<compile_context>
chip_gen: v5e
topology: v5e:2x2
jax: 0.10.0
libtpu: 0.0.40
codegen_flags: <defaults>
</compile_context>

<pallas_src>
import functools

import numpy as np

import jax
import jax.numpy as jnp
from jax.experimental import pallas as pl
from jax.experimental.pallas import tpu as pltpu


_LRELU_SLOPE = 0.2


def _lrelu(x):
    return jnp.where(x > 0, x, _LRELU_SLOPE * x)


def _pool_matrix(rows, cols):
    """(rows//2 * cols//2, rows*cols) matrix performing 2x2/stride-2 average
    pooling on a row-major flattened (rows, cols) spatial block."""
    r2, c2 = rows // 2, cols // 2
    m = np.zeros((r2 * c2, rows * cols), np.float32)
    for h in range(r2):
        for w in range(c2):
            o = h * c2 + w
            for dh in (0, 1):
                for dw in (0, 1):
                    m[o, (2 * h + dh) * cols + (2 * w + dw)] = 0.25
    return jnp.asarray(m)


def _full_spec(shape):
    return pl.BlockSpec(shape, lambda n, _nd=len(shape): (0,) * _nd)


# ----------------------------------------------------------------------------
# Fused kernel: [fromRGB] -> conv3x3 -> conv3x3 -> [2x2 avgpool] -> [fade lerp]
# ----------------------------------------------------------------------------
def fused_double_block(x, H, W, *, rgb, block, pool, xd=None, alpha=1.0):
    """x: (N, H*W, Cx) activations; returns (N, P_out, C2)."""
    N, P, Cx = x.shape
    assert P == H * W
    C1 = block["conv1"]["w"].shape[1]
    C2 = block["conv2"]["w"].shape[1]
    fuse_rgb = rgb is not None
    do_lerp = xd is not None
    if not fuse_rgb:
        assert Cx == C1
    if do_lerp:
        assert pool

    # Row-strip size (keeps the im2col operand / accumulator small).
    RS = min(H, max(2, 64 // W))
    assert H % RS == 0 and RS % 2 == 0
    NS = H // RS
    RSh, Wh = RS // 2, W // 2
    P_out = (H // 2) * (W // 2) if pool else P
    pmat = _pool_matrix(RS, W) if pool else None

    # Padded scratch layout: leading (row) halo of 1, column halo of 8 on the
    # left / 1 on the right so the interior store starts at a sublane-aligned
    # offset (8).  Padded column p maps to buffer column p + 7.
    PADW = W + 9
    COL0 = 8

    def kernel(*refs):
        it = iter(refs)
        x_ref = next(it)
        if fuse_rgb:
            w0_ref, b0_ref = next(it), next(it)
        w1_ref, b1_ref = next(it), next(it)
        w2_ref, b2_ref = next(it), next(it)
        pmat_ref = next(it) if pool else None
        xd_ref = next(it) if do_lerp else None
        o_ref = next(it)
        pad1, pad2 = next(it), next(it)

        # Zero halos (cheap full memset; interiors are rewritten below).
        pad1[...] = jnp.zeros(pad1.shape, jnp.float32)
        pad2[...] = jnp.zeros(pad2.shape, jnp.float32)

        # ---- stage 0: fromRGB 1x1 conv on the VPU (scale folded into w0) ----
        if fuse_rgb:
            xin = x_ref[0]                                  # (P, nc)
            w0 = w0_ref[...]                                # (nc, C1)
            a0 = xin[:, 0:1] * w0[0:1, :]
            for c in range(1, Cx):
                a0 = a0 + xin[:, c:c + 1] * w0[c:c + 1, :]
            a0 = _lrelu(a0 + b0_ref[...])                   # (P, C1)
        else:
            a0 = x_ref[0]                                   # (P, C1)

        pad1[1:H + 1, COL0:COL0 + W, :] = a0.reshape(H, W, C1)

        def conv3x3_strip(pad_ref, w, b, s):
            r0 = s * RS
            cols = []
            for kh in range(3):
                for kw in range(3):
                    cols.append(
                        pad_ref[r0 + kh:r0 + kh + RS,
                                COL0 - 1 + kw:COL0 - 1 + kw + W, :]
                        .reshape(RS * W, C1))
            im = jnp.concatenate(cols, axis=1).astype(jnp.bfloat16)  # (RS*W, 9*C1)
            z = jnp.dot(im, w, preferred_element_type=jnp.float32) + b
            return _lrelu(z)

        # ---- conv1 (3x3, C1 -> C1): im2col matmul per strip, K = 9*C1 ----
        w1, b1 = w1_ref[...], b1_ref[...]
        for s in range(NS):
            z = conv3x3_strip(pad1, w1, b1, s)              # (RS*W, C1)
            r0 = s * RS
            pad2[1 + r0:1 + r0 + RS, COL0:COL0 + W, :] = z.reshape(RS, W, C1)

        # ---- conv2 (3x3, C1 -> C2) + optional avg-pool + fade-lerp epilogue ----
        w2, b2 = w2_ref[...], b2_ref[...]
        for s in range(NS):
            z = conv3x3_strip(pad2, w2, b2, s)              # (RS*W, C2)
            r0 = s * RS
            if pool:
                zp = jnp.dot(pmat_ref[...], z, preferred_element_type=jnp.float32)
                lo = s * RSh * Wh
                if do_lerp:
                    zp = (1.0 - alpha) * xd_ref[0, lo:lo + RSh * Wh, :] + alpha * zp
                o_ref[0, lo:lo + RSh * Wh, :] = zp
            else:
                o_ref[0, r0 * W:(r0 + RS) * W, :] = z

    in_arrays = [x]
    in_specs = [pl.BlockSpec((1, P, Cx), lambda n: (n, 0, 0))]
    if fuse_rgb:
        in_arrays += [rgb["w"], rgb["b"]]
        in_specs += [_full_spec(rgb["w"].shape), _full_spec(rgb["b"].shape)]
    in_arrays += [block["conv1"]["w"], block["conv1"]["b"],
                  block["conv2"]["w"], block["conv2"]["b"]]
    in_specs += [_full_spec(block["conv1"]["w"].shape),
                 _full_spec(block["conv1"]["b"].shape),
                 _full_spec(block["conv2"]["w"].shape),
                 _full_spec(block["conv2"]["b"].shape)]
    if pool:
        in_arrays.append(pmat)
        in_specs.append(_full_spec(pmat.shape))
    if do_lerp:
        in_arrays.append(xd)
        in_specs.append(pl.BlockSpec((1, P_out, C2), lambda n: (n, 0, 0)))

    return pl.pallas_call(
        kernel,
        out_shape=jax.ShapeDtypeStruct((N, P_out, C2), jnp.float32),
        grid=(N,),
        in_specs=in_specs,
        out_specs=pl.BlockSpec((1, P_out, C2), lambda n: (n, 0, 0)),
        scratch_shapes=[pltpu.VMEM((H + 2, PADW, C1), jnp.float32),
                        pltpu.VMEM((H + 2, PADW, C1), jnp.float32)],
        compiler_params=pltpu.CompilerParams(dimension_semantics=("parallel",)),
    )(*in_arrays)


# ----------------------------------------------------------------------------
# Fade skip-branch: avgpool(RGB) -> fromRGB (1x1), fused in one kernel.
# (1x1 conv and 2x2 average pooling commute exactly, so we run the cheap VPU
#  1x1 first and pool the C-channel result with one small matmul.)
# ----------------------------------------------------------------------------
def pooled_from_rgb(x, H, W, rgb):
    N, P, nc = x.shape
    C = rgb["w"].shape[1]
    P2 = (H // 2) * (W // 2)
    pmat = _pool_matrix(H, W)

    def kernel(x_ref, pmat_ref, w_ref, b_ref, o_ref):
        xin = x_ref[0]                                      # (P, nc)
        w = w_ref[...]                                      # (nc, C)
        y = xin[:, 0:1] * w[0:1, :]
        for c in range(1, nc):
            y = y + xin[:, c:c + 1] * w[c:c + 1, :]
        yp = jnp.dot(pmat_ref[...], y, preferred_element_type=jnp.float32)  # (P2, C)
        o_ref[0] = _lrelu(yp + b_ref[...])

    return pl.pallas_call(
        kernel,
        out_shape=jax.ShapeDtypeStruct((N, P2, C), jnp.float32),
        grid=(N,),
        in_specs=[pl.BlockSpec((1, P, nc), lambda n: (n, 0, 0)),
                  _full_spec(pmat.shape),
                  _full_spec(rgb["w"].shape),
                  _full_spec(rgb["b"].shape)],
        out_specs=pl.BlockSpec((1, P2, C), lambda n: (n, 0, 0)),
        compiler_params=pltpu.CompilerParams(dimension_semantics=("parallel",)),
    )(x, pmat, rgb["w"], rgb["b"])


# ----------------------------------------------------------------------------
# Head: minibatch-stddev + 8x8 valid conv + LeakyReLU + Linear(hidden -> 1)
# ----------------------------------------------------------------------------
def head(x, p_conv, p_lin):
    N, P, C = x.shape
    x2 = x.reshape(N, P * C)   # contiguous row-major: free layout change in XLA

    def kernel(x_ref, wm_ref, ws_ref, b_ref, wl_ref, bl_ref, o_ref):
        xv = x_ref[...]                                     # (N, P*C) f32
        mu = jnp.mean(xv, axis=0, keepdims=True)
        var = jnp.mean((xv - mu) ** 2, axis=0, keepdims=True)
        mean_std = jnp.mean(jnp.sqrt(var + 1e-8))           # scalar, f32
        z = jnp.dot(xv.astype(jnp.bfloat16), wm_ref[...],
                    preferred_element_type=jnp.float32)     # (N, hidden)
        z = _lrelu(z + mean_std * ws_ref[...] + b_ref[...])
        o_ref[...] = jnp.dot(z, wl_ref[...],
                             preferred_element_type=jnp.float32) + bl_ref[...]

    vmem = pl.BlockSpec(memory_space=pltpu.MemorySpace.VMEM)
    return pl.pallas_call(
        kernel,
        out_shape=jax.ShapeDtypeStruct((N, 1), jnp.float32),
        in_specs=[vmem] * 6,
        out_specs=vmem,
    )(x2, p_conv["wm"], p_conv["ws_sum"], p_conv["b"], p_lin["w"], p_lin["b"])


# ----------------------------------------------------------------------------
# Parameters (equalized-LR scale folded into weights; conv weights stored as
# bf16 in im2col layout (9*Cin, Cout); biases / 1x1 weights stay f32).
# ----------------------------------------------------------------------------
def init_params(key, hidden=32, nc=3):
    hc = hidden
    in_out = [hc, hc, hc // 2, hc // 4, hc // 8]
    blk_in = [hc, hc, hc // 2, hc // 4, hc // 8]
    blk_out = [hc, hc, hc, hc // 2, hc // 4]

    keys = iter(jax.random.split(key, 64))

    def normal(shape):
        return jax.random.normal(next(keys), shape, jnp.float32)

    def conv3x3_params(cin, cout):
        scale = (1.0 / (cin * 9)) ** 0.5
        w = normal((3, 3, cin, cout)) * scale               # fold LREquilizer scale
        return {"w": w.reshape(9 * cin, cout).astype(jnp.bfloat16),
                "b": jnp.zeros((1, cout), jnp.float32)}

    params = {"in_blocks": [], "blocks": []}
    for i in range(5):
        co = in_out[i]
        scale = (1.0 / (nc * 1 * 1)) ** 0.5
        params["in_blocks"].append({
            "w": normal((nc, co)) * scale,                  # (Cin, Cout), f32 (VPU path)
            "b": jnp.zeros((1, co), jnp.float32),
        })
    for i in range(5):
        params["blocks"].append({
            "conv1": conv3x3_params(blk_in[i], blk_in[i]),
            "conv2": conv3x3_params(blk_in[i], blk_out[i]),
        })

    # output_conv: EQConvBlock(hidden+1 -> hidden, kernel=8, padding=0)
    scale = (1.0 / ((hc + 1) * 8 * 8)) ** 0.5
    w_oc = normal((8, 8, hc + 1, hc)) * scale               # HWIO, scale folded
    params["output_conv"] = {
        "wm": w_oc[:, :, :hc, :].reshape(64 * hc, hc).astype(jnp.bfloat16),
        "ws_sum": jnp.sum(w_oc[:, :, hc, :], axis=(0, 1)).reshape(1, hc),
        "b": jnp.zeros((1, hc), jnp.float32),
    }
    # output_layer: Linear(hidden, 1); bias kept at zero (deterministic choice)
    params["output_layer"] = {"w": normal((hc, 1)),
                              "b": jnp.zeros((1, 1), jnp.float32)}
    return params


# ----------------------------------------------------------------------------
# Discriminator.forward
# ----------------------------------------------------------------------------
def discriminator_forward(params, x_nchw, level, alpha=1.0):
    # PyTorch reference is NCHW; kernels use channels-last flattened (N, H*W, C).
    N, _, H, W = x_nchw.shape
    x = jnp.transpose(x_nchw, (0, 2, 3, 1)).reshape(N, H * W, -1).astype(jnp.float32)

    pending_rgb = None
    if level > 0 and alpha < 1:
        xd = pooled_from_rgb(x, H, W, params["in_blocks"][level - 1])
        x = fused_double_block(x, H, W,
                               rgb=params["in_blocks"][level],
                               block=params["blocks"][level],
                               pool=True, xd=xd, alpha=float(alpha))
        H //= 2
        W //= 2
        level -= 1
    else:
        pending_rgb = params["in_blocks"][level]

    for i in range(level, -1, -1):
        pool = i > 0
        x = fused_double_block(x, H, W, rgb=pending_rgb,
                               block=params["blocks"][i], pool=pool)
        pending_rgb = None
        if pool:
            H //= 2
            W //= 2

    return head(x, params["output_conv"], params["output_layer"])  # (N, 1)


if __name__ == "__main__":
    key = jax.random.PRNGKey(0)
    pkey, xkey = jax.random.split(key)

    hidden, nc = 32, 3          # small stand-in for hidden_channels=128
    level = 1                   # input resolution = 8 * 2**level = 16
    x = jax.random.normal(xkey, (2, nc, 16, 16), jnp.float32)   # NCHW like PyTorch

    params = init_params(pkey, hidden=hidden, nc=nc)

    fwd = jax.jit(discriminator_forward, static_argnames=("level", "alpha"))

    out = jax.block_until_ready(fwd(params, x, level=level, alpha=1.0))
    assert out.shape == (2, 1) and out.dtype == jnp.float32

    # Exercise the progressive-growing fade path (fused pool + fromRGB + lerp).
    out_fade = jax.block_until_ready(fwd(params, x, level=level, alpha=0.5))
    assert out_fade.shape == (2, 1)

    print("KERNEL_OK")
</pallas_src>

<mosaic_0001>
module attributes {stable_mosaic.version = 11 : i64} {
  func.func @kernel(%arg0: i32, %arg1: memref<1x64x32xf32, #tpu.memory_space<vmem>>, %arg2: memref<288x32xbf16, #tpu.memory_space<vmem>>, %arg3: memref<1x32xf32, #tpu.memory_space<vmem>>, %arg4: memref<288x32xbf16, #tpu.memory_space<vmem>>, %arg5: memref<1x32xf32, #tpu.memory_space<vmem>>, %arg6: memref<1x64x32xf32, #tpu.memory_space<vmem>>, %arg7: memref<10x17x32xf32, #tpu.memory_space<vmem>>, %arg8: memref<10x17x32xf32, #tpu.memory_space<vmem>>) attributes {dimension_semantics = [#tpu.dimension_semantics<parallel>], iteration_bounds = array<i64: 2>, scalar_prefetch = 0 : i64, scratch_operands = 2 : i64, tpu.core_type = #tpu.core_type<tc>, window_params = [{transform_indices = @transform_0, window_bounds = array<i64: 1, 64, 32>}, {pipeline_mode = #tpu.pipeline_mode<synchronous>, transform_indices = @transform_1, window_bounds = array<i64: 288, 32>}, {pipeline_mode = #tpu.pipeline_mode<synchronous>, transform_indices = @transform_2, window_bounds = array<i64: 1, 32>}, {pipeline_mode = #tpu.pipeline_mode<synchronous>, transform_indices = @transform_3, window_bounds = array<i64: 288, 32>}, {pipeline_mode = #tpu.pipeline_mode<synchronous>, transform_indices = @transform_4, window_bounds = array<i64: 1, 32>}, {transform_indices = @transform_5, window_bounds = array<i64: 1, 64, 32>}]} {
    %cst = arith.constant 0.000000e+00 : f32
    %0 = vector.broadcast %cst : f32 to vector<10x17x32xf32>
    %c0 = arith.constant 0 : index
    %c0_0 = arith.constant 0 : index
    %c0_1 = arith.constant 0 : index
    %1 = vector.load %arg7[%c0, %c0_0, %c0_1] : memref<10x17x32xf32, #tpu.memory_space<vmem>>, vector<10x17x32xf32>
    tpu.vector_store %arg7[%c0, %c0_0, %c0_1], %0 {strides = array<i32>} : memref<10x17x32xf32, #tpu.memory_space<vmem>>, vector<10x17x32xf32>,
    %cst_2 = arith.constant 0.000000e+00 : f32
    %2 = vector.broadcast %cst_2 : f32 to vector<10x17x32xf32>
    %c0_3 = arith.constant 0 : index
    %c0_4 = arith.constant 0 : index
    %c0_5 = arith.constant 0 : index
    %3 = vector.load %arg8[%c0_3, %c0_4, %c0_5] : memref<10x17x32xf32, #tpu.memory_space<vmem>>, vector<10x17x32xf32>
    tpu.vector_store %arg8[%c0_3, %c0_4, %c0_5], %2 {strides = array<i32>} : memref<10x17x32xf32, #tpu.memory_space<vmem>>, vector<10x17x32xf32>,
    %c0_6 = arith.constant 0 : index
    %c0_7 = arith.constant 0 : index
    %c0_8 = arith.constant 0 : index
    %4 = vector.load %arg1[%c0_6, %c0_7, %c0_8] : memref<1x64x32xf32, #tpu.memory_space<vmem>>, vector<1x64x32xf32>
    %5 = vector.shape_cast %4 : vector<1x64x32xf32> to vector<64x32xf32>
    %6 = vector.shape_cast %5 : vector<64x32xf32> to vector<8x8x32xf32>
    %c1 = arith.constant 1 : index
    %c8 = arith.constant 8 : index
    %c0_9 = arith.constant 0 : index
    %7 = vector.load %arg7[%c1, %c8, %c0_9] : memref<10x17x32xf32, #tpu.memory_space<vmem>>, vector<8x8x32xf32>
    tpu.vector_store %arg7[%c1, %c8, %c0_9], %6 {strides = array<i32>} : memref<10x17x32xf32, #tpu.memory_space<vmem>>, vector<8x8x32xf32>,
    %c0_10 = arith.constant 0 : index
    %c0_11 = arith.constant 0 : index
    %8 = vector.load %arg2[%c0_10, %c0_11] : memref<288x32xbf16, #tpu.memory_space<vmem>>, vector<288x32xbf16>
    %c0_12 = arith.constant 0 : index
    %c0_13 = arith.constant 0 : index
    %9 = vector.load %arg3[%c0_12, %c0_13] : memref<1x32xf32, #tpu.memory_space<vmem>>, vector<1x32xf32>
    %c0_14 = arith.constant 0 : index
    %c7 = arith.constant 7 : index
    %c0_15 = arith.constant 0 : index
    %10 = vector.load %arg7[%c0_14, %c7, %c0_15] : memref<10x17x32xf32, #tpu.memory_space<vmem>>, vector<8x8x32xf32>
    %11 = vector.shape_cast %10 : vector<8x8x32xf32> to vector<64x32xf32>
    %c0_16 = arith.constant 0 : index
    %c8_17 = arith.constant 8 : index
    %c0_18 = arith.constant 0 : index
    %12 = vector.load %arg7[%c0_16, %c8_17, %c0_18] : memref<10x17x32xf32, #tpu.memory_space<vmem>>, vector<8x8x32xf32>
    %13 = vector.shape_cast %12 : vector<8x8x32xf32> to vector<64x32xf32>
    %c0_19 = arith.constant 0 : index
    %c9 = arith.constant 9 : index
    %c0_20 = arith.constant 0 : index
    %14 = vector.load %arg7[%c0_19, %c9, %c0_20] : memref<10x17x32xf32, #tpu.memory_space<vmem>>, vector<8x8x32xf32>
    %15 = vector.shape_cast %14 : vector<8x8x32xf32> to vector<64x32xf32>
    %c1_21 = arith.constant 1 : index
    %c7_22 = arith.constant 7 : index
    %c0_23 = arith.constant 0 : index
    %16 = vector.load %arg7[%c1_21, %c7_22, %c0_23] : memref<10x17x32xf32, #tpu.memory_space<vmem>>, vector<8x8x32xf32>
    %17 = vector.shape_cast %16 : vector<8x8x32xf32> to vector<64x32xf32>
    %c1_24 = arith.constant 1 : index
    %c8_25 = arith.constant 8 : index
    %c0_26 = arith.constant 0 : index
    %18 = vector.load %arg7[%c1_24, %c8_25, %c0_26] : memref<10x17x32xf32, #tpu.memory_space<vmem>>, vector<8x8x32xf32>
    %19 = vector.shape_cast %18 : vector<8x8x32xf32> to vector<64x32xf32>
    %c1_27 = arith.constant 1 : index
    %c9_28 = arith.constant 9 : index
    %c0_29 = arith.constant 0 : index
    %20 = vector.load %arg7[%c1_27, %c9_28, %c0_29] : memref<10x17x32xf32, #tpu.memory_space<vmem>>, vector<8x8x32xf32>
    %21 = vector.shape_cast %20 : vector<8x8x32xf32> to vector<64x32xf32>
    %c2 = arith.constant 2 : index
    %c7_30 = arith.constant 7 : index
    %c0_31 = arith.constant 0 : index
    %22 = vector.load %arg7[%c2, %c7_30, %c0_31] : memref<10x17x32xf32, #tpu.memory_space<vmem>>, vector<8x8x32xf32>
    %23 = vector.shape_cast %22 : vector<8x8x32xf32> to vector<64x32xf32>
    %c2_32 = arith.constant 2 : index
    %c8_33 = arith.constant 8 : index
    %c0_34 = arith.constant 0 : index
    %24 = vector.load %arg7[%c2_32, %c8_33, %c0_34] : memref<10x17x32xf32, #tpu.memory_space<vmem>>, vector<8x8x32xf32>
    %25 = vector.shape_cast %24 : vector<8x8x32xf32> to vector<64x32xf32>
    %c2_35 = arith.constant 2 : index
    %c9_36 = arith.constant 9 : index
    %c0_37 = arith.constant 0 : index
    %26 = vector.load %arg7[%c2_35, %c9_36, %c0_37] : memref<10x17x32xf32, #tpu.memory_space<vmem>>, vector<8x8x32xf32>
    %27 = vector.shape_cast %26 : vector<8x8x32xf32> to vector<64x32xf32>
    %28 = tpu.concatenate %11, %13, %15, %17, %19, %21, %23, %25, %27 in 1 : vector<64x32xf32>, vector<64x32xf32>, vector<64x32xf32>, vector<64x32xf32>, vector<64x32xf32>, vector<64x32xf32>, vector<64x32xf32>, vector<64x32xf32>, vector<64x32xf32> -> vector<64x288xf32>
    %29 = arith.truncf %28 : vector<64x288xf32> to vector<64x288xbf16>
    %cst_38 = arith.constant dense<0.000000e+00> : vector<64x32xf32>
    %30 = tpu.matmul %29, %8, %cst_38 {dimension_numbers = #tpu.dot_dimension_numbers<[1], [0], [0], [1], [0, 0, 1, 1], [], []>} : vector<64x288xbf16>, vector<288x32xbf16>, vector<64x32xf32> -> vector<64x32xf32>
    %31 = vector.broadcast %9 : vector<1x32xf32> to vector<64x32xf32>
    %32 = arith.addf %30, %31 : vector<64x32xf32>
    %cst_39 = arith.constant 0.000000e+00 : f32
    %33 = vector.broadcast %cst_39 : f32 to vector<64x32xf32>
    %34 = arith.cmpf ogt, %32, %33 : vector<64x32xf32>
    %cst_40 = arith.constant 2.000000e-01 : f32
    %35 = vector.broadcast %cst_40 : f32 to vector<64x32xf32>
    %36 = arith.mulf %35, %32 : vector<64x32xf32>
    %37 = arith.select %34, %32, %36 : vector<64x32xi1>, vector<64x32xf32>
    %38 = vector.shape_cast %37 : vector<64x32xf32> to vector<8x8x32xf32>
    %c1_41 = arith.constant 1 : index
    %c8_42 = arith.constant 8 : index
    %c0_43 = arith.constant 0 : index
    %39 = vector.load %arg8[%c1_41, %c8_42, %c0_43] : memref<10x17x32xf32, #tpu.memory_space<vmem>>, vector<8x8x32xf32>
    tpu.vector_store %arg8[%c1_41, %c8_42, %c0_43], %38 {strides = array<i32>} : memref<10x17x32xf32, #tpu.memory_space<vmem>>, vector<8x8x32xf32>,
    %c0_44 = arith.constant 0 : index
    %c0_45 = arith.constant 0 : index
    %40 = vector.load %arg4[%c0_44, %c0_45] : memref<288x32xbf16, #tpu.memory_space<vmem>>, vector<288x32xbf16>
    %c0_46 = arith.constant 0 : index
    %c0_47 = arith.constant 0 : index
    %41 = vector.load %arg5[%c0_46, %c0_47] : memref<1x32xf32, #tpu.memory_space<vmem>>, vector<1x32xf32>
    %c0_48 = arith.constant 0 : index
    %c7_49 = arith.constant 7 : index
    %c0_50 = arith.constant 0 : index
    %42 = vector.load %arg8[%c0_48, %c7_49, %c0_50] : memref<10x17x32xf32, #tpu.memory_space<vmem>>, vector<8x8x32xf32>
    %43 = vector.shape_cast %42 : vector<8x8x32xf32> to vector<64x32xf32>
    %c0_51 = arith.constant 0 : index
    %c8_52 = arith.constant 8 : index
    %c0_53 = arith.constant 0 : index
    %44 = vector.load %arg8[%c0_51, %c8_52, %c0_53] : memref<10x17x32xf32, #tpu.memory_space<vmem>>, vector<8x8x32xf32>
    %45 = vector.shape_cast %44 : vector<8x8x32xf32> to vector<64x32xf32>
    %c0_54 = arith.constant 0 : index
    %c9_55 = arith.constant 9 : index
    %c0_56 = arith.constant 0 : index
    %46 = vector.load %arg8[%c0_54, %c9_55, %c0_56] : memref<10x17x32xf32, #tpu.memory_space<vmem>>, vector<8x8x32xf32>
    %47 = vector.shape_cast %46 : vector<8x8x32xf32> to vector<64x32xf32>
    %c1_57 = arith.constant 1 : index
    %c7_58 = arith.constant 7 : index
    %c0_59 = arith.constant 0 : index
    %48 = vector.load %arg8[%c1_57, %c7_58, %c0_59] : memref<10x17x32xf32, #tpu.memory_space<vmem>>, vector<8x8x32xf32>
    %49 = vector.shape_cast %48 : vector<8x8x32xf32> to vector<64x32xf32>
    %c1_60 = arith.constant 1 : index
    %c8_61 = arith.constant 8 : index
    %c0_62 = arith.constant 0 : index
    %50 = vector.load %arg8[%c1_60, %c8_61, %c0_62] : memref<10x17x32xf32, #tpu.memory_space<vmem>>, vector<8x8x32xf32>
    %51 = vector.shape_cast %50 : vector<8x8x32xf32> to vector<64x32xf32>
    %c1_63 = arith.constant 1 : index
    %c9_64 = arith.constant 9 : index
    %c0_65 = arith.constant 0 : index
    %52 = vector.load %arg8[%c1_63, %c9_64, %c0_65] : memref<10x17x32xf32, #tpu.memory_space<vmem>>, vector<8x8x32xf32>
    %53 = vector.shape_cast %52 : vector<8x8x32xf32> to vector<64x32xf32>
    %c2_66 = arith.constant 2 : index
    %c7_67 = arith.constant 7 : index
    %c0_68 = arith.constant 0 : index
    %54 = vector.load %arg8[%c2_66, %c7_67, %c0_68] : memref<10x17x32xf32, #tpu.memory_space<vmem>>, vector<8x8x32xf32>
    %55 = vector.shape_cast %54 : vector<8x8x32xf32> to vector<64x32xf32>
    %c2_69 = arith.constant 2 : index
    %c8_70 = arith.constant 8 : index
    %c0_71 = arith.constant 0 : index
    %56 = vector.load %arg8[%c2_69, %c8_70, %c0_71] : memref<10x17x32xf32, #tpu.memory_space<vmem>>, vector<8x8x32xf32>
    %57 = vector.shape_cast %56 : vector<8x8x32xf32> to vector<64x32xf32>
    %c2_72 = arith.constant 2 : index
    %c9_73 = arith.constant 9 : index
    %c0_74 = arith.constant 0 : index
    %58 = vector.load %arg8[%c2_72, %c9_73, %c0_74] : memref<10x17x32xf32, #tpu.memory_space<vmem>>, vector<8x8x32xf32>
    %59 = vector.shape_cast %58 : vector<8x8x32xf32> to vector<64x32xf32>
    %60 = tpu.concatenate %43, %45, %47, %49, %51, %53, %55, %57, %59 in 1 : vector<64x32xf32>, vector<64x32xf32>, vector<64x32xf32>, vector<64x32xf32>, vector<64x32xf32>, vector<64x32xf32>, vector<64x32xf32>, vector<64x32xf32>, vector<64x32xf32> -> vector<64x288xf32>
    %61 = arith.truncf %60 : vector<64x288xf32> to vector<64x288xbf16>
    %cst_75 = arith.constant dense<0.000000e+00> : vector<64x32xf32>
    %62 = tpu.matmul %61, %40, %cst_75 {dimension_numbers = #tpu.dot_dimension_numbers<[1], [0], [0], [1], [0, 0, 1, 1], [], []>} : vector<64x288xbf16>, vector<288x32xbf16>, vector<64x32xf32> -> vector<64x32xf32>
    %63 = vector.broadcast %41 : vector<1x32xf32> to vector<64x32xf32>
    %64 = arith.addf %62, %63 : vector<64x32xf32>
    %cst_76 = arith.constant 0.000000e+00 : f32
    %65 = vector.broadcast %cst_76 : f32 to vector<64x32xf32>
    %66 = arith.cmpf ogt, %64, %65 : vector<64x32xf32>
    %cst_77 = arith.constant 2.000000e-01 : f32
    %67 = vector.broadcast %cst_77 : f32 to vector<64x32xf32>
    %68 = arith.mulf %67, %64 : vector<64x32xf32>
    %69 = arith.select %66, %64, %68 : vector<64x32xi1>, vector<64x32xf32>
    %c0_78 = arith.constant 0 : index
    %c0_79 = arith.constant 0 : index
    %c0_80 = arith.constant 0 : index
    %70 = vector.load %arg6[%c0_78, %c0_79, %c0_80] : memref<1x64x32xf32, #tpu.memory_space<vmem>>, vector<1x64x32xf32>
    %71 = vector.shape_cast %70 : vector<1x64x32xf32> to vector<64x32xf32>
    %72 = vector.shape_cast %69 : vector<64x32xf32> to vector<1x64x32xf32>
    tpu.vector_store %arg6[%c0_78, %c0_79, %c0_80], %72 {strides = array<i32>} : memref<1x64x32xf32, #tpu.memory_space<vmem>>, vector<1x64x32xf32>,
    return
  }
  func.func @transform_0(%arg0: i32) -> (i32, i32, i32) {
    %c0_i32 = arith.constant 0 : i32
    %c0_i32_0 = arith.constant 0 : i32
    %c0_i32_1 = arith.constant 0 : i32
    return %arg0, %c0_i32, %c0_i32_0 : i32, i32, i32
  }
  func.func @transform_1(%arg0: i32) -> (i32, i32) {
    %c0_i32 = arith.constant 0 : i32
    %c0_i32_0 = arith.constant 0 : i32
    %c0_i32_1 = arith.constant 0 : i32
    return %c0_i32, %c0_i32_0 : i32, i32
  }
  func.func @transform_2(%arg0: i32) -> (i32, i32) {
    %c0_i32 = arith.constant 0 : i32
    %c0_i32_0 = arith.constant 0 : i32
    %c0_i32_1 = arith.constant 0 : i32
    return %c0_i32, %c0_i32_0 : i32, i32
  }
  func.func @transform_3(%arg0: i32) -> (i32, i32) {
    %c0_i32 = arith.constant 0 : i32
    %c0_i32_0 = arith.constant 0 : i32
    %c0_i32_1 = arith.constant 0 : i32
    return %c0_i32, %c0_i32_0 : i32, i32
  }
  func.func @transform_4(%arg0: i32) -> (i32, i32) {
    %c0_i32 = arith.constant 0 : i32
    %c0_i32_0 = arith.constant 0 : i32
    %c0_i32_1 = arith.constant 0 : i32
    return %c0_i32, %c0_i32_0 : i32, i32
  }
  func.func @transform_5(%arg0: i32) -> (i32, i32, i32) {
    %c0_i32 = arith.constant 0 : i32
    %c0_i32_0 = arith.constant 0 : i32
    %c0_i32_1 = arith.constant 0 : i32
    return %arg0, %c0_i32, %c0_i32_0 : i32, i32, i32
  }
}

module attributes {stable_mosaic.version = 11 : i64} {
  func.func @kernel(%arg0: i32, %arg1: memref<1x256x3xf32, #tpu.memory_space<vmem>>, %arg2: memref<3x32xf32, #tpu.memory_space<vmem>>, %arg3: memref<1x32xf32, #tpu.memory_space<vmem>>, %arg4: memref<288x32xbf16, #tpu.memory_space<vmem>>, %arg5: memref<1x32xf32, #tpu.memory_space<vmem>>, %arg6: memref<288x32xbf16, #tpu.memory_space<vmem>>, %arg7: memref<1x32xf32, #tpu.memory_space<vmem>>, %arg8: memref<16x64xf32, #tpu.memory_space<vmem>>, %arg9: memref<1x64x32xf32, #tpu.memory_space<vmem>>, %arg10: memref<18x25x32xf32, #tpu.memory_space<vmem>>, %arg11: memref<18x25x32xf32, #tpu.memory_space<vmem>>) attributes {dimension_semantics = [#tpu.dimension_semantics<parallel>], iteration_bounds = array<i64: 2>, scalar_prefetch = 0 : i64, scratch_operands = 2 : i64, tpu.core_type = #tpu.core_type<tc>, window_params = [{transform_indices = @transform_0, window_bounds = array<i64: 1, 256, 3>}, {pipeline_mode = #tpu.pipeline_mode<synchronous>, transform_indices = @transform_1, window_bounds = array<i64: 3, 32>}, {pipeline_mode = #tpu.pipeline_mode<synchronous>, transform_indices = @transform_2, window_bounds = array<i64: 1, 32>}, {pipeline_mode = #tpu.pipeline_mode<synchronous>, transform_indices = @transform_3, window_bounds = array<i64: 288, 32>}, {pipeline_mode = #tpu.pipeline_mode<synchronous>, transform_indices = @transform_4, window_bounds = array<i64: 1, 32>}, {pipeline_mode = #tpu.pipeline_mode<synchronous>, transform_indices = @transform_5, window_bounds = array<i64: 288, 32>}, {pipeline_mode = #tpu.pipeline_mode<synchronous>, transform_indices = @transform_6, window_bounds = array<i64: 1, 32>}, {pipeline_mode = #tpu.pipeline_mode<synchronous>, transform_indices = @transform_7, window_bounds = array<i64: 16, 64>}, {transform_indices = @transform_8, window_bounds = array<i64: 1, 64, 32>}]} {
    %cst = arith.constant 0.000000e+00 : f32
    %0 = vector.broadcast %cst : f32 to vector<18x25x32xf32>
    %c0 = arith.constant 0 : index
    %c0_0 = arith.constant 0 : index
    %c0_1 = arith.constant 0 : index
    %1 = vector.load %arg10[%c0, %c0_0, %c0_1] : memref<18x25x32xf32, #tpu.memory_space<vmem>>, vector<18x25x32xf32>
    tpu.vector_store %arg10[%c0, %c0_0, %c0_1], %0 {strides = array<i32>} : memref<18x25x32xf32, #tpu.memory_space<vmem>>, vector<18x25x32xf32>,
    %cst_2 = arith.constant 0.000000e+00 : f32
    %2 = vector.broadcast %cst_2 : f32 to vector<18x25x32xf32>
    %c0_3 = arith.constant 0 : index
    %c0_4 = arith.constant 0 : index
    %c0_5 = arith.constant 0 : index
    %3 = vector.load %arg11[%c0_3, %c0_4, %c0_5] : memref<18x25x32xf32, #tpu.memory_space<vmem>>, vector<18x25x32xf32>
    tpu.vector_store %arg11[%c0_3, %c0_4, %c0_5], %2 {strides = array<i32>} : memref<18x25x32xf32, #tpu.memory_space<vmem>>, vector<18x25x32xf32>,
    %c0_6 = arith.constant 0 : index
    %c0_7 = arith.constant 0 : index
    %c0_8 = arith.constant 0 : index
    %4 = vector.load %arg1[%c0_6, %c0_7, %c0_8] : memref<1x256x3xf32, #tpu.memory_space<vmem>>, vector<1x256x3xf32>
    %5 = vector.shape_cast %4 : vector<1x256x3xf32> to vector<256x3xf32>
    %c0_9 = arith.constant 0 : index
    %c0_10 = arith.constant 0 : index
    %6 = vector.load %arg2[%c0_9, %c0_10] : memref<3x32xf32, #tpu.memory_space<vmem>>, vector<3x32xf32>
    %7 = vector.extract_strided_slice %5 {offsets = [0, 0], sizes = [256, 1], strides = [1, 1]} : vector<256x3xf32> to vector<256x1xf32>
    %8 = vector.extract_strided_slice %6 {offsets = [0, 0], sizes = [1, 32], strides = [1, 1]} : vector<3x32xf32> to vector<1x32xf32>
    %9 = vector.broadcast %7 : vector<256x1xf32> to vector<256x32xf32>
    %10 = vector.broadcast %8 : vector<1x32xf32> to vector<256x32xf32>
    %11 = arith.mulf %9, %10 : vector<256x32xf32>
    %12 = vector.extract_strided_slice %5 {offsets = [0, 1], sizes = [256, 1], strides = [1, 1]} : vector<256x3xf32> to vector<256x1xf32>
    %13 = vector.extract_strided_slice %6 {offsets = [1, 0], sizes = [1, 32], strides = [1, 1]} : vector<3x32xf32> to vector<1x32xf32>
    %14 = vector.broadcast %12 : vector<256x1xf32> to vector<256x32xf32>
    %15 = vector.broadcast %13 : vector<1x32xf32> to vector<256x32xf32>
    %16 = arith.mulf %14, %15 : vector<256x32xf32>
    %17 = arith.addf %11, %16 : vector<256x32xf32>
    %18 = vector.extract_strided_slice %5 {offsets = [0, 2], sizes = [256, 1], strides = [1, 1]} : vector<256x3xf32> to vector<256x1xf32>
    %19 = vector.extract_strided_slice %6 {offsets = [2, 0], sizes = [1, 32], strides = [1, 1]} : vector<3x32xf32> to vector<1x32xf32>
    %20 = vector.broadcast %18 : vector<256x1xf32> to vector<256x32xf32>
    %21 = vector.broadcast %19 : vector<1x32xf32> to vector<256x32xf32>
    %22 = arith.mulf %20, %21 : vector<256x32xf32>
    %23 = arith.addf %17, %22 : vector<256x32xf32>
    %c0_11 = arith.constant 0 : index
    %c0_12 = arith.constant 0 : index
    %24 = vector.load %arg3[%c0_11, %c0_12] : memref<1x32xf32, #tpu.memory_space<vmem>>, vector<1x32xf32>
    %25 = vector.broadcast %24 : vector<1x32xf32> to vector<256x32xf32>
    %26 = arith.addf %23, %25 : vector<256x32xf32>
    %cst_13 = arith.constant 0.000000e+00 : f32
    %27 = vector.broadcast %cst_13 : f32 to vector<256x32xf32>
    %28 = arith.cmpf ogt, %26, %27 : vector<256x32xf32>
    %cst_14 = arith.constant 2.000000e-01 : f32
    %29 = vector.broadcast %cst_14 : f32 to vector<256x32xf32>
    %30 = arith.mulf %29, %26 : vector<256x32xf32>
    %31 = arith.select %28, %26, %30 : vector<256x32xi1>, vector<256x32xf32>
    %32 = vector.shape_cast %31 : vector<256x32xf32> to vector<16x16x32xf32>
    %c1 = arith.constant 1 : index
    %c8 = arith.constant 8 : index
    %c0_15 = arith.constant 0 : index
    %33 = vector.load %arg10[%c1, %c8, %c0_15] : memref<18x25x32xf32, #tpu.memory_space<vmem>>, vector<16x16x32xf32>
    tpu.vector_store %arg10[%c1, %c8, %c0_15], %32 {strides = array<i32>} : memref<18x25x32xf32, #tpu.memory_space<vmem>>, vector<16x16x32xf32>,
    %c0_16 = arith.constant 0 : index
    %c0_17 = arith.constant 0 : index
    %34 = vector.load %arg4[%c0_16, %c0_17] : memref<288x32xbf16, #tpu.memory_space<vmem>>, vector<288x32xbf16>
    %c0_18 = arith.constant 0 : index
    %c0_19 = arith.constant 0 : index
    %35 = vector.load %arg5[%c0_18, %c0_19] : memref<1x32xf32, #tpu.memory_space<vmem>>, vector<1x32xf32>
    %c0_20 = arith.constant 0 : index
    %c7 = arith.constant 7 : index
    %c0_21 = arith.constant 0 : index
    %36 = vector.load %arg10[%c0_20, %c7, %c0_21] : memref<18x25x32xf32, #tpu.memory_space<vmem>>, vector<4x16x32xf32>
    %37 = vector.shape_cast %36 : vector<4x16x32xf32> to vector<64x32xf32>
    %c0_22 = arith.constant 0 : index
    %c8_23 = arith.constant 8 : index
    %c0_24 = arith.constant 0 : index
    %38 = vector.load %arg10[%c0_22, %c8_23, %c0_24] : memref<18x25x32xf32, #tpu.memory_space<vmem>>, vector<4x16x32xf32>
    %39 = vector.shape_cast %38 : vector<4x16x32xf32> to vector<64x32xf32>
    %c0_25 = arith.constant 0 : index
    %c9 = arith.constant 9 : index
    %c0_26 = arith.constant 0 : index
    %40 = vector.load %arg10[%c0_25, %c9, %c0_26] : memref<18x25x32xf32, #tpu.memory_space<vmem>>, vector<4x16x32xf32>
    %41 = vector.shape_cast %40 : vector<4x16x32xf32> to vector<64x32xf32>
    %c1_27 = arith.constant 1 : index
    %c7_28 = arith.constant 7 : index
    %c0_29 = arith.constant 0 : index
    %42 = vector.load %arg10[%c1_27, %c7_28, %c0_29] : memref<18x25x32xf32, #tpu.memory_space<vmem>>, vector<4x16x32xf32>
    %43 = vector.shape_cast %42 : vector<4x16x32xf32> to vector<64x32xf32>
    %c1_30 = arith.constant 1 : index
    %c8_31 = arith.constant 8 : index
    %c0_32 = arith.constant 0 : index
    %44 = vector.load %arg10[%c1_30, %c8_31, %c0_32] : memref<18x25x32xf32, #tpu.memory_space<vmem>>, vector<4x16x32xf32>
    %45 = vector.shape_cast %44 : vector<4x16x32xf32> to vector<64x32xf32>
    %c1_33 = arith.constant 1 : index
    %c9_34 = arith.constant 9 : index
    %c0_35 = arith.constant 0 : index
    %46 = vector.load %arg10[%c1_33, %c9_34, %c0_35] : memref<18x25x32xf32, #tpu.memory_space<vmem>>, vector<4x16x32xf32>
    %47 = vector.shape_cast %46 : vector<4x16x32xf32> to vector<64x32xf32>
    %c2 = arith.constant 2 : index
    %c7_36 = arith.constant 7 : index
    %c0_37 = arith.constant 0 : index
    %48 = vector.load %arg10[%c2, %c7_36, %c0_37] : memref<18x25x32xf32, #tpu.memory_space<vmem>>, vector<4x16x32xf32>
    %49 = vector.shape_cast %48 : vector<4x16x32xf32> to vector<64x32xf32>
    %c2_38 = arith.constant 2 : index
    %c8_39 = arith.constant 8 : index
    %c0_40 = arith.constant 0 : index
    %50 = vector.load %arg10[%c2_38, %c8_39, %c0_40] : memref<18x25x32xf32, #tpu.memory_space<vmem>>, vector<4x16x32xf32>
    %51 = vector.shape_cast %50 : vector<4x16x32xf32> to vector<64x32xf32>
    %c2_41 = arith.constant 2 : index
    %c9_42 = arith.constant 9 : index
    %c0_43 = arith.constant 0 : index
    %52 = vector.load %arg10[%c2_41, %c9_42, %c0_43] : memref<18x25x32xf32, #tpu.memory_space<vmem>>, vector<4x16x32xf32>
    %53 = vector.shape_cast %52 : vector<4x16x32xf32> to vector<64x32xf32>
    %54 = tpu.concatenate %37, %39, %41, %43, %45, %47, %49, %51, %53 in 1 : vector<64x32xf32>, vector<64x32xf32>, vector<64x32xf32>, vector<64x32xf32>, vector<64x32xf32>, vector<64x32xf32>, vector<64x32xf32>, vector<64x32xf32>, vector<64x32xf32> -> vector<64x288xf32>
    %55 = arith.truncf %54 : vector<64x288xf32> to vector<64x288xbf16>
    %cst_44 = arith.constant dense<0.000000e+00> : vector<64x32xf32>
    %56 = tpu.matmul %55, %34, %cst_44 {dimension_numbers = #tpu.dot_dimension_numbers<[1], [0], [0], [1], [0, 0, 1, 1], [], []>} : vector<64x288xbf16>, vector<288x32xbf16>, vector<64x32xf32> -> vector<64x32xf32>
    %57 = vector.broadcast %35 : vector<1x32xf32> to vector<64x32xf32>
    %58 = arith.addf %56, %57 : vector<64x32xf32>
    %cst_45 = arith.constant 0.000000e+00 : f32
    %59 = vector.broadcast %cst_45 : f32 to vector<64x32xf32>
    %60 = arith.cmpf ogt, %58, %59 : vector<64x32xf32>
    %cst_46 = arith.constant 2.000000e-01 : f32
    %61 = vector.broadcast %cst_46 : f32 to vector<64x32xf32>
    %62 = arith.mulf %61, %58 : vector<64x32xf32>
    %63 = arith.select %60, %58, %62 : vector<64x32xi1>, vector<64x32xf32>
    %64 = vector.shape_cast %63 : vector<64x32xf32> to vector<4x16x32xf32>
    %c1_47 = arith.constant 1 : index
    %c8_48 = arith.constant 8 : index
    %c0_49 = arith.constant 0 : index
    %65 = vector.load %arg11[%c1_47, %c8_48, %c0_49] : memref<18x25x32xf32, #tpu.memory_space<vmem>>, vector<4x16x32xf32>
    tpu.vector_store %arg11[%c1_47, %c8_48, %c0_49], %64 {strides = array<i32>} : memref<18x25x32xf32, #tpu.memory_space<vmem>>, vector<4x16x32xf32>,
    %c4 = arith.constant 4 : index
    %c7_50 = arith.constant 7 : index
    %c0_51 = arith.constant 0 : index
    %66 = vector.load %arg10[%c4, %c7_50, %c0_51] : memref<18x25x32xf32, #tpu.memory_space<vmem>>, vector<4x16x32xf32>
    %67 = vector.shape_cast %66 : vector<4x16x32xf32> to vector<64x32xf32>
    %c4_52 = arith.constant 4 : index
    %c8_53 = arith.constant 8 : index
    %c0_54 = arith.constant 0 : index
    %68 = vector.load %arg10[%c4_52, %c8_53, %c0_54] : memref<18x25x32xf32, #tpu.memory_space<vmem>>, vector<4x16x32xf32>
    %69 = vector.shape_cast %68 : vector<4x16x32xf32> to vector<64x32xf32>
    %c4_55 = arith.constant 4 : index
    %c9_56 = arith.constant 9 : index
    %c0_57 = arith.constant 0 : index
    %70 = vector.load %arg10[%c4_55, %c9_56, %c0_57] : memref<18x25x32xf32, #tpu.memory_space<vmem>>, vector<4x16x32xf32>
    %71 = vector.shape_cast %70 : vector<4x16x32xf32> to vector<64x32xf32>
    %c5 = arith.constant 5 : index
    %c7_58 = arith.constant 7 : index
    %c0_59 = arith.constant 0 : index
    %72 = vector.load %arg10[%c5, %c7_58, %c0_59] : memref<18x25x32xf32, #tpu.memory_space<vmem>>, vector<4x16x32xf32>
    %73 = vector.shape_cast %72 : vector<4x16x32xf32> to vector<64x32xf32>
    %c5_60 = arith.constant 5 : index
    %c8_61 = arith.constant 8 : index
    %c0_62 = arith.constant 0 : index
    %74 = vector.load %arg10[%c5_60, %c8_61, %c0_62] : memref<18x25x32xf32, #tpu.memory_space<vmem>>, vector<4x16x32xf32>
    %75 = vector.shape_cast %74 : vector<4x16x32xf32> to vector<64x32xf32>
    %c5_63 = arith.constant 5 : index
    %c9_64 = arith.constant 9 : index
    %c0_65 = arith.constant 0 : index
    %76 = vector.load %arg10[%c5_63, %c9_64, %c0_65] : memref<18x25x32xf32, #tpu.memory_space<vmem>>, vector<4x16x32xf32>
    %77 = vector.shape_cast %76 : vector<4x16x32xf32> to vector<64x32xf32>
    %c6 = arith.constant 6 : index
    %c7_66 = arith.constant 7 : index
    %c0_67 = arith.constant 0 : index
    %78 = vector.load %arg10[%c6, %c7_66, %c0_67] : memref<18x25x32xf32, #tpu.memory_space<vmem>>, vector<4x16x32xf32>
    %79 = vector.shape_cast %78 : vector<4x16x32xf32> to vector<64x32xf32>
    %c6_68 = arith.constant 6 : index
    %c8_69 = arith.constant 8 : index
    %c0_70 = arith.constant 0 : index
    %80 = vector.load %arg10[%c6_68, %c8_69, %c0_70] : memref<18x25x32xf32, #tpu.memory_space<vmem>>, vector<4x16x32xf32>
    %81 = vector.shape_cast %80 : vector<4x16x32xf32> to vector<64x32xf32>
    %c6_71 = arith.constant 6 : index
    %c9_72 = arith.constant 9 : index
    %c0_73 = arith.constant 0 : index
    %82 = vector.load %arg10[%c6_71, %c9_72, %c0_73] : memref<18x25x32xf32, #tpu.memory_space<vmem>>, vector<4x16x32xf32>
    %83 = vector.shape_cast %82 : vector<4x16x32xf32> to vector<64x32xf32>
    %84 = tpu.concatenate %67, %69, %71, %73, %75, %77, %79, %81, %83 in 1 : vector<64x32xf32>, vector<64x32xf32>, vector<64x32xf32>, vector<64x32xf32>, vector<64x32xf32>, vector<64x32xf32>, vector<64x32xf32>, vector<64x32xf32>, vector<64x32xf32> -> vector<64x288xf32>
    %85 = arith.truncf %84 : vector<64x288xf32> to vector<64x288xbf16>
    %cst_74 = arith.constant dense<0.000000e+00> : vector<64x32xf32>
    %86 = tpu.matmul %85, %34, %cst_74 {dimension_numbers = #tpu.dot_dimension_numbers<[1], [0], [0], [1], [0, 0, 1, 1], [], []>} : vector<64x288xbf16>, vector<288x32xbf16>, vector<64x32xf32> -> vector<64x32xf32>
    %87 = vector.broadcast %35 : vector<1x32xf32> to vector<64x32xf32>
    %88 = arith.addf %86, %87 : vector<64x32xf32>
    %cst_75 = arith.constant 0.000000e+00 : f32
    %89 = vector.broadcast %cst_75 : f32 to vector<64x32xf32>
    %90 = arith.cmpf ogt, %88, %89 : vector<64x32xf32>
    %cst_76 = arith.constant 2.000000e-01 : f32
    %91 = vector.broadcast %cst_76 : f32 to vector<64x32xf32>
    %92 = arith.mulf %91, %88 : vector<64x32xf32>
    %93 = arith.select %90, %88, %92 : vector<64x32xi1>, vector<64x32xf32>
    %94 = vector.shape_cast %93 : vector<64x32xf32> to vector<4x16x32xf32>
    %c5_77 = arith.constant 5 : index
    %c8_78 = arith.constant 8 : index
    %c0_79 = arith.constant 0 : index
    %95 = vector.load %arg11[%c5_77, %c8_78, %c0_79] : memref<18x25x32xf32, #tpu.memory_space<vmem>>, vector<4x16x32xf32>
    tpu.vector_store %arg11[%c5_77, %c8_78, %c0_79], %94 {strides = array<i32>} : memref<18x25x32xf32, #tpu.memory_space<vmem>>, vector<4x16x32xf32>,
    %c8_80 = arith.constant 8 : index
    %c7_81 = arith.constant 7 : index
    %c0_82 = arith.constant 0 : index
    %96 = vector.load %arg10[%c8_80, %c7_81, %c0_82] : memref<18x25x32xf32, #tpu.memory_space<vmem>>, vector<4x16x32xf32>
    %97 = vector.shape_cast %96 : vector<4x16x32xf32> to vector<64x32xf32>
    %c8_83 = arith.constant 8 : index
    %c8_84 = arith.constant 8 : index
    %c0_85 = arith.constant 0 : index
    %98 = vector.load %arg10[%c8_83, %c8_84, %c0_85] : memref<18x25x32xf32, #tpu.memory_space<vmem>>, vector<4x16x32xf32>
    %99 = vector.shape_cast %98 : vector<4x16x32xf32> to vector<64x32xf32>
    %c8_86 = arith.constant 8 : index
    %c9_87 = arith.constant 9 : index
    %c0_88 = arith.constant 0 : index
    %100 = vector.load %arg10[%c8_86, %c9_87, %c0_88] : memref<18x25x32xf32, #tpu.memory_space<vmem>>, vector<4x16x32xf32>
    %101 = vector.shape_cast %100 : vector<4x16x32xf32> to vector<64x32xf32>
    %c9_89 = arith.constant 9 : index
    %c7_90 = arith.constant 7 : index
    %c0_91 = arith.constant 0 : index
    %102 = vector.load %arg10[%c9_89, %c7_90, %c0_91] : memref<18x25x32xf32, #tpu.memory_space<vmem>>, vector<4x16x32xf32>
    %103 = vector.shape_cast %102 : vector<4x16x32xf32> to vector<64x32xf32>
    %c9_92 = arith.constant 9 : index
    %c8_93 = arith.constant 8 : index
    %c0_94 = arith.constant 0 : index
    %104 = vector.load %arg10[%c9_92, %c8_93, %c0_94] : memref<18x25x32xf32, #tpu.memory_space<vmem>>, vector<4x16x32xf32>
    %105 = vector.shape_cast %104 : vector<4x16x32xf32> to vector<64x32xf32>
    %c9_95 = arith.constant 9 : index
    %c9_96 = arith.constant 9 : index
    %c0_97 = arith.constant 0 : index
    %106 = vector.load %arg10[%c9_95, %c9_96, %c0_97] : memref<18x25x32xf32, #tpu.memory_space<vmem>>, vector<4x16x32xf32>
    %107 = vector.shape_cast %106 : vector<4x16x32xf32> to vector<64x32xf32>
    %c10 = arith.constant 10 : index
    %c7_98 = arith.constant 7 : index
    %c0_99 = arith.constant 0 : index
    %108 = vector.load %arg10[%c10, %c7_98, %c0_99] : memref<18x25x32xf32, #tpu.memory_space<vmem>>, vector<4x16x32xf32>
    %109 = vector.shape_cast %108 : vector<4x16x32xf32> to vector<64x32xf32>
    %c10_100 = arith.constant 10 : index
    %c8_101 = arith.constant 8 : index
    %c0_102 = arith.constant 0 : index
    %110 = vector.load %arg10[%c10_100, %c8_101, %c0_102] : memref<18x25x32xf32, #tpu.memory_space<vmem>>, vector<4x16x32xf32>
    %111 = vector.shape_cast %110 : vector<4x16x32xf32> to vector<64x32xf32>
    %c10_103 = arith.constant 10 : index
    %c9_104 = arith.constant 9 : index
    %c0_105 = arith.constant 0 : index
    %112 = vector.load %arg10[%c10_103, %c9_104, %c0_105] : memref<18x25x32xf32, #tpu.memory_space<vmem>>, vector<4x16x32xf32>
    %113 = vector.shape_cast %112 : vector<4x16x32xf32> to vector<64x32xf32>
    %114 = tpu.concatenate %97, %99, %101, %103, %105, %107, %109, %111, %113 in 1 : vector<64x32xf32>, vector<64x32xf32>, vector<64x32xf32>, vector<64x32xf32>, vector<64x32xf32>, vector<64x32xf32>, vector<64x32xf32>, vector<64x32xf32>, vector<64x32xf32> -> vector<64x288xf32>
    %115 = arith.truncf %114 : vector<64x288xf32> to vector<64x288xbf16>
    %cst_106 = arith.constant dense<0.000000e+00> : vector<64x32xf32>
    %116 = tpu.matmul %115, %34, %cst_106 {dimension_numbers = #tpu.dot_dimension_numbers<[1], [0], [0], [1], [0, 0, 1, 1], [], []>} : vector<64x288xbf16>, vector<288x32xbf16>, vector<64x32xf32> -> vector<64x32xf32>
    %117 = vector.broadcast %35 : vector<1x32xf32> to vector<64x32xf32>
    %118 = arith.addf %116, %117 : vector<64x32xf32>
    %cst_107 = arith.constant 0.000000e+00 : f32
    %119 = vector.broadcast %cst_107 : f32 to vector<64x32xf32>
    %120 = arith.cmpf ogt, %118, %119 : vector<64x32xf32>
    %cst_108 = arith.constant 2.000000e-01 : f32
    %121 = vector.broadcast %cst_108 : f32 to vector<64x32xf32>
    %122 = arith.mulf %121, %118 : vector<64x32xf32>
    %123 = arith.select %120, %118, %122 : vector<64x32xi1>, vector<64x32xf32>
    %124 = vector.shape_cast %123 : vector<64x32xf32> to vector<4x16x32xf32>
    %c9_109 = arith.constant 9 : index
    %c8_110 = arith.constant 8 : index
    %c0_111 = arith.constant 0 : index
    %125 = vector.load %arg11[%c9_109, %c8_110, %c0_111] : memref<18x25x32xf32, #tpu.memory_space<vmem>>, vector<4x16x32xf32>
    tpu.vector_store %arg11[%c9_109, %c8_110, %c0_111], %124 {strides = array<i32>} : memref<18x25x32xf32, #tpu.memory_space<vmem>>, vector<4x16x32xf32>,
    %c12 = arith.constant 12 : index
    %c7_112 = arith.constant 7 : index
    %c0_113 = arith.constant 0 : index
    %126 = vector.load %arg10[%c12, %c7_112, %c0_113] : memref<18x25x32xf32, #tpu.memory_space<vmem>>, vector<4x16x32xf32>
    %127 = vector.shape_cast %126 : vector<4x16x32xf32> to vector<64x32xf32>
    %c12_114 = arith.constant 12 : index
    %c8_115 = arith.constant 8 : index
    %c0_116 = arith.constant 0 : index
    %128 = vector.load %arg10[%c12_114, %c8_115, %c0_116] : memref<18x25x32xf32, #tpu.memory_space<vmem>>, vector<4x16x32xf32>
    %129 = vector.shape_cast %128 : vector<4x16x32xf32> to vector<64x32xf32>
    %c12_117 = arith.constant 12 : index
    %c9_118 = arith.constant 9 : index
    %c0_119 = arith.constant 0 : index
    %130 = vector.load %arg10[%c12_117, %c9_118, %c0_119] : memref<18x25x32xf32, #tpu.memory_space<vmem>>, vector<4x16x32xf32>
    %131 = vector.shape_cast %130 : vector<4x16x32xf32> to vector<64x32xf32>
    %c13 = arith.constant 13 : index
    %c7_120 = arith.constant 7 : index
    %c0_121 = arith.constant 0 : index
    %132 = vector.load %arg10[%c13, %c7_120, %c0_121] : memref<18x25x32xf32, #tpu.memory_space<vmem>>, vector<4x16x32xf32>
    %133 = vector.shape_cast %132 : vector<4x16x32xf32> to vector<64x32xf32>
    %c13_122 = arith.constant 13 : index
    %c8_123 = arith.constant 8 : index
    %c0_124 = arith.constant 0 : index
    %134 = vector.load %arg10[%c13_122, %c8_123, %c0_124] : memref<18x25x32xf32, #tpu.memory_space<vmem>>, vector<4x16x32xf32>
    %135 = vector.shape_cast %134 : vector<4x16x32xf32> to vector<64x32xf32>
    %c13_125 = arith.constant 13 : index
    %c9_126 = arith.constant 9 : index
    %c0_127 = arith.constant 0 : index
    %136 = vector.load %arg10[%c13_125, %c9_126, %c0_127] : memref<18x25x32xf32, #tpu.memory_space<vmem>>, vector<4x16x32xf32>
    %137 = vector.shape_cast %136 : vector<4x16x32xf32> to vector<64x32xf32>
    %c14 = arith.constant 14 : index
    %c7_128 = arith.constant 7 : index
    %c0_129 = arith.constant 0 : index
    %138 = vector.load %arg10[%c14, %c7_128, %c0_129] : memref<18x25x32xf32, #tpu.memory_space<vmem>>, vector<4x16x32xf32>
    %139 = vector.shape_cast %138 : vector<4x16x32xf32> to vector<64x32xf32>
    %c14_130 = arith.constant 14 : index
    %c8_131 = arith.constant 8 : index
    %c0_132 = arith.constant 0 : index
    %140 = vector.load %arg10[%c14_130, %c8_131, %c0_132] : memref<18x25x32xf32, #tpu.memory_space<vmem>>, vector<4x16x32xf32>
    %141 = vector.shape_cast %140 : vector<4x16x32xf32> to vector<64x32xf32>
    %c14_133 = arith.constant 14 : index
    %c9_134 = arith.constant 9 : index
    %c0_135 = arith.constant 0 : index
    %142 = vector.load %arg10[%c14_133, %c9_134, %c0_135] : memref<18x25x32xf32, #tpu.memory_space<vmem>>, vector<4x16x32xf32>
    %143 = vector.shape_cast %142 : vector<4x16x32xf32> to vector<64x32xf32>
    %144 = tpu.concatenate %127, %129, %131, %133, %135, %137, %139, %141, %143 in 1 : vector<64x32xf32>, vector<64x32xf32>, vector<64x32xf32>, vector<64x32xf32>, vector<64x32xf32>, vector<64x32xf32>, vector<64x32xf32>, vector<64x32xf32>, vector<64x32xf32> -> vector<64x288xf32>
    %145 = arith.truncf %144 : vector<64x288xf32> to vector<64x288xbf16>
    %cst_136 = arith.constant dense<0.000000e+00> : vector<64x32xf32>
    %146 = tpu.matmul %145, %34, %cst_136 {dimension_numbers = #tpu.dot_dimension_numbers<[1], [0], [0], [1], [0, 0, 1, 1], [], []>} : vector<64x288xbf16>, vector<288x32xbf16>, vector<64x32xf32> -> vector<64x32xf32>
    %147 = vector.broadcast %35 : vector<1x32xf32> to vector<64x32xf32>
    %148 = arith.addf %146, %147 : vector<64x32xf32>
    %cst_137 = arith.constant 0.000000e+00 : f32
    %149 = vector.broadcast %cst_137 : f32 to vector<64x32xf32>
    %150 = arith.cmpf ogt, %148, %149 : vector<64x32xf32>
    %cst_138 = arith.constant 2.000000e-01 : f32
    %151 = vector.broadcast %cst_138 : f32 to vector<64x32xf32>
    %152 = arith.mulf %151, %148 : vector<64x32xf32>
    %153 = arith.select %150, %148, %152 : vector<64x32xi1>, vector<64x32xf32>
    %154 = vector.shape_cast %153 : vector<64x32xf32> to vector<4x16x32xf32>
    %c13_139 = arith.constant 13 : index
    %c8_140 = arith.constant 8 : index
    %c0_141 = arith.constant 0 : index
    %155 = vector.load %arg11[%c13_139, %c8_140, %c0_141] : memref<18x25x32xf32, #tpu.memory_space<vmem>>, vector<4x16x32xf32>
    tpu.vector_store %arg11[%c13_139, %c8_140, %c0_141], %154 {strides = array<i32>} : memref<18x25x32xf32, #tpu.memory_space<vmem>>, vector<4x16x32xf32>,
    %c0_142 = arith.constant 0 : index
    %c0_143 = arith.constant 0 : index
    %156 = vector.load %arg6[%c0_142, %c0_143] : memref<288x32xbf16, #tpu.memory_space<vmem>>, vector<288x32xbf16>
    %c0_144 = arith.constant 0 : index
    %c0_145 = arith.constant 0 : index
    %157 = vector.load %arg7[%c0_144, %c0_145] : memref<1x32xf32, #tpu.memory_space<vmem>>, vector<1x32xf32>
    %c0_146 = arith.constant 0 : index
    %c7_147 = arith.constant 7 : index
    %c0_148 = arith.constant 0 : index
    %158 = vector.load %arg11[%c0_146, %c7_147, %c0_148] : memref<18x25x32xf32, #tpu.memory_space<vmem>>, vector<4x16x32xf32>
    %159 = vector.shape_cast %158 : vector<4x16x32xf32> to vector<64x32xf32>
    %c0_149 = arith.constant 0 : index
    %c8_150 = arith.constant 8 : index
    %c0_151 = arith.constant 0 : index
    %160 = vector.load %arg11[%c0_149, %c8_150, %c0_151] : memref<18x25x32xf32, #tpu.memory_space<vmem>>, vector<4x16x32xf32>
    %161 = vector.shape_cast %160 : vector<4x16x32xf32> to vector<64x32xf32>
    %c0_152 = arith.constant 0 : index
    %c9_153 = arith.constant 9 : index
    %c0_154 = arith.constant 0 : index
    %162 = vector.load %arg11[%c0_152, %c9_153, %c0_154] : memref<18x25x32xf32, #tpu.memory_space<vmem>>, vector<4x16x32xf32>
    %163 = vector.shape_cast %162 : vector<4x16x32xf32> to vector<64x32xf32>
    %c1_155 = arith.constant 1 : index
    %c7_156 = arith.constant 7 : index
    %c0_157 = arith.constant 0 : index
    %164 = vector.load %arg11[%c1_155, %c7_156, %c0_157] : memref<18x25x32xf32, #tpu.memory_space<vmem>>, vector<4x16x32xf32>
    %165 = vector.shape_cast %164 : vector<4x16x32xf32> to vector<64x32xf32>
    %c1_158 = arith.constant 1 : index
    %c8_159 = arith.constant 8 : index
    %c0_160 = arith.constant 0 : index
    %166 = vector.load %arg11[%c1_158, %c8_159, %c0_160] : memref<18x25x32xf32, #tpu.memory_space<vmem>>, vector<4x16x32xf32>
    %167 = vector.shape_cast %166 : vector<4x16x32xf32> to vector<64x32xf32>
    %c1_161 = arith.constant 1 : index
    %c9_162 = arith.constant 9 : index
    %c0_163 = arith.constant 0 : index
    %168 = vector.load %arg11[%c1_161, %c9_162, %c0_163] : memref<18x25x32xf32, #tpu.memory_space<vmem>>, vector<4x16x32xf32>
    %169 = vector.shape_cast %168 : vector<4x16x32xf32> to vector<64x32xf32>
    %c2_164 = arith.constant 2 : index
    %c7_165 = arith.constant 7 : index
    %c0_166 = arith.constant 0 : index
    %170 = vector.load %arg11[%c2_164, %c7_165, %c0_166] : memref<18x25x32xf32, #tpu.memory_space<vmem>>, vector<4x16x32xf32>
    %171 = vector.shape_cast %170 : vector<4x16x32xf32> to vector<64x32xf32>
    %c2_167 = arith.constant 2 : index
    %c8_168 = arith.constant 8 : index
    %c0_169 = arith.constant 0 : index
    %172 = vector.load %arg11[%c2_167, %c8_168, %c0_169] : memref<18x25x32xf32, #tpu.memory_space<vmem>>, vector<4x16x32xf32>
    %173 = vector.shape_cast %172 : vector<4x16x32xf32> to vector<64x32xf32>
    %c2_170 = arith.constant 2 : index
    %c9_171 = arith.constant 9 : index
    %c0_172 = arith.constant 0 : index
    %174 = vector.load %arg11[%c2_170, %c9_171, %c0_172] : memref<18x25x32xf32, #tpu.memory_space<vmem>>, vector<4x16x32xf32>
    %175 = vector.shape_cast %174 : vector<4x16x32xf32> to vector<64x32xf32>
    %176 = tpu.concatenate %159, %161, %163, %165, %167, %169, %171, %173, %175 in 1 : vector<64x32xf32>, vector<64x32xf32>, vector<64x32xf32>, vector<64x32xf32>, vector<64x32xf32>, vector<64x32xf32>, vector<64x32xf32>, vector<64x32xf32>, vector<64x32xf32> -> vector<64x288xf32>
    %177 = arith.truncf %176 : vector<64x288xf32> to vector<64x288xbf16>
    %cst_173 = arith.constant dense<0.000000e+00> : vector<64x32xf32>
    %178 = tpu.matmul %177, %156, %cst_173 {dimension_numbers = #tpu.dot_dimension_numbers<[1], [0], [0], [1], [0, 0, 1, 1], [], []>} : vector<64x288xbf16>, vector<288x32xbf16>, vector<64x32xf32> -> vector<64x32xf32>
    %179 = vector.broadcast %157 : vector<1x32xf32> to vector<64x32xf32>
    %180 = arith.addf %178, %179 : vector<64x32xf32>
    %cst_174 = arith.constant 0.000000e+00 : f32
    %181 = vector.broadcast %cst_174 : f32 to vector<64x32xf32>
    %182 = arith.cmpf ogt, %180, %181 : vector<64x32xf32>
    %cst_175 = arith.constant 2.000000e-01 : f32
    %183 = vector.broadcast %cst_175 : f32 to vector<64x32xf32>
    %184 = arith.mulf %183, %180 : vector<64x32xf32>
    %185 = arith.select %182, %180, %184 : vector<64x32xi1>, vector<64x32xf32>
    %c0_176 = arith.constant 0 : index
    %c0_177 = arith.constant 0 : index
    %186 = vector.load %arg8[%c0_176, %c0_177] : memref<16x64xf32, #tpu.memory_space<vmem>>, vector<16x64xf32>
    %cst_178 = arith.constant dense<0.000000e+00> : vector<16x32xf32>
    %187 = tpu.matmul %186, %185, %cst_178 {dimension_numbers = #tpu.dot_dimension_numbers<[1], [0], [0], [1], [0, 0, 1, 1], [], []>} : vector<16x64xf32>, vector<64x32xf32>, vector<16x32xf32> -> vector<16x32xf32>
    %c0_179 = arith.constant 0 : index
    %c0_180 = arith.constant 0 : index
    %c0_181 = arith.constant 0 : index
    %188 = vector.load %arg9[%c0_179, %c0_180, %c0_181] : memref<1x64x32xf32, #tpu.memory_space<vmem>>, vector<1x16x32xf32>
    %189 = vector.shape_cast %188 : vector<1x16x32xf32> to vector<16x32xf32>
    %190 = vector.shape_cast %187 : vector<16x32xf32> to vector<1x16x32xf32>
    tpu.vector_store %arg9[%c0_179, %c0_180, %c0_181], %190 {strides = array<i32>} : memref<1x64x32xf32, #tpu.memory_space<vmem>>, vector<1x16x32xf32>,
    %c4_182 = arith.constant 4 : index
    %c7_183 = arith.constant 7 : index
    %c0_184 = arith.constant 0 : index
    %191 = vector.load %arg11[%c4_182, %c7_183, %c0_184] : memref<18x25x32xf32, #tpu.memory_space<vmem>>, vector<4x16x32xf32>
    %192 = vector.shape_cast %191 : vector<4x16x32xf32> to vector<64x32xf32>
    %c4_185 = arith.constant 4 : index
    %c8_186 = arith.constant 8 : index
    %c0_187 = arith.constant 0 : index
    %193 = vector.load %arg11[%c4_185, %c8_186, %c0_187] : memref<18x25x32xf32, #tpu.memory_space<vmem>>, vector<4x16x32xf32>
    %194 = vector.shape_cast %193 : vector<4x16x32xf32> to vector<64x32xf32>
    %c4_188 = arith.constant 4 : index
    %c9_189 = arith.constant 9 : index
    %c0_190 = arith.constant 0 : index
    %195 = vector.load %arg11[%c4_188, %c9_189, %c0_190] : memref<18x25x32xf32, #tpu.memory_space<vmem>>, vector<4x16x32xf32>
    %196 = vector.shape_cast %195 : vector<4x16x32xf32> to vector<64x32xf32>
    %c5_191 = arith.constant 5 : index
    %c7_192 = arith.constant 7 : index
    %c0_193 = arith.constant 0 : index
    %197 = vector.load %arg11[%c5_191, %c7_192, %c0_193] : memref<18x25x32xf32, #tpu.memory_space<vmem>>, vector<4x16x32xf32>
    %198 = vector.shape_cast %197 : vector<4x16x32xf32> to vector<64x32xf32>
    %c5_194 = arith.constant 5 : index
    %c8_195 = arith.constant 8 : index
    %c0_196 = arith.constant 0 : index
    %199 = vector.load %arg11[%c5_194, %c8_195, %c0_196] : memref<18x25x32xf32, #tpu.memory_space<vmem>>, vector<4x16x32xf32>
    %200 = vector.shape_cast %199 : vector<4x16x32xf32> to vector<64x32xf32>
    %c5_197 = arith.constant 5 : index
    %c9_198 = arith.constant 9 : index
    %c0_199 = arith.constant 0 : index
    %201 = vector.load %arg11[%c5_197, %c9_198, %c0_199] : memref<18x25x32xf32, #tpu.memory_space<vmem>>, vector<4x16x32xf32>
    %202 = vector.shape_cast %201 : vector<4x16x32xf32> to vector<64x32xf32>
    %c6_200 = arith.constant 6 : index
    %c7_201 = arith.constant 7 : index
    %c0_202 = arith.constant 0 : index
    %203 = vector.load %arg11[%c6_200, %c7_201, %c0_202] : memref<18x25x32xf32, #tpu.memory_space<vmem>>, vector<4x16x32xf32>
    %204 = vector.shape_cast %203 : vector<4x16x32xf32> to vector<64x32xf32>
    %c6_203 = arith.constant 6 : index
    %c8_204 = arith.constant 8 : index
    %c0_205 = arith.constant 0 : index
    %205 = vector.load %arg11[%c6_203, %c8_204, %c0_205] : memref<18x25x32xf32, #tpu.memory_space<vmem>>, vector<4x16x32xf32>
    %206 = vector.shape_cast %205 : vector<4x16x32xf32> to vector<64x32xf32>
    %c6_206 = arith.constant 6 : index
    %c9_207 = arith.constant 9 : index
    %c0_208 = arith.constant 0 : index
    %207 = vector.load %arg11[%c6_206, %c9_207, %c0_208] : memref<18x25x32xf32, #tpu.memory_space<vmem>>, vector<4x16x32xf32>
    %208 = vector.shape_cast %207 : vector<4x16x32xf32> to vector<64x32xf32>
    %209 = tpu.concatenate %192, %194, %196, %198, %200, %202, %204, %206, %208 in 1 : vector<64x32xf32>, vector<64x32xf32>, vector<64x32xf32>, vector<64x32xf32>, vector<64x32xf32>, vector<64x32xf32>, vector<64x32xf32>, vector<64x32xf32>, vector<64x32xf32> -> vector<64x288xf32>
    %210 = arith.truncf %209 : vector<64x288xf32> to vector<64x288xbf16>
    %cst_209 = arith.constant dense<0.000000e+00> : vector<64x32xf32>
    %211 = tpu.matmul %210, %156, %cst_209 {dimension_numbers = #tpu.dot_dimension_numbers<[1], [0], [0], [1], [0, 0, 1, 1], [], []>} : vector<64x288xbf16>, vector<288x32xbf16>, vector<64x32xf32> -> vector<64x32xf32>
    %212 = vector.broadcast %157 : vector<1x32xf32> to vector<64x32xf32>
    %213 = arith.addf %211, %212 : vector<64x32xf32>
    %cst_210 = arith.constant 0.000000e+00 : f32
    %214 = vector.broadcast %cst_210 : f32 to vector<64x32xf32>
    %215 = arith.cmpf ogt, %213, %214 : vector<64x32xf32>
    %cst_211 = arith.constant 2.000000e-01 : f32
    %216 = vector.broadcast %cst_211 : f32 to vector<64x32xf32>
    %217 = arith.mulf %216, %213 : vector<64x32xf32>
    %218 = arith.select %215, %213, %217 : vector<64x32xi1>, vector<64x32xf32>
    %c0_212 = arith.constant 0 : index
    %c0_213 = arith.constant 0 : index
    %219 = vector.load %arg8[%c0_212, %c0_213] : memref<16x64xf32, #tpu.memory_space<vmem>>, vector<16x64xf32>
    %cst_214 = arith.constant dense<0.000000e+00> : vector<16x32xf32>
    %220 = tpu.matmul %219, %218, %cst_214 {dimension_numbers = #tpu.dot_dimension_numbers<[1], [0], [0], [1], [0, 0, 1, 1], [], []>} : vector<16x64xf32>, vector<64x32xf32>, vector<16x32xf32> -> vector<16x32xf32>
    %c0_215 = arith.constant 0 : index
    %c16 = arith.constant 16 : index
    %c0_216 = arith.constant 0 : index
    %221 = vector.load %arg9[%c0_215, %c16, %c0_216] : memref<1x64x32xf32, #tpu.memory_space<vmem>>, vector<1x16x32xf32>
    %222 = vector.shape_cast %221 : vector<1x16x32xf32> to vector<16x32xf32>
    %223 = vector.shape_cast %220 : vector<16x32xf32> to vector<1x16x32xf32>
    tpu.vector_store %arg9[%c0_215, %c16, %c0_216], %223 {strides = array<i32>} : memref<1x64x32xf32, #tpu.memory_space<vmem>>, vector<1x16x32xf32>,
    %c8_217 = arith.constant 8 : index
    %c7_218 = arith.constant 7 : index
    %c0_219 = arith.constant 0 : index
    %224 = vector.load %arg11[%c8_217, %c7_218, %c0_219] : memref<18x25x32xf32, #tpu.memory_space<vmem>>, vector<4x16x32xf32>
    %225 = vector.shape_cast %224 : vector<4x16x32xf32> to vector<64x32xf32>
    %c8_220 = arith.constant 8 : index
    %c8_221 = arith.constant 8 : index
    %c0_222 = arith.constant 0 : index
    %226 = vector.load %arg11[%c8_220, %c8_221, %c0_222] : memref<18x25x32xf32, #tpu.memory_space<vmem>>, vector<4x16x32xf32>
    %227 = vector.shape_cast %226 : vector<4x16x32xf32> to vector<64x32xf32>
    %c8_223 = arith.constant 8 : index
    %c9_224 = arith.constant 9 : index
    %c0_225 = arith.constant 0 : index
    %228 = vector.load %arg11[%c8_223, %c9_224, %c0_225] : memref<18x25x32xf32, #tpu.memory_space<vmem>>, vector<4x16x32xf32>
    %229 = vector.shape_cast %228 : vector<4x16x32xf32> to vector<64x32xf32>
    %c9_226 = arith.constant 9 : index
    %c7_227 = arith.constant 7 : index
    %c0_228 = arith.constant 0 : index
    %230 = vector.load %arg11[%c9_226, %c7_227, %c0_228] : memref<18x25x32xf32, #tpu.memory_space<vmem>>, vector<4x16x32xf32>
    %231 = vector.shape_cast %230 : vector<4x16x32xf32> to vector<64x32xf32>
    %c9_229 = arith.constant 9 : index
    %c8_230 = arith.constant 8 : index
    %c0_231 = arith.constant 0 : index
    %232 = vector.load %arg11[%c9_229, %c8_230, %c0_231] : memref<18x25x32xf32, #tpu.memory_space<vmem>>, vector<4x16x32xf32>
    %233 = vector.shape_cast %232 : vector<4x16x32xf32> to vector<64x32xf32>
    %c9_232 = arith.constant 9 : index
    %c9_233 = arith.constant 9 : index
    %c0_234 = arith.constant 0 : index
    %234 = vector.load %arg11[%c9_232, %c9_233, %c0_234] : memref<18x25x32xf32, #tpu.memory_space<vmem>>, vector<4x16x32xf32>
    %235 = vector.shape_cast %234 : vector<4x16x32xf32> to vector<64x32xf32>
    %c10_235 = arith.constant 10 : index
    %c7_236 = arith.constant 7 : index
    %c0_237 = arith.constant 0 : index
    %236 = vector.load %arg11[%c10_235, %c7_236, %c0_237] : memref<18x25x32xf32, #tpu.memory_space<vmem>>, vector<4x16x32xf32>
    %237 = vector.shape_cast %236 : vector<4x16x32xf32> to vector<64x32xf32>
    %c10_238 = arith.constant 10 : index
    %c8_239 = arith.constant 8 : index
    %c0_240 = arith.constant 0 : index
    %238 = vector.load %arg11[%c10_238, %c8_239, %c0_240] : memref<18x25x32xf32, #tpu.memory_space<vmem>>, vector<4x16x32xf32>
    %239 = vector.shape_cast %238 : vector<4x16x32xf32> to vector<64x32xf32>
    %c10_241 = arith.constant 10 : index
    %c9_242 = arith.constant 9 : index
    %c0_243 = arith.constant 0 : index
    %240 = vector.load %arg11[%c10_241, %c9_242, %c0_243] : memref<18x25x32xf32, #tpu.memory_space<vmem>>, vector<4x16x32xf32>
    %241 = vector.shape_cast %240 : vector<4x16x32xf32> to vector<64x32xf32>
    %242 = tpu.concatenate %225, %227, %229, %231, %233, %235, %237, %239, %241 in 1 : vector<64x32xf32>, vector<64x32xf32>, vector<64x32xf32>, vector<64x32xf32>, vector<64x32xf32>, vector<64x32xf32>, vector<64x32xf32>, vector<64x32xf32>, vector<64x32xf32> -> vector<64x288xf32>
    %243 = arith.truncf %242 : vector<64x288xf32> to vector<64x288xbf16>
    %cst_244 = arith.constant dense<0.000000e+00> : vector<64x32xf32>
    %244 = tpu.matmul %243, %156, %cst_244 {dimension_numbers = #tpu.dot_dimension_numbers<[1], [0], [0], [1], [0, 0, 1, 1], [], []>} : vector<64x288xbf16>, vector<288x32xbf16>, vector<64x32xf32> -> vector<64x32xf32>
    %245 = vector.broadcast %157 : vector<1x32xf32> to vector<64x32xf32>
    %246 = arith.addf %244, %245 : vector<64x32xf32>
    %cst_245 = arith.constant 0.000000e+00 : f32
    %247 = vector.broadcast %cst_245 : f32 to vector<64x32xf32>
    %248 = arith.cmpf ogt, %246, %247 : vector<64x32xf32>
    %cst_246 = arith.constant 2.000000e-01 : f32
    %249 = vector.broadcast %cst_246 : f32 to vector<64x32xf32>
    %250 = arith.mulf %249, %246 : vector<64x32xf32>
    %251 = arith.select %248, %246, %250 : vector<64x32xi1>, vector<64x32xf32>
    %c0_247 = arith.constant 0 : index
    %c0_248 = arith.constant 0 : index
    %252 = vector.load %arg8[%c0_247, %c0_248] : memref<16x64xf32, #tpu.memory_space<vmem>>, vector<16x64xf32>
    %cst_249 = arith.constant dense<0.000000e+00> : vector<16x32xf32>
    %253 = tpu.matmul %252, %251, %cst_249 {dimension_numbers = #tpu.dot_dimension_numbers<[1], [0], [0], [1], [0, 0, 1, 1], [], []>} : vector<16x64xf32>, vector<64x32xf32>, vector<16x32xf32> -> vector<16x32xf32>
    %c0_250 = arith.constant 0 : index
    %c32 = arith.constant 32 : index
    %c0_251 = arith.constant 0 : index
    %254 = vector.load %arg9[%c0_250, %c32, %c0_251] : memref<1x64x32xf32, #tpu.memory_space<vmem>>, vector<1x16x32xf32>
    %255 = vector.shape_cast %254 : vector<1x16x32xf32> to vector<16x32xf32>
    %256 = vector.shape_cast %253 : vector<16x32xf32> to vector<1x16x32xf32>
    tpu.vector_store %arg9[%c0_250, %c32, %c0_251], %256 {strides = array<i32>} : memref<1x64x32xf32, #tpu.memory_space<vmem>>, vector<1x16x32xf32>,
    %c12_252 = arith.constant 12 : index
    %c7_253 = arith.constant 7 : index
    %c0_254 = arith.constant 0 : index
    %257 = vector.load %arg11[%c12_252, %c7_253, %c0_254] : memref<18x25x32xf32, #tpu.memory_space<vmem>>, vector<4x16x32xf32>
    %258 = vector.shape_cast %257 : vector<4x16x32xf32> to vector<64x32xf32>
    %c12_255 = arith.constant 12 : index
    %c8_256 = arith.constant 8 : index
    %c0_257 = arith.constant 0 : index
    %259 = vector.load %arg11[%c12_255, %c8_256, %c0_257] : memref<18x25x32xf32, #tpu.memory_space<vmem>>, vector<4x16x32xf32>
    %260 = vector.shape_cast %259 : vector<4x16x32xf32> to vector<64x32xf32>
    %c12_258 = arith.constant 12 : index
    %c9_259 = arith.constant 9 : index
    %c0_260 = arith.constant 0 : index
    %261 = vector.load %arg11[%c12_258, %c9_259, %c0_260] : memref<18x25x32xf32, #tpu.memory_space<vmem>>, vector<4x16x32xf32>
    %262 = vector.shape_cast %261 : vector<4x16x32xf32> to vector<64x32xf32>
    %c13_261 = arith.constant 13 : index
    %c7_262 = arith.constant 7 : index
    %c0_263 = arith.constant 0 : index
    %263 = vector.load %arg11[%c13_261, %c7_262, %c0_263] : memref<18x25x32xf32, #tpu.memory_space<vmem>>, vector<4x16x32xf32>
    %264 = vector.shape_cast %263 : vector<4x16x32xf32> to vector<64x32xf32>
    %c13_264 = arith.constant 13 : index
    %c8_265 = arith.constant 8 : index
    %c0_266 = arith.constant 0 : index
    %265 = vector.load %arg11[%c13_264, %c8_265, %c0_266] : memref<18x25x32xf32, #tpu.memory_space<vmem>>, vector<4x16x32xf32>
    %266 = vector.shape_cast %265 : vector<4x16x32xf32> to vector<64x32xf32>
    %c13_267 = arith.constant 13 : index
    %c9_268 = arith.constant 9 : index
    %c0_269 = arith.constant 0 : index
    %267 = vector.load %arg11[%c13_267, %c9_268, %c0_269] : memref<18x25x32xf32, #tpu.memory_space<vmem>>, vector<4x16x32xf32>
    %268 = vector.shape_cast %267 : vector<4x16x32xf32> to vector<64x32xf32>
    %c14_270 = arith.constant 14 : index
    %c7_271 = arith.constant 7 : index
    %c0_272 = arith.constant 0 : index
    %269 = vector.load %arg11[%c14_270, %c7_271, %c0_272] : memref<18x25x32xf32, #tpu.memory_space<vmem>>, vector<4x16x32xf32>
    %270 = vector.shape_cast %269 : vector<4x16x32xf32> to vector<64x32xf32>
    %c14_273 = arith.constant 14 : index
    %c8_274 = arith.constant 8 : index
    %c0_275 = arith.constant 0 : index
    %271 = vector.load %arg11[%c14_273, %c8_274, %c0_275] : memref<18x25x32xf32, #tpu.memory_space<vmem>>, vector<4x16x32xf32>
    %272 = vector.shape_cast %271 : vector<4x16x32xf32> to vector<64x32xf32>
    %c14_276 = arith.constant 14 : index
    %c9_277 = arith.constant 9 : index
    %c0_278 = arith.constant 0 : index
    %273 = vector.load %arg11[%c14_276, %c9_277, %c0_278] : memref<18x25x32xf32, #tpu.memory_space<vmem>>, vector<4x16x32xf32>
    %274 = vector.shape_cast %273 : vector<4x16x32xf32> to vector<64x32xf32>
    %275 = tpu.concatenate %258, %260, %262, %264, %266, %268, %270, %272, %274 in 1 : vector<64x32xf32>, vector<64x32xf32>, vector<64x32xf32>, vector<64x32xf32>, vector<64x32xf32>, vector<64x32xf32>, vector<64x32xf32>, vector<64x32xf32>, vector<64x32xf32> -> vector<64x288xf32>
    %276 = arith.truncf %275 : vector<64x288xf32> to vector<64x288xbf16>
    %cst_279 = arith.constant dense<0.000000e+00> : vector<64x32xf32>
    %277 = tpu.matmul %276, %156, %cst_279 {dimension_numbers = #tpu.dot_dimension_numbers<[1], [0], [0], [1], [0, 0, 1, 1], [], []>} : vector<64x288xbf16>, vector<288x32xbf16>, vector<64x32xf32> -> vector<64x32xf32>
    %278 = vector.broadcast %157 : vector<1x32xf32> to vector<64x32xf32>
    %279 = arith.addf %277, %278 : vector<64x32xf32>
    %cst_280 = arith.constant 0.000000e+00 : f32
    %280 = vector.broadcast %cst_280 : f32 to vector<64x32xf32>
    %281 = arith.cmpf ogt, %279, %280 : vector<64x32xf32>
    %cst_281 = arith.constant 2.000000e-01 : f32
    %282 = vector.broadcast %cst_281 : f32 to vector<64x32xf32>
    %283 = arith.mulf %282, %279 : vector<64x32xf32>
    %284 = arith.select %281, %279, %283 : vector<64x32xi1>, vector<64x32xf32>
    %c0_282 = arith.constant 0 : index
    %c0_283 = arith.constant 0 : index
    %285 = vector.load %arg8[%c0_282, %c0_283] : memref<16x64xf32, #tpu.memory_space<vmem>>, vector<16x64xf32>
    %cst_284 = arith.constant dense<0.000000e+00> : vector<16x32xf32>
    %286 = tpu.matmul %285, %284, %cst_284 {dimension_numbers = #tpu.dot_dimension_numbers<[1], [0], [0], [1], [0, 0, 1, 1], [], []>} : vector<16x64xf32>, vector<64x32xf32>, vector<16x32xf32> -> vector<16x32xf32>
    %c0_285 = arith.constant 0 : index
    %c48 = arith.constant 48 : index
    %c0_286 = arith.constant 0 : index
    %287 = vector.load %arg9[%c0_285, %c48, %c0_286] : memref<1x64x32xf32, #tpu.memory_space<vmem>>, vector<1x16x32xf32>
    %288 = vector.shape_cast %287 : vector<1x16x32xf32> to vector<16x32xf32>
    %289 = vector.shape_cast %286 : vector<16x32xf32> to vector<1x16x32xf32>
    tpu.vector_store %arg9[%c0_285, %c48, %c0_286], %289 {strides = array<i32>} : memref<1x64x32xf32, #tpu.memory_space<vmem>>, vector<1x16x32xf32>,
    return
  }
  func.func @transform_0(%arg0: i32) -> (i32, i32, i32) {
    %c0_i32 = arith.constant 0 : i32
    %c0_i32_0 = arith.constant 0 : i32
    %c0_i32_1 = arith.constant 0 : i32
    return %arg0, %c0_i32, %c0_i32_0 : i32, i32, i32
  }
  func.func @transform_1(%arg0: i32) -> (i32, i32) {
    %c0_i32 = arith.constant 0 : i32
    %c0_i32_0 = arith.constant 0 : i32
    %c0_i32_1 = arith.constant 0 : i32
    return %c0_i32, %c0_i32_0 : i32, i32
  }
  func.func @transform_2(%arg0: i32) -> (i32, i32) {
    %c0_i32 = arith.constant 0 : i32
    %c0_i32_0 = arith.constant 0 : i32
    %c0_i32_1 = arith.constant 0 : i32
    return %c0_i32, %c0_i32_0 : i32, i32
  }
  func.func @transform_3(%arg0: i32) -> (i32, i32) {
    %c0_i32 = arith.constant 0 : i32
    %c0_i32_0 = arith.constant 0 : i32
    %c0_i32_1 = arith.constant 0 : i32
    return %c0_i32, %c0_i32_0 : i32, i32
  }
  func.func @transform_4(%arg0: i32) -> (i32, i32) {
    %c0_i32 = arith.constant 0 : i32
    %c0_i32_0 = arith.constant 0 : i32
    %c0_i32_1 = arith.constant 0 : i32
    return %c0_i32, %c0_i32_0 : i32, i32
  }
  func.func @transform_5(%arg0: i32) -> (i32, i32) {
    %c0_i32 = arith.constant 0 : i32
    %c0_i32_0 = arith.constant 0 : i32
    %c0_i32_1 = arith.constant 0 : i32
    return %c0_i32, %c0_i32_0 : i32, i32
  }
  func.func @transform_6(%arg0: i32) -> (i32, i32) {
    %c0_i32 = arith.constant 0 : i32
    %c0_i32_0 = arith.constant 0 : i32
    %c0_i32_1 = arith.constant 0 : i32
    return %c0_i32, %c0_i32_0 : i32, i32
  }
  func.func @transform_7(%arg0: i32) -> (i32, i32) {
    %c0_i32 = arith.constant 0 : i32
    %c0_i32_0 = arith.constant 0 : i32
    %c0_i32_1 = arith.constant 0 : i32
    return %c0_i32, %c0_i32_0 : i32, i32
  }
  func.func @transform_8(%arg0: i32) -> (i32, i32, i32) {
    %c0_i32 = arith.constant 0 : i32
    %c0_i32_0 = arith.constant 0 : i32
    %c0_i32_1 = arith.constant 0 : i32
    return %arg0, %c0_i32, %c0_i32_0 : i32, i32, i32
  }
}

module attributes {stable_mosaic.version = 11 : i64} {
  func.func @kernel(%arg0: memref<2x2048xf32, #tpu.memory_space<vmem>>, %arg1: memref<2048x32xbf16, #tpu.memory_space<vmem>>, %arg2: memref<1x32xf32, #tpu.memory_space<vmem>>, %arg3: memref<1x32xf32, #tpu.memory_space<vmem>>, %arg4: memref<32x1xf32, #tpu.memory_space<vmem>>, %arg5: memref<1x1xf32, #tpu.memory_space<vmem>>, %arg6: memref<2x1xf32, #tpu.memory_space<vmem>>) attributes {dimension_semantics = [], scalar_prefetch = 0 : i64, scratch_operands = 0 : i64, tpu.core_type = #tpu.core_type<tc>} {
    %c0 = arith.constant 0 : index
    %c0_0 = arith.constant 0 : index
    %0 = vector.load %arg0[%c0, %c0_0] : memref<2x2048xf32, #tpu.memory_space<vmem>>, vector<2x2048xf32>
    %cst = arith.constant dense<0.000000e+00> : vector<2048xf32>
    %1 = vector.multi_reduction <add>, %0, %cst [0] : vector<2x2048xf32> to vector<2048xf32>
    %2 = vector.shape_cast %1 : vector<2048xf32> to vector<1x2048xf32>
    %cst_1 = arith.constant 2.000000e+00 : f32
    %3 = vector.broadcast %cst_1 : f32 to vector<1x2048xf32>
    %4 = arith.divf %2, %3 : vector<1x2048xf32>
    %5 = vector.broadcast %4 : vector<1x2048xf32> to vector<2x2048xf32>
    %6 = arith.subf %0, %5 : vector<2x2048xf32>
    %7 = arith.mulf %6, %6 : vector<2x2048xf32>
    %cst_2 = arith.constant dense<0.000000e+00> : vector<2048xf32>
    %8 = vector.multi_reduction <add>, %7, %cst_2 [0] : vector<2x2048xf32> to vector<2048xf32>
    %9 = vector.shape_cast %8 : vector<2048xf32> to vector<1x2048xf32>
    %cst_3 = arith.constant 2.000000e+00 : f32
    %10 = vector.broadcast %cst_3 : f32 to vector<1x2048xf32>
    %11 = arith.divf %9, %10 : vector<1x2048xf32>
    %cst_4 = arith.constant 9.99999993E-9 : f32
    %12 = vector.broadcast %cst_4 : f32 to vector<1x2048xf32>
    %13 = arith.addf %11, %12 : vector<1x2048xf32>
    %14 = math.sqrt %13 : vector<1x2048xf32>
    %15 = vector.shape_cast %14 : vector<1x2048xf32> to vector<1x1x2048xf32>
    %cst_5 = arith.constant dense<0.000000e+00> : vector<1xf32>
    %16 = vector.multi_reduction <add>, %15, %cst_5 [1, 2] : vector<1x1x2048xf32> to vector<1xf32>
    %17 = vector.shape_cast %16 : vector<1xf32> to vector<1x1x1xf32>
    %18 = vector.extract %17[0, 0, 0] : f32 from vector<1x1x1xf32>
    %cst_6 = arith.constant 2.048000e+03 : f32
    %19 = arith.divf %18, %cst_6 : f32
    %20 = arith.truncf %0 : vector<2x2048xf32> to vector<2x2048xbf16>
    %c0_7 = arith.constant 0 : index
    %c0_8 = arith.constant 0 : index
    %21 = vector.load %arg1[%c0_7, %c0_8] : memref<2048x32xbf16, #tpu.memory_space<vmem>>, vector<2048x32xbf16>
    %cst_9 = arith.constant dense<0.000000e+00> : vector<2x32xf32>
    %22 = tpu.matmul %20, %21, %cst_9 {dimension_numbers = #tpu.dot_dimension_numbers<[1], [0], [0], [1], [0, 0, 1, 1], [], []>} : vector<2x2048xbf16>, vector<2048x32xbf16>, vector<2x32xf32> -> vector<2x32xf32>
    %c0_10 = arith.constant 0 : index
    %c0_11 = arith.constant 0 : index
    %23 = vector.load %arg2[%c0_10, %c0_11] : memref<1x32xf32, #tpu.memory_space<vmem>>, vector<1x32xf32>
    %24 = vector.broadcast %19 : f32 to vector<1x32xf32>
    %25 = arith.mulf %24, %23 : vector<1x32xf32>
    %26 = vector.broadcast %25 : vector<1x32xf32> to vector<2x32xf32>
    %27 = arith.addf %22, %26 : vector<2x32xf32>
    %c0_12 = arith.constant 0 : index
    %c0_13 = arith.constant 0 : index
    %28 = vector.load %arg3[%c0_12, %c0_13] : memref<1x32xf32, #tpu.memory_space<vmem>>, vector<1x32xf32>
    %29 = vector.broadcast %28 : vector<1x32xf32> to vector<2x32xf32>
    %30 = arith.addf %27, %29 : vector<2x32xf32>
    %cst_14 = arith.constant 0.000000e+00 : f32
    %31 = vector.broadcast %cst_14 : f32 to vector<2x32xf32>
    %32 = arith.cmpf ogt, %30, %31 : vector<2x32xf32>
    %cst_15 = arith.constant 2.000000e-01 : f32
    %33 = vector.broadcast %cst_15 : f32 to vector<2x32xf32>
    %34 = arith.mulf %33, %30 : vector<2x32xf32>
    %35 = arith.select %32, %30, %34 : vector<2x32xi1>, vector<2x32xf32>
    %c0_16 = arith.constant 0 : index
    %c0_17 = arith.constant 0 : index
    %36 = vector.load %arg4[%c0_16, %c0_17] : memref<32x1xf32, #tpu.memory_space<vmem>>, vector<32x1xf32>
    %cst_18 = arith.constant dense<0.000000e+00> : vector<2x1xf32>
    %37 = tpu.matmul %35, %36, %cst_18 {dimension_numbers = #tpu.dot_dimension_numbers<[1], [0], [0], [1], [0, 0, 1, 1], [], []>} : vector<2x32xf32>, vector<32x1xf32>, vector<2x1xf32> -> vector<2x1xf32>
    %c0_19 = arith.constant 0 : index
    %c0_20 = arith.constant 0 : index
    %38 = vector.load %arg5[%c0_19, %c0_20] : memref<1x1xf32, #tpu.memory_space<vmem>>, vector<1x1xf32>
    %39 = vector.broadcast %38 : vector<1x1xf32> to vector<2x1xf32>
    %40 = arith.addf %37, %39 : vector<2x1xf32>
    %c0_21 = arith.constant 0 : index
    %c0_22 = arith.constant 0 : index
    %41 = vector.load %arg6[%c0_21, %c0_22] : memref<2x1xf32, #tpu.memory_space<vmem>>, vector<2x1xf32>
    tpu.vector_store %arg6[%c0_21, %c0_22], %40 {strides = array<i32>} : memref<2x1xf32, #tpu.memory_space<vmem>>, vector<2x1xf32>,
    return
  }
}

</mosaic_0001>

<bundles_post_ra>
// kernel: discriminator_forward.4
= control target key start
LH: loop header
LB: loop body
LE: loop exit
PB: predicated region body
PF: predicated region fallthrough
CT: control target
= control target key end

     0   :  { %s2078_s18 = smov 0   ;;  %s2738_s0 = inlined_call_operand.vmem [shape: f32[2,64,32], index: 0, kind: input, shape index: {}]   ;;  %s2739_s1 = inlined_call_operand.vmem [shape: bf16[288,32], index: 1, kind: input, shape index: {}]   ;;  %s2740_s2 = inlined_call_operand.vmem [shape: f32[1,32], index: 2, kind: input, shape index: {}]   ;;  %s2741_s3 = inlined_call_operand.vmem [shape: bf16[288,32], index: 3, kind: input, shape index: {}]   ;;  %s2742_s4 = inlined_call_operand.vmem [shape: f32[1,32], index: 4, kind: input, shape index: {}]   ;;  %s2743_s5 = inlined_call_operand.vmem [shape: f32[2,64,32], index: 5, kind: output, shape index: {}]  }
   0x1 LB: > { %s1571_s19 = sadd.s32 4294967295, %s2042_s18   ;;  %p1575_p0 = scmp.ge.s32.totalorder %s2042_s18, 1  ;;  %s2042_s18 = sphi %s2078_s18, %s15_s18  }
   0x2   : > { %p187_p1 = scmp.lt.s32.totalorder %s2042_s18, 3 }
   0x4   : > { %p188_p2 = pnand %p1575_p0, %p187_p1 }
   0x5   : > { %p215_p3 = scmp.lt.s32.totalorder (!%p188_p2), %s1571_s19, 1  ;;  %s2045_s24 = smov (!%p188_p2), 32  }
   0x6   : > { %191 = sbr.rel (%p188_p2) target bundleno = 701 (0x2bd), region = 40  ;;  %s2046_s25 = smov (!%p188_p2), 96  }
   0x7   : > { %s2047_s26 = smov (!%p188_p2), 64  }
   0xb   : > { %vm226_vm0 = vcmask 261120   ;;  %v2044_v0 = vmov 0.0   ;;  %s2745_s19 = smov (!%p215_p3, %s1571_s19), 1  ;;  %vm229_vm1 = vcmask 253952   ;;  %v1743_v43 = vld [vmem:[%s2739_s1 + $0x38] sm:$0xff]  ;;  %v1742_v45 = vld [vmem:[%s2739_s1 + $0x30] sm:$0xff] }
   0xc   : > { %241 = vst.msk [vmem:[#allocation2 + $0x68] sm:$0xff] %vm226_vm0, %v2044_v0  ;;  %s1734_s20 = sshll.u32 %s2745_s19, 6  ;;  %1772 = vmatpush.bf16.msra.mxu1 %v1743_v43  ;;  %792 = vmatpush.bf16.msra.mxu0 %v1743_v43  ;;  %v1741_v48 = vld [vmem:[%s2739_s1 + $0x28] sm:$0xff]  ;;  %v1740_v50 = vld [vmem:[%s2739_s1 + $0x20] sm:$0xff]  ;;  %v1739_v54 = vld [vmem:[%s2739_s1 + $0x18] sm:$0xff]  ;;  %vm615_vm2 = vcmask 523264  }
   0xd   : > { %244 = vst.msk [vmem:[#allocation2 + $0x80] sm:$0xff] %vm226_vm0, %v2044_v0  ;;  %s2102_s23 = scalar_lea.vmem %s2738_s0, %s1734_s20  ;;  %v1738_v56 = vld [vmem:[%s2739_s1 + $0x10] sm:$0xff]  ;;  %v1737_v59 = vld [vmem:[%s2739_s1 + $0x8] sm:$0xff]  ;;  %vm624_vm3 = vcmask 785408   ;;  %s2710_s17 = scalar_lea.vmem %s2743_s5, %s1734_s20 }
   0xe   : > { %227 = vst.msk [vmem:[#allocation2] sm:$0xff] %vm226_vm0, %v2044_v0  ;;  %v291_v1 = vld [vmem:[%s2102_s23 + $0x18] sm:$0xff]  ;;  %v292_v2 = vld [vmem:[%s2102_s23 + $0x20] sm:$0xff]  ;;  %v293_v6 = vld [vmem:[%s2102_s23 + $0x28] sm:$0xff] }
   0xf   : > { %228 = vst.msk [vmem:[#allocation2 + $0x8] sm:$0xff] %vm226_vm0, %v2044_v0  ;;  %v294_v13 = vld [vmem:[%s2102_s23 + $0x30] sm:$0xff]  ;;  %v288_v14 = vld [vmem:[%s2102_s23] sm:$0xff]  ;;  %v289_v15 = vld [vmem:[%s2102_s23 + $0x8] sm:$0xff] }
  0x10   : > { %231 = vst.msk [vmem:[#allocation2 + $0x18] sm:$0xff] %vm226_vm0, %v2044_v0  ;;  %v290_v16 = vld [vmem:[%s2102_s23 + $0x10] sm:$0xff]  ;;  %v295_v17 = vld [vmem:[%s2102_s23 + $0x38] sm:$0xff]  ;;  %1773 = vmatpush.bf16.msra.mxu1 %v1742_v45  ;;  %793 = vmatpush.bf16.msra.mxu0 %v1742_v45 }
  0x11   : > { %232 = vst.msk [vmem:[#allocation2 + $0x20] sm:$0xff] %vm226_vm0, %v2044_v0  ;;  %v1746_v45 = vld [vmem:[%s2739_s1 + $0x50] sm:$0xff] }
  0x12   : > { %300 = vst.msk [vmem:[#allocation2 + $0x68] sm:$0xff] %vm226_vm0, %v291_v1  ;;  %v1736_v1 = vld [vmem:[%s2739_s1] sm:$0xff] }
  0x13   : > { %301 = vst.msk [vmem:[#allocation2 + $0x80] sm:$0xff] %vm226_vm0, %v292_v2  ;;  %v1751_v2 = vld [vmem:[%s2739_s1 + $0x78] sm:$0xff] }
  0x14   : > { %234 = vst.msk [vmem:[#allocation2 + $0x30] sm:$0xff] %vm226_vm0, %v2044_v0  ;;  %1774 = vmatpush.bf16.msra.mxu1 %v1741_v48  ;;  %794 = vmatpush.bf16.msra.mxu0 %v1741_v48  ;;  %v1744_v48 = vld [vmem:[%s2739_s1 + $0x40] sm:$0xff] }
  0x15   : > { %235 = vst.msk [vmem:[#allocation2 + $0x38] sm:$0xff] %vm226_vm0, %v2044_v0 }
  0x16   : > { %237 = vst.msk [vmem:[#allocation2 + $0x48] sm:$0xff] %vm226_vm0, %v2044_v0  ;;  %v350_v20 = vld [vmem:[#allocation2 + $0x8] sm:$0xff] }
  0x17   : > { %238 = vst.msk [vmem:[#allocation2 + $0x50] sm:$0xff] %vm226_vm0, %v2044_v0 }
  0x18   : > { %240 = vst.msk [vmem:[#allocation2 + $0x60] sm:$0xff] %vm226_vm0, %v2044_v0  ;;  %1775 = vmatpush.bf16.msra.mxu1 %v1740_v50  ;;  %795 = vmatpush.bf16.msra.mxu0 %v1740_v50 }
  0x19   : > { %v2122_v3 = vld [vmem:[#allocation2 + $0x68] sm:$0xff]  ;;  %243 = vst.msk [vmem:[#allocation2 + $0x78] sm:$0xff] %vm226_vm0, %v2044_v0 }
  0x1a   : > { %v2126_v4 = vld [vmem:[#allocation2 + $0x80] sm:$0xff]  ;;  %246 = vst.msk [vmem:[#allocation2 + $0x90] sm:$0xff] %vm226_vm0, %v2044_v0 }
  0x1b   : > { %v2132_v5 = vpack.i.bf16 %v2126_v4, %v2122_v3  ;;  %247 = vst.msk [vmem:[#allocation2 + $0x98] sm:$0xff] %vm226_vm0, %v2044_v0 }
  0x1c   : > { %249 = vst.msk [vmem:[#allocation2 + $0xa8] sm:$0xff] %vm226_vm0, %v2044_v0  ;;  %1776 = vmatpush.bf16.msra.mxu1 %v1739_v54  ;;  %796 = vmatpush.bf16.msra.mxu0 %v1739_v54 }
  0x1d   : > { %1795 = vrot.lane.b32.xlu0 %v2132_v5, %s2045_s24  ;;  %250 = vst.msk [vmem:[#allocation2 + $0xb0] sm:$0xff] %vm226_vm0, %v2044_v0 }
  0x1e   : > { %252 = vst.msk [vmem:[#allocation2 + $0xc0] sm:$0xff] %vm226_vm0, %v2044_v0 }
  0x1f   : > { %253 = vst.msk [vmem:[#allocation2 + $0xc8] sm:$0xff] %vm226_vm0, %v2044_v0  ;;  %v2323_v49 = vld [vmem:[#allocation2 + $0x67] sm:$0xff] }
  0x20   : > { %255 = vst.msk [vmem:[#allocation2 + $0xd8] sm:$0xff] %vm226_vm0, %v2044_v0  ;;  %v2200_v7 = vld [vmem:[#allocation2 + $0x7f] sm:$0xff]  ;;  %1777 = vmatpush.bf16.msra.mxu1 %v1738_v56  ;;  %797 = vmatpush.bf16.msra.mxu0 %v1738_v56 }
  0x21   : > { %256 = vst.msk [vmem:[#allocation2 + $0xe0] sm:$0xff] %vm226_vm0, %v2044_v0  ;;  %v1874_v51 = vpack.i.bf16 %v2200_v7, %v2323_v49 }
  0x22   : > { %258 = vst.msk [vmem:[#allocation3] sm:$0xff] %vm226_vm0, %v2044_v0 }
  0x23   : > { %259 = vst.msk [vmem:[#allocation3 + $0x8] sm:$0xff] %vm226_vm0, %v2044_v0 }
  0x24   : > { %261 = vst.msk [vmem:[#allocation3 + $0x18] sm:$0xff] %vm226_vm0, %v2044_v0  ;;  %1778 = vmatpush.bf16.msra.mxu1 %v1737_v59  ;;  %798 = vmatpush.bf16.msra.mxu0 %v1737_v59 }
  0x25   : > { %262 = vst.msk [vmem:[#allocation3 + $0x20] sm:$0xff] %vm226_vm0, %v2044_v0 }
  0x26   : > { %264 = vst.msk [vmem:[#allocation3 + $0x30] sm:$0xff] %vm226_vm0, %v2044_v0 }
  0x27   : > { %265 = vst.msk [vmem:[#allocation3 + $0x38] sm:$0xff] %vm226_vm0, %v2044_v0 }
  0x28   : > { %267 = vst.msk [vmem:[#allocation3 + $0x48] sm:$0xff] %vm226_vm0, %v2044_v0  ;;  %v398_v60 = vld [vmem:[#allocation2 + $0xdf] sm:$0xff]  ;;  %1779 = vmatpush.bf16.msra.mxu1 %v1736_v1  ;;  %799 = vmatpush.bf16.msra.mxu0 %v1736_v1 }
  0x29   : > { %268 = vst.msk [vmem:[#allocation3 + $0x50] sm:$0xff] %vm226_vm0, %v2044_v0  ;;  %v406_v63 = vld [vmem:[#allocation2 + $0xe0] sm:$0xff] }
  0x2a   : > { %270 = vst.msk [vmem:[#allocation3 + $0x60] sm:$0xff] %vm226_vm0, %v2044_v0 }
  0x2b   : > { %271 = vst.msk [vmem:[#allocation3 + $0x68] sm:$0xff] %vm226_vm0, %v2044_v0 }
  0x2c   : > { %273 = vst.msk [vmem:[#allocation3 + $0x78] sm:$0xff] %vm226_vm0, %v2044_v0  ;;  %821 = vmatpush.bf16.msrb.mxu1 %v1751_v2 }
  0x2d   : > { %274 = vst.msk [vmem:[#allocation3 + $0x80] sm:$0xff] %vm226_vm0, %v2044_v0 }
  0x2e   : > { %276 = vst.msk [vmem:[#allocation3 + $0x90] sm:$0xff] %vm226_vm0, %v2044_v0 }
  0x2f   : > { %277 = vst.msk [vmem:[#allocation3 + $0x98] sm:$0xff] %vm226_vm0, %v2044_v0 }
  0x30   : > { %279 = vst.msk [vmem:[#allocation3 + $0xa8] sm:$0xff] %vm226_vm0, %v2044_v0 }
  0x31   : > { %280 = vst.msk [vmem:[#allocation3 + $0xb0] sm:$0xff] %vm226_vm0, %v2044_v0 }
  0x32   : > { %282 = vst.msk [vmem:[#allocation3 + $0xc0] sm:$0xff] %vm226_vm0, %v2044_v0 }
  0x33   : > { %283 = vst.msk [vmem:[#allocation3 + $0xc8] sm:$0xff] %vm226_vm0, %v2044_v0 }
  0x34   : > { %285 = vst.msk [vmem:[#allocation3 + $0xd8] sm:$0xff] %vm226_vm0, %v2044_v0 }
  0x35   : > { %286 = vst.msk [vmem:[#allocation3 + $0xe0] sm:$0xff] %vm226_vm0, %v2044_v0 }
  0x36   : > { %302 = vst.msk [vmem:[#allocation2 + $0x98] sm:$0xff] %vm226_vm0, %v293_v6 }
  0x37   : > { %242 = vst.msk [vmem:[#allocation2 + $0x70] sm:$0x1] %vm229_vm1, %v2044_v0 }
  0x38   : > { %245 = vst.msk [vmem:[#allocation2 + $0x88] sm:$0x1] %vm229_vm1, %v2044_v0 }
  0x39   : > { %230 = vst.msk [vmem:[#allocation2 + $0x10] sm:$0x1] %vm229_vm1, %v2044_v0 }
  0x3a   : > { %233 = vst.msk [vmem:[#allocation2 + $0x28] sm:$0x1] %vm229_vm1, %v2044_v0 }
  0x3b   : > { %236 = vst.msk [vmem:[#allocation2 + $0x40] sm:$0x1] %vm229_vm1, %v2044_v0 }
  0x3c   : > { %239 = vst.msk [vmem:[#allocation2 + $0x58] sm:$0x1] %vm229_vm1, %v2044_v0 }
  0x3d   : > { %v2206_v8 = vld [vmem:[#allocation2 + $0x97] sm:$0xff]  ;;  %248 = vst.msk [vmem:[#allocation2 + $0xa0] sm:$0x1] %vm229_vm1, %v2044_v0 }
  0x3e   : > { %v1804_v9 = vpack.i.bf16 %v2206_v8, %v2200_v7  ;;  %v2212_v10 = vld [vmem:[#allocation2 + $0x69] sm:$0xff]  ;;  %251 = vst.msk [vmem:[#allocation2 + $0xb8] sm:$0x1] %vm229_vm1, %v2044_v0  ;;  %v2256_v18 = vld [vmem:[#allocation2 + $0x98] sm:$0xff] }
  0x3f   : > { %v2216_v11 = vld [vmem:[#allocation2 + $0x81] sm:$0xff]  ;;  %254 = vst.msk [vmem:[#allocation2 + $0xd0] sm:$0x1] %vm229_vm1, %v2044_v0 }
  0x40   : > { %1805 = vrot.lane.b32.xlu1 %v1804_v9, %s2046_s25  ;;  %v1799_v12 = vpack.i.bf16 %v2216_v11, %v2212_v10  ;;  %257 = vst.msk [vmem:[#allocation2 + $0xe8] sm:$0x1] %vm229_vm1, %v2044_v0  ;;  %v358_v27 = vld [vmem:[#allocation2 + $0x9] sm:$0xff] }
  0x41   : > { %260 = vst.msk [vmem:[#allocation3 + $0x10] sm:$0x1] %vm229_vm1, %v2044_v0  ;;  %v1749_v9 = vld [vmem:[%s2739_s1 + $0x68] sm:$0xff] }
  0x42   : > { %1800 = vrot.lane.b32.xlu0 %v1799_v12, %s2047_s26  ;;  %263 = vst.msk [vmem:[#allocation3 + $0x28] sm:$0x1] %vm229_vm1, %v2044_v0  ;;  %v1748_v12 = vld [vmem:[%s2739_s1 + $0x60] sm:$0xff] }
  0x43   : > { %266 = vst.msk [vmem:[#allocation3 + $0x40] sm:$0x1] %vm229_vm1, %v2044_v0 }
  0x44   : > { %269 = vst.msk [vmem:[#allocation3 + $0x58] sm:$0x1] %vm229_vm1, %v2044_v0  ;;  %v2258_v19 = vld [vmem:[#allocation2 + $0x99] sm:$0xff] }
  0x45   : > { %272 = vst.msk [vmem:[#allocation3 + $0x70] sm:$0x1] %vm229_vm1, %v2044_v0  ;;  %v1884_v53 = vpack.i.bf16 %v2258_v19, %v2216_v11 }
  0x46   : > { %275 = vst.msk [vmem:[#allocation3 + $0x88] sm:$0x1] %vm229_vm1, %v2044_v0 }
  0x47   : > { %278 = vst.msk [vmem:[#allocation3 + $0xa0] sm:$0x1] %vm229_vm1, %v2044_v0 }
  0x48   : > { %281 = vst.msk [vmem:[#allocation3 + $0xb8] sm:$0x1] %vm229_vm1, %v2044_v0 }
  0x49   : > { %284 = vst.msk [vmem:[#allocation3 + $0xd0] sm:$0x1] %vm229_vm1, %v2044_v0 }
  0x4a   : > { %287 = vst.msk [vmem:[#allocation3 + $0xe8] sm:$0x1] %vm229_vm1, %v2044_v0 }
  0x4b   : > { %303 = vst.msk [vmem:[#allocation2 + $0xb0] sm:$0xff] %vm226_vm0, %v294_v13  ;;  %v1753_v13 = vld [vmem:[%s2739_s1 + $0x88] sm:$0xff] }
  0x4c   : > { %297 = vst.msk [vmem:[#allocation2 + $0x20] sm:$0xff] %vm226_vm0, %v288_v14  ;;  %856 = vmatpush.bf16.msra.mxu2 %v1753_v13  ;;  %1780 = vmatpush.bf16.msra.mxu3 %v1753_v13 }
  0x4d   : > { %298 = vst.msk [vmem:[#allocation2 + $0x38] sm:$0xff] %vm226_vm0, %v289_v15 }
  0x4e   : > { %299 = vst.msk [vmem:[#allocation2 + $0x50] sm:$0xff] %vm226_vm0, %v290_v16 }
  0x4f   : > { %304 = vst.msk [vmem:[#allocation2 + $0xc8] sm:$0xff] %vm226_vm0, %v295_v17  ;;  %v1747_v17 = vld [vmem:[%s2739_s1 + $0x58] sm:$0xff] }
  0x52   : > { %v2260_v21 = vld [vmem:[#allocation2 + $0xb0] sm:$0xff] }
  0x53   : > { %v2262_v22 = vld [vmem:[#allocation2 + $0xb1] sm:$0xff]  ;;  %v2266_v23 = vpack.i.bf16 %v2260_v21, %v2256_v18  ;;  %v2268_v24 = vld [vmem:[#allocation2 + $0x20] sm:$0xff] }
  0x54   : > { %v1814_v25 = vpack.i.bf16 %v2262_v22, %v2258_v19  ;;  %v1824_v26 = vpack.i.bf16 %v2268_v24, %v350_v20  ;;  %v359_v28 = vld [vmem:[#allocation2 + $0x21] sm:$0xff]  ;;  %v2277_v29 = vld [vmem:[#allocation2 + $0xaf] sm:$0xff]  ;;  %v2279_v31 = vld [vmem:[#allocation2 + $0x39] sm:$0xff] }
  0x55   : > { %1810 = vrot.lane.b32.xlu1 %v2266_v23, %s2045_s24  ;;  %v1829_v32 = vpack.i.bf16 %v359_v28, %v358_v27  ;;  %v1839_v34 = vpack.i.bf16 %v2279_v31, %v359_v28  ;;  %v2286_v35 = vld [vmem:[#allocation2 + $0x37] sm:$0xff]  ;;  %v2288_v36 = vld [vmem:[#allocation2 + $0x4f] sm:$0xff]  ;;  %v2290_v37 = vld [vmem:[#allocation2 + $0x1f] sm:$0xff]  ;;  %v1889_v57 = vpack.i.bf16 %v2277_v29, %v2206_v8 }
  0x56   : > { %1815 = vrot.lane.b32.xlu2 %v1814_v25, %s2047_s26  ;;  %1825 = vrot.lane.b32.xlu0 %v1824_v26, %s2045_s24  ;;  %v373_v30 = vld [vmem:[#allocation2 + $0xc7] sm:$0xff]  ;;  %v2292_v38 = vld [vmem:[#allocation2 + $0x38] sm:$0xff]  ;;  %v2294_v39 = vld [vmem:[#allocation2 + $0x50] sm:$0xff]  ;;  %v1844_v40 = vpack.i.bf16 %v2288_v36, %v2286_v35  ;;  %v1834_v41 = vpack.i.bf16 %v2286_v35, %v2290_v37  ;;  %v1864_v52 = vpack.i.bf16 %v2323_v49, %v2288_v36 }
  0x57   : > { %v1819_v33 = vpack.i.bf16 %v373_v30, %v2277_v29  ;;  %v1854_v42 = vpack.i.bf16 %v2294_v39, %v2292_v38  ;;  %v2308_v44 = vld [vmem:[#allocation2 + $0x51] sm:$0xff]  ;;  %v2340_v55 = vld [vmem:[#allocation2 + $0xc9] sm:$0xff]  ;;  %v1904_v61 = vpack.i.bf16 %v398_v60, %v373_v30  ;;  %v1752_v30 = vld [vmem:[%s2739_s1 + $0x80] sm:$0xff] }
  0x58   : > { %v1859_v46 = vpack.i.bf16 %v2308_v44, %v2279_v31  ;;  %v1869_v47 = vpack.i.bf16 %v2212_v10, %v2308_v44  ;;  %v1899_v58 = vpack.i.bf16 %v2340_v55, %v2262_v22  ;;  %v2359_v62 = vld [vmem:[#allocation2 + $0xc8] sm:$0xff]  ;;  %857 = vmatpush.bf16.msra.mxu2 %v1752_v30  ;;  %1781 = vmatpush.bf16.msra.mxu3 %v1752_v30 }
  0x59   : > { %v1909_v0 = vpack.i.bf16 %v406_v63, %v2359_v62 }
  0x5d   : > { %1830 = vrot.lane.b32.xlu1 %v1829_v32, %s2047_s26 }
  0x5e   : > { %1820 = vrot.lane.b32.xlu2 %v1819_v33, %s2046_s25  ;;  %1840 = vrot.lane.b32.xlu0 %v1839_v34, %s2045_s24 }
  0x65   : > { %1845 = vrot.lane.b32.xlu1 %v1844_v40, %s2047_s26 }
  0x66   : > { %1835 = vrot.lane.b32.xlu2 %v1834_v41, %s2046_s25  ;;  %1855 = vrot.lane.b32.xlu0 %v1854_v42, %s2045_s24 }
  0x6d   : > { %1860 = vrot.lane.b32.xlu1 %v1859_v46, %s2047_s26  ;;  %v1745_v46 = vld [vmem:[%s2739_s1 + $0x48] sm:$0xff] }
  0x6e   : > { %1850 = vrot.lane.b32.xlu2 %v1854_v42, %s2046_s25  ;;  %1870 = vrot.lane.b32.xlu0 %v1869_v47, %s2045_s24 }
  0x75   : > { %1875 = vrot.lane.b32.xlu1 %v1874_v51, %s2047_s26 }
  0x76   : > { %1865 = vrot.lane.b32.xlu2 %v1864_v52, %s2046_s25  ;;  %1885 = vrot.lane.b32.xlu0 %v1884_v53, %s2045_s24 }
  0x7d   : > { %1890 = vrot.lane.b32.xlu1 %v1889_v57, %s2047_s26 }
  0x7e   : > { %1880 = vrot.lane.b32.xlu2 %v2132_v5, %s2046_s25  ;;  %1900 = vrot.lane.b32.xlu0 %v1899_v58, %s2045_s24  ;;  %v1750_v5 = vld [vmem:[%s2739_s1 + $0x70] sm:$0xff] }
  0x7f   : > { %822 = vmatpush.bf16.msrb.mxu1 %v1750_v5 }
  0x83   : > { %823 = vmatpush.bf16.msrb.mxu1 %v1749_v9 }
  0x85   : > { %1905 = vrot.lane.b32.xlu1 %v1904_v61, %s2047_s26 }
  0x86   : > { %1895 = vrot.lane.b32.xlu2 %v2266_v23, %s2046_s25 }
  0x87   : > { %824 = vmatpush.bf16.msrb.mxu1 %v1748_v12  ;;  %v665_v12 = vpack.c.bf16 %v2262_v22, %v2258_v19 }
  0x89   : > { %1654 = vmatmul.msk.bf16.vlgmr.msra.gmra.mxu3 %vm226_vm0, %v665_v12 }
  0x8b   : > { %825 = vmatpush.bf16.msrb.mxu1 %v1747_v17 }
  0x8e   : > { %1910 = vrot.lane.b32.xlu2 %v1909_v0, %s2046_s25 }
  0x8f   : > { %v1796_v6 = vpop.permute.xlu0 %1795  ;;  %826 = vmatpush.bf16.msrb.mxu1 %v1746_v45 }
  0x90   : > { %v1798_v14 = vunpack.i.h.bf16 %v1796_v6  ;;  %v1797_v15 = vunpack.i.l.bf16 %v1796_v6 }
  0x92   : > { %v612_v32 = vsel %vm226_vm0, %v2200_v7, %v1798_v14  ;;  %v611_v33 = vsel %vm226_vm0, %v2323_v49, %v1797_v15  ;;  %v659_v7 = vpack.c.bf16 %v2308_v44, %v2279_v31  ;;  %v662_v31 = vpack.c.bf16 %v2216_v11, %v2212_v10  ;;  %v342_v10 = vld [vmem:[#allocation2 + $0x7] sm:$0xff] }
  0x93   : > { %827 = vmatpush.bf16.msrb.mxu1 %v1745_v46 }
  0x94   : > { %1652 = vmatmul.msk.bf16.vlgmr.msra.gmra.mxu2 %vm226_vm0, %v659_v7 }
  0x97   : > { %828 = vmatpush.bf16.msrb.mxu1 %v1744_v48 }
  0xa4   : > { %1653 = vmatmul.msk.bf16.gmra.mxu2 %vm226_vm0, %v662_v31  ;;  %v414_v31 = vld [vmem:[#allocation2 + $0xe1] sm:$0xff] }
  0xb0   : > { %v1816_v26 = vpop.permute.xlu2 %1815 }
  0xb1   : > { %v1818_v49 = vunpack.i.h.bf16 %v1816_v26  ;;  %v1817_v50 = vunpack.i.l.bf16 %v1816_v26 }
  0xb2   : > { %v1806_v16 = vpop.permute.xlu1 %1805 }
  0xb3   : > { %v1808_v20 = vunpack.i.h.bf16 %v1806_v16  ;;  %v1807_v23 = vunpack.i.l.bf16 %v1806_v16 }
  0xb4   : > { %v1801_v25 = vpop.permute.xlu0 %1800 }
  0xb5   : > { %v1803_v27 = vunpack.i.h.bf16 %v1801_v25  ;;  %v1802_v28 = vunpack.i.l.bf16 %v1801_v25 }
  0xb7   : > { %v620_v34 = vsel %vm615_vm2, %v611_v33, %v1802_v28  ;;  %v621_v40 = vsel %vm615_vm2, %v612_v32, %v1803_v27 }
  0xb8   : > { %v629_v41 = vsel %vm624_vm3, %v620_v34, %v1807_v23  ;;  %v630_v42 = vsel %vm624_vm3, %v621_v40, %v1808_v20  ;;  %v1821_v47 = vpop.permute.xlu2 %1820 }
  0xb9   : > { %v663_v43 = vpack.c.bf16 %v630_v42, %v629_v41  ;;  %v1823_v53 = vunpack.i.h.bf16 %v1821_v47  ;;  %v1822_v54 = vunpack.i.l.bf16 %v1821_v47 }
  0xbb   : > { %810 = vmatmul.bf16.vlgmr.msra.gmra.mxu1 %v663_v43 }
  0xc0   : > { %v1836_v57 = vpop.permute.xlu2 %1835 }
  0xc1   : > { %v1838_v5 = vunpack.i.h.bf16 %v1836_v57  ;;  %v1837_v9 = vunpack.i.l.bf16 %v1836_v57 }
  0xc7   : > { %v1811_v51 = vpop.permute.xlu1 %1810 }
  0xc8   : > { %v1813_v44 = vunpack.i.h.bf16 %v1811_v51  ;;  %v1812_v52 = vunpack.i.l.bf16 %v1811_v51  ;;  %v1826_v56 = vpop.permute.xlu0 %1825  ;;  %v1851_v20 = vpop.permute.xlu2 %1850 }
  0xc9   : > { %v1828_v60 = vunpack.i.h.bf16 %v1826_v56  ;;  %v1827_v61 = vunpack.i.l.bf16 %v1826_v56  ;;  %v1853_v30 = vunpack.i.h.bf16 %v1851_v20  ;;  %v1852_v32 = vunpack.i.l.bf16 %v1851_v20 }
  0xca   : > { %v614_v58 = vsel %vm226_vm0, %v2277_v29, %v1813_v44  ;;  %v613_v59 = vsel %vm226_vm0, %v2206_v8, %v1812_v52 }
  0xcb   : > { %v622_v63 = vsel %vm615_vm2, %v613_v59, %v1817_v50  ;;  %v623_v0 = vsel %vm615_vm2, %v614_v58, %v1818_v49  ;;  %v607_v29 = vsel %vm226_vm0, %v342_v10, %v1827_v61  ;;  %v608_v8 = vsel %vm226_vm0, %v2290_v37, %v1828_v60 }
  0xcc   : > { %v631_v11 = vsel %vm624_vm3, %v622_v63, %v1822_v54  ;;  %v632_v1 = vsel %vm624_vm3, %v623_v0, %v1823_v53  ;;  %v668_v54 = vpack.c.bf16 %v414_v31, %v2340_v55 }
  0xcd   : > { %v666_v2 = vpack.c.bf16 %v632_v1, %v631_v11 }
  0xce   : > { %1655 = vmatmul.msk.bf16.gmra.mxu3 %vm226_vm0, %v668_v54 }
  0xcf   : > { %v1831_v6 = vpop.permute.xlu1 %1830  ;;  %815 = vmatmul.bf16.gmra.mxu1 %v666_v2 }
  0xd0   : > { %v1833_v13 = vunpack.i.h.bf16 %v1831_v6  ;;  %v1832_v14 = vunpack.i.l.bf16 %v1831_v6  ;;  %v1841_v15 = vpop.permute.xlu0 %1840 }
  0xd1   : > { %v1843_v23 = vunpack.i.h.bf16 %v1841_v15  ;;  %v1842_v25 = vunpack.i.l.bf16 %v1841_v15 }
  0xd2   : > { %v616_v16 = vsel %vm615_vm2, %v607_v29, %v1832_v14  ;;  %v617_v17 = vsel %vm615_vm2, %v608_v8, %v1833_v13 }
  0xd3   : > { %v625_v37 = vsel %vm624_vm3, %v616_v16, %v1837_v9  ;;  %v626_v26 = vsel %vm624_vm3, %v617_v17, %v1838_v5  ;;  %v634_v19 = vsel %vm226_vm0, %v2292_v38, %v1843_v23  ;;  %v633_v22 = vsel %vm226_vm0, %v2268_v24, %v1842_v25  ;;  %v1866_v38 = vpop.permute.xlu2 %1865 }
  0xd4   : > { %v657_v27 = vpack.c.bf16 %v626_v26, %v625_v37  ;;  %v1868_v50 = vunpack.i.h.bf16 %v1866_v38  ;;  %v1867_v51 = vunpack.i.l.bf16 %v1866_v38 }
  0xd6   : > { %800 = vmatmul.bf16.vlgmr.msra.gmra.mxu0 %v657_v27 }
  0xd7   : > { %v1846_v28 = vpop.permute.xlu1 %1845 }
  0xd8   : > { %v1848_v33 = vunpack.i.h.bf16 %v1846_v28  ;;  %v1847_v34 = vunpack.i.l.bf16 %v1846_v28  ;;  %v1856_v40 = vpop.permute.xlu0 %1855 }
  0xd9   : > { %v1858_v43 = vunpack.i.h.bf16 %v1856_v40  ;;  %v1857_v45 = vunpack.i.l.bf16 %v1856_v40 }
  0xda   : > { %v641_v41 = vsel %vm615_vm2, %v633_v22, %v1847_v34  ;;  %v642_v42 = vsel %vm615_vm2, %v634_v19, %v1848_v33 }
  0xdb   : > { %v649_v7 = vsel %vm624_vm3, %v641_v41, %v1852_v32  ;;  %v650_v46 = vsel %vm624_vm3, %v642_v42, %v1853_v30  ;;  %v610_v24 = vsel %vm226_vm0, %v2288_v36, %v1858_v43  ;;  %v609_v48 = vsel %vm226_vm0, %v2286_v35, %v1857_v45  ;;  %v1881_v61 = vpop.permute.xlu2 %1880 }
  0xdc   : > { %v658_v47 = vpack.c.bf16 %v650_v46, %v649_v7  ;;  %v1883_v10 = vunpack.i.h.bf16 %v1881_v61  ;;  %v1882_v11 = vunpack.i.l.bf16 %v1881_v61 }
  0xdf   : > { %v1861_v49 = vpop.permute.xlu1 %1860  ;;  %829 = vmatmul.bf16.vlgmr.msrb.gmra.mxu1 %v658_v47 }
  0xe0   : > { %v1863_v44 = vunpack.i.h.bf16 %v1861_v49  ;;  %v1862_v52 = vunpack.i.l.bf16 %v1861_v49  ;;  %v1871_v53 = vpop.permute.xlu0 %1870 }
  0xe1   : > { %v1873_v59 = vunpack.i.h.bf16 %v1871_v53  ;;  %v1872_v35 = vunpack.i.l.bf16 %v1871_v53  ;;  %v1771_v53 = vld [vmem:[%s2741_s3 + $0x88] sm:$0xff] }
  0xe2   : > { %v618_v56 = vsel %vm615_vm2, %v609_v48, %v1862_v52  ;;  %v619_v57 = vsel %vm615_vm2, %v610_v24, %v1863_v44  ;;  %1461 = vmatpush.bf16.msrb.mxu0 %v1771_v53 }
  0xe3   : > { %v627_v58 = vsel %vm624_vm3, %v618_v56, %v1867_v51  ;;  %v628_v36 = vsel %vm624_vm3, %v619_v57, %v1868_v50  ;;  %v636_v63 = vsel %vm226_vm0, %v2122_v3, %v1873_v59  ;;  %v635_v55 = vsel %vm226_vm0, %v2294_v39, %v1872_v35  ;;  %v1896_v16 = vpop.permute.xlu2 %1895  ;;  %v2481_v51 = vld [vmem:[%s2740_s2] ss:$0 sm:$0xff] }
  0xe4   : > { %v660_v60 = vpack.c.bf16 %v628_v36, %v627_v58  ;;  %v1898_v23 = vunpack.i.h.bf16 %v1896_v16  ;;  %v1897_v25 = vunpack.i.l.bf16 %v1896_v16  ;;  %v1770_v56 = vld [vmem:[%s2741_s3 + $0x80] sm:$0xff] }
  0xe6   : > { %805 = vmatmul.bf16.gmra.mxu0 %v660_v60 }
  0xe7   : > { %v1876_v0 = vpop.permute.xlu1 %1875  ;;  %1462 = vmatpush.bf16.msrb.mxu0 %v1770_v56 }
  0xe8   : > { %v1878_v1 = vunpack.i.h.bf16 %v1876_v0  ;;  %v1877_v2 = vunpack.i.l.bf16 %v1876_v0  ;;  %v1886_v9 = vpop.permute.xlu0 %1885 }
  0xe9   : > { %v1888_v13 = vunpack.i.h.bf16 %v1886_v9  ;;  %v1887_v3 = vunpack.i.l.bf16 %v1886_v9 }
  0xea   : > { %v643_v5 = vsel %vm615_vm2, %v635_v55, %v1877_v2  ;;  %v644_v29 = vsel %vm615_vm2, %v636_v63, %v1878_v1 }
  0xeb   : > { %v651_v8 = vsel %vm624_vm3, %v643_v5, %v1882_v11  ;;  %v652_v6 = vsel %vm624_vm3, %v644_v29, %v1883_v10  ;;  %v638_v17 = vsel %vm226_vm0, %v2256_v18, %v1888_v13  ;;  %v637_v20 = vsel %vm226_vm0, %v2126_v4, %v1887_v3  ;;  %v1911_v40 = vpop.permute.xlu2 %1910  ;;  %v965_v10 = vld [vmem:[#allocation3 + $0x9] sm:$0xff] }
  0xec   : > { %v661_v12 = vpack.c.bf16 %v652_v6, %v651_v8  ;;  %v1913_v42 = vunpack.i.h.bf16 %v1911_v40  ;;  %v1912_v43 = vunpack.i.l.bf16 %v1911_v40  ;;  %v957_v11 = vld [vmem:[#allocation3 + $0x8] sm:$0xff] }
  0xef   : > { %834 = vmatmul.bf16.gmra.mxu1 %v661_v12  ;;  %v1891_v14 = vpop.permute.xlu1 %1890 }
  0xf0   : > { %v1893_v39 = vunpack.i.h.bf16 %v1891_v14  ;;  %v1892_v15 = vunpack.i.l.bf16 %v1891_v14  ;;  %v1901_v28 = vpop.permute.xlu0 %1900 }
  0xf1   : > { %v1903_v30 = vunpack.i.h.bf16 %v1901_v28  ;;  %v1902_v32 = vunpack.i.l.bf16 %v1901_v28 }
  0xf2   : > { %v645_v37 = vsel %vm615_vm2, %v637_v20, %v1892_v15  ;;  %v646_v26 = vsel %vm615_vm2, %v638_v17, %v1893_v39 }
  0xf3   : > { %v653_v27 = vsel %vm624_vm3, %v645_v37, %v1897_v25  ;;  %v654_v19 = vsel %vm624_vm3, %v646_v26, %v1898_v23  ;;  %v640_v4 = vsel %vm226_vm0, %v2359_v62, %v1903_v30  ;;  %v639_v41 = vsel %vm226_vm0, %v2260_v21, %v1902_v32 }
  0xf4   : > { %v664_v22 = vpack.c.bf16 %v654_v19, %v653_v27 }
  0xf7   : > { %v1906_v33 = vpop.permute.xlu1 %1905 }
  0xf8   : > { %v1908_v18 = vunpack.i.h.bf16 %v1906_v33  ;;  %v1907_v34 = vunpack.i.l.bf16 %v1906_v33 }
  0xfa   : > { %v647_v45 = vsel %vm615_vm2, %v639_v41, %v1907_v34  ;;  %v648_v7 = vsel %vm615_vm2, %v640_v4, %v1908_v18 }
  0xfb   : > { %v655_v46 = vsel %vm624_vm3, %v647_v45, %v1912_v43  ;;  %v656_v38 = vsel %vm624_vm3, %v648_v7, %v1913_v42 }
  0xfc   : > { %v667_v47 = vpack.c.bf16 %v656_v38, %v655_v46 }
  0xff   : > { %839 = vmatmul.bf16.gmra.mxu1 %v664_v22 }
 0x10c   : > { %v869_v28 = vpop.f32.mrf.mxu3 }
 0x10f   : > { %844 = vmatmul.bf16.gmra.mxu1 %v667_v47 }
 0x114   : > { %v871_v47 = vpop.f32.mrf.mxu3 }
 0x117   : > { %v859_v50 = vpop.f32.mrf.mxu2 }
 0x11f   : > { %v861_v36 = vpop.f32.mrf.mxu2 }
 0x127   : > { %v864_v8 = vpop.f32.mrf.mxu2 }
 0x12f   : > { %v866_v19 = vpop.f32.mrf.mxu2 }
 0x138   : > { %v2470_v24 = vpop.f32.mrf.mxu1 }
 0x139   : > { %v812_v33 = vadd.f32 %v2481_v51, %v2470_v24 }
 0x140   : > { %v2472_v48 = vpop.f32.mrf.mxu1 }
 0x141   : > { %v814_v24 = vadd.f32 %v2481_v51, %v2472_v48 }
 0x14c   : > { %v2474_v62 = vpop.f32.mrf.mxu1 }
 0x153   : > { %v801_v49 = vpop.f32.mrf.mxu0 }
 0x154   : > { %v2476_v21 = vpop.f32.mrf.mxu1  ;;  %v802_v31 = vadd.f32 %v2481_v51, %v801_v49 }
 0x15b   : > { %v803_v44 = vpop.f32.mrf.mxu0 }
 0x15c   : > { %v830_v52 = vpop.f32.mrf.mxu1  ;;  %v804_v59 = vadd.f32 %v2481_v51, %v803_v44 }
 0x15d   : > { %v831_v54 = vadd.f32 %v830_v52, %v802_v31 }
 0x15f   : > { %v860_v57 = vadd.f32 %v859_v50, %v831_v54 }
 0x161   : > { %vm879_vm4 = vcmp.gt.f32.partialorder %v860_v57, 0.0  ;;  %v887_v58 = vmul.f32 0.2, %v860_v57 }
 0x163   : > { %v895_v35 = vsel %vm879_vm4, %v860_v57, %v887_v58  ;;  %v806_v63 = vpop.f32.mrf.mxu0 }
 0x164   : > { %904 = vst.msk [vmem:[#allocation3 + $0x20] sm:$0xff] %vm226_vm0, %v895_v35  ;;  %v832_v60 = vpop.f32.mrf.mxu1  ;;  %v807_v1 = vadd.f32 %v2481_v51, %v806_v63  ;;  %v874_v63 = vpop.f32.mrf.mxu3 }
 0x165   : > { %v833_v61 = vadd.f32 %v832_v60, %v804_v59 }
 0x167   : > { %v862_v55 = vadd.f32 %v861_v36, %v833_v61  ;;  %v817_v36 = vadd.f32 %v2481_v51, %v2474_v62 }
 0x169   : > { %vm880_vm5 = vcmp.gt.f32.partialorder %v862_v55, 0.0  ;;  %v888_v0 = vmul.f32 0.2, %v862_v55 }
 0x16b   : > { %v896_v2 = vsel %vm880_vm5, %v862_v55, %v888_v0  ;;  %v966_v5 = vld [vmem:[#allocation3 + $0x21] sm:$0xff]  ;;  %v808_v14 = vpop.f32.mrf.mxu0 }
 0x16c   : > { %v2493_v29 = vld [vmem:[#allocation3 + $0x20] sm:$0xff]  ;;  %905 = vst.msk [vmem:[#allocation3 + $0x38] sm:$0xff] %vm226_vm0, %v896_v2  ;;  %v835_v6 = vpop.f32.mrf.mxu1  ;;  %v1919_v9 = vpack.i.bf16 %v966_v5, %v965_v10  ;;  %v809_v15 = vadd.f32 %v2481_v51, %v808_v14  ;;  %v1761_v2 = vld [vmem:[%s2741_s3 + $0x38] sm:$0xff] }
 0x16d   : > { %v1914_v12 = vpack.i.bf16 %v2493_v29, %v957_v11  ;;  %v836_v13 = vadd.f32 %v835_v6, %v807_v1  ;;  %v2500_v17 = vld [vmem:[#allocation3 + $0x1f] sm:$0xff]  ;;  %1397 = vmatpush.bf16.msrb.mxu3 %v1761_v2  ;;  %v819_v6 = vadd.f32 %v2481_v51, %v2476_v21 }
 0x16e   : > { %1920 = vrot.lane.b32.xlu1 %v1919_v9, %s2047_s26 }
 0x16f   : > { %1915 = vrot.lane.b32.xlu0 %v1914_v12, %s2045_s24  ;;  %v865_v3 = vadd.f32 %v864_v8, %v836_v13  ;;  %v1760_v8 = vld [vmem:[%s2741_s3 + $0x30] sm:$0xff] }
 0x171   : > { %vm881_vm6 = vcmp.gt.f32.partialorder %v865_v3, 0.0  ;;  %v889_v39 = vmul.f32 0.2, %v865_v3  ;;  %1398 = vmatpush.bf16.msrb.mxu3 %v1760_v8 }
 0x173   : > { %v897_v16 = vsel %vm881_vm6, %v865_v3, %v889_v39  ;;  %v2502_v20 = vld [vmem:[#allocation3 + $0x37] sm:$0xff] }
 0x174   : > { %v990_v23 = vld [vmem:[#allocation3 + $0x39] sm:$0xff]  ;;  %906 = vst.msk [vmem:[#allocation3 + $0x50] sm:$0xff] %vm226_vm0, %v897_v16  ;;  %v837_v25 = vpop.f32.mrf.mxu1  ;;  %v1924_v37 = vpack.i.bf16 %v2502_v20, %v2500_v17 }
 0x175   : > { %v1929_v26 = vpack.i.bf16 %v990_v23, %v966_v5  ;;  %v838_v27 = vadd.f32 %v837_v25, %v809_v15  ;;  %v2509_v32 = vld [vmem:[#allocation3 + $0x38] sm:$0xff] }
 0x176   : > { %1925 = vrot.lane.b32.xlu2 %v1924_v37, %s2046_s25 }
 0x177   : > { %1930 = vrot.lane.b32.xlu0 %v1929_v26, %s2045_s24  ;;  %v867_v22 = vadd.f32 %v866_v19, %v838_v27 }
 0x179   : > { %vm882_vm7 = vcmp.gt.f32.partialorder %v867_v22, 0.0  ;;  %v890_v30 = vmul.f32 0.2, %v867_v22 }
 0x17b   : > { %v898_v18 = vsel %vm882_vm7, %v867_v22, %v890_v30  ;;  %v1015_v34 = vld [vmem:[#allocation3 + $0x51] sm:$0xff] }
 0x17c   : > { %v2513_v40 = vld [vmem:[#allocation3 + $0x50] sm:$0xff]  ;;  %907 = vst.msk [vmem:[#allocation3 + $0x68] sm:$0xff] %vm226_vm0, %v898_v18  ;;  %v840_v41 = vpop.f32.mrf.mxu1  ;;  %v1264_v42 = vpack.c.bf16 %v1015_v34, %v990_v23  ;;  %v1949_v56 = vpack.i.bf16 %v1015_v34, %v990_v23  ;;  %v876_v23 = vpop.f32.mrf.mxu3 }
 0x17d   : > { %v2515_v4 = vld [vmem:[#allocation3 + $0x4f] sm:$0xff]  ;;  %v1939_v43 = vpack.i.bf16 %v2513_v40, %v2509_v32  ;;  %v841_v7 = vadd.f32 %v840_v41, %v812_v33 }
 0x17e   : > { %v1934_v45 = vpack.i.bf16 %v2515_v4, %v2502_v20  ;;  %1728 = vmatmul.msk.bf16.vlgmr.msrb.gmra.mxu0 %vm226_vm0, %v1264_v42 }
 0x17f   : > { %1940 = vrot.lane.b32.xlu2 %v1939_v43, %s2046_s25  ;;  %v870_v46 = vadd.f32 %v869_v28, %v841_v7  ;;  %1945 = vrot.lane.b32.xlu0 %v1939_v43, %s2045_s24  ;;  %v1021_v43 = vld [vmem:[#allocation3 + $0xe1] sm:$0xff] }
 0x180   : > { %1935 = vrot.lane.b32.xlu1 %v1934_v45, %s2047_s26  ;;  %v1013_v7 = vld [vmem:[#allocation3 + $0xe0] sm:$0xff] }
 0x181   : > { %vm883_vm8 = vcmp.gt.f32.partialorder %v870_v46, 0.0  ;;  %v891_v38 = vmul.f32 0.2, %v870_v46 }
 0x183   : > { %v899_v49 = vsel %vm883_vm8, %v870_v46, %v891_v38  ;;  %v2528_v50 = vld [vmem:[#allocation3 + $0x67] sm:$0xff]  ;;  %v1005_v46 = vld [vmem:[#allocation3 + $0xdf] sm:$0xff] }
 0x184   : > { %v992_v31 = vld [vmem:[#allocation3 + $0x69] sm:$0xff]  ;;  %908 = vst.msk [vmem:[#allocation3 + $0x80] sm:$0xff] %vm226_vm0, %v899_v49  ;;  %v842_v44 = vpop.f32.mrf.mxu1  ;;  %v1954_v52 = vpack.i.bf16 %v2528_v50, %v2515_v4  ;;  %v1759_v49 = vld [vmem:[%s2741_s3 + $0x28] sm:$0xff] }
 0x185   : > { %v1959_v53 = vpack.i.bf16 %v992_v31, %v1015_v34  ;;  %v843_v54 = vadd.f32 %v842_v44, %v814_v24  ;;  %v2536_v58 = vld [vmem:[#allocation3 + $0x68] sm:$0xff]  ;;  %1399 = vmatpush.bf16.msrb.mxu3 %v1759_v49  ;;  %v1758_v44 = vld [vmem:[%s2741_s3 + $0x20] sm:$0xff] }
 0x187   : > { %1955 = vrot.lane.b32.xlu2 %v1954_v52, %s2046_s25  ;;  %v872_v57 = vadd.f32 %v871_v47, %v843_v54  ;;  %1960 = vrot.lane.b32.xlu0 %v1959_v53, %s2045_s24  ;;  %v1757_v52 = vld [vmem:[%s2741_s3 + $0x18] sm:$0xff]  ;;  %v1768_v53 = vld [vmem:[%s2741_s3 + $0x70] sm:$0xff] }
 0x188   : > { %1950 = vrot.lane.b32.xlu1 %v1949_v56, %s2047_s26  ;;  %v1756_v54 = vld [vmem:[%s2741_s3 + $0x10] sm:$0xff]  ;;  %v1767_v56 = vld [vmem:[%s2741_s3 + $0x68] sm:$0xff] }
 0x189   : > { %vm884_vm9 = vcmp.gt.f32.partialorder %v872_v57, 0.0  ;;  %v892_v48 = vmul.f32 0.2, %v872_v57  ;;  %1400 = vmatpush.bf16.msrb.mxu3 %v1758_v44 }
 0x18b   : > { %v900_v59 = vsel %vm884_vm9, %v872_v57, %v892_v48  ;;  %v1017_v35 = vld [vmem:[#allocation3 + $0x81] sm:$0xff]  ;;  %v1755_v57 = vld [vmem:[%s2741_s3 + $0x8] sm:$0xff]  ;;  %v1766_v48 = vld [vmem:[%s2741_s3 + $0x60] sm:$0xff] }
 0x18c   : > { %v2540_v60 = vld [vmem:[#allocation3 + $0x80] sm:$0xff]  ;;  %909 = vst.msk [vmem:[#allocation3 + $0x98] sm:$0xff] %vm226_vm0, %v900_v59  ;;  %v845_v55 = vpop.f32.mrf.mxu1  ;;  %v1267_v0 = vpack.c.bf16 %v1017_v35, %v992_v31  ;;  %v1979_v16 = vpack.i.bf16 %v1017_v35, %v992_v31  ;;  %v1769_v31 = vld [vmem:[%s2741_s3 + $0x78] sm:$0xff] }
 0x18d   : > { %v2542_v61 = vld [vmem:[#allocation3 + $0x7f] sm:$0xff]  ;;  %v1969_v10 = vpack.i.bf16 %v2540_v60, %v2536_v58  ;;  %v846_v1 = vadd.f32 %v845_v55, %v817_v36  ;;  %1426 = vmatpush.bf16.msrb.mxu2 %v1769_v31  ;;  %1401 = vmatpush.bf16.msrb.mxu3 %v1757_v52  ;;  %v1754_v36 = vld [vmem:[%s2741_s3] sm:$0xff]  ;;  %v1765_v59 = vld [vmem:[%s2741_s3 + $0x58] sm:$0xff] }
 0x18e   : > { %v1964_v11 = vpack.i.bf16 %v2542_v61, %v2528_v50  ;;  %1729 = vmatmul.msk.bf16.gmra.mxu0 %vm226_vm0, %v1267_v0  ;;  %v1762_v55 = vld [vmem:[%s2741_s3 + $0x40] sm:$0xff] }
 0x18f   : > { %1970 = vrot.lane.b32.xlu2 %v1969_v10, %s2046_s25  ;;  %v875_v62 = vadd.f32 %v874_v63, %v846_v1  ;;  %1975 = vrot.lane.b32.xlu0 %v1969_v10, %s2045_s24  ;;  %v1763_v63 = vld [vmem:[%s2741_s3 + $0x48] sm:$0xff] }
 0x190   : > { %1965 = vrot.lane.b32.xlu1 %v1964_v11, %s2047_s26 }
 0x191   : > { %vm885_vm10 = vcmp.gt.f32.partialorder %v875_v62, 0.0  ;;  %v893_v5 = vmul.f32 0.2, %v875_v62  ;;  %1427 = vmatpush.bf16.msrb.mxu2 %v1768_v53  ;;  %1402 = vmatpush.bf16.msrb.mxu3 %v1756_v54 }
 0x193   : > { %v901_v9 = vsel %vm885_vm10, %v875_v62, %v893_v5  ;;  %v2561_v12 = vld [vmem:[#allocation3 + $0x97] sm:$0xff]  ;;  %v949_v62 = vld [vmem:[#allocation3 + $0x7] sm:$0xff] }
 0x194   : > { %v994_v13 = vld [vmem:[#allocation3 + $0x99] sm:$0xff]  ;;  %910 = vst.msk [vmem:[#allocation3 + $0xb0] sm:$0xff] %vm226_vm0, %v901_v9  ;;  %v847_v3 = vpop.f32.mrf.mxu1  ;;  %v1984_v14 = vpack.i.bf16 %v2561_v12, %v2542_v61 }
 0x195   : > { %v1989_v39 = vpack.i.bf16 %v994_v13, %v1017_v35  ;;  %v848_v15 = vadd.f32 %v847_v3, %v819_v6  ;;  %v2569_v51 = vld [vmem:[#allocation3 + $0x98] sm:$0xff]  ;;  %1428 = vmatpush.bf16.msrb.mxu2 %v1767_v56  ;;  %1403 = vmatpush.bf16.msrb.mxu3 %v1755_v57  ;;  %v1764_v35 = vld [vmem:[%s2741_s3 + $0x50] sm:$0xff] }
 0x197   : > { %1985 = vrot.lane.b32.xlu2 %v1984_v14, %s2046_s25  ;;  %v877_v25 = vadd.f32 %v876_v23, %v848_v15  ;;  %1990 = vrot.lane.b32.xlu0 %v1989_v39, %s2045_s24 }
 0x198   : > { %1980 = vrot.lane.b32.xlu1 %v1979_v16, %s2047_s26 }
 0x199   : > { %vm886_vm11 = vcmp.gt.f32.partialorder %v877_v25, 0.0  ;;  %v894_v21 = vmul.f32 0.2, %v877_v25  ;;  %1429 = vmatpush.bf16.msrb.mxu2 %v1766_v48  ;;  %1404 = vmatpush.bf16.msrb.mxu3 %v1754_v36 }
 0x19b   : > { %v902_v37 = vsel %vm886_vm11, %v877_v25, %v894_v21  ;;  %v1019_v26 = vld [vmem:[#allocation3 + $0xb1] sm:$0xff] }
 0x19c   : > { %v2571_v27 = vld [vmem:[#allocation3 + $0xb0] sm:$0xff]  ;;  %911 = vst.msk [vmem:[#allocation3 + $0xc8] sm:$0xff] %vm226_vm0, %v902_v37  ;;  %v1270_v22 = vpack.c.bf16 %v1019_v26, %v994_v13  ;;  %v2009_v42 = vpack.i.bf16 %v1019_v26, %v994_v13 }
 0x19d   : > { %v2573_v19 = vld [vmem:[#allocation3 + $0xaf] sm:$0xff]  ;;  %v1999_v28 = vpack.i.bf16 %v2571_v27, %v2569_v51  ;;  %1430 = vmatpush.bf16.msrb.mxu2 %v1765_v59 }
 0x19e   : > { %v1994_v30 = vpack.i.bf16 %v2573_v19, %v2561_v12  ;;  %1730 = vmatmul.msk.bf16.gmra.mxu0 %vm226_vm0, %v1270_v22 }
 0x19f   : > { %2000 = vrot.lane.b32.xlu2 %v1999_v28, %s2046_s25  ;;  %2005 = vrot.lane.b32.xlu0 %v1999_v28, %s2045_s24 }
 0x1a0   : > { %1995 = vrot.lane.b32.xlu1 %v1994_v30, %s2047_s26 }
 0x1a1   : > { %1431 = vmatpush.bf16.msrb.mxu2 %v1764_v35 }
 0x1a3   : > { %v980_v33 = vld [vmem:[#allocation3 + $0xc7] sm:$0xff] }
 0x1a4   : > { %v996_v18 = vld [vmem:[#allocation3 + $0xc9] sm:$0xff]  ;;  %v2014_v34 = vpack.i.bf16 %v980_v33, %v2573_v19  ;;  %v2024_v24 = vpack.i.bf16 %v1005_v46, %v980_v33 }
 0x1a5   : > { %v2019_v41 = vpack.i.bf16 %v996_v18, %v1019_v26  ;;  %v2588_v45 = vld [vmem:[#allocation3 + $0xc8] sm:$0xff]  ;;  %v1273_v38 = vpack.c.bf16 %v1021_v43, %v996_v18  ;;  %1432 = vmatpush.bf16.msrb.mxu2 %v1763_v63 }
 0x1a6   : > { %v2029_v47 = vpack.i.bf16 %v1013_v7, %v2588_v45 }
 0x1a7   : > { %2015 = vrot.lane.b32.xlu2 %v2014_v34, %s2046_s25  ;;  %2020 = vrot.lane.b32.xlu0 %v2019_v41, %s2045_s24 }
 0x1a8   : > { %2010 = vrot.lane.b32.xlu1 %v2009_v42, %s2047_s26 }
 0x1a9   : > { %1433 = vmatpush.bf16.msrb.mxu2 %v1762_v55 }
 0x1ae   : > { %1731 = vmatmul.msk.bf16.gmra.mxu0 %vm226_vm0, %v1273_v38 }
 0x1af   : > { %2030 = vrot.lane.b32.xlu2 %v2029_v47, %s2046_s25 }
 0x1b0   : > { %2025 = vrot.lane.b32.xlu1 %v2024_v24, %s2047_s26 }
 0x1d0   : > { %v1926_v0 = vpop.permute.xlu2 %1925 }
 0x1d1   : > { %v1928_v6 = vunpack.i.h.bf16 %v1926_v0  ;;  %v1927_v9 = vunpack.i.l.bf16 %v1926_v0 }
 0x1d9   : > { %v1941_v13 = vpop.permute.xlu2 %1940 }
 0x1da   : > { %v1943_v34 = vunpack.i.h.bf16 %v1941_v13 }
 0x1e0   : > { %v1921_v10 = vpop.permute.xlu1 %1920 }
 0x1e1   : > { %v1923_v11 = vunpack.i.h.bf16 %v1921_v10  ;;  %v1922_v1 = vunpack.i.l.bf16 %v1921_v10  ;;  %v1916_v2 = vpop.permute.xlu0 %1915  ;;  %v1956_v37 = vpop.permute.xlu2 %1955 }
 0x1e2   : > { %v1918_v5 = vunpack.i.h.bf16 %v1916_v2  ;;  %v1917_v8 = vunpack.i.l.bf16 %v1916_v2  ;;  %v1958_v54 = vunpack.i.h.bf16 %v1956_v37  ;;  %v1957_v56 = vunpack.i.l.bf16 %v1956_v37 }
 0x1e4   : > { %v1214_v3 = vsel %vm226_vm0, %v949_v62, %v1917_v8  ;;  %v1215_v14 = vsel %vm226_vm0, %v2500_v17, %v1918_v5  ;;  %v1942_v17 = vunpack.i.l.bf16 %v1941_v13 }
 0x1e5   : > { %v1222_v39 = vsel %vm615_vm2, %v1214_v3, %v1922_v1  ;;  %v1223_v15 = vsel %vm615_vm2, %v1215_v14, %v1923_v11 }
 0x1e6   : > { %v1230_v16 = vsel %vm624_vm3, %v1222_v39, %v1927_v9  ;;  %v1231_v23 = vsel %vm624_vm3, %v1223_v15, %v1928_v6 }
 0x1e7   : > { %v1262_v25 = vpack.c.bf16 %v1231_v23, %v1230_v16 }
 0x1e9   : > { %v1931_v21 = vpop.permute.xlu0 %1930  ;;  %1405 = vmatmul.bf16.vlgmr.msrb.gmra.mxu3 %v1262_v25  ;;  %v1971_v31 = vpop.permute.xlu2 %1970 }
 0x1ea   : > { %v1933_v26 = vunpack.i.h.bf16 %v1931_v21  ;;  %v1932_v22 = vunpack.i.l.bf16 %v1931_v21  ;;  %v1973_v2 = vunpack.i.h.bf16 %v1971_v31  ;;  %v1972_v5 = vunpack.i.l.bf16 %v1971_v31 }
 0x1ec   : > { %v1239_v41 = vsel %vm226_vm0, %v2509_v32, %v1933_v26  ;;  %v1238_v42 = vsel %vm226_vm0, %v2493_v29, %v1932_v22 }
 0x1f1   : > { %v1946_v30 = vpop.permute.xlu0 %1945  ;;  %v1986_v1 = vpop.permute.xlu2 %1985 }
 0x1f2   : > { %v1936_v28 = vpop.permute.xlu1 %1935  ;;  %v1948_v24 = vunpack.i.h.bf16 %v1946_v30  ;;  %v1947_v49 = vunpack.i.l.bf16 %v1946_v30  ;;  %v1987_v37 = vunpack.i.l.bf16 %v1986_v1 }
 0x1f3   : > { %v1938_v33 = vunpack.i.h.bf16 %v1936_v28  ;;  %v1937_v18 = vunpack.i.l.bf16 %v1936_v28 }
 0x1f4   : > { %v1217_v29 = vsel %vm226_vm0, %v2515_v4, %v1948_v24  ;;  %v1216_v57 = vsel %vm226_vm0, %v2502_v20, %v1947_v49 }
 0x1f5   : > { %v1246_v43 = vsel %vm615_vm2, %v1238_v42, %v1937_v18  ;;  %v1247_v7 = vsel %vm615_vm2, %v1239_v41, %v1938_v33 }
 0x1f6   : > { %v1254_v46 = vsel %vm624_vm3, %v1246_v43, %v1942_v17  ;;  %v1255_v38 = vsel %vm624_vm3, %v1247_v7, %v1943_v34 }
 0x1f7   : > { %v1263_v47 = vpack.c.bf16 %v1255_v38, %v1254_v46 }
 0x1f9   : > { %1434 = vmatmul.bf16.vlgmr.msrb.gmra.mxu2 %v1263_v47  ;;  %v1961_v52 = vpop.permute.xlu0 %1960  ;;  %v2001_v22 = vpop.permute.xlu2 %2000 }
 0x1fa   : > { %v1951_v44 = vpop.permute.xlu1 %1950  ;;  %v1963_v55 = vunpack.i.h.bf16 %v1961_v52  ;;  %v1962_v0 = vunpack.i.l.bf16 %v1961_v52  ;;  %v2003_v46 = vunpack.i.h.bf16 %v2001_v22  ;;  %v2002_v38 = vunpack.i.l.bf16 %v2001_v22 }
 0x1fb   : > { %v1953_v53 = vunpack.i.h.bf16 %v1951_v44  ;;  %v1952_v32 = vunpack.i.l.bf16 %v1951_v44 }
 0x1fc   : > { %v1241_v20 = vsel %vm226_vm0, %v2536_v58, %v1963_v55  ;;  %v1240_v8 = vsel %vm226_vm0, %v2513_v40, %v1962_v0  ;;  %v1988_v58 = vunpack.i.h.bf16 %v1986_v1 }
 0x1fd   : > { %v1224_v48 = vsel %vm615_vm2, %v1216_v57, %v1952_v32  ;;  %v1225_v36 = vsel %vm615_vm2, %v1217_v29, %v1953_v53 }
 0x1fe   : > { %v1232_v59 = vsel %vm624_vm3, %v1224_v48, %v1957_v56  ;;  %v1233_v35 = vsel %vm624_vm3, %v1225_v36, %v1958_v54 }
 0x1ff   : > { %v1265_v63 = vpack.c.bf16 %v1233_v35, %v1232_v59 }
 0x201   : > { %1410 = vmatmul.bf16.gmra.mxu3 %v1265_v63  ;;  %v1976_v11 = vpop.permute.xlu0 %1975  ;;  %v2016_v52 = vpop.permute.xlu2 %2015 }
 0x202   : > { %v1966_v10 = vpop.permute.xlu1 %1965  ;;  %v1978_v39 = vunpack.i.h.bf16 %v1976_v11  ;;  %v1977_v15 = vunpack.i.l.bf16 %v1976_v11  ;;  %v2017_v48 = vunpack.i.l.bf16 %v2016_v52 }
 0x203   : > { %v1968_v62 = vunpack.i.h.bf16 %v1966_v10  ;;  %v1967_v4 = vunpack.i.l.bf16 %v1966_v10 }
 0x204   : > { %v1219_v40 = vsel %vm226_vm0, %v2542_v61, %v1978_v39  ;;  %v1218_v26 = vsel %vm226_vm0, %v2528_v50, %v1977_v15  ;;  %v1464_v39 = vpop.f32.mrf.mxu0 }
 0x205   : > { %v1248_v6 = vsel %vm615_vm2, %v1240_v8, %v1967_v4  ;;  %v1249_v9 = vsel %vm615_vm2, %v1241_v20, %v1968_v62 }
 0x206   : > { %v1256_v13 = vsel %vm624_vm3, %v1248_v6, %v1972_v5  ;;  %v1257_v3 = vsel %vm624_vm3, %v1249_v9, %v1973_v2 }
 0x207   : > { %v1266_v14 = vpack.c.bf16 %v1257_v3, %v1256_v13 }
 0x209   : > { %1439 = vmatmul.bf16.gmra.mxu2 %v1266_v14  ;;  %v1991_v23 = vpop.permute.xlu0 %1990  ;;  %v2031_v62 = vpop.permute.xlu2 %2030 }
 0x20a   : > { %v1981_v16 = vpop.permute.xlu1 %1980  ;;  %v1993_v17 = vunpack.i.h.bf16 %v1991_v23  ;;  %v1992_v41 = vunpack.i.l.bf16 %v1991_v23  ;;  %v2033_v5 = vunpack.i.h.bf16 %v2031_v62  ;;  %v2032_v20 = vunpack.i.l.bf16 %v2031_v62 }
 0x20b   : > { %v1983_v25 = vunpack.i.h.bf16 %v1981_v16  ;;  %v1982_v21 = vunpack.i.l.bf16 %v1981_v16 }
 0x20c   : > { %v1243_v50 = vsel %vm226_vm0, %v2569_v51, %v1993_v17  ;;  %v1242_v47 = vsel %vm226_vm0, %v2540_v60, %v1992_v41  ;;  %v2018_v51 = vunpack.i.h.bf16 %v2016_v52  ;;  %v1466_v16 = vpop.f32.mrf.mxu0 }
 0x20d   : > { %v1226_v28 = vsel %vm615_vm2, %v1218_v26, %v1982_v21  ;;  %v1227_v30 = vsel %vm615_vm2, %v1219_v40, %v1983_v25 }
 0x20e   : > { %v1234_v33 = vsel %vm624_vm3, %v1226_v28, %v1987_v37  ;;  %v1235_v18 = vsel %vm624_vm3, %v1227_v30, %v1988_v58 }
 0x20f   : > { %v1268_v34 = vpack.c.bf16 %v1235_v18, %v1234_v33 }
 0x211   : > { %1415 = vmatmul.bf16.gmra.mxu3 %v1268_v34  ;;  %v2006_v61 = vpop.permute.xlu0 %2005 }
 0x212   : > { %v1996_v42 = vpop.permute.xlu1 %1995  ;;  %v2008_v32 = vunpack.i.h.bf16 %v2006_v61  ;;  %v2007_v54 = vunpack.i.l.bf16 %v2006_v61 }
 0x213   : > { %v1998_v43 = vunpack.i.h.bf16 %v1996_v42  ;;  %v1997_v7 = vunpack.i.l.bf16 %v1996_v42 }
 0x214   : > { %v1221_v60 = vsel %vm226_vm0, %v2573_v19, %v2008_v32  ;;  %v1220_v36 = vsel %vm226_vm0, %v2561_v12, %v2007_v54  ;;  %v1469_v40 = vpop.f32.mrf.mxu0 }
 0x215   : > { %v1250_v24 = vsel %vm615_vm2, %v1242_v47, %v1997_v7  ;;  %v1251_v49 = vsel %vm615_vm2, %v1243_v50, %v1998_v43 }
 0x216   : > { %v1258_v31 = vsel %vm624_vm3, %v1250_v24, %v2002_v38  ;;  %v1259_v44 = vsel %vm624_vm3, %v1251_v49, %v2003_v46 }
 0x217   : > { %v1269_v53 = vpack.c.bf16 %v1259_v44, %v1258_v31 }
 0x219   : > { %1444 = vmatmul.bf16.gmra.mxu2 %v1269_v53  ;;  %v2021_v59 = vpop.permute.xlu0 %2020 }
 0x21a   : > { %v2011_v56 = vpop.permute.xlu1 %2010  ;;  %v2023_v11 = vunpack.i.h.bf16 %v2021_v59  ;;  %v2022_v1 = vunpack.i.l.bf16 %v2021_v59 }
 0x21b   : > { %v2013_v29 = vunpack.i.h.bf16 %v2011_v56  ;;  %v2012_v57 = vunpack.i.l.bf16 %v2011_v56 }
 0x21c   : > { %v1245_v12 = vsel %vm226_vm0, %v2588_v45, %v2023_v11  ;;  %v1244_v8 = vsel %vm226_vm0, %v2571_v27, %v2022_v1  ;;  %v2702_v45 = vld [vmem:[%s2742_s4] ss:$0 sm:$0xff]  ;;  %v1471_v61 = vpop.f32.mrf.mxu0 }
 0x21d   : > { %v1228_v35 = vsel %vm615_vm2, %v1220_v36, %v2012_v57  ;;  %v1229_v63 = vsel %vm615_vm2, %v1221_v60, %v2013_v29 }
 0x21e   : > { %v1236_v55 = vsel %vm624_vm3, %v1228_v35, %v2017_v48  ;;  %v1237_v0 = vsel %vm624_vm3, %v1229_v63, %v2018_v51 }
 0x21f   : > { %v1271_v10 = vpack.c.bf16 %v1237_v0, %v1236_v55 }
 0x221   : > { %1420 = vmatmul.bf16.gmra.mxu3 %v1271_v10 }
 0x222   : > { %v2026_v4 = vpop.permute.xlu1 %2025 }
 0x223   : > { %v2028_v2 = vunpack.i.h.bf16 %v2026_v4  ;;  %v2027_v19 = vunpack.i.l.bf16 %v2026_v4 }
 0x224   : > { %v1474_v52 = vpop.f32.mrf.mxu0 }
 0x225   : > { %v1252_v6 = vsel %vm615_vm2, %v1244_v8, %v2027_v19  ;;  %v1253_v9 = vsel %vm615_vm2, %v1245_v12, %v2028_v2 }
 0x226   : > { %v1260_v13 = vsel %vm624_vm3, %v1252_v6, %v2032_v20  ;;  %v1261_v3 = vsel %vm624_vm3, %v1253_v9, %v2033_v5 }
 0x227   : > { %v1272_v14 = vpack.c.bf16 %v1261_v3, %v1260_v13 }
 0x229   : > { %1449 = vmatmul.bf16.gmra.mxu2 %v1272_v14 }
 0x22c   : > { %v1476_v60 = vpop.f32.mrf.mxu0 }
 0x234   : > { %v1479_v62 = vpop.f32.mrf.mxu0 }
 0x23c   : > { %v1481_v13 = vpop.f32.mrf.mxu0 }
 0x26c   : > { %v1406_v15 = vpop.f32.mrf.mxu3 }
 0x26d   : > { %v1407_v27 = vadd.f32 %v2702_v45, %v1406_v15 }
 0x274   : > { %v1408_v23 = vpop.f32.mrf.mxu3 }
 0x275   : > { %v1409_v26 = vadd.f32 %v2702_v45, %v1408_v23 }
 0x27c   : > { %v1435_v25 = vpop.f32.mrf.mxu2 }
 0x27d   : > { %v1436_v21 = vadd.f32 %v1435_v25, %v1407_v27 }
 0x27f   : > { %v1465_v58 = vadd.f32 %v1464_v39, %v1436_v21 }
 0x281   : > { %vm1484_vm12 = vcmp.gt.f32.partialorder %v1465_v58, 0.0  ;;  %v1492_v37 = vmul.f32 0.2, %v1465_v58 }
 0x283   : > { %v1500_v22 = vsel %vm1484_vm12, %v1465_v58, %v1492_v37 }
 0x284   : > { %1508 = vst.msk [vmem:[%s2710_s17] sm:$0xff] %vm226_vm0, %v1500_v22  ;;  %v1411_v28 = vpop.f32.mrf.mxu3  ;;  %v1437_v30 = vpop.f32.mrf.mxu2 }
 0x285   : > { %v1438_v33 = vadd.f32 %v1437_v30, %v1409_v26  ;;  %v1412_v17 = vadd.f32 %v2702_v45, %v1411_v28 }
 0x287   : > { %v1467_v18 = vadd.f32 %v1466_v16, %v1438_v33 }
 0x289   : > { %vm1485_vm13 = vcmp.gt.f32.partialorder %v1467_v18, 0.0  ;;  %v1493_v34 = vmul.f32 0.2, %v1467_v18 }
 0x28b   : > { %v1501_v41 = vsel %vm1485_vm13, %v1467_v18, %v1493_v34 }
 0x28c   : > { %1509 = vst.msk [vmem:[%s2710_s17 + $0x8] sm:$0xff] %vm226_vm0, %v1501_v41  ;;  %v1413_v42 = vpop.f32.mrf.mxu3  ;;  %v1440_v43 = vpop.f32.mrf.mxu2 }
 0x28d   : > { %v1441_v7 = vadd.f32 %v1440_v43, %v1412_v17  ;;  %v1414_v50 = vadd.f32 %v2702_v45, %v1413_v42 }
 0x28f   : > { %v1470_v46 = vadd.f32 %v1469_v40, %v1441_v7 }
 0x291   : > { %vm1486_vm14 = vcmp.gt.f32.partialorder %v1470_v46, 0.0  ;;  %v1494_v38 = vmul.f32 0.2, %v1470_v46 }
 0x293   : > { %v1502_v47 = vsel %vm1486_vm14, %v1470_v46, %v1494_v38 }
 0x294   : > { %1510 = vst.msk [vmem:[%s2710_s17 + $0x10] sm:$0xff] %vm226_vm0, %v1502_v47  ;;  %v1416_v24 = vpop.f32.mrf.mxu3  ;;  %v1442_v49 = vpop.f32.mrf.mxu2 }
 0x295   : > { %v1443_v31 = vadd.f32 %v1442_v49, %v1414_v50  ;;  %v1417_v32 = vadd.f32 %v2702_v45, %v1416_v24 }
 0x297   : > { %v1472_v44 = vadd.f32 %v1471_v61, %v1443_v31 }
 0x299   : > { %vm1487_vm15 = vcmp.gt.f32.partialorder %v1472_v44, 0.0  ;;  %v1495_v53 = vmul.f32 0.2, %v1472_v44 }
 0x29b   : > { %v1503_v54 = vsel %vm1487_vm15, %v1472_v44, %v1495_v53 }
 0x29c   : > { %1511 = vst.msk [vmem:[%s2710_s17 + $0x18] sm:$0xff] %vm226_vm0, %v1503_v54  ;;  %v1418_v56 = vpop.f32.mrf.mxu3  ;;  %v1445_v29 = vpop.f32.mrf.mxu2 }
 0x29d   : > { %v1446_v57 = vadd.f32 %v1445_v29, %v1417_v32  ;;  %v1419_v36 = vadd.f32 %v2702_v45, %v1418_v56 }
 0x29f   : > { %v1475_v51 = vadd.f32 %v1474_v52, %v1446_v57 }
 0x2a1   : > { %vm1488_vm1 = vcmp.gt.f32.partialorder %v1475_v51, 0.0  ;;  %v1496_v48 = vmul.f32 0.2, %v1475_v51 }
 0x2a3   : > { %v1504_v59 = vsel %vm1488_vm1, %v1475_v51, %v1496_v48 }
 0x2a4   : > { %1512 = vst.msk [vmem:[%s2710_s17 + $0x20] sm:$0xff] %vm226_vm0, %v1504_v59  ;;  %v1447_v35 = vpop.f32.mrf.mxu2  ;;  %v1421_v55 = vpop.f32.mrf.mxu3 }
 0x2a5   : > { %v1448_v63 = vadd.f32 %v1447_v35, %v1419_v36  ;;  %v1422_v11 = vadd.f32 %v2702_v45, %v1421_v55 }
 0x2a7   : > { %v1477_v0 = vadd.f32 %v1476_v60, %v1448_v63 }
 0x2a9   : > { %vm1489_vm2 = vcmp.gt.f32.partialorder %v1477_v0, 0.0  ;;  %v1497_v10 = vmul.f32 0.2, %v1477_v0 }
 0x2ab   : > { %v1505_v1 = vsel %vm1489_vm2, %v1477_v0, %v1497_v10 }
 0x2ac   : > { %1513 = vst.msk [vmem:[%s2710_s17 + $0x28] sm:$0xff] %vm226_vm0, %v1505_v1  ;;  %v1450_v4 = vpop.f32.mrf.mxu2  ;;  %v1423_v5 = vpop.f32.mrf.mxu3 }
 0x2ad   : > { %v1451_v2 = vadd.f32 %v1450_v4, %v1422_v11  ;;  %v1424_v12 = vadd.f32 %v2702_v45, %v1423_v5 }
 0x2af   : > { %v1480_v19 = vadd.f32 %v1479_v62, %v1451_v2 }
 0x2b1   : > { %vm1490_vm3 = vcmp.gt.f32.partialorder %v1480_v19, 0.0  ;;  %v1498_v20 = vmul.f32 0.2, %v1480_v19 }
 0x2b3   : > { %v1506_v8 = vsel %vm1490_vm3, %v1480_v19, %v1498_v20 }
 0x2b4   : > { %1514 = vst.msk [vmem:[%s2710_s17 + $0x30] sm:$0xff] %vm226_vm0, %v1506_v8  ;;  %v1452_v6 = vpop.f32.mrf.mxu2 }
 0x2b5   : > { %v1453_v9 = vadd.f32 %v1452_v6, %v1424_v12 }
 0x2b7   : > { %v1482_v3 = vadd.f32 %v1481_v13, %v1453_v9 }
 0x2b9   : > { %vm1491_vm4 = vcmp.gt.f32.partialorder %v1482_v3, 0.0  ;;  %v1499_v14 = vmul.f32 0.2, %v1482_v3 }
 0x2bb   : > { %v1507_v39 = vsel %vm1491_vm4, %v1482_v3, %v1499_v14 }
 0x2bc   : > { %1515 = vst.msk [vmem:[%s2710_s17 + $0x38] sm:$0xff] %vm226_vm0, %v1507_v39 }
 0x2bd PF: > { %s15_s18 = sadd.s32 1, %s2042_s18  }
 0x2be   : > { %p12_p4 = scmp.ge.s32.totalorder %s15_s18, 4  }
 0x2c0   :  { %14 = sbr.rel (!%p12_p4) target bundleno = 1 (0x1), region = 74 }

// kernel: discriminator_forward.5
= control target key start
LH: loop header
LB: loop body
LE: loop exit
PB: predicated region body
PF: predicated region fallthrough
CT: control target
= control target key end

     0   :  { %v2709_v12 = vmov 2.0   ;;  %vm70_vm0 = vcmask 1041408   ;;  %vm235_vm2 = vcmask 1045508   ;;  %vm237_vm3 = vcmask 1043456   ;;  %s3599_s1 = inlined_call_operand.vmem [shape: bf16[2048,32], index: 1, kind: input, shape index: {}]   ;;  %s3600_s0 = inlined_call_operand.vmem [shape: f32[2,2048], index: 0, kind: input, shape index: {}]   ;;  %s3601_s3 = inlined_call_operand.vmem [shape: f32[1,32], index: 3, kind: input, shape index: {}]   ;;  %s3602_s2 = inlined_call_operand.vmem [shape: f32[1,32], index: 2, kind: input, shape index: {}]   ;;  %s3603_s4 = inlined_call_operand.vmem [shape: f32[32,1], index: 4, kind: input, shape index: {}]   ;;  %s3604_s5 = inlined_call_operand.<no memory space> [shape: f32[1,1], index: 5, kind: input, shape index: {}]   ;;  %s3605_s6 = inlined_call_operand.vmem [shape: f32[2,1], index: 6, kind: output, shape index: {}]  }
   0x1   :  { %v2560_v0 = vld [vmem:[%s3599_s1 + $0xb8] sm:$0xff]  ;;  %v2559_v4 = vld [vmem:[%s3599_s1 + $0xb0] sm:$0xff]  ;;  %v2558_v8 = vld [vmem:[%s3599_s1 + $0xa8] sm:$0xff]  ;;  %2673 = vrcp.f32 %v2709_v12 }
   0x2   :  { %v2544_v1 = vld [vmem:[%s3599_s1 + $0x38] sm:$0xff]  ;;  %1796 = vmatpush.bf16.msra.mxu2 %v2560_v0  ;;  %v2543_v5 = vld [vmem:[%s3599_s1 + $0x30] sm:$0xff]  ;;  %v2542_v9 = vld [vmem:[%s3599_s1 + $0x28] sm:$0xff] }
   0x3   :  { %v2568_v2 = vld [vmem:[%s3599_s1 + $0xf8] sm:$0xff]  ;;  %1770 = vmatpush.bf16.msra.mxu0 %v2544_v1  ;;  %v2567_v6 = vld [vmem:[%s3599_s1 + $0xf0] sm:$0xff]  ;;  %v2566_v10 = vld [vmem:[%s3599_s1 + $0xe8] sm:$0xff] }
   0x4   :  { %v2552_v3 = vld [vmem:[%s3599_s1 + $0x78] sm:$0xff]  ;;  %1809 = vmatpush.bf16.msra.mxu3 %v2568_v2  ;;  %v2551_v7 = vld [vmem:[%s3599_s1 + $0x70] sm:$0xff]  ;;  %v2550_v11 = vld [vmem:[%s3599_s1 + $0x68] sm:$0xff] }
   0x5   :  { %1783 = vmatpush.bf16.msra.mxu1 %v2552_v3  ;;  %v2557_v13 = vld [vmem:[%s3599_s1 + $0xa0] sm:$0xff]  ;;  %v2556_v17 = vld [vmem:[%s3599_s1 + $0x98] sm:$0xff]  ;;  %v2816_v23 = vld [vmem:[%s3600_s0 + $0x8] sm:$0xff] }
   0x6   :  { %1797 = vmatpush.bf16.msra.mxu2 %v2559_v4  ;;  %v2541_v14 = vld [vmem:[%s3599_s1 + $0x20] sm:$0xff]  ;;  %v2540_v18 = vld [vmem:[%s3599_s1 + $0x18] sm:$0xff]  ;;  %35 = vst [vmem:[#allocation1 + $0x20] ss:$4 sm:$0xff] %v2816_v23  ;;  %v2555_v24 = vld [vmem:[%s3599_s1 + $0x90] sm:$0xff] }
   0x7   :  { %1771 = vmatpush.bf16.msra.mxu0 %v2543_v5  ;;  %v2565_v15 = vld [vmem:[%s3599_s1 + $0xe0] sm:$0xff]  ;;  %v2800_v19 = vpop.eup %2673  ;;  %v2564_v20 = vld [vmem:[%s3599_s1 + $0xd8] sm:$0xff]  ;;  %v2539_v25 = vld [vmem:[%s3599_s1 + $0x10] sm:$0xff] }
   0x8   :  { %1810 = vmatpush.bf16.msra.mxu3 %v2567_v6  ;;  %v2549_v16 = vld [vmem:[%s3599_s1 + $0x60] sm:$0xff]  ;;  %v2548_v21 = vld [vmem:[%s3599_s1 + $0x58] sm:$0xff]  ;;  %v2827_v26 = vmul.f32 2.0, %v2800_v19  ;;  %v2563_v27 = vld [vmem:[%s3599_s1 + $0xd0] sm:$0xff]  ;;  %vm188_vm1 = vweird.f32 %v2800_v19 }
   0x9   :  { %1784 = vmatpush.bf16.msra.mxu1 %v2551_v7  ;;  %v2811_v22 = vld [vmem:[%s3600_s0] sm:$0xff]  ;;  %v2547_v28 = vld [vmem:[%s3599_s1 + $0x50] sm:$0xff]  ;;  %v2554_v29 = vld [vmem:[%s3599_s1 + $0x88] sm:$0xff] }
   0xa   :  { %1798 = vmatpush.bf16.msra.mxu2 %v2558_v8  ;;  %33 = vst [vmem:[#allocation1] ss:$4 sm:$0xff] %v2811_v22  ;;  %v2538_v30 = vld [vmem:[%s3599_s1 + $0x8] sm:$0xff]  ;;  %v2850_v33 = vld [vmem:[%s3600_s0 + $0x10] sm:$0xff]  ;;  %v185_v34 = vsub.f32 1.0, %v2827_v26  ;;  %v2856_v35 = vld [vmem:[%s3600_s0 + $0x18] sm:$0xff] }
   0xb   :  { %1772 = vmatpush.bf16.msra.mxu0 %v2542_v9  ;;  %v2562_v31 = vld [vmem:[%s3599_s1 + $0xc8] sm:$0xff]  ;;  %v2553_v38 = vld [vmem:[%s3599_s1 + $0x80] sm:$0xff]  ;;  %v2592_v42 = vld [vmem:[%s3599_s1 + $0x1b8] sm:$0xff] }
   0xc   :  { %1811 = vmatpush.bf16.msra.mxu3 %v2566_v10  ;;  %v2546_v32 = vld [vmem:[%s3599_s1 + $0x48] sm:$0xff]  ;;  %v2537_v39 = vld [vmem:[%s3599_s1] sm:$0xff]  ;;  %v2576_v46 = vld [vmem:[%s3599_s1 + $0x138] sm:$0xff] }
   0xd   :  { %1785 = vmatpush.bf16.msra.mxu1 %v2550_v11  ;;  %v2561_v43 = vld [vmem:[%s3599_s1 + $0xc0] sm:$0xff]  ;;  %v41_v45 = vld.sshfl [vmem:[#allocation1 + $0x28] sm:$0xff pattern:$0x73625140]  ;;  %v2600_v47 = vld [vmem:[%s3599_s1 + $0x1f8] sm:$0xff] }
   0xe   :  { %1799 = vmatpush.bf16.msra.mxu2 %v2557_v13  ;;  %v40_v44 = vld.sshfl [vmem:[#allocation1 + $0x20] sm:$0xff pattern:$0x73625140]  ;;  %v42_v48 = vld.sshfl [vmem:[#allocation1 + $0x30] sm:$0xff pattern:$0x73625140] }
   0xf   :  { %1773 = vmatpush.bf16.msra.mxu0 %v2541_v14  ;;  %v43_v49 = vld.sshfl [vmem:[#allocation1 + $0x38] sm:$0xff pattern:$0x73625140]  ;;  %v2545_v58 = vld [vmem:[%s3599_s1 + $0x40] sm:$0xff]  ;;  %v99_v59 = vsel %vm70_vm0, %v40_v44, 0.0  ;;  %v106_v60 = vsel %vm70_vm0, %v41_v45, 0.0  ;;  %v186_v14 = vmul.f32 %v2800_v19, %v185_v34 }
  0x10   :  { %1812 = vmatpush.bf16.msra.mxu3 %v2565_v15  ;;  %45 = vst [vmem:[#allocation1 + $0x20] ss:$4 sm:$0xff] %v2856_v35  ;;  %v113_v61 = vsel %vm70_vm0, %v42_v48, 0.0  ;;  %v120_v62 = vsel %vm70_vm0, %v43_v49, 0.0  ;;  %v2584_v63 = vld [vmem:[%s3599_s1 + $0x178] sm:$0xff]  ;;  %v100_v3 = vrot.slane %v99_v59, 4 }
  0x11   :  { %1786 = vmatpush.bf16.msra.mxu1 %v2549_v16  ;;  %v36_v36 = vld.sshfl [vmem:[#allocation1] sm:$0xff pattern:$0x73625140]  ;;  %v37_v37 = vld.sshfl [vmem:[#allocation1 + $0x8] sm:$0xff pattern:$0x73625140] }
  0x12   :  { %1800 = vmatpush.bf16.msra.mxu2 %v2556_v17  ;;  %v38_v40 = vld.sshfl [vmem:[#allocation1 + $0x10] sm:$0xff pattern:$0x73625140]  ;;  %v39_v41 = vld.sshfl [vmem:[#allocation1 + $0x18] sm:$0xff pattern:$0x73625140] }
  0x13   :  { %1774 = vmatpush.bf16.msra.mxu0 %v2540_v18  ;;  %44 = vst [vmem:[#allocation1] ss:$4 sm:$0xff] %v2850_v33  ;;  %v71_v50 = vsel %vm70_vm0, %v36_v36, 0.0  ;;  %v78_v51 = vsel %vm70_vm0, %v37_v37, 0.0  ;;  %v85_v52 = vsel %vm70_vm0, %v38_v40, 0.0  ;;  %v92_v53 = vsel %vm70_vm0, %v39_v41, 0.0 }
  0x14   :  { %1813 = vmatpush.bf16.msra.mxu3 %v2564_v20  ;;  %v72_v54 = vrot.slane %v71_v50, 4  ;;  %v79_v55 = vrot.slane %v78_v51, 4  ;;  %v86_v56 = vrot.slane %v85_v52, 4  ;;  %v93_v57 = vrot.slane %v92_v53, 4  ;;  %v2591_v4 = vld [vmem:[%s3599_s1 + $0x1b0] sm:$0xff]  ;;  %v2589_v41 = vld [vmem:[%s3599_s1 + $0x1a0] sm:$0xff] }
  0x15   :  { %1787 = vmatpush.bf16.msra.mxu1 %v2548_v21  ;;  %v107_v6 = vrot.slane %v106_v60, 4  ;;  %v114_v7 = vrot.slane %v113_v61, 4  ;;  %v121_v8 = vrot.slane %v120_v62, 4  ;;  %v2575_v9 = vld [vmem:[%s3599_s1 + $0x130] sm:$0xff]  ;;  %v2590_v21 = vld [vmem:[%s3599_s1 + $0x1a8] sm:$0xff] }
  0x16   :  { %1801 = vmatpush.bf16.msra.mxu2 %v2555_v24  ;;  %v73_v0 = vadd.f32 %v72_v54, %v71_v50  ;;  %v80_v1 = vadd.f32 %v79_v55, %v78_v51  ;;  %v87_v2 = vadd.f32 %v86_v56, %v85_v52  ;;  %v94_v5 = vadd.f32 %v93_v57, %v92_v53  ;;  %v2599_v10 = vld [vmem:[%s3599_s1 + $0x1f0] sm:$0xff] }
  0x17   :  { %1775 = vmatpush.bf16.msra.mxu0 %v2539_v25  ;;  %v2583_v16 = vld [vmem:[%s3599_s1 + $0x170] sm:$0xff]  ;;  %v101_v24 = vadd.f32 %v100_v3, %v99_v59  ;;  %v108_v25 = vadd.f32 %v107_v6, %v106_v60  ;;  %v115_v26 = vadd.f32 %v114_v7, %v113_v61  ;;  %v50_v57 = vld.sshfl [vmem:[#allocation1 + $0x20] sm:$0xff pattern:$0x73625140] }
  0x18   :  { %1814 = vmatpush.bf16.msra.mxu3 %v2563_v27  ;;  %v74_v11 = vrot.slane %v73_v0, 2  ;;  %v81_v12 = vrot.slane %v80_v1, 2  ;;  %v88_v13 = vrot.slane %v87_v2, 2  ;;  %v95_v15 = vrot.slane %v94_v5, 2 }
  0x19   :  { %1788 = vmatpush.bf16.msra.mxu1 %v2547_v28  ;;  %v122_v27 = vadd.f32 %v121_v8, %v120_v62  ;;  %v2574_v28 = vld [vmem:[%s3599_s1 + $0x128] sm:$0xff]  ;;  %v116_v44 = vrot.slane %v115_v26, 2 }
  0x1a   :  { %1802 = vmatpush.bf16.msra.mxu2 %v2554_v29  ;;  %v75_v17 = vadd.f32 %v74_v11, %v73_v0  ;;  %v82_v18 = vadd.f32 %v81_v12, %v80_v1  ;;  %v89_v20 = vadd.f32 %v88_v13, %v87_v2  ;;  %v2598_v29 = vld [vmem:[%s3599_s1 + $0x1e8] sm:$0xff]  ;;  %v46_v34 = vld.sshfl [vmem:[#allocation1] sm:$0xff pattern:$0x73625140] }
  0x1b   :  { %1776 = vmatpush.bf16.msra.mxu0 %v2538_v30  ;;  %v2582_v30 = vld [vmem:[%s3599_s1 + $0x168] sm:$0xff]  ;;  %v48_v37 = vld.sshfl [vmem:[#allocation1 + $0x10] sm:$0xff pattern:$0x73625140]  ;;  %v123_v45 = vrot.slane %v122_v27, 2  ;;  %v127_v50 = vsel %vm70_vm0, %v46_v34, 0.0  ;;  %v117_v56 = vadd.f32 %v116_v44, %v115_v26 }
  0x1c   :  { %1815 = vmatpush.bf16.msra.mxu3 %v2562_v31  ;;  %v96_v31 = vadd.f32 %v95_v15, %v94_v5  ;;  %v47_v36 = vld.sshfl [vmem:[#allocation1 + $0x8] sm:$0xff pattern:$0x73625140]  ;;  %v90_v40 = vrot.slane %v89_v20, 1  ;;  %v128_v59 = vrot.slane %v127_v50, 4  ;;  %v141_v61 = vsel %vm70_vm0, %v48_v37, 0.0 }
  0x1d   :  { %1789 = vmatpush.bf16.msra.mxu1 %v2546_v32  ;;  %v187_v32 = vadd.f32 %v2800_v19, %v186_v14  ;;  %v49_v52 = vld.sshfl [vmem:[#allocation1 + $0x18] sm:$0xff pattern:$0x73625140]  ;;  %v134_v60 = vsel %vm70_vm0, %v47_v36, 0.0  ;;  %v142_v5 = vrot.slane %v141_v61, 4  ;;  %v118_v8 = vrot.slane %v117_v56, 1 }
  0x1e   :  { %1803 = vmatpush.bf16.msra.mxu2 %v2553_v38  ;;  %v76_v38 = vrot.slane %v75_v17, 1  ;;  %v97_v49 = vrot.slane %v96_v31, 1  ;;  %v51_v62 = vld.sshfl [vmem:[#allocation1 + $0x28] sm:$0xff pattern:$0x73625140]  ;;  %v135_v1 = vrot.slane %v134_v60, 4 }
  0x1f   :  { %1777 = vmatpush.bf16.msra.mxu0 %v2537_v39  ;;  %v83_v39 = vrot.slane %v82_v18, 1  ;;  %v2934_v51 = vsel %vm188_vm1, %v2800_v19, %v187_v32  ;;  %v52_v2 = vld.sshfl [vmem:[#allocation1 + $0x30] sm:$0xff pattern:$0x73625140]  ;;  %v148_v6 = vsel %vm70_vm0, %v49_v52, 0.0  ;;  %v143_v14 = vadd.f32 %v142_v5, %v141_v61 }
  0x20   :  { %1816 = vmatpush.bf16.msra.mxu3 %v2561_v43  ;;  %v109_v43 = vrot.slane %v108_v25, 2  ;;  %v2928_v48 = vadd.f32 %v76_v38, %v75_v17  ;;  %v98_v3 = vadd.f32 %v97_v49, %v96_v31  ;;  %v53_v11 = vld.sshfl [vmem:[#allocation1 + $0x38] sm:$0xff pattern:$0x73625140]  ;;  %v149_v15 = vrot.slane %v148_v6, 4 }
  0x21   :  { %1790 = vmatpush.bf16.msra.mxu1 %v2545_v58  ;;  %v2936_v53 = vadd.f32 %v83_v39, %v82_v18  ;;  %v124_v58 = vadd.f32 %v123_v45, %v122_v27  ;;  %v155_v17 = vsel %vm70_vm0, %v50_v57, 0.0  ;;  %v162_v18 = vsel %vm70_vm0, %v51_v62, 0.0 }
  0x22   :  { %1848 = vmatpush.bf16.msrb.mxu2 %v2592_v42  ;;  %v102_v42 = vrot.slane %v101_v24, 2  ;;  %v110_v55 = vadd.f32 %v109_v43, %v108_v25  ;;  %v150_v25 = vadd.f32 %v149_v15, %v148_v6  ;;  %v156_v26 = vrot.slane %v155_v17, 4 }
  0x23   :  { %1822 = vmatpush.bf16.msrb.mxu0 %v2576_v46  ;;  %v2573_v46 = vld [vmem:[%s3599_s1 + $0x120] sm:$0xff]  ;;  %v193_v6 = vmul.f32 %v2934_v51, %v98_v3 }
  0x24   :  { %1861 = vmatpush.bf16.msrb.mxu3 %v2600_v47  ;;  %v2597_v47 = vld [vmem:[%s3599_s1 + $0x1e0] sm:$0xff]  ;;  %v103_v54 = vadd.f32 %v102_v42, %v101_v24  ;;  %v111_v0 = vrot.slane %v110_v55, 1  ;;  %v144_v24 = vrot.slane %v143_v14, 2  ;;  %v151_v34 = vrot.slane %v150_v25, 2 }
  0x25   :  { %1835 = vmatpush.bf16.msrb.mxu1 %v2584_v63  ;;  %v2940_v63 = vadd.f32 %v90_v40, %v89_v20  ;;  %v169_v20 = vsel %vm70_vm0, %v52_v2, 0.0  ;;  %v157_v36 = vadd.f32 %v156_v26, %v155_v17 }
  0x26   :  { %1849 = vmatpush.bf16.msrb.mxu2 %v2591_v4  ;;  %v104_v19 = vrot.slane %v103_v54, 1  ;;  %v129_v4 = vadd.f32 %v128_v59, %v127_v50  ;;  %v112_v12 = vadd.f32 %v111_v0, %v110_v55  ;;  %v145_v32 = vadd.f32 %v144_v24, %v143_v14 }
  0x27   :  { %1823 = vmatpush.bf16.msrb.mxu0 %v2575_v9  ;;  %v125_v9 = vrot.slane %v124_v58, 1  ;;  %v152_v43 = vadd.f32 %v151_v34, %v150_v25  ;;  %v158_v44 = vrot.slane %v157_v36, 2  ;;  %v191_v0 = vmul.f32 %v2934_v51, %v2936_v53 }
  0x28   :  { %1862 = vmatpush.bf16.msrb.mxu3 %v2599_v10  ;;  %v105_v7 = vadd.f32 %v104_v19, %v103_v54  ;;  %v136_v10 = vadd.f32 %v135_v1, %v134_v60  ;;  %v130_v13 = vrot.slane %v129_v4, 2  ;;  %v146_v42 = vrot.slane %v145_v32, 1 }
  0x29   :  { %1836 = vmatpush.bf16.msrb.mxu1 %v2583_v16  ;;  %v126_v45 = vadd.f32 %v125_v9, %v124_v58  ;;  %v153_v54 = vrot.slane %v152_v43, 1  ;;  %v159_v55 = vadd.f32 %v158_v44, %v157_v36  ;;  %v222_v17 = vrot.slane %v191_v0, 6 }
  0x2a   :  { %1850 = vmatpush.bf16.msrb.mxu2 %v2590_v21  ;;  %v137_v16 = vrot.slane %v136_v10, 2  ;;  %v131_v21 = vadd.f32 %v130_v13, %v129_v4  ;;  %v147_v57 = vadd.f32 %v146_v42, %v145_v32  ;;  %v192_v4 = vmul.f32 %v2934_v51, %v2940_v63 }
  0x2b   :  { %1824 = vmatpush.bf16.msrb.mxu0 %v2574_v28  ;;  %v163_v28 = vrot.slane %v162_v18, 4  ;;  %v154_v62 = vadd.f32 %v153_v54, %v152_v43  ;;  %v160_v19 = vrot.slane %v159_v55, 1  ;;  %v194_v53 = vmul.f32 %v2934_v51, %v105_v7 }
  0x2c   :  { %1863 = vmatpush.bf16.msrb.mxu3 %v2598_v29  ;;  %v138_v27 = vadd.f32 %v137_v16, %v136_v10  ;;  %v170_v29 = vrot.slane %v169_v20, 4  ;;  %v132_v31 = vrot.slane %v131_v21, 1  ;;  %v200_v15 = vmul.f32 %v2934_v51, %v147_v57 }
  0x2d   :  { %1837 = vmatpush.bf16.msrb.mxu1 %v2582_v30  ;;  %v176_v30 = vsel %vm70_vm0, %v53_v11, 0.0  ;;  %v164_v38 = vadd.f32 %v163_v28, %v162_v18  ;;  %v161_v5 = vadd.f32 %v160_v19, %v159_v55  ;;  %v201_v63 = vmul.f32 %v2934_v51, %v154_v62 }
  0x2e   :  { %1851 = vmatpush.bf16.msrb.mxu2 %v2589_v41  ;;  %v139_v37 = vrot.slane %v138_v27, 1  ;;  %v171_v39 = vadd.f32 %v170_v29, %v169_v20  ;;  %v177_v40 = vrot.slane %v176_v30, 4  ;;  %v119_v41 = vadd.f32 %v118_v8, %v117_v56 }
  0x2f   :  { %1825 = vmatpush.bf16.msrb.mxu0 %v2573_v46  ;;  %v165_v46 = vrot.slane %v164_v38, 2  ;;  %v133_v50 = vadd.f32 %v132_v31, %v131_v21  ;;  %v190_v56 = vmul.f32 %v2934_v51, %v2928_v48  ;;  %v195_v8 = vmul.f32 %v2934_v51, %v112_v12 }
  0x30   :  { %1864 = vmatpush.bf16.msrb.mxu3 %v2597_v47  ;;  %v172_v47 = vrot.slane %v171_v39, 2  ;;  %v178_v49 = vadd.f32 %v177_v40, %v176_v30  ;;  %v140_v52 = vadd.f32 %v139_v37, %v138_v27  ;;  %v196_v9 = vmul.f32 %v2934_v51, %v119_v41 }
  0x31   :  { %v166_v59 = vadd.f32 %v165_v46, %v164_v38  ;;  %v197_v48 = vmul.f32 %v2934_v51, %v126_v45  ;;  %v223_v18 = vrot.slane %v192_v4, 4  ;;  %v224_v20 = vrot.slane %v193_v6, 2 }
  0x32   :  { %v173_v60 = vadd.f32 %v172_v47, %v171_v39  ;;  %v179_v61 = vrot.slane %v178_v49, 2  ;;  %v199_v14 = vmul.f32 %v2934_v51, %v140_v52  ;;  %v225_v21 = vrot.slane %v195_v8, 6 }
  0x33   :  { %v167_v58 = vrot.slane %v166_v59, 1  ;;  %v226_v24 = vrot.slane %v196_v9, 4  ;;  %v198_v25 = vmul.f32 %v2934_v51, %v133_v50  ;;  %v202_v7 = vmul.f32 %v2934_v51, %v161_v5 }
  0x34   :  { %v174_v1 = vrot.slane %v173_v60, 1  ;;  %v180_v2 = vadd.f32 %v179_v61, %v178_v49  ;;  %v227_v27 = vrot.slane %v197_v48, 2  ;;  %v228_v28 = vrot.slane %v199_v14, 6 }
  0x35   :  { %v168_v10 = vadd.f32 %v167_v58, %v166_v59  ;;  %v229_v29 = vrot.slane %v200_v15, 4  ;;  %v230_v30 = vrot.slane %v201_v63, 2  ;;  %v234_v31 = vsel %vm70_vm0, %v190_v56, %v222_v17 }
  0x36   :  { %v175_v11 = vadd.f32 %v174_v1, %v173_v60  ;;  %v181_v13 = vrot.slane %v180_v2, 1  ;;  %v239_v34 = vsel %vm70_vm0, %v194_v53, %v225_v21  ;;  %v236_v38 = vsel %vm235_vm2, %v223_v18, %v224_v20 }
  0x37   :  { %v203_v3 = vmul.f32 %v2934_v51, %v168_v10  ;;  %v240_v39 = vsel %vm235_vm2, %v226_v24, %v227_v27  ;;  %v238_v40 = vsel %vm237_vm3, %v234_v31, %v236_v38  ;;  %v242_v44 = vsel %vm70_vm0, %v198_v25, %v228_v28 }
  0x38   :  { %v182_v16 = vadd.f32 %v181_v13, %v180_v2  ;;  %v204_v12 = vmul.f32 %v2934_v51, %v175_v11  ;;  %v241_v41 = vsel %vm237_vm3, %v239_v34, %v240_v39  ;;  %v252_v42 = vsub.f32 %v2811_v22, %v238_v40 }
  0x39   :  { %v231_v32 = vrot.slane %v203_v3, 6  ;;  %v253_v43 = vsub.f32 %v2816_v23, %v241_v41  ;;  %v243_v45 = vsel %vm235_vm2, %v229_v29, %v230_v30 }
  0x3a   :  { %v205_v26 = vmul.f32 %v2934_v51, %v182_v16  ;;  %v232_v36 = vrot.slane %v204_v12, 4  ;;  %v256_v49 = vmul.f32 %v252_v42, %v252_v42  ;;  %v244_v52 = vsel %vm237_vm3, %v242_v44, %v243_v45 }
  0x3b   :  { %v245_v46 = vsel %vm70_vm0, %v202_v7, %v231_v32  ;;  %v257_v50 = vmul.f32 %v253_v43, %v253_v43  ;;  %v254_v55 = vsub.f32 %v2850_v33, %v244_v52 }
  0x3c   :  { %v233_v37 = vrot.slane %v205_v26, 2  ;;  %264 = vst [vmem:[#allocation1] ss:$4 sm:$0xff] %v256_v49 }
  0x3d   :  { %266 = vst [vmem:[#allocation1 + $0x20] ss:$4 sm:$0xff] %v257_v50  ;;  %v258_v59 = vmul.f32 %v254_v55, %v254_v55 }
  0x3e   :  { %v246_v47 = vsel %vm235_vm2, %v232_v36, %v233_v37 }
  0x3f   :  { %v247_v54 = vsel %vm237_vm3, %v245_v46, %v246_v47 }
  0x40   :  { %v255_v57 = vsub.f32 %v2856_v35, %v247_v54 }
  0x42   :  { %v259_v60 = vmul.f32 %v255_v57, %v255_v57 }
  0x43   :  { %v267_v61 = vld.sshfl [vmem:[#allocation1] sm:$0xff pattern:$0x73625140]  ;;  %v268_v62 = vld.sshfl [vmem:[#allocation1 + $0x8] sm:$0xff pattern:$0x73625140] }
  0x44   :  { %v269_v19 = vld.sshfl [vmem:[#allocation1 + $0x10] sm:$0xff pattern:$0x73625140]  ;;  %v270_v56 = vld.sshfl [vmem:[#allocation1 + $0x18] sm:$0xff pattern:$0x73625140] }
  0x45   :  { %v271_v0 = vld.sshfl [vmem:[#allocation1 + $0x20] sm:$0xff pattern:$0x73625140]  ;;  %v272_v58 = vld.sshfl [vmem:[#allocation1 + $0x28] sm:$0xff pattern:$0x73625140] }
  0x46   :  { %v273_v1 = vld.sshfl [vmem:[#allocation1 + $0x30] sm:$0xff pattern:$0x73625140]  ;;  %v274_v2 = vld.sshfl [vmem:[#allocation1 + $0x38] sm:$0xff pattern:$0x73625140] }
  0x47   :  { %275 = vst [vmem:[#allocation1] ss:$4 sm:$0xff] %v258_v59  ;;  %v301_v4 = vsel %vm70_vm0, %v267_v61, 0.0  ;;  %v308_v5 = vsel %vm70_vm0, %v268_v62, 0.0  ;;  %v315_v6 = vsel %vm70_vm0, %v269_v19, 0.0  ;;  %v322_v8 = vsel %vm70_vm0, %v270_v56, 0.0 }
  0x48   :  { %276 = vst [vmem:[#allocation1 + $0x20] ss:$4 sm:$0xff] %v259_v60  ;;  %v329_v9 = vsel %vm70_vm0, %v271_v0, 0.0  ;;  %v336_v10 = vsel %vm70_vm0, %v272_v58, 0.0  ;;  %v302_v11 = vrot.slane %v301_v4, 4  ;;  %v309_v13 = vrot.slane %v308_v5, 4 }
  0x49   :  { %v316_v48 = vrot.slane %v315_v6, 4  ;;  %v323_v53 = vrot.slane %v322_v8, 4  ;;  %v330_v14 = vrot.slane %v329_v9, 4  ;;  %v337_v15 = vrot.slane %v336_v10, 4 }
  0x4a   :  { %v343_v63 = vsel %vm70_vm0, %v273_v1, 0.0  ;;  %v350_v16 = vsel %vm70_vm0, %v274_v2, 0.0  ;;  %v303_v25 = vadd.f32 %v302_v11, %v301_v4  ;;  %v310_v7 = vadd.f32 %v309_v13, %v308_v5 }
  0x4b   :  { %v317_v26 = vadd.f32 %v316_v48, %v315_v6  ;;  %v344_v28 = vrot.slane %v343_v63, 4  ;;  %v324_v29 = vadd.f32 %v323_v53, %v322_v8  ;;  %v351_v34 = vrot.slane %v350_v16, 4 }
  0x4c   :  { %v304_v30 = vrot.slane %v303_v25, 2  ;;  %v311_v31 = vrot.slane %v310_v7, 2  ;;  %v331_v36 = vadd.f32 %v330_v14, %v329_v9  ;;  %v338_v37 = vadd.f32 %v337_v15, %v336_v10 }
  0x4d   :  { %v318_v32 = vrot.slane %v317_v26, 2  ;;  %v345_v38 = vadd.f32 %v344_v28, %v343_v63  ;;  %v325_v40 = vrot.slane %v324_v29, 2  ;;  %v352_v45 = vadd.f32 %v351_v34, %v350_v16 }
  0x4e   :  { %v277_v3 = vld.sshfl [vmem:[#allocation1] sm:$0xff pattern:$0x73625140]  ;;  %v278_v12 = vld.sshfl [vmem:[#allocation1 + $0x8] sm:$0xff pattern:$0x73625140]  ;;  %v305_v44 = vadd.f32 %v304_v30, %v303_v25 }
  0x4f   :  { %v279_v17 = vld.sshfl [vmem:[#allocation1 + $0x10] sm:$0xff pattern:$0x73625140]  ;;  %v280_v18 = vld.sshfl [vmem:[#allocation1 + $0x18] sm:$0xff pattern:$0x73625140]  ;;  %v319_v46 = vadd.f32 %v318_v32, %v317_v26  ;;  %v326_v19 = vadd.f32 %v325_v40, %v324_v29 }
  0x50   :  { %v281_v20 = vld.sshfl [vmem:[#allocation1 + $0x20] sm:$0xff pattern:$0x73625140]  ;;  %v282_v21 = vld.sshfl [vmem:[#allocation1 + $0x28] sm:$0xff pattern:$0x73625140] }
  0x51   :  { %v283_v24 = vld.sshfl [vmem:[#allocation1 + $0x30] sm:$0xff pattern:$0x73625140]  ;;  %v284_v27 = vld.sshfl [vmem:[#allocation1 + $0x38] sm:$0xff pattern:$0x73625140] }
  0x52   :  { %687 = vst [vmem:[#allocation1] ss:$4 sm:$0xff] %v2811_v22  ;;  %v357_v39 = vsel %vm70_vm0, %v277_v3, 0.0  ;;  %v364_v42 = vsel %vm70_vm0, %v278_v12, 0.0  ;;  %v371_v43 = vsel %vm70_vm0, %v279_v17, 0.0  ;;  %v312_v22 = vadd.f32 %v311_v31, %v310_v7 }
  0x53   :  { %689 = vst [vmem:[#allocation1 + $0x20] ss:$4 sm:$0xff] %v2816_v23  ;;  %v358_v41 = vrot.slane %v357_v39, 4  ;;  %v378_v23 = vsel %vm70_vm0, %v280_v18, 0.0  ;;  %v332_v47 = vrot.slane %v331_v36, 2  ;;  %v339_v49 = vrot.slane %v338_v37, 2 }
  0x54   :  { %v346_v50 = vrot.slane %v345_v38, 2  ;;  %v365_v52 = vrot.slane %v364_v42, 4  ;;  %v372_v54 = vrot.slane %v371_v43, 4  ;;  %v385_v55 = vsel %vm70_vm0, %v281_v20, 0.0 }
  0x55   :  { %v392_v57 = vsel %vm70_vm0, %v282_v21, 0.0  ;;  %v359_v59 = vadd.f32 %v358_v41, %v357_v39  ;;  %v379_v60 = vrot.slane %v378_v23, 4  ;;  %v399_v61 = vsel %vm70_vm0, %v283_v24, 0.0 }
  0x56   :  { %v406_v62 = vsel %vm70_vm0, %v284_v27, 0.0  ;;  %v353_v56 = vrot.slane %v352_v45, 2  ;;  %v386_v0 = vrot.slane %v385_v55, 4  ;;  %v393_v58 = vrot.slane %v392_v57, 4 }
  0x57   :  { %v306_v1 = vrot.slane %v305_v44, 1  ;;  %v313_v2 = vrot.slane %v312_v22, 1  ;;  %v320_v4 = vrot.slane %v319_v46, 1  ;;  %v333_v5 = vadd.f32 %v332_v47, %v331_v36 }
  0x58   :  { %v340_v6 = vadd.f32 %v339_v49, %v338_v37  ;;  %v366_v8 = vadd.f32 %v365_v52, %v364_v42  ;;  %v400_v9 = vrot.slane %v399_v61, 4  ;;  %v407_v10 = vrot.slane %v406_v62, 4 }
  0x59   :  { %v347_v11 = vadd.f32 %v346_v50, %v345_v38  ;;  %v360_v13 = vrot.slane %v359_v59, 2  ;;  %v373_v48 = vadd.f32 %v372_v54, %v371_v43  ;;  %v380_v53 = vadd.f32 %v379_v60, %v378_v23 }
  0x5a   :  { %v327_v14 = vrot.slane %v326_v19, 1  ;;  %v354_v15 = vadd.f32 %v353_v56, %v352_v45  ;;  %v387_v63 = vadd.f32 %v386_v0, %v385_v55  ;;  %v394_v16 = vadd.f32 %v393_v58, %v392_v57 }
  0x5b   :  { %v307_v3 = vadd.f32 %v306_v1, %v305_v44  ;;  %v314_v12 = vadd.f32 %v313_v2, %v312_v22  ;;  %v321_v17 = vadd.f32 %v320_v4, %v319_v46  ;;  %v334_v18 = vrot.slane %v333_v5, 1 }
  0x5c   :  { %v341_v20 = vrot.slane %v340_v6, 1  ;;  %v367_v21 = vrot.slane %v366_v8, 2  ;;  %v401_v24 = vadd.f32 %v400_v9, %v399_v61  ;;  %v408_v25 = vadd.f32 %v407_v10, %v406_v62 }
  0x5d   :  { %v348_v7 = vrot.slane %v347_v11, 1  ;;  %v361_v26 = vadd.f32 %v360_v13, %v359_v59  ;;  %v374_v27 = vrot.slane %v373_v48, 2  ;;  %v381_v28 = vrot.slane %v380_v53, 2 }
  0x5e   :  { %v328_v29 = vadd.f32 %v327_v14, %v326_v19  ;;  %v355_v30 = vrot.slane %v354_v15, 1  ;;  %v388_v31 = vrot.slane %v387_v63, 2  ;;  %v395_v32 = vrot.slane %v394_v16, 2 }
  0x5f   :  { %v335_v34 = vadd.f32 %v334_v18, %v333_v5  ;;  %v413_v36 = vmul.f32 %v307_v3, %v2934_v51  ;;  %v414_v37 = vmul.f32 %v314_v12, %v2934_v51  ;;  %v415_v38 = vmul.f32 %v321_v17, %v2934_v51 }
  0x60   :  { %v342_v39 = vadd.f32 %v341_v20, %v340_v6  ;;  %v368_v40 = vadd.f32 %v367_v21, %v366_v8  ;;  %v402_v41 = vrot.slane %v401_v24, 2  ;;  %v409_v42 = vrot.slane %v408_v25, 2 }
  0x61   :  { %v349_v43 = vadd.f32 %v348_v7, %v347_v11  ;;  %v362_v44 = vrot.slane %v361_v26, 1  ;;  %v375_v22 = vadd.f32 %v374_v27, %v373_v48  ;;  %v382_v45 = vadd.f32 %v381_v28, %v380_v53 }
  0x62   :  { %v356_v23 = vadd.f32 %v355_v30, %v354_v15  ;;  %v389_v46 = vadd.f32 %v388_v31, %v387_v63  ;;  %v396_v47 = vadd.f32 %v395_v32, %v394_v16  ;;  %v416_v49 = vmul.f32 %v328_v29, %v2934_v51 }
  0x63   :  { %v417_v50 = vmul.f32 %v335_v34, %v2934_v51  ;;  %v3001_v52 = vadd.f32 1e-08, %v413_v36  ;;  %v3003_v54 = vadd.f32 1e-08, %v414_v37  ;;  %v3005_v55 = vadd.f32 1e-08, %v415_v38 }
  0x64   :  { %v369_v57 = vrot.slane %v368_v40, 1  ;;  %v403_v59 = vadd.f32 %v402_v41, %v401_v24  ;;  %v410_v60 = vadd.f32 %v409_v42, %v408_v25  ;;  %v418_v61 = vmul.f32 %v342_v39, %v2934_v51 }
  0x65   :  { %v363_v62 = vadd.f32 %v362_v44, %v361_v26  ;;  %v376_v19 = vrot.slane %v375_v22, 1  ;;  %v383_v56 = vrot.slane %v382_v45, 1  ;;  %2675 = vrsqrt.f32 %v3001_v52 }
  0x66   :  { %v390_v0 = vrot.slane %v389_v46, 1  ;;  %v419_v58 = vmul.f32 %v349_v43, %v2934_v51  ;;  %v3010_v1 = vadd.f32 1e-08, %v416_v49  ;;  %2677 = vrsqrt.f32 %v3003_v54 }
  0x67   :  { %v397_v2 = vrot.slane %v396_v47, 1  ;;  %v420_v4 = vmul.f32 %v356_v23, %v2934_v51  ;;  %v3014_v5 = vadd.f32 1e-08, %v417_v50  ;;  %2679 = vrsqrt.f32 %v3005_v55 }
  0x68   :  { %v404_v6 = vrot.slane %v403_v59, 1  ;;  %v411_v8 = vrot.slane %v410_v60, 1  ;;  %v3017_v9 = vadd.f32 1e-08, %v418_v61  ;;  %v370_v10 = vadd.f32 %v369_v57, %v368_v40 }
  0x69   :  { %v377_v11 = vadd.f32 %v376_v19, %v375_v22  ;;  %v384_v13 = vadd.f32 %v383_v56, %v382_v45  ;;  %v391_v48 = vadd.f32 %v390_v0, %v389_v46  ;;  %v3019_v53 = vadd.f32 1e-08, %v419_v58 }
  0x6a   :  { %2681 = vrsqrt.f32 %v3010_v1  ;;  %v398_v15 = vadd.f32 %v397_v2, %v396_v47  ;;  %v421_v63 = vmul.f32 %v363_v62, %v2934_v51  ;;  %v3025_v16 = vadd.f32 1e-08, %v420_v4 }
  0x6b   :  { %v3022_v14 = vpop.eup %2675  ;;  %2683 = vrsqrt.f32 %v3014_v5  ;;  %v405_v12 = vadd.f32 %v404_v6, %v403_v59  ;;  %v412_v17 = vadd.f32 %v411_v8, %v410_v60  ;;  %v422_v21 = vmul.f32 %v370_v10, %v2934_v51 }
  0x6c   :  { %v3028_v3 = vpop.eup %2677  ;;  %v446_v18 = vmul.f32 %v3022_v14, %v3001_v52  ;;  %2685 = vrsqrt.f32 %v3017_v9  ;;  %v423_v24 = vmul.f32 %v377_v11, %v2934_v51  ;;  %v424_v25 = vmul.f32 %v384_v13, %v2934_v51 }
  0x6d   :  { %v3033_v20 = vpop.eup %2679  ;;  %v458_v7 = vmul.f32 %v3028_v3, %v3003_v54  ;;  %v425_v26 = vmul.f32 %v391_v48, %v2934_v51  ;;  %2687 = vrsqrt.f32 %v3019_v53  ;;  %v3045_v29 = vadd.f32 1e-08, %v421_v63 }
  0x6e   :  { %v447_v27 = vmul.f32 %v3022_v14, %v446_v18  ;;  %v470_v28 = vmul.f32 %v3033_v20, %v3005_v55  ;;  %2689 = vrsqrt.f32 %v3025_v16  ;;  %v426_v32 = vmul.f32 %v398_v15, %v2934_v51 }
  0x6f   :  { %v459_v30 = vmul.f32 %v3028_v3, %v458_v7  ;;  %v427_v34 = vmul.f32 %v405_v12, %v2934_v51  ;;  %v428_v36 = vmul.f32 %v412_v17, %v2934_v51  ;;  %v3053_v39 = vadd.f32 1e-08, %v422_v21 }
  0x70   :  { %v2682_v31 = vpop.eup %2681  ;;  %v471_v37 = vmul.f32 %v3033_v20, %v470_v28  ;;  %v3055_v40 = vadd.f32 1e-08, %v423_v24  ;;  %v448_v41 = vmul.f32 0.5, %v447_v27  ;;  %v3058_v44 = vadd.f32 1e-08, %v424_v25 }
  0x71   :  { %v2684_v38 = vpop.eup %2683  ;;  %v482_v42 = vmul.f32 %v2682_v31, %v3010_v1  ;;  %v3060_v22 = vadd.f32 1e-08, %v425_v26  ;;  %v460_v45 = vmul.f32 0.5, %v459_v30  ;;  %2691 = vrsqrt.f32 %v3045_v29 }
  0x72   :  { %v2686_v43 = vpop.eup %2685  ;;  %v494_v23 = vmul.f32 %v2684_v38, %v3014_v5  ;;  %v472_v46 = vmul.f32 0.5, %v471_v37  ;;  %v3065_v50 = vadd.f32 1e-08, %v426_v32  ;;  %v3067_v57 = vadd.f32 1e-08, %v427_v34 }
  0x73   :  { %v483_v51 = vmul.f32 %v2682_v31, %v482_v42  ;;  %v506_v47 = vmul.f32 %v2686_v43, %v3017_v9  ;;  %v2688_v49 = vpop.eup %2687  ;;  %v3069_v59 = vadd.f32 1e-08, %v428_v36  ;;  %v449_v62 = vsub.f32 1.5, %v448_v41 }
  0x74   :  { %v495_v60 = vmul.f32 %v2684_v38, %v494_v23  ;;  %v3071_v61 = vpop.eup %2689  ;;  %v518_v0 = vmul.f32 %v2688_v49, %v3019_v53  ;;  %vm452_vm4 = vcmp.eq.f32.partialorder %v3001_v52, inf  ;;  %v455_v58 = vand.u32 2147483648, %v3001_v52 }
  0x75   :  { %v484_v19 = vmul.f32 0.5, %v483_v51  ;;  %v507_v56 = vmul.f32 %v2686_v43, %v506_v47  ;;  %v461_v2 = vsub.f32 1.5, %v460_v45  ;;  %v530_v6 = vmul.f32 %v3071_v61, %v3025_v16 }
  0x76   :  { %v496_v4 = vmul.f32 0.5, %v495_v60  ;;  %vm464_vm5 = vcmp.eq.f32.partialorder %v3003_v54, inf  ;;  %v473_v8 = vsub.f32 1.5, %v472_v46  ;;  %v519_v11 = vmul.f32 %v2688_v49, %v518_v0 }
  0x77   :  { %v508_v10 = vmul.f32 0.5, %v507_v56  ;;  %v467_v13 = vand.u32 2147483648, %v3003_v54  ;;  %vm476_vm6 = vcmp.eq.f32.partialorder %v3005_v55, inf  ;;  %v485_v48 = vsub.f32 1.5, %v484_v19  ;;  %v3082_v63 = vpop.eup %2691 }
  0x78   :  { %v531_v15 = vmul.f32 %v3071_v61, %v530_v6  ;;  %v450_v12 = vmul.f32 %v3022_v14, %v449_v62  ;;  %vm454_vm7 = vcmp.eq.f32.partialorder %v3001_v52, 0.0  ;;  %v479_v17 = vand.u32 2147483648, %v3005_v55 }
  0x79   :  { %v497_v18 = vsub.f32 1.5, %v496_v4  ;;  %v509_v21 = vsub.f32 1.5, %v508_v10  ;;  %v462_v24 = vmul.f32 %v3028_v3, %v461_v2  ;;  %vm488_vm8 = vcmp.eq.f32.partialorder %v3010_v1, inf }
  0x7a   :  { %v491_v25 = vand.u32 2147483648, %v3010_v1  ;;  %v520_v7 = vmul.f32 0.5, %v519_v11  ;;  %vm466_vm9 = vcmp.eq.f32.partialorder %v3003_v54, 0.0  ;;  %v474_v26 = vmul.f32 %v3033_v20, %v473_v8 }
  0x7b   :  { %vm478_vm10 = vcmp.eq.f32.partialorder %v3005_v55, 0.0  ;;  %vm500_vm11 = vcmp.eq.f32.partialorder %v3014_v5, inf  ;;  %v503_v14 = vand.u32 2147483648, %v3014_v5  ;;  %v532_v27 = vmul.f32 0.5, %v531_v15 }
  0x7c   :  { %v486_v28 = vmul.f32 %v2682_v31, %v485_v48  ;;  %v521_v30 = vsub.f32 1.5, %v520_v7  ;;  %v542_v3 = vmul.f32 %v3082_v63, %v3045_v29  ;;  %2693 = vrsqrt.f32 %v3053_v39 }
  0x7d   :  { %v451_v32 = vmul.f32 %v450_v12, %v3001_v52  ;;  %vm490_vm12 = vcmp.eq.f32.partialorder %v3010_v1, 0.0  ;;  %v498_v34 = vmul.f32 %v2684_v38, %v497_v18  ;;  %vm502_vm13 = vcmp.eq.f32.partialorder %v3014_v5, 0.0 }
  0x7e   :  { %v510_v20 = vmul.f32 %v2686_v43, %v509_v21  ;;  %vm512_vm14 = vcmp.eq.f32.partialorder %v3017_v9, inf  ;;  %v463_v36 = vmul.f32 %v462_v24, %v3003_v54  ;;  %vm514_vm15 = vcmp.eq.f32.partialorder %v3017_v9, 0.0 }
  0x7f   :  { %v533_v31 = vsub.f32 1.5, %v532_v27  ;;  %v543_v37 = vmul.f32 %v3082_v63, %v542_v3  ;;  %v475_v41 = vmul.f32 %v474_v26, %v3005_v55  ;;  %v515_v42 = vand.u32 2147483648, %v3017_v9  ;;  %v2581_v3 = vld [vmem:[%s3599_s1 + $0x160] sm:$0xff] }
  0x80   :  { %v522_v45 = vmul.f32 %v2688_v49, %v521_v30  ;;  %vm524_vm0 = vcmp.eq.f32.partialorder %v3019_v53, inf  ;;  %v487_v38 = vmul.f32 %v486_v28, %v3010_v1  ;;  %vm526_vm1 = vcmp.eq.f32.partialorder %v3019_v53, 0.0  ;;  %1838 = vmatpush.bf16.msrb.mxu1 %v2581_v3 }
  0x81   :  { %v527_v43 = vand.u32 2147483648, %v3019_v53  ;;  %v544_v23 = vmul.f32 0.5, %v543_v37  ;;  %v453_v46 = vsel %vm452_vm4, %v3001_v52, %v451_v32  ;;  %v499_v51 = vmul.f32 %v498_v34, %v3014_v5  ;;  %v2588_v32 = vld [vmem:[%s3599_s1 + $0x198] sm:$0xff] }
  0x82   :  { %v511_v47 = vmul.f32 %v510_v20, %v3017_v9  ;;  %2695 = vrsqrt.f32 %v3055_v40  ;;  %v2694_v49 = vpop.eup %2693  ;;  %v465_v60 = vsel %vm464_vm5, %v3003_v54, %v463_v36  ;;  %v534_v62 = vmul.f32 %v3071_v61, %v533_v31  ;;  %1852 = vmatpush.bf16.msrb.mxu2 %v2588_v32 }
  0x83   :  { %vm536_vm2 = vcmp.eq.f32.partialorder %v3025_v16, inf  ;;  %2697 = vrsqrt.f32 %v3058_v44  ;;  %v477_v19 = vsel %vm476_vm6, %v3005_v55, %v475_v41  ;;  %v523_v56 = vmul.f32 %v522_v45, %v3019_v53 }
  0x84   :  { %v545_v0 = vsub.f32 1.5, %v544_v23  ;;  %v554_v2 = vmul.f32 %v2694_v49, %v3053_v39  ;;  %v456_v4 = vsel %vm454_vm7, %v455_v58, %v453_v46  ;;  %v489_v61 = vsel %vm488_vm8, %v3010_v1, %v487_v38  ;;  %v2572_v23 = vld [vmem:[%s3599_s1 + $0x118] sm:$0xff] }
  0x85   :  { %v539_v6 = vand.u32 2147483648, %v3025_v16  ;;  %v551_v8 = vand.u32 2147483648, %v3045_v29  ;;  %v501_v10 = vsel %vm500_vm11, %v3014_v5, %v499_v51  ;;  %v513_v11 = vsel %vm512_vm14, %v3017_v9, %v511_v47  ;;  %v2596_v46 = vld [vmem:[%s3599_s1 + $0x1d8] sm:$0xff]  ;;  %1826 = vmatpush.bf16.msrb.mxu0 %v2572_v23 }
  0x86   :  { %vm548_vm3 = vcmp.eq.f32.partialorder %v3045_v29, inf  ;;  %v555_v52 = vmul.f32 %v2694_v49, %v554_v2  ;;  %2699 = vrsqrt.f32 %v3060_v22  ;;  %v468_v58 = vsel %vm466_vm9, %v467_v13, %v465_v60  ;;  %v2580_v51 = vld [vmem:[%s3599_s1 + $0x158] sm:$0xff]  ;;  %1865 = vmatpush.bf16.msrb.mxu3 %v2596_v46 }
  0x87   :  { %v480_v48 = vsel %vm478_vm10, %v479_v17, %v477_v19  ;;  %v535_v15 = vmul.f32 %v534_v62, %v3025_v16  ;;  %2701 = vrsqrt.f32 %v3065_v50  ;;  %v525_v18 = vsel %vm524_vm0, %v3019_v53, %v523_v56  ;;  %v2587_v19 = vld [vmem:[%s3599_s1 + $0x190] sm:$0xff]  ;;  %1839 = vmatpush.bf16.msrb.mxu1 %v2580_v51  ;;  %v3273_v23 = vld.sshfl [vmem:[#allocation1 + $0x18] sm:$0xff pattern:$0x73625140] }
  0x88   :  { %v2696_v12 = vpop.eup %2695  ;;  %v546_v21 = vmul.f32 %v3082_v63, %v545_v0  ;;  %v556_v24 = vmul.f32 0.5, %v555_v52  ;;  %2703 = vrsqrt.f32 %v3067_v57  ;;  %v3162_v54 = vsel %vm490_vm12, %v491_v25, %v489_v61  ;;  %v2571_v61 = vld [vmem:[%s3599_s1 + $0x110] sm:$0xff]  ;;  %1853 = vmatpush.bf16.msrb.mxu2 %v2587_v19  ;;  %v2593_v19 = vld [vmem:[%s3599_s1 + $0x1c0] sm:$0xff] }
  0x89   :  { %v2698_v7 = vpop.eup %2697  ;;  %v3166_v55 = vsel %vm502_vm13, %v503_v14, %v501_v10  ;;  %v3170_v13 = vsel %vm514_vm15, %v515_v42, %v513_v11  ;;  %v566_v63 = vmul.f32 %v2696_v12, %v3055_v40  ;;  %v563_v26 = vand.u32 2147483648, %v3053_v39  ;;  %v2595_v10 = vld [vmem:[%s3599_s1 + $0x1d0] sm:$0xff]  ;;  %1827 = vmatpush.bf16.msrb.mxu0 %v2571_v61 }
  0x8a   :  { %v557_v17 = vsub.f32 1.5, %v556_v24  ;;  %v575_v27 = vand.u32 2147483648, %v3055_v40  ;;  %v578_v28 = vmul.f32 %v2698_v7, %v3058_v44  ;;  %v3178_v1 = vsel %vm526_vm1, %v527_v43, %v525_v18  ;;  %1866 = vmatpush.bf16.msrb.mxu3 %v2595_v10 }
  0x8b   :  { %v3183_v5 = vsel %vm536_vm2, %v3025_v16, %v535_v15  ;;  %vm538_vm4 = vcmp.eq.f32.partialorder %v3025_v16, 0.0  ;;  %v567_v9 = vmul.f32 %v2696_v12, %v566_v63  ;;  %2705 = vrsqrt.f32 %v3069_v59 }
  0x8c   :  { %v3187_v25 = vpop.eup %2699  ;;  %v547_v14 = vmul.f32 %v546_v21, %v3045_v29  ;;  %vm550_vm5 = vcmp.eq.f32.partialorder %v3045_v29, 0.0  ;;  %vm560_vm6 = vcmp.eq.f32.partialorder %v3053_v39, inf  ;;  %v579_v53 = vmul.f32 %v2698_v7, %v578_v28 }
  0x8d   :  { %v587_v30 = vand.u32 2147483648, %v3058_v44  ;;  %vm637_vm7 = vcmask 1040384   ;;  %v3199_v34 = vpop.eup %2701  ;;  %v568_v20 = vmul.f32 0.5, %v567_v9  ;;  %vm572_vm8 = vcmp.eq.f32.partialorder %v3055_v40, inf }
  0x8e   :  { %v590_v36 = vmul.f32 %v3187_v25, %v3060_v22  ;;  %v638_v31 = vsel %vm637_vm7, %v456_v4, 0.0  ;;  %v639_v37 = vsel %vm637_vm7, %v468_v58, 0.0  ;;  %v3206_v41 = vpop.eup %2703  ;;  %v558_v42 = vmul.f32 %v2694_v49, %v557_v17  ;;  %v2586_v17 = vld [vmem:[%s3599_s1 + $0x188] sm:$0xff] }
  0x8f   :  { %v580_v45 = vmul.f32 0.5, %v579_v53  ;;  %vm584_vm9 = vcmp.eq.f32.partialorder %v3058_v44, inf  ;;  %v602_v38 = vmul.f32 %v3199_v34, %v3065_v50  ;;  %v640_v43 = vadd.f32 %v639_v37, %v638_v31  ;;  %v2570_v53 = vld [vmem:[%s3599_s1 + $0x108] sm:$0xff]  ;;  %v3266_v31 = vld.sshfl [vmem:[#allocation1 + $0x10] sm:$0xff pattern:$0x73625140]  ;;  %1854 = vmatpush.bf16.msrb.mxu2 %v2586_v17 }
  0x90   :  { %vm562_vm10 = vcmp.eq.f32.partialorder %v3053_v39, 0.0  ;;  %v569_v47 = vsub.f32 1.5, %v568_v20  ;;  %v591_v49 = vmul.f32 %v3187_v25, %v590_v36  ;;  %v614_v60 = vmul.f32 %v3206_v41, %v3067_v57  ;;  %v2594_v36 = vld [vmem:[%s3599_s1 + $0x1c8] sm:$0xff]  ;;  %v3268_v37 = vld.sshfl [vmem:[#allocation1] sm:$0xff pattern:$0x73625140]  ;;  %1828 = vmatpush.bf16.msrb.mxu0 %v2570_v53 }
  0x91   :  { %v641_v62 = vsel %vm637_vm7, %v480_v48, 0.0  ;;  %v581_v56 = vsub.f32 1.5, %v580_v45  ;;  %v599_v0 = vand.u32 2147483648, %v3060_v22  ;;  %v603_v2 = vmul.f32 %v3199_v34, %v602_v38  ;;  %v3236_v11 = vpop.eup %2705  ;;  %1867 = vmatpush.bf16.msrb.mxu3 %v2594_v36  ;;  %v2632_v17 = vld [vmem:[%s3599_s1 + $0x2f8] sm:$0xff] }
  0x92   :  { %v642_v4 = vadd.f32 %v641_v62, %v640_v43  ;;  %v549_v52 = vsel %vm548_vm3, %v3045_v29, %v547_v14  ;;  %v570_v58 = vmul.f32 %v2696_v12, %v569_v47  ;;  %vm574_vm11 = vcmp.eq.f32.partialorder %v3055_v40, 0.0  ;;  %v2579_v12 = vld [vmem:[%s3599_s1 + $0x150] sm:$0xff]  ;;  %v3285_v47 = vld.sshfl [vmem:[#allocation1 + $0x8] sm:$0xff pattern:$0x73625140]  ;;  %v2616_v53 = vld [vmem:[%s3599_s1 + $0x278] sm:$0xff] }
  0x93   :  { %vm586_vm12 = vcmp.eq.f32.partialorder %v3058_v44, 0.0  ;;  %v592_v48 = vmul.f32 0.5, %v591_v49  ;;  %v615_v15 = vmul.f32 %v3206_v41, %v614_v60  ;;  %v582_v18 = vmul.f32 %v2698_v7, %v581_v56  ;;  %1840 = vmatpush.bf16.msrb.mxu1 %v2579_v12  ;;  %698 = vst [vmem:[#allocation1] ss:$4 sm:$0xff] %v2850_v33 }
  0x94   :  { %vm596_vm13 = vcmp.eq.f32.partialorder %v3060_v22, inf  ;;  %v604_v21 = vmul.f32 0.5, %v603_v2  ;;  %v626_v24 = vmul.f32 %v3236_v11, %v3069_v59  ;;  %v643_v63 = vsel %vm637_vm7, %v3162_v54, 0.0  ;;  %v696_v36 = vld.sshfl [vmem:[#allocation1 + $0x30] sm:$0xff pattern:$0x73625140] }
  0x95   :  { %v559_v7 = vmul.f32 %v558_v42, %v3053_v39  ;;  %v593_v28 = vsub.f32 1.5, %v592_v48  ;;  %v616_v9 = vmul.f32 0.5, %v615_v15  ;;  %v644_v14 = vadd.f32 %v643_v63, %v642_v4  ;;  %1868 = vmatpush.bf16.msrb.mxu3 %v2593_v19 }
  0x96   :  { %v571_v54 = vmul.f32 %v570_v58, %v3055_v40  ;;  %v605_v3 = vsub.f32 1.5, %v604_v21  ;;  %v627_v32 = vmul.f32 %v3236_v11, %v626_v24  ;;  %v645_v20 = vsel %vm637_vm7, %v3166_v55, 0.0 }
  0x97   :  { %v583_v42 = vmul.f32 %v582_v18, %v3058_v44  ;;  %v594_v45 = vmul.f32 %v3187_v25, %v593_v28  ;;  %vm598_vm14 = vcmp.eq.f32.partialorder %v3060_v22, 0.0  ;;  %v617_v38 = vsub.f32 1.5, %v616_v9  ;;  %v2578_v25 = vld [vmem:[%s3599_s1 + $0x148] sm:$0xff] }
  0x98   :  { %v646_v43 = vadd.f32 %v645_v20, %v644_v14  ;;  %v540_v55 = vsel %vm538_vm4, %v539_v6, %v3183_v5  ;;  %v606_v46 = vmul.f32 %v3199_v34, %v605_v3  ;;  %vm608_vm15 = vcmp.eq.f32.partialorder %v3065_v50, inf  ;;  %v2585_v34 = vld [vmem:[%s3599_s1 + $0x180] sm:$0xff]  ;;  %1841 = vmatpush.bf16.msrb.mxu1 %v2578_v25  ;;  %v2607_v3 = vld [vmem:[%s3599_s1 + $0x230] sm:$0xff] }
  0x99   :  { %v628_v51 = vmul.f32 0.5, %v627_v32  ;;  %v552_v49 = vsel %vm550_vm5, %v551_v8, %v549_v52  ;;  %v561_v16 = vsel %vm560_vm6, %v3053_v39, %v559_v7  ;;  %vm610_vm0 = vcmp.eq.f32.partialorder %v3065_v50, 0.0  ;;  %v2577_v52 = vld [vmem:[%s3599_s1 + $0x140] sm:$0xff]  ;;  %1855 = vmatpush.bf16.msrb.mxu2 %v2585_v34 }
  0x9a   :  { %v611_v6 = vand.u32 2147483648, %v3065_v50  ;;  %v647_v5 = vsel %vm637_vm7, %v3170_v13, 0.0  ;;  %v573_v29 = vsel %vm572_vm8, %v3055_v40, %v571_v54  ;;  %v649_v62 = vsel %vm637_vm7, %v3178_v1, 0.0  ;;  %v2569_v13 = vld [vmem:[%s3599_s1 + $0x100] sm:$0xff]  ;;  %v2623_v54 = vld [vmem:[%s3599_s1 + $0x2b0] sm:$0xff] }
  0x9b   :  { %v629_v8 = vsub.f32 1.5, %v628_v51  ;;  %v648_v60 = vadd.f32 %v647_v5, %v646_v43  ;;  %v585_v33 = vsel %vm584_vm9, %v3058_v44, %v583_v42  ;;  %v595_v56 = vmul.f32 %v594_v45, %v3060_v22  ;;  %1829 = vmatpush.bf16.msrb.mxu0 %v2569_v13  ;;  %v697_v42 = vld.sshfl [vmem:[#allocation1 + $0x38] sm:$0xff pattern:$0x73625140]  ;;  %v2631_v43 = vld [vmem:[%s3599_s1 + $0x2f0] sm:$0xff]  ;;  %v2621_v34 = vld [vmem:[%s3599_s1 + $0x2a0] sm:$0xff] }
  0x9c   :  { %v618_v2 = vmul.f32 %v3206_v41, %v617_v38  ;;  %v651_v1 = vsel %vm637_vm7, %v540_v55, 0.0  ;;  %v564_v4 = vsel %vm562_vm10, %v563_v26, %v561_v16  ;;  %v607_v61 = vmul.f32 %v606_v46, %v3065_v50  ;;  %1842 = vmatpush.bf16.msrb.mxu1 %v2577_v52  ;;  %v695_v45 = vld.sshfl [vmem:[#allocation1 + $0x28] sm:$0xff pattern:$0x73625140]  ;;  %v2615_v55 = vld [vmem:[%s3599_s1 + $0x270] sm:$0xff]  ;;  %v2613_v13 = vld [vmem:[%s3599_s1 + $0x260] sm:$0xff] }
  0x9d   :  { %vm620_vm1 = vcmp.eq.f32.partialorder %v3067_v57, inf  ;;  %v650_v10 = vadd.f32 %v649_v62, %v648_v60  ;;  %vm622_vm2 = vcmp.eq.f32.partialorder %v3067_v57, 0.0  ;;  %v623_v41 = vand.u32 2147483648, %v3067_v57  ;;  %v2629_v62 = vld [vmem:[%s3599_s1 + $0x2e0] sm:$0xff]  ;;  %v2612_v52 = vld [vmem:[%s3599_s1 + $0x258] sm:$0xff] }
  0x9e   :  { %v630_v58 = vmul.f32 %v3236_v11, %v629_v8  ;;  %v653_v48 = vsel %vm637_vm7, %v552_v49, 0.0  ;;  %v576_v39 = vsel %vm574_vm11, %v575_v27, %v573_v29  ;;  %v588_v26 = vsel %vm586_vm12, %v587_v30, %v585_v33  ;;  %v2624_v11 = vld [vmem:[%s3599_s1 + $0x2b8] sm:$0xff]  ;;  %v2605_v8 = vld [vmem:[%s3599_s1 + $0x220] sm:$0xff] }
  0x9f   :  { %vm632_vm3 = vcmp.eq.f32.partialorder %v3069_v59, inf  ;;  %v652_v15 = vadd.f32 %v651_v1, %v650_v10  ;;  %v597_v18 = vsel %vm596_vm13, %v3060_v22, %v595_v56  ;;  %v619_v40 = vmul.f32 %v618_v2, %v3067_v57  ;;  %v2608_v30 = vld [vmem:[%s3599_s1 + $0x238] sm:$0xff] }
  0xa0   :  { %v655_v27 = vsel %vm637_vm7, %v564_v4, 0.0  ;;  %v726_v44 = vpack.c.bf16 %v3266_v31, %v3266_v31  ;;  %v609_v21 = vsel %vm608_vm15, %v3065_v50, %v607_v61  ;;  %v724_v63 = vpack.c.bf16 %v3268_v37, %v3268_v37  ;;  %v694_v31 = vld.sshfl [vmem:[#allocation1 + $0x20] sm:$0xff pattern:$0x73625140]  ;;  %v2620_v56 = vld [vmem:[%s3599_s1 + $0x298] sm:$0xff] }
  0xa1   :  { %v654_v24 = vadd.f32 %v653_v48, %v652_v15  ;;  %v727_v12 = vpack.c.bf16 %v3273_v23, %v3273_v23  ;;  %v631_v7 = vmul.f32 %v630_v58, %v3069_v59  ;;  %v657_v28 = vsel %vm637_vm7, %v576_v39, 0.0  ;;  %699 = vst [vmem:[#allocation1 + $0x20] ss:$4 sm:$0xff] %v2856_v35  ;;  %v2622_v35 = vld [vmem:[%s3599_s1 + $0x2a8] sm:$0xff]  ;;  %v2604_v1 = vld [vmem:[%s3599_s1 + $0x218] sm:$0xff]  ;;  %v2603_v58 = vld [vmem:[%s3599_s1 + $0x210] sm:$0xff] }
  0xa2   :  { %v659_v9 = vsel %vm637_vm7, %v588_v26, 0.0  ;;  %1804 = vmatmul.bf16.vlgmr.msra.gmra.mxu2 %v726_v44  ;;  %v725_v14 = vpack.c.bf16 %v3285_v47, %v3285_v47  ;;  %v600_v32 = vsel %vm598_vm14, %v599_v0, %v597_v18  ;;  %1778 = vmatmul.bf16.vlgmr.msra.gmra.mxu0 %v724_v63  ;;  %v621_v37 = vsel %vm620_vm1, %v3067_v57, %v619_v40  ;;  %v2630_v57 = vld [vmem:[%s3599_s1 + $0x2e8] sm:$0xff]  ;;  %v2628_v61 = vld [vmem:[%s3599_s1 + $0x2d8] sm:$0xff]  ;;  %v2627_v48 = vld [vmem:[%s3599_s1 + $0x2d0] sm:$0xff] }
  0xa3   :  { %v656_v20 = vadd.f32 %v655_v27, %v654_v24  ;;  %1900 = vmatpush.bf16.msra.mxu2 %v2624_v11  ;;  %1817 = vmatmul.bf16.vlgmr.msra.gmra.mxu3 %v727_v12  ;;  %v612_v38 = vsel %vm610_vm0, %v611_v6, %v609_v21  ;;  %v635_v22 = vand.u32 2147483648, %v3069_v59  ;;  %v633_v23 = vsel %vm632_vm3, %v3069_v59, %v631_v7  ;;  %v2614_v6 = vld [vmem:[%s3599_s1 + $0x268] sm:$0xff]  ;;  %v2611_v39 = vld [vmem:[%s3599_s1 + $0x250] sm:$0xff]  ;;  %v2617_v40 = vld [vmem:[%s3599_s1 + $0x280] sm:$0xff] }
  0xa4   :  { %1874 = vmatpush.bf16.msra.mxu0 %v2608_v30  ;;  %1913 = vmatpush.bf16.msra.mxu3 %v2632_v17  ;;  %vm634_vm4 = vcmp.eq.f32.partialorder %v3069_v59, 0.0  ;;  %v661_v50 = vsel %vm637_vm7, %v600_v32, 0.0  ;;  %v624_v46 = vsel %vm622_vm2, %v623_v41, %v621_v37  ;;  %v663_v25 = vsel %vm637_vm7, %v612_v38, 0.0  ;;  %v2606_v59 = vld [vmem:[%s3599_s1 + $0x228] sm:$0xff]  ;;  %v2619_v41 = vld [vmem:[%s3599_s1 + $0x290] sm:$0xff]  ;;  %v2656_v27 = vld [vmem:[%s3599_s1 + $0x3b8] sm:$0xff] }
  0xa5   :  { %v658_v0 = vadd.f32 %v657_v28, %v656_v20  ;;  %1791 = vmatmul.bf16.vlgmr.msra.gmra.mxu1 %v725_v14  ;;  %v636_v47 = vsel %vm634_vm4, %v635_v22, %v633_v23  ;;  %v665_v16 = vsel %vm637_vm7, %v624_v46, 0.0  ;;  %v730_v19 = vpack.c.bf16 %v696_v36, %v696_v36  ;;  %v2618_v26 = vld [vmem:[%s3599_s1 + $0x288] sm:$0xff]  ;;  %v2601_v44 = vld [vmem:[%s3599_s1 + $0x200] sm:$0xff]  ;;  %v702_v30 = vld.sshfl [vmem:[#allocation1 + $0x10] sm:$0xff pattern:$0x73625140] }
  0xa6   :  { %1887 = vmatpush.bf16.msra.mxu1 %v2616_v53  ;;  %v667_v29 = vsel %vm637_vm7, %v636_v47, 0.0  ;;  %v728_v2 = vpack.c.bf16 %v694_v31, %v694_v31  ;;  %v731_v4 = vpack.c.bf16 %v697_v42, %v697_v42  ;;  %v729_v10 = vpack.c.bf16 %v695_v45, %v695_v45  ;;  %v2602_v15 = vld [vmem:[%s3599_s1 + $0x208] sm:$0xff]  ;;  %v2625_v21 = vld [vmem:[%s3599_s1 + $0x2c0] sm:$0xff]  ;;  %v2640_v24 = vld [vmem:[%s3599_s1 + $0x338] sm:$0xff] }
  0xa7   :  { %v660_v51 = vadd.f32 %v659_v9, %v658_v0  ;;  %1901 = vmatpush.bf16.msra.mxu2 %v2623_v54  ;;  %v2626_v11 = vld [vmem:[%s3599_s1 + $0x2c8] sm:$0xff]  ;;  %v700_v63 = vld.sshfl [vmem:[#allocation1] sm:$0xff pattern:$0x73625140]  ;;  %v2664_v12 = vld [vmem:[%s3599_s1 + $0x3f8] sm:$0xff]  ;;  %v734_v9 = vpack.c.bf16 %v702_v30, %v702_v30  ;;  %vm1994_vm7 = vcmask 261120  }
  0xa8   :  { %1875 = vmatpush.bf16.msra.mxu0 %v2607_v3  ;;  %1914 = vmatpush.bf16.msra.mxu3 %v2631_v43  ;;  %v2610_v18 = vld [vmem:[%s3599_s1 + $0x248] sm:$0xff]  ;;  %v2609_v17 = vld [vmem:[%s3599_s1 + $0x240] sm:$0xff]  ;;  %v703_v7 = vld.sshfl [vmem:[#allocation1 + $0x18] sm:$0xff pattern:$0x73625140]  ;;  %v732_v54 = vpack.c.bf16 %v700_v63, %v700_v63  ;;  %vm2018_vm8 = vcmask 1024  }
  0xa9   :  { %v662_v49 = vadd.f32 %v661_v50, %v660_v51  ;;  %v2648_v28 = vld [vmem:[%s3599_s1 + $0x378] sm:$0xff]  ;;  %v701_v14 = vld.sshfl [vmem:[#allocation1 + $0x8] sm:$0xff pattern:$0x73625140]  ;;  %v2655_v53 = vld [vmem:[%s3599_s1 + $0x3b0] sm:$0xff]  ;;  %v735_v32 = vpack.c.bf16 %v703_v7, %v703_v7 }
  0xaa   :  { %1888 = vmatpush.bf16.msra.mxu1 %v2615_v55  ;;  %v2639_v3 = vld [vmem:[%s3599_s1 + $0x330] sm:$0xff]  ;;  %v733_v36 = vpack.c.bf16 %v701_v14, %v701_v14  ;;  %v2654_v37 = vld [vmem:[%s3599_s1 + $0x3a8] sm:$0xff]  ;;  %v2653_v22 = vld [vmem:[%s3599_s1 + $0x3a0] sm:$0xff] }
  0xab   :  { %v664_v5 = vadd.f32 %v663_v25, %v662_v49  ;;  %1902 = vmatpush.bf16.msra.mxu2 %v2622_v35  ;;  %v2663_v20 = vld [vmem:[%s3599_s1 + $0x3f0] sm:$0xff]  ;;  %v2638_v42 = vld [vmem:[%s3599_s1 + $0x328] sm:$0xff]  ;;  %v2637_v0 = vld [vmem:[%s3599_s1 + $0x320] sm:$0xff] }
  0xac   :  { %1876 = vmatpush.bf16.msra.mxu0 %v2606_v59  ;;  %1915 = vmatpush.bf16.msra.mxu3 %v2630_v57  ;;  %v2647_v31 = vld [vmem:[%s3599_s1 + $0x370] sm:$0xff]  ;;  %v2662_v45 = vld [vmem:[%s3599_s1 + $0x3e8] sm:$0xff]  ;;  %v2661_v43 = vld [vmem:[%s3599_s1 + $0x3e0] sm:$0xff] }
  0xad   :  { %v666_v60 = vadd.f32 %v665_v16, %v664_v5  ;;  %v2646_v38 = vld [vmem:[%s3599_s1 + $0x368] sm:$0xff]  ;;  %v2645_v23 = vld [vmem:[%s3599_s1 + $0x360] sm:$0xff]  ;;  %v2652_v50 = vld [vmem:[%s3599_s1 + $0x398] sm:$0xff] }
  0xae   :  { %1889 = vmatpush.bf16.msra.mxu1 %v2614_v6  ;;  %v2636_v55 = vld [vmem:[%s3599_s1 + $0x318] sm:$0xff]  ;;  %v2651_v35 = vld [vmem:[%s3599_s1 + $0x390] sm:$0xff]  ;;  %v2650_v49 = vld [vmem:[%s3599_s1 + $0x388] sm:$0xff] }
  0xaf   :  { %v668_v33 = vadd.f32 %v667_v29, %v666_v60  ;;  %1903 = vmatpush.bf16.msra.mxu2 %v2621_v34  ;;  %v2660_v46 = vld [vmem:[%s3599_s1 + $0x3d8] sm:$0xff]  ;;  %v2635_v25 = vld [vmem:[%s3599_s1 + $0x310] sm:$0xff]  ;;  %v2634_v57 = vld [vmem:[%s3599_s1 + $0x308] sm:$0xff] }
  0xb0   :  { %1877 = vmatpush.bf16.msra.mxu0 %v2605_v8  ;;  %1916 = vmatpush.bf16.msra.mxu3 %v2629_v62  ;;  %v2644_v51 = vld [vmem:[%s3599_s1 + $0x358] sm:$0xff]  ;;  %v2659_v59 = vld [vmem:[%s3599_s1 + $0x3d0] sm:$0xff]  ;;  %v2658_v16 = vld [vmem:[%s3599_s1 + $0x3c8] sm:$0xff] }
  0xb1   :  { %669 = vadd.xlane.f32.xlu0 %v668_v33  ;;  %v2643_v47 = vld [vmem:[%s3599_s1 + $0x350] sm:$0xff]  ;;  %v2642_v6 = vld [vmem:[%s3599_s1 + $0x348] sm:$0xff]  ;;  %v2649_v5 = vld [vmem:[%s3599_s1 + $0x380] sm:$0xff] }
  0xb2   :  { %1890 = vmatpush.bf16.msra.mxu1 %v2613_v13  ;;  %1856 = vmatmul.bf16.vlgmr.msrb.gmra.mxu2 %v730_v19  ;;  %v706_v34 = vld.sshfl [vmem:[#allocation1 + $0x30] sm:$0xff pattern:$0x73625140]  ;;  %v2633_v29 = vld [vmem:[%s3599_s1 + $0x300] sm:$0xff] }
  0xb3   :  { %1904 = vmatpush.bf16.msra.mxu2 %v2620_v56  ;;  %1830 = vmatmul.bf16.vlgmr.msrb.gmra.mxu0 %v728_v2  ;;  %v704_v8 = vld.sshfl [vmem:[#allocation1 + $0x20] sm:$0xff pattern:$0x73625140]  ;;  %v707_v62 = vld.sshfl [vmem:[#allocation1 + $0x38] sm:$0xff pattern:$0x73625140]  ;;  %v738_v13 = vpack.c.bf16 %v706_v34, %v706_v34 }
  0xb4   :  { %1878 = vmatpush.bf16.msra.mxu0 %v2604_v1  ;;  %1869 = vmatmul.bf16.vlgmr.msrb.gmra.mxu3 %v731_v4  ;;  %v2657_v60 = vld [vmem:[%s3599_s1 + $0x3c0] sm:$0xff]  ;;  %v705_v33 = vld.sshfl [vmem:[#allocation1 + $0x28] sm:$0xff pattern:$0x73625140]  ;;  %v736_v56 = vpack.c.bf16 %v704_v8, %v704_v8  ;;  %v739_v2 = vpack.c.bf16 %v707_v62, %v707_v62  ;;  %v2710_v4 = vmov 2048.0   ;;  %v11_v62 = vstv %s3604_s5 }
  0xb5   :  { %1917 = vmatpush.bf16.msra.mxu3 %v2628_v61  ;;  %1843 = vmatmul.bf16.vlgmr.msrb.gmra.mxu1 %v729_v10  ;;  %v2641_v19 = vld [vmem:[%s3599_s1 + $0x340] sm:$0xff]  ;;  %v737_v1 = vpack.c.bf16 %v705_v33, %v705_v33  ;;  %2707 = vrcp.f32 %v2710_v4  ;;  %v1987_v34 = vld [vmem:[%s3603_s4 + $0x8] sm:$0xff]  ;;  %12 = vst [vmem:[#allocation2] sm:$0x1] %v11_v62 }
  0xb6   :  { %1891 = vmatpush.bf16.msra.mxu1 %v2612_v52  ;;  %v1986_v8 = vld [vmem:[%s3603_s4] sm:$0xff] }
  0xb7   :  { %1905 = vmatpush.bf16.msra.mxu2 %v2619_v41 }
  0xb8   :  { %1879 = vmatpush.bf16.msra.mxu0 %v2603_v58 }
  0xb9   :  { %1918 = vmatpush.bf16.msra.mxu3 %v2627_v48 }
  0xba   :  { %1892 = vmatpush.bf16.msra.mxu1 %v2611_v39 }
  0xbb   :  { %1906 = vmatpush.bf16.msra.mxu2 %v2618_v26  ;;  %v2708_v61 = vpop.eup %2707 }
  0xbc   :  { %1880 = vmatpush.bf16.msra.mxu0 %v2602_v15  ;;  %v679_v10 = vmul.f32 2048.0, %v2708_v61  ;;  %vm683_vm5 = vweird.f32 %v2708_v61 }
  0xbd   :  { %1919 = vmatpush.bf16.msra.mxu3 %v2626_v11 }
  0xbe   :  { %1893 = vmatpush.bf16.msra.mxu1 %v2610_v18  ;;  %v680_v58 = vsub.f32 1.0, %v679_v10 }
  0xbf   :  { %1907 = vmatpush.bf16.msra.mxu2 %v2617_v40 }
  0xc0   :  { %1881 = vmatpush.bf16.msra.mxu0 %v2601_v44  ;;  %v681_v11 = vmul.f32 %v2708_v61, %v680_v58 }
  0xc1   :  { %1920 = vmatpush.bf16.msra.mxu3 %v2625_v21 }
  0xc2   :  { %1894 = vmatpush.bf16.msra.mxu1 %v2609_v17  ;;  %1908 = vmatmul.bf16.vlgmr.msra.gmra.mxu2 %v734_v9  ;;  %v682_v21 = vadd.f32 %v2708_v61, %v681_v11 }
  0xc3   :  { %1952 = vmatpush.bf16.msrb.mxu2 %v2656_v27  ;;  %1882 = vmatmul.bf16.vlgmr.msra.gmra.mxu0 %v732_v54 }
  0xc4   :  { %1926 = vmatpush.bf16.msrb.mxu0 %v2640_v24  ;;  %1921 = vmatmul.bf16.vlgmr.msra.gmra.mxu3 %v735_v32  ;;  %v684_v17 = vsel %vm683_vm5, %v2708_v61, %v682_v21 }
  0xc5   :  { %1965 = vmatpush.bf16.msrb.mxu3 %v2664_v12  ;;  %1895 = vmatmul.bf16.vlgmr.msra.gmra.mxu1 %v733_v36 }
  0xc6   :  { %1939 = vmatpush.bf16.msrb.mxu1 %v2648_v28 }
  0xc7   :  { %1953 = vmatpush.bf16.msrb.mxu2 %v2655_v53 }
  0xc8   :  { %1927 = vmatpush.bf16.msrb.mxu0 %v2639_v3 }
  0xc9   :  { %1966 = vmatpush.bf16.msrb.mxu3 %v2663_v20 }
  0xca   :  { %1940 = vmatpush.bf16.msrb.mxu1 %v2647_v31 }
  0xcb   :  { %1954 = vmatpush.bf16.msrb.mxu2 %v2654_v37 }
  0xcc   :  { %1928 = vmatpush.bf16.msrb.mxu0 %v2638_v42 }
  0xcd   :  { %1967 = vmatpush.bf16.msrb.mxu3 %v2662_v45 }
  0xce   :  { %1941 = vmatpush.bf16.msrb.mxu1 %v2646_v38 }
  0xcf   :  { %1955 = vmatpush.bf16.msrb.mxu2 %v2653_v22 }
  0xd0   :  { %1929 = vmatpush.bf16.msrb.mxu0 %v2637_v0 }
  0xd1   :  { %1968 = vmatpush.bf16.msrb.mxu3 %v2661_v43 }
  0xd2   :  { %1942 = vmatpush.bf16.msrb.mxu1 %v2645_v23 }
  0xd3   :  { %1956 = vmatpush.bf16.msrb.mxu2 %v2652_v50 }
  0xd4   :  { %1930 = vmatpush.bf16.msrb.mxu0 %v2636_v55  ;;  %v996_v55 = vld [vmem:[%s3602_s2] sm:$0x1] }
  0xd5   :  { %1969 = vmatpush.bf16.msrb.mxu3 %v2660_v46 }
  0xd6   :  { %1943 = vmatpush.bf16.msrb.mxu1 %v2644_v51 }
  0xd7   :  { %1957 = vmatpush.bf16.msrb.mxu2 %v2651_v35 }
  0xd8   :  { %1931 = vmatpush.bf16.msrb.mxu0 %v2635_v25 }
  0xd9   :  { %1970 = vmatpush.bf16.msrb.mxu3 %v2659_v59 }
  0xda   :  { %1944 = vmatpush.bf16.msrb.mxu1 %v2643_v47  ;;  %v1989_v47 = vld [vmem:[%s3603_s4 + $0x18] sm:$0xff] }
  0xdb   :  { %1958 = vmatpush.bf16.msrb.mxu2 %v2650_v49 }
  0xdc   :  { %1932 = vmatpush.bf16.msrb.mxu0 %v2634_v57  ;;  %v1988_v57 = vld [vmem:[%s3603_s4 + $0x10] sm:$0xff] }
  0xdd   :  { %1971 = vmatpush.bf16.msrb.mxu3 %v2658_v16 }
  0xde   :  { %1945 = vmatpush.bf16.msrb.mxu1 %v2642_v6 }
  0xdf   :  { %1959 = vmatpush.bf16.msrb.mxu2 %v2649_v5 }
  0xe0   :  { %1933 = vmatpush.bf16.msrb.mxu0 %v2633_v29 }
  0xe1   :  { %1972 = vmatpush.bf16.msrb.mxu3 %v2657_v60 }
  0xe2   :  { %1960 = vmatmul.bf16.vlgmr.msrb.gmra.mxu2 %v738_v13  ;;  %1946 = vmatpush.bf16.msrb.mxu1 %v2641_v19 }
  0xe3   :  { %1934 = vmatmul.bf16.vlgmr.msrb.gmra.mxu0 %v736_v56 }
  0xe4   :  { %1973 = vmatmul.bf16.vlgmr.msrb.gmra.mxu3 %v739_v2  ;;  %2010 = vmatpush.msra.mxu0 %v1989_v47 }
  0xe5   :  { %1947 = vmatmul.bf16.vlgmr.msrb.gmra.mxu1 %v737_v1 }
  0xe6   :  { %2011 = vmatpush.msra.mxu0 %v1988_v57 }
  0xe8   :  { %2012 = vmatpush.msra.mxu0 %v1987_v34 }
  0xea   :  { %2013 = vmatpush.msra.mxu0 %v1986_v8 }
 0x11f   :  { %v1779_v52 = vpop.f32.mrf.mxu0 }
 0x122   :  { %v1792_v41 = vpop.f32.mrf.mxu1 }
 0x124   :  { %v670_v48 = vpop.xlane.xlu0 %669 }
 0x125   :  { %v671_v39 = vrot.slane %v670_v48, 4  ;;  %v1805_v26 = vpop.f32.mrf.mxu2 }
 0x126   :  { %v1818_v18 = vpop.f32.mrf.mxu3 }
 0x127   :  { %v672_v15 = vadd.f32 %v671_v39, %v670_v48  ;;  %v1781_v40 = vpop.f32.mrf.mxu0  ;;  %v2671_v48 = vld [vmem:[%s3601_s3] ss:$0 sm:$0xff] }
 0x129   :  { %v673_v27 = vrot.slane %v672_v15, 2 }
 0x12a   :  { %v1794_v44 = vpop.f32.mrf.mxu1 }
 0x12b   :  { %v674_v30 = vadd.f32 %v673_v27, %v672_v15 }
 0x12d   :  { %v675_v24 = vrot.slane %v674_v30, 1  ;;  %v1807_v63 = vpop.f32.mrf.mxu2 }
 0x12e   :  { %v1820_v7 = vpop.f32.mrf.mxu3 }
 0x12f   :  { %v676_v12 = vadd.f32 %v675_v24, %v674_v30 }
 0x130   :  { %v1831_v28 = vpop.f32.mrf.mxu0 }
 0x131   :  { %2665 = vpush %v676_v12 }
 0x132   :  { %2667 = vpush %v684_v17  ;;  %v1844_v9 = vpop.f32.mrf.mxu1 }
 0x135   :  { %v1857_v14 = vpop.f32.mrf.mxu2 }
 0x137   :  { %v1870_v53 = vpop.f32.mrf.mxu3 }
 0x138   :  { %v1833_v54 = vpop.f32.mrf.mxu0 }
 0x13a   :  { %v1846_v3 = vpop.f32.mrf.mxu1 }
 0x13d   :  { %v1859_v32 = vpop.f32.mrf.mxu2 }
 0x13f   :  { %v1872_v20 = vpop.f32.mrf.mxu3 }
 0x140   :  { %v1883_v36 = vpop.f32.mrf.mxu0 }
 0x142   :  { %v1896_v31 = vpop.f32.mrf.mxu1 }
 0x145   :  { %v1909_v37 = vpop.f32.mrf.mxu2 }
 0x147   :  { %v1922_v42 = vpop.f32.mrf.mxu3 }
 0x148   :  { %v1885_v45 = vpop.f32.mrf.mxu0 }
 0x14a   :  { %v1898_v38 = vpop.f32.mrf.mxu1 }
 0x14d   :  { %v1911_v22 = vpop.f32.mrf.mxu2 }
 0x14f   :  { %v1924_v0 = vpop.f32.mrf.mxu3 }
 0x160   :  { %v1935_v43 = vpop.f32.mrf.mxu0 }
 0x162   :  { %v1948_v23 = vpop.f32.mrf.mxu1  ;;  %s2666_s1 = spop %2665 }
 0x163   :  { %s2668_s13 = spop %2667 }
 0x164   :  { %s686_s14 = smul.f32 %s2668_s13, %s2666_s1 }
 0x165   :  { %v1961_v50 = vpop.f32.mrf.mxu2 }
 0x166   :  { %v997_v35 = vstv %s686_s14 }
 0x167   :  { %v1974_v46 = vpop.f32.mrf.mxu3  ;;  %v998_v25 = vmul.f32 %v997_v35, %v996_v55 }
 0x168   :  { %v1937_v51 = vpop.f32.mrf.mxu0 }
 0x169   :  { %v1000_v49 = vperm.slane %v998_v25, 0 }
 0x16a   :  { %v1950_v59 = vpop.f32.mrf.mxu1 }
 0x16b   :  { %v1780_v6 = vadd.f32 %v1779_v52, %v1000_v49 }
 0x16d   :  { %v1963_v16 = vpop.f32.mrf.mxu2  ;;  %v1793_v29 = vadd.f32 %v1792_v41, %v1780_v6 }
 0x16f   :  { %v1976_v5 = vpop.f32.mrf.mxu3  ;;  %v1806_v60 = vadd.f32 %v1805_v26, %v1793_v29 }
 0x171   :  { %v1819_v13 = vadd.f32 %v1818_v18, %v1806_v60  ;;  %v2672_v18 = vld [vmem:[#allocation2] ss:$0 sm:$0xff] }
 0x173   :  { %v1832_v19 = vadd.f32 %v1831_v28, %v1819_v13 }
 0x175   :  { %v1845_v33 = vadd.f32 %v1844_v9, %v1832_v19 }
 0x177   :  { %v1858_v56 = vadd.f32 %v1857_v14, %v1845_v33 }
 0x179   :  { %v1871_v2 = vadd.f32 %v1870_v53, %v1858_v56 }
 0x17b   :  { %v1884_v1 = vadd.f32 %v1883_v36, %v1871_v2 }
 0x17d   :  { %v1897_v4 = vadd.f32 %v1896_v31, %v1884_v1 }
 0x17f   :  { %v1910_v61 = vadd.f32 %v1909_v37, %v1897_v4 }
 0x181   :  { %v1923_v10 = vadd.f32 %v1922_v42, %v1910_v61 }
 0x183   :  { %v1936_v52 = vadd.f32 %v1935_v43, %v1923_v10 }
 0x185   :  { %v1949_v41 = vadd.f32 %v1948_v23, %v1936_v52 }
 0x187   :  { %v1962_v58 = vadd.f32 %v1961_v50, %v1949_v41 }
 0x189   :  { %v1975_v39 = vadd.f32 %v1974_v46, %v1962_v58 }
 0x18b   :  { %v1982_v26 = vadd.f32 %v2671_v48, %v1975_v39 }
 0x18d   :  { %vm1983_vm6 = vcmp.gt.f32.partialorder %v1982_v26, 0.0  ;;  %v1984_v15 = vmul.f32 0.2, %v1982_v26 }
 0x18f   :  { %v1985_v11 = vsel %vm1983_vm6, %v1982_v26, %v1984_v15 }
 0x190   :  { %2536 = vmatmul.msk.f32.vlgmr.msra.gmra.mxu0 %vm1994_vm7, %v1985_v11 }
 0x20d   :  { %v2015_v40 = vpop.f32.mrf.mxu0 }
 0x20e   :  { %v2016_v27 = vadd.f32 %v2672_v18, %v2015_v40 }
 0x210   :  { %2019 = vst.msk [vmem:[%s3605_s6] sm:$0x3] %vm2018_vm8, %v2016_v27 }

// kernel: discriminator_forward.3
= control target key start
LH: loop header
LB: loop body
LE: loop exit
PB: predicated region body
PF: predicated region fallthrough
CT: control target
= control target key end

     0   :  { %s6678_s27 = smov 0   ;;  %s9907_s0 = inlined_call_operand.vmem [shape: f32[2,256,3], index: 0, kind: input, shape index: {}]   ;;  %s9908_s1 = inlined_call_operand.vmem [shape: f32[3,32], index: 1, kind: input, shape index: {}]   ;;  %s9909_s2 = inlined_call_operand.vmem [shape: f32[1,32], index: 2, kind: input, shape index: {}]   ;;  %s9910_s3 = inlined_call_operand.vmem [shape: bf16[288,32], index: 3, kind: input, shape index: {}]   ;;  %s9911_s4 = inlined_call_operand.vmem [shape: f32[1,32], index: 4, kind: input, shape index: {}]   ;;  %s9912_s5 = inlined_call_operand.vmem [shape: bf16[288,32], index: 5, kind: input, shape index: {}]   ;;  %s9913_s6 = inlined_call_operand.vmem [shape: f32[1,32], index: 6, kind: input, shape index: {}]   ;;  %s9914_s7 = inlined_call_operand.vmem [shape: f32[16,64], index: 7, kind: input, shape index: {}]   ;;  %s9915_s8 = inlined_call_operand.vmem [shape: f32[2,64,32], index: 8, kind: output, shape index: {}]  }
   0x1 LB: > { %s5344_s28 = sadd.s32 4294967295, %s6624_s27   ;;  %p5348_p0 = scmp.ge.s32.totalorder %s6624_s27, 1  ;;  %s6624_s27 = sphi %s6678_s27, %s18_s27  }
   0x2   : > { %p262_p1 = scmp.lt.s32.totalorder %s6624_s27, 3 }
   0x4   : > { %p263_p2 = pnand %p5348_p0, %p262_p1 }
   0x6   : > { %266 = sbr.rel (%p263_p2) target bundleno = 1757 (0x6dd), region = 52 }
   0xb   : > { %p296_p3 = scmp.lt.s32.totalorder %s5344_s28, 1  ;;  %v6626_v0 = vmov 0   ;;  %v6627_v33 = vmov 1   ;;  %v6628_v58 = vmov 2   ;;  %vm307_vm0 = vcmask 261120   ;;  %s6630_s19 = smov 32  }
   0xc   : > { %5594 = vset.pattern.permute.xlu2 %v6626_v0  ;;  %5593 = vset.pattern.permute.xlu1 %v6626_v0  ;;  %vm311_vm15 = vcmask 253952   ;;  %s6631_s20 = smov 64   ;;  %s6632_s21 = smov 96  }
   0xd   : > { %5592 = vset.pattern.permute.xlu0 %v6626_v0  ;;  %s10046_s28 = smov (!%p296_p3, %s5344_s28), 1 }
   0xe   : > { %s5539_s29 = sshll.u32 %s10046_s28, 8  ;;  %s5540_s25 = sshll.u32 %s10046_s28, 6 }
   0xf   : > { %s6692_s10 = scalar_lea.vmem %s9907_s0, %s5539_s29  ;;  %s9460_s28 = scalar_lea.vmem %s9915_s8, %s5540_s25 }
  0x10   : > { %v6695_v1 = vld [vmem:[%s6692_s10 + $0x20] sm:$0xff]  ;;  %v6698_v2 = vld [vmem:[%s6692_s10 + $0x10] sm:$0xff]  ;;  %v6707_v4 = vld [vmem:[%s6692_s10 + $0x28] sm:$0xff] }
  0x11   : > { %v6701_v3 = vld [vmem:[%s6692_s10] sm:$0xff]  ;;  %508 = vperm.xlu2 %5594, %v6695_v1   ;;  %498 = vperm.xlu1 %5593, %v6698_v2   ;;  %v6710_v5 = vld [vmem:[%s6692_s10 + $0x18] sm:$0xff]  ;;  %v6713_v6 = vld [vmem:[%s6692_s10 + $0x8] sm:$0xff] }
  0x12   : > { %488 = vperm.xlu0 %5592, %v6701_v3   ;;  %v6719_v7 = vld [vmem:[%s6692_s10 + $0x40] sm:$0xff]  ;;  %v6722_v8 = vld [vmem:[%s6692_s10 + $0x38] sm:$0xff]  ;;  %v6725_v9 = vld [vmem:[%s6692_s10 + $0x30] sm:$0xff] }
  0x13   : > { %v6731_v10 = vld [vmem:[%s6692_s10 + $0x58] sm:$0xff]  ;;  %v6734_v11 = vld [vmem:[%s6692_s10 + $0x50] sm:$0xff]  ;;  %v6737_v12 = vld [vmem:[%s6692_s10 + $0x48] sm:$0xff] }
  0x14   : > { %v6743_v13 = vld [vmem:[%s6692_s10 + $0x70] sm:$0xff]  ;;  %v6746_v14 = vld [vmem:[%s6692_s10 + $0x68] sm:$0xff]  ;;  %v6749_v15 = vld [vmem:[%s6692_s10 + $0x60] sm:$0xff] }
  0x15   : > { %v6755_v16 = vld [vmem:[%s6692_s10 + $0x88] sm:$0xff]  ;;  %v6758_v17 = vld [vmem:[%s6692_s10 + $0x80] sm:$0xff]  ;;  %v6761_v18 = vld [vmem:[%s6692_s10 + $0x78] sm:$0xff] }
  0x16   : > { %v6767_v19 = vld [vmem:[%s6692_s10 + $0xa0] sm:$0xff]  ;;  %v6770_v20 = vld [vmem:[%s6692_s10 + $0x98] sm:$0xff]  ;;  %v6773_v21 = vld [vmem:[%s6692_s10 + $0x90] sm:$0xff] }
  0x17   : > { %v6779_v22 = vld [vmem:[%s6692_s10 + $0xb8] sm:$0xff]  ;;  %v6782_v23 = vld [vmem:[%s6692_s10 + $0xb0] sm:$0xff]  ;;  %v6785_v24 = vld [vmem:[%s6692_s10 + $0xa8] sm:$0xff] }
  0x18   : > { %v6791_v25 = vld [vmem:[%s6692_s10 + $0xd0] sm:$0xff]  ;;  %v6794_v26 = vld [vmem:[%s6692_s10 + $0xc8] sm:$0xff]  ;;  %v6797_v27 = vld [vmem:[%s6692_s10 + $0xc0] sm:$0xff] }
  0x19   : > { %513 = vperm.xlu2 %5594, %v6707_v4   ;;  %503 = vperm.xlu1 %5593, %v6710_v5   ;;  %v6803_v28 = vld [vmem:[%s6692_s10 + $0xe8] sm:$0xff]  ;;  %v6806_v29 = vld [vmem:[%s6692_s10 + $0xe0] sm:$0xff]  ;;  %v6809_v30 = vld [vmem:[%s6692_s10 + $0xd8] sm:$0xff] }
  0x1a   : > { %493 = vperm.xlu0 %5592, %v6713_v6   ;;  %v6815_v31 = vld [vmem:[%s6692_s10 + $0xf8] sm:$0xff]  ;;  %v6818_v32 = vld [vmem:[%s6692_s10 + $0xf0] sm:$0xff] }
  0x21   : > { %528 = vperm.xlu2 %5594, %v6719_v7   ;;  %523 = vperm.xlu1 %5593, %v6722_v8  }
  0x22   : > { %518 = vperm.xlu0 %5592, %v6725_v9  }
  0x29   : > { %543 = vperm.xlu2 %5594, %v6731_v10   ;;  %538 = vperm.xlu1 %5593, %v6734_v11  }
  0x2a   : > { %533 = vperm.xlu0 %5592, %v6737_v12  }
  0x31   : > { %558 = vperm.xlu2 %5594, %v6743_v13   ;;  %553 = vperm.xlu1 %5593, %v6746_v14  }
  0x32   : > { %548 = vperm.xlu0 %5592, %v6749_v15  }
  0x39   : > { %573 = vperm.xlu2 %5594, %v6755_v16   ;;  %568 = vperm.xlu1 %5593, %v6758_v17  }
  0x3a   : > { %563 = vperm.xlu0 %5592, %v6761_v18  }
  0x41   : > { %588 = vperm.xlu2 %5594, %v6767_v19   ;;  %583 = vperm.xlu1 %5593, %v6770_v20  }
  0x42   : > { %578 = vperm.xlu0 %5592, %v6773_v21  }
  0x49   : > { %603 = vperm.xlu2 %5594, %v6779_v22   ;;  %598 = vperm.xlu1 %5593, %v6782_v23  }
  0x4a   : > { %593 = vperm.xlu0 %5592, %v6785_v24  }
  0x51   : > { %618 = vperm.xlu2 %5594, %v6791_v25   ;;  %613 = vperm.xlu1 %5593, %v6794_v26  }
  0x52   : > { %608 = vperm.xlu0 %5592, %v6797_v27  }
  0x59   : > { %633 = vperm.xlu2 %5594, %v6803_v28   ;;  %628 = vperm.xlu1 %5593, %v6806_v29  }
  0x5a   : > { %623 = vperm.xlu0 %5592, %v6809_v30  }
  0x61   : > { %5595 = vset.pattern.permute.xlu2 %v6627_v33  ;;  %643 = vperm.xlu1 %5593, %v6815_v31  }
  0x62   : > { %638 = vperm.xlu0 %5592, %v6818_v32   ;;  %680 = vperm.xlu2 %5595, %v6701_v3  }
  0x69   : > { %5597 = vset.pattern.permute.xlu1 %v6627_v33 }
  0x6a   : > { %5596 = vset.pattern.permute.xlu0 %v6627_v33  ;;  %688 = vperm.xlu1 %5597, %v6698_v2  }
  0x6b   : > { %692 = vperm.xlu2 %5595, %v6710_v5   ;;  %684 = vperm.xlu0 %5596, %v6713_v6   ;;  %v6826_v34 = vpop.permute.xlu2 %508 }
  0x72   : > { %696 = vperm.xlu1 %5597, %v6695_v1  }
  0x73   : > { %700 = vperm.xlu2 %5595, %v6707_v4   ;;  %704 = vperm.xlu0 %5596, %v6725_v9   ;;  %v6831_v35 = vpop.permute.xlu2 %513 }
  0x7a   : > { %708 = vperm.xlu1 %5597, %v6722_v8  }
  0x7b   : > { %712 = vperm.xlu2 %5595, %v6719_v7   ;;  %716 = vperm.xlu0 %5596, %v6737_v12   ;;  %v6836_v36 = vpop.permute.xlu2 %528 }
  0x82   : > { %720 = vperm.xlu1 %5597, %v6734_v11  }
  0x83   : > { %724 = vperm.xlu2 %5595, %v6731_v10   ;;  %728 = vperm.xlu0 %5596, %v6749_v15   ;;  %v6841_v37 = vpop.permute.xlu2 %543  ;;  %v6843_v38 = vpop.permute.xlu1 %498 }
  0x84   : > { %v6845_v39 = vpop.permute.xlu0 %488 }
  0x8a   : > { %732 = vperm.xlu1 %5597, %v6746_v14  }
  0x8b   : > { %736 = vperm.xlu2 %5595, %v6743_v13   ;;  %740 = vperm.xlu0 %5596, %v6761_v18   ;;  %v6850_v40 = vpop.permute.xlu2 %558  ;;  %v6852_v41 = vpop.permute.xlu1 %503 }
  0x8c   : > { %v6854_v42 = vpop.permute.xlu0 %493 }
  0x92   : > { %744 = vperm.xlu1 %5597, %v6758_v17  }
  0x93   : > { %748 = vperm.xlu2 %5595, %v6755_v16   ;;  %752 = vperm.xlu0 %5596, %v6773_v21   ;;  %v6859_v43 = vpop.permute.xlu2 %573  ;;  %v6861_v44 = vpop.permute.xlu1 %523 }
  0x94   : > { %v6863_v45 = vpop.permute.xlu0 %518 }
  0x9a   : > { %756 = vperm.xlu1 %5597, %v6770_v20  }
  0x9b   : > { %760 = vperm.xlu2 %5595, %v6767_v19   ;;  %764 = vperm.xlu0 %5596, %v6785_v24   ;;  %v6868_v46 = vpop.permute.xlu2 %588  ;;  %v6870_v47 = vpop.permute.xlu1 %538 }
  0x9c   : > { %v6872_v48 = vpop.permute.xlu0 %533 }
  0xa2   : > { %768 = vperm.xlu1 %5597, %v6782_v23  }
  0xa3   : > { %772 = vperm.xlu2 %5595, %v6779_v22   ;;  %776 = vperm.xlu0 %5596, %v6797_v27   ;;  %v6877_v49 = vpop.permute.xlu2 %603  ;;  %v6879_v50 = vpop.permute.xlu1 %553 }
  0xa4   : > { %v6881_v51 = vpop.permute.xlu0 %548 }
  0xaa   : > { %780 = vperm.xlu1 %5597, %v6794_v26  }
  0xab   : > { %784 = vperm.xlu2 %5595, %v6791_v25   ;;  %788 = vperm.xlu0 %5596, %v6809_v30   ;;  %v6886_v52 = vpop.permute.xlu2 %618  ;;  %v6888_v53 = vpop.permute.xlu1 %568 }
  0xac   : > { %v6890_v54 = vpop.permute.xlu0 %563 }
  0xb2   : > { %792 = vperm.xlu1 %5597, %v6806_v29  }
  0xb3   : > { %796 = vperm.xlu2 %5595, %v6803_v28   ;;  %800 = vperm.xlu0 %5596, %v6818_v32   ;;  %v6895_v55 = vpop.permute.xlu2 %633  ;;  %v6897_v56 = vpop.permute.xlu1 %583 }
  0xb4   : > { %v6899_v57 = vpop.permute.xlu0 %578 }
  0xba   : > { %804 = vperm.xlu1 %5597, %v6815_v31  }
  0xbb   : > { %5598 = vset.pattern.permute.xlu2 %v6628_v58  ;;  %5599 = vset.pattern.permute.xlu0 %v6628_v58  ;;  %v6906_v60 = vpop.permute.xlu1 %598 }
  0xbc   : > { %873 = vperm.xlu2 %5598, %v6701_v3   ;;  %877 = vperm.xlu0 %5599, %v6713_v6   ;;  %v6904_v59 = vpop.permute.xlu2 %680  ;;  %v6908_v61 = vpop.permute.xlu0 %593 }
  0xc2   : > { %5600 = vset.pattern.permute.xlu1 %v6628_v58 }
  0xc3   : > { %881 = vperm.xlu1 %5600, %v6698_v2   ;;  %v6915_v63 = vpop.permute.xlu1 %613 }
  0xc4   : > { %885 = vperm.xlu2 %5598, %v6710_v5   ;;  %897 = vperm.xlu0 %5599, %v6725_v9   ;;  %v6917_v0 = vpop.permute.xlu0 %608 }
  0xc5   : > { %v6913_v62 = vpop.permute.xlu2 %692  ;;  %9933 = vst [vmem:[#allocation4_spill] sm:$0xff] %v6917_v0 }
  0xcb   : > { %889 = vperm.xlu1 %5600, %v6695_v1   ;;  %v6925_v2 = vpop.permute.xlu1 %628 }
  0xcc   : > { %893 = vperm.xlu2 %5598, %v6707_v4   ;;  %909 = vperm.xlu0 %5599, %v6737_v12   ;;  %9934 = vst [vmem:[#allocation5_spill] sm:$0xff] %v6925_v2  ;;  %v6929_v5 = vpop.permute.xlu0 %623 }
  0xcd   : > { %v6922_v3 = vpop.permute.xlu2 %700  ;;  %9935 = vst [vmem:[#allocation6_spill] sm:$0xff] %v6929_v5 }
  0xd3   : > { %901 = vperm.xlu1 %5600, %v6722_v8   ;;  %v6938_v4 = vpop.permute.xlu1 %643 }
  0xd4   : > { %905 = vperm.xlu2 %5598, %v6719_v7   ;;  %921 = vperm.xlu0 %5599, %v6749_v15   ;;  %9936 = vst [vmem:[#allocation7_spill] sm:$0xff] %v6938_v4  ;;  %v6940_v8 = vpop.permute.xlu0 %638  ;;  %v6629_v15 = vmov 0.0  }
  0xd5   : > { %v6931_v6 = vpop.permute.xlu2 %712  ;;  %9937 = vst [vmem:[#allocation8_spill] sm:$0xff] %v6940_v8 }
  0xd6   : > { %314 = vst.msk [vmem:[#allocation2 + $0x28] sm:$0xff] %vm307_vm0, %v6629_v15 }
  0xd7   : > { %308 = vst.msk [vmem:[#allocation2] sm:$0xff] %vm307_vm0, %v6629_v15 }
  0xd8   : > { %309 = vst.msk [vmem:[#allocation2 + $0x8] sm:$0xff] %vm307_vm0, %v6629_v15 }
  0xd9   : > { %310 = vst.msk [vmem:[#allocation2 + $0x10] sm:$0xff] %vm307_vm0, %v6629_v15 }
  0xda   : > { %313 = vst.msk [vmem:[#allocation2 + $0x20] sm:$0xff] %vm307_vm0, %v6629_v15 }
  0xdb   : > { %913 = vperm.xlu1 %5600, %v6734_v11   ;;  %315 = vst.msk [vmem:[#allocation2 + $0x30] sm:$0xff] %vm307_vm0, %v6629_v15 }
  0xdc   : > { %917 = vperm.xlu2 %5598, %v6731_v10   ;;  %933 = vperm.xlu0 %5599, %v6761_v18   ;;  %v6947_v9 = vpop.permute.xlu1 %688  ;;  %317 = vst.msk [vmem:[#allocation2 + $0x40] sm:$0xff] %vm307_vm0, %v6629_v15 }
  0xdd   : > { %v6936_v1 = vpop.permute.xlu2 %724  ;;  %v6949_v11 = vpop.permute.xlu0 %684  ;;  %318 = vst.msk [vmem:[#allocation2 + $0x48] sm:$0xff] %vm307_vm0, %v6629_v15 }
  0xde   : > { %319 = vst.msk [vmem:[#allocation2 + $0x50] sm:$0xff] %vm307_vm0, %v6629_v15 }
  0xdf   : > { %321 = vst.msk [vmem:[#allocation2 + $0x60] sm:$0xff] %vm307_vm0, %v6629_v15 }
  0xe0   : > { %322 = vst.msk [vmem:[#allocation2 + $0x68] sm:$0xff] %vm307_vm0, %v6629_v15 }
  0xe1   : > { %323 = vst.msk [vmem:[#allocation2 + $0x70] sm:$0xff] %vm307_vm0, %v6629_v15 }
  0xe2   : > { %325 = vst.msk [vmem:[#allocation2 + $0x80] sm:$0xff] %vm307_vm0, %v6629_v15 }
  0xe3   : > { %925 = vperm.xlu1 %5600, %v6746_v14   ;;  %326 = vst.msk [vmem:[#allocation2 + $0x88] sm:$0xff] %vm307_vm0, %v6629_v15 }
  0xe4   : > { %929 = vperm.xlu2 %5598, %v6743_v13   ;;  %945 = vperm.xlu0 %5599, %v6773_v21   ;;  %v6956_v12 = vpop.permute.xlu1 %696  ;;  %327 = vst.msk [vmem:[#allocation2 + $0x90] sm:$0xff] %vm307_vm0, %v6629_v15 }
  0xe5   : > { %v6945_v7 = vpop.permute.xlu2 %736  ;;  %v6958_v14 = vpop.permute.xlu0 %704  ;;  %329 = vst.msk [vmem:[#allocation2 + $0xa0] sm:$0xff] %vm307_vm0, %v6629_v15 }
  0xe6   : > { %330 = vst.msk [vmem:[#allocation2 + $0xa8] sm:$0xff] %vm307_vm0, %v6629_v15 }
  0xe7   : > { %331 = vst.msk [vmem:[#allocation2 + $0xb0] sm:$0xff] %vm307_vm0, %v6629_v15 }
  0xe8   : > { %333 = vst.msk [vmem:[#allocation2 + $0xc0] sm:$0xff] %vm307_vm0, %v6629_v15 }
  0xe9   : > { %334 = vst.msk [vmem:[#allocation2 + $0xc8] sm:$0xff] %vm307_vm0, %v6629_v15 }
  0xea   : > { %335 = vst.msk [vmem:[#allocation2 + $0xd0] sm:$0xff] %vm307_vm0, %v6629_v15 }
  0xeb   : > { %937 = vperm.xlu1 %5600, %v6758_v17   ;;  %337 = vst.msk [vmem:[#allocation2 + $0xe0] sm:$0xff] %vm307_vm0, %v6629_v15 }
  0xec   : > { %941 = vperm.xlu2 %5598, %v6755_v16   ;;  %957 = vperm.xlu0 %5599, %v6785_v24   ;;  %v6972_v16 = vpop.permute.xlu1 %708  ;;  %338 = vst.msk [vmem:[#allocation2 + $0xe8] sm:$0xff] %vm307_vm0, %v6629_v15 }
  0xed   : > { %v6954_v10 = vpop.permute.xlu2 %748  ;;  %v6978_v17 = vpop.permute.xlu0 %716  ;;  %339 = vst.msk [vmem:[#allocation2 + $0xf0] sm:$0xff] %vm307_vm0, %v6629_v15 }
  0xee   : > { %341 = vst.msk [vmem:[#allocation2 + $0x100] sm:$0xff] %vm307_vm0, %v6629_v15 }
  0xef   : > { %342 = vst.msk [vmem:[#allocation2 + $0x108] sm:$0xff] %vm307_vm0, %v6629_v15 }
  0xf0   : > { %343 = vst.msk [vmem:[#allocation2 + $0x110] sm:$0xff] %vm307_vm0, %v6629_v15 }
  0xf1   : > { %345 = vst.msk [vmem:[#allocation2 + $0x120] sm:$0xff] %vm307_vm0, %v6629_v15 }
  0xf2   : > { %346 = vst.msk [vmem:[#allocation2 + $0x128] sm:$0xff] %vm307_vm0, %v6629_v15 }
  0xf3   : > { %949 = vperm.xlu1 %5600, %v6770_v20   ;;  %347 = vst.msk [vmem:[#allocation2 + $0x130] sm:$0xff] %vm307_vm0, %v6629_v15 }
  0xf4   : > { %953 = vperm.xlu2 %5598, %v6767_v19   ;;  %969 = vperm.xlu0 %5599, %v6797_v27   ;;  %v7007_v20 = vpop.permute.xlu1 %720  ;;  %349 = vst.msk [vmem:[#allocation2 + $0x140] sm:$0xff] %vm307_vm0, %v6629_v15 }
  0xf5   : > { %v6963_v13 = vpop.permute.xlu2 %760  ;;  %v7009_v21 = vpop.permute.xlu0 %728  ;;  %350 = vst.msk [vmem:[#allocation2 + $0x148] sm:$0xff] %vm307_vm0, %v6629_v15 }
  0xf6   : > { %351 = vst.msk [vmem:[#allocation2 + $0x150] sm:$0xff] %vm307_vm0, %v6629_v15 }
  0xf7   : > { %353 = vst.msk [vmem:[#allocation2 + $0x160] sm:$0xff] %vm307_vm0, %v6629_v15 }
  0xf8   : > { %354 = vst.msk [vmem:[#allocation2 + $0x168] sm:$0xff] %vm307_vm0, %v6629_v15 }
  0xf9   : > { %355 = vst.msk [vmem:[#allocation2 + $0x170] sm:$0xff] %vm307_vm0, %v6629_v15 }
  0xfa   : > { %357 = vst.msk [vmem:[#allocation2 + $0x180] sm:$0xff] %vm307_vm0, %v6629_v15 }
  0xfb   : > { %961 = vperm.xlu1 %5600, %v6782_v23   ;;  %v485_v23 = vld [vmem:[%s9908_s1] sm:$0x7]  ;;  %358 = vst.msk [vmem:[#allocation2 + $0x188] sm:$0xff] %vm307_vm0, %v6629_v15 }
  0xfc   : > { %965 = vperm.xlu2 %5598, %v6779_v22   ;;  %981 = vperm.xlu0 %5599, %v6809_v30   ;;  %v7034_v24 = vperm.slane %v485_v23, 1  ;;  %v7048_v27 = vperm.slane %v485_v23, 0  ;;  %359 = vst.msk [vmem:[#allocation2 + $0x190] sm:$0xff] %vm307_vm0, %v6629_v15 }
  0xfd   : > { %v6980_v18 = vpop.permute.xlu2 %772  ;;  %361 = vst.msk [vmem:[#allocation2 + $0x1a0] sm:$0xff] %vm307_vm0, %v6629_v15 }
  0xfe   : > { %v647_v30 = vmul.f32 %v7048_v27, %v6845_v39  ;;  %362 = vst.msk [vmem:[#allocation2 + $0x1a8] sm:$0xff] %vm307_vm0, %v6629_v15  ;;  %v810_v5 = vmul.f32 %v7034_v24, %v6947_v9 }
  0xff   : > { %363 = vst.msk [vmem:[#allocation2 + $0x1b0] sm:$0xff] %vm307_vm0, %v6629_v15 }
 0x100   : > { %365 = vst.msk [vmem:[#allocation2 + $0x1c0] sm:$0xff] %vm307_vm0, %v6629_v15 }
 0x101   : > { %366 = vst.msk [vmem:[#allocation2 + $0x1c8] sm:$0xff] %vm307_vm0, %v6629_v15 }
 0x102   : > { %367 = vst.msk [vmem:[#allocation2 + $0x1d0] sm:$0xff] %vm307_vm0, %v6629_v15 }
 0x103   : > { %973 = vperm.xlu1 %5600, %v6794_v26   ;;  %v7042_v26 = vpop.permute.xlu0 %740  ;;  %369 = vst.msk [vmem:[#allocation2 + $0x1e0] sm:$0xff] %vm307_vm0, %v6629_v15 }
 0x104   : > { %977 = vperm.xlu2 %5598, %v6791_v25   ;;  %993 = vperm.xlu0 %5599, %v6818_v32   ;;  %v7040_v25 = vpop.permute.xlu1 %732  ;;  %370 = vst.msk [vmem:[#allocation2 + $0x1e8] sm:$0xff] %vm307_vm0, %v6629_v15 }
 0x105   : > { %v7001_v19 = vpop.permute.xlu2 %784  ;;  %371 = vst.msk [vmem:[#allocation2 + $0x1f0] sm:$0xff] %vm307_vm0, %v6629_v15 }
 0x106   : > { %9938 = vst [vmem:[#allocation9_spill] sm:$0xff] %v7001_v19 }
 0x107   : > { %373 = vst.msk [vmem:[#allocation2 + $0x200] sm:$0xff] %vm307_vm0, %v6629_v15 }
 0x108   : > { %374 = vst.msk [vmem:[#allocation2 + $0x208] sm:$0xff] %vm307_vm0, %v6629_v15 }
 0x109   : > { %375 = vst.msk [vmem:[#allocation2 + $0x210] sm:$0xff] %vm307_vm0, %v6629_v15 }
 0x10a   : > { %377 = vst.msk [vmem:[#allocation2 + $0x220] sm:$0xff] %vm307_vm0, %v6629_v15 }
 0x10b   : > { %985 = vperm.xlu1 %5600, %v6806_v29   ;;  %v7053_v29 = vperm.slane %v485_v23, 2  ;;  %v7081_v23 = vpop.permute.xlu0 %752  ;;  %378 = vst.msk [vmem:[#allocation2 + $0x228] sm:$0xff] %vm307_vm0, %v6629_v15 }
 0x10c   : > { %989 = vperm.xlu2 %5598, %v6803_v28   ;;  %v808_v28 = vmul.f32 %v7034_v24, %v6904_v59  ;;  %v7079_v59 = vpop.permute.xlu1 %744  ;;  %9940 = vst [vmem:[#allocation11_spill] sm:$0xff] %v7081_v23 }
 0x10d   : > { %v7025_v22 = vpop.permute.xlu2 %796  ;;  %379 = vst.msk [vmem:[#allocation2 + $0x230] sm:$0xff] %vm307_vm0, %v6629_v15 }
 0x10e   : > { %9939 = vst [vmem:[#allocation10_spill] sm:$0xff] %v7025_v22  ;;  %v840_v33 = vadd.f32 %v808_v28, %v647_v30  ;;  %v811_v22 = vmul.f32 %v7034_v24, %v6913_v62  ;;  %v648_v62 = vmul.f32 %v7048_v27, %v6854_v42  ;;  %v7248_v42 = vmul.f32 %v7048_v27, %v6881_v51  ;;  %v5558_v51 = vld [vmem:[%s9910_s3 + $0x88] sm:$0xff] }
 0x10f   : > { %381 = vst.msk [vmem:[#allocation3] sm:$0xff] %vm307_vm0, %v6629_v15  ;;  %1781 = vmatpush.bf16.msra.mxu2 %v5558_v51 }
 0x110   : > { %382 = vst.msk [vmem:[#allocation3 + $0x8] sm:$0xff] %vm307_vm0, %v6629_v15 }
 0x111   : > { %383 = vst.msk [vmem:[#allocation3 + $0x10] sm:$0xff] %vm307_vm0, %v6629_v15 }
 0x112   : > { %385 = vst.msk [vmem:[#allocation3 + $0x20] sm:$0xff] %vm307_vm0, %v6629_v15 }
 0x113   : > { %997 = vperm.xlu1 %5600, %v6815_v31   ;;  %v7068_v31 = vld [vmem:[%s9909_s2] ss:$0 sm:$0xff]  ;;  %386 = vst.msk [vmem:[#allocation3 + $0x28] sm:$0xff] %vm307_vm0, %v6629_v15 }
 0x114   : > { %387 = vst.msk [vmem:[#allocation3 + $0x30] sm:$0xff] %vm307_vm0, %v6629_v15 }
 0x115   : > { %389 = vst.msk [vmem:[#allocation3 + $0x40] sm:$0xff] %vm307_vm0, %v6629_v15 }
 0x116   : > { %v874_v32 = vpop.permute.xlu2 %873  ;;  %390 = vst.msk [vmem:[#allocation3 + $0x48] sm:$0xff] %vm307_vm0, %v6629_v15 }
 0x117   : > { %v1001_v58 = vmul.f32 %v7053_v29, %v874_v32  ;;  %391 = vst.msk [vmem:[#allocation3 + $0x50] sm:$0xff] %vm307_vm0, %v6629_v15 }
 0x118   : > { %393 = vst.msk [vmem:[#allocation3 + $0x60] sm:$0xff] %vm307_vm0, %v6629_v15 }
 0x119   : > { %v1033_v39 = vadd.f32 %v1001_v58, %v840_v33  ;;  %v7103_v33 = vpop.permute.xlu1 %756  ;;  %v7105_v58 = vpop.permute.xlu0 %764  ;;  %394 = vst.msk [vmem:[#allocation3 + $0x68] sm:$0xff] %vm307_vm0, %v6629_v15 }
 0x11a   : > { %9941 = vst [vmem:[#allocation12_spill] sm:$0xff] %v7103_v33  ;;  %v813_v33 = vmul.f32 %v7034_v24, %v6922_v3  ;;  %v7233_v3 = vmul.f32 %v7048_v27, %v6859_v43 }
 0x11b   : > { %v1069_v28 = vadd.f32 %v7068_v31, %v1033_v39  ;;  %9942 = vst [vmem:[#allocation13_spill] sm:$0xff] %v7105_v58  ;;  %v658_v58 = vmul.f32 %v7048_v27, %v6841_v37  ;;  %v809_v37 = vmul.f32 %v7034_v24, %v6949_v11  ;;  %v656_v11 = vmul.f32 %v7048_v27, %v6872_v48 }
 0x11c   : > { %395 = vst.msk [vmem:[#allocation3 + $0x70] sm:$0xff] %vm307_vm0, %v6629_v15 }
 0x11d   : > { %vm1101_vm1 = vcmp.gt.f32.partialorder %v1069_v28, 0.0  ;;  %v1133_v30 = vmul.f32 0.2, %v1069_v28  ;;  %397 = vst.msk [vmem:[#allocation3 + $0x80] sm:$0xff] %vm307_vm0, %v6629_v15 }
 0x11e   : > { %v886_v4 = vpop.permute.xlu2 %885  ;;  %398 = vst.msk [vmem:[#allocation3 + $0x88] sm:$0xff] %vm307_vm0, %v6629_v15 }
 0x11f   : > { %v1165_v32 = vsel %vm1101_vm1, %v1069_v28, %v1133_v30  ;;  %399 = vst.msk [vmem:[#allocation3 + $0x90] sm:$0xff] %vm307_vm0, %v6629_v15 }
 0x120   : > { %1198 = vst.msk [vmem:[#allocation2 + $0x28] sm:$0xff] %vm307_vm0, %v1165_v32 }
 0x121   : > { %v7127_v39 = vpop.permute.xlu1 %768  ;;  %v7129_v28 = vpop.permute.xlu0 %776  ;;  %401 = vst.msk [vmem:[#allocation3 + $0xa0] sm:$0xff] %vm307_vm0, %v6629_v15 }
 0x122   : > { %9943 = vst [vmem:[#allocation14_spill] sm:$0xff] %v7127_v39  ;;  %v652_v39 = vmul.f32 %v7048_v27, %v6831_v35  ;;  %v661_v35 = vmul.f32 %v7048_v27, %v6850_v40  ;;  %v1004_v40 = vmul.f32 %v7053_v29, %v886_v4  ;;  %v816_v4 = vmul.f32 %v7034_v24, %v6931_v6 }
 0x123   : > { %9944 = vst [vmem:[#allocation15_spill] sm:$0xff] %v7129_v28  ;;  %v651_v28 = vmul.f32 %v7048_v27, %v6826_v34  ;;  %v649_v34 = vmul.f32 %v7048_v27, %v6843_v38  ;;  %v7237_v38 = vmul.f32 %v7048_v27, %v6861_v44  ;;  %v812_v6 = vmul.f32 %v7034_v24, %v6956_v12 }
 0x124   : > { %402 = vst.msk [vmem:[#allocation3 + $0xa8] sm:$0xff] %vm307_vm0, %v6629_v15  ;;  %v845_v23 = vadd.f32 %v813_v33, %v652_v39  ;;  %v841_v33 = vadd.f32 %v809_v37, %v648_v62  ;;  %v1275_v39 = vld [vmem:[#allocation2 + $0x8] sm:$0xff]  ;;  %v822_v12 = vmul.f32 %v7034_v24, %v6945_v7  ;;  %v814_v37 = vmul.f32 %v7034_v24, %v6958_v14 }
 0x125   : > { %403 = vst.msk [vmem:[#allocation3 + $0xb0] sm:$0xff] %vm307_vm0, %v6629_v15  ;;  %v842_v7 = vadd.f32 %v810_v5, %v649_v34  ;;  %v817_v14 = vmul.f32 %v7034_v24, %v6978_v17 }
 0x126   : > { %405 = vst.msk [vmem:[#allocation3 + $0xc0] sm:$0xff] %vm307_vm0, %v6629_v15 }
 0x127   : > { %406 = vst.msk [vmem:[#allocation3 + $0xc8] sm:$0xff] %vm307_vm0, %v6629_v15 }
 0x128   : > { %407 = vst.msk [vmem:[#allocation3 + $0xd0] sm:$0xff] %vm307_vm0, %v6629_v15 }
 0x129   : > { %v7153_v30 = vpop.permute.xlu1 %780  ;;  %v7155_v32 = vpop.permute.xlu0 %788  ;;  %409 = vst.msk [vmem:[#allocation3 + $0xe0] sm:$0xff] %vm307_vm0, %v6629_v15 }
 0x12a   : > { %9945 = vst [vmem:[#allocation16_spill] sm:$0xff] %v7153_v30  ;;  %v894_v30 = vpop.permute.xlu2 %893 }
 0x12b   : > { %9946 = vst [vmem:[#allocation17_spill] sm:$0xff] %v7155_v32  ;;  %v1006_v43 = vmul.f32 %v7053_v29, %v894_v30  ;;  %v1276_v30 = vld [vmem:[#allocation2 + $0x10] sm:$0xff] }
 0x12c   : > { %410 = vst.msk [vmem:[#allocation3 + $0xe8] sm:$0xff] %vm307_vm0, %v6629_v15  ;;  %v5601_v9 = vpack.i.bf16 %v1276_v30, %v1275_v39  ;;  %v844_v30 = vadd.f32 %v812_v6, %v651_v28  ;;  %v825_v28 = vmul.f32 %v7034_v24, %v6954_v10 }
 0x12d   : > { %411 = vst.msk [vmem:[#allocation3 + $0xf0] sm:$0xff] %vm307_vm0, %v6629_v15  ;;  %v1038_v62 = vadd.f32 %v1006_v43, %v845_v23 }
 0x12e   : > { %413 = vst.msk [vmem:[#allocation3 + $0x100] sm:$0xff] %vm307_vm0, %v6629_v15  ;;  %5602 = vrot.lane.b32.xlu2 %v5601_v9, %s6630_s19 }
 0x12f   : > { %414 = vst.msk [vmem:[#allocation3 + $0x108] sm:$0xff] %vm307_vm0, %v6629_v15  ;;  %v1074_v5 = vadd.f32 %v7068_v31, %v1038_v62 }
 0x130   : > { %415 = vst.msk [vmem:[#allocation3 + $0x110] sm:$0xff] %vm307_vm0, %v6629_v15 }
 0x131   : > { %v7177_v2 = vpop.permute.xlu1 %792  ;;  %v7179_v8 = vpop.permute.xlu0 %800  ;;  %417 = vst.msk [vmem:[#allocation3 + $0x120] sm:$0xff] %vm307_vm0, %v6629_v15  ;;  %vm1106_vm3 = vcmp.gt.f32.partialorder %v1074_v5, 0.0 }
 0x132   : > { %9947 = vst [vmem:[#allocation18_spill] sm:$0xff] %v7177_v2  ;;  %v906_v32 = vpop.permute.xlu2 %905 }
 0x133   : > { %9948 = vst [vmem:[#allocation19_spill] sm:$0xff] %v7179_v8  ;;  %v1009_v0 = vmul.f32 %v7053_v29, %v906_v32 }
 0x134   : > { %418 = vst.msk [vmem:[#allocation3 + $0x128] sm:$0xff] %vm307_vm0, %v6629_v15 }
 0x135   : > { %419 = vst.msk [vmem:[#allocation3 + $0x130] sm:$0xff] %vm307_vm0, %v6629_v15 }
 0x136   : > { %421 = vst.msk [vmem:[#allocation3 + $0x140] sm:$0xff] %vm307_vm0, %v6629_v15 }
 0x137   : > { %422 = vst.msk [vmem:[#allocation3 + $0x148] sm:$0xff] %vm307_vm0, %v6629_v15 }
 0x138   : > { %423 = vst.msk [vmem:[#allocation3 + $0x150] sm:$0xff] %vm307_vm0, %v6629_v15 }
 0x139   : > { %v7197_v2 = vpop.permute.xlu1 %804  ;;  %v878_v8 = vpop.permute.xlu0 %877  ;;  %425 = vst.msk [vmem:[#allocation3 + $0x160] sm:$0xff] %vm307_vm0, %v6629_v15 }
 0x13a   : > { %9949 = vst [vmem:[#allocation20_spill] sm:$0xff] %v7197_v2  ;;  %v655_v2 = vmul.f32 %v7048_v27, %v6836_v36  ;;  %v650_v36 = vmul.f32 %v7048_v27, %v6852_v41  ;;  %v653_v41 = vmul.f32 %v7048_v27, %v6863_v45  ;;  %v1002_v45 = vmul.f32 %v7053_v29, %v878_v8  ;;  %v918_v8 = vpop.permute.xlu2 %917 }
 0x13b   : > { %426 = vst.msk [vmem:[#allocation3 + $0x168] sm:$0xff] %vm307_vm0, %v6629_v15  ;;  %v1012_v51 = vmul.f32 %v7053_v29, %v918_v8 }
 0x13c   : > { %v843_v44 = vadd.f32 %v811_v22, %v650_v36  ;;  %427 = vst.msk [vmem:[#allocation3 + $0x170] sm:$0xff] %vm307_vm0, %v6629_v15  ;;  %v819_v22 = vmul.f32 %v7034_v24, %v6936_v1  ;;  %v5557_v1 = vld [vmem:[%s9910_s3 + $0x80] sm:$0xff]  ;;  %v1034_v32 = vadd.f32 %v1002_v45, %v841_v33  ;;  %v846_v45 = vadd.f32 %v814_v37, %v653_v41 }
 0x13d   : > { %429 = vst.msk [vmem:[#allocation3 + $0x180] sm:$0xff] %vm307_vm0, %v6629_v15  ;;  %1782 = vmatpush.bf16.msra.mxu2 %v5557_v1  ;;  %v849_v41 = vadd.f32 %v817_v14, %v656_v11 }
 0x13e   : > { %430 = vst.msk [vmem:[#allocation3 + $0x188] sm:$0xff] %vm307_vm0, %v6629_v15  ;;  %v1036_v36 = vadd.f32 %v1004_v40, %v843_v44  ;;  %v848_v44 = vadd.f32 %v816_v4, %v655_v2  ;;  %v851_v39 = vadd.f32 %v819_v22, %v658_v58  ;;  %v854_v4 = vadd.f32 %v822_v12, %v661_v35 }
 0x13f   : > { %431 = vst.msk [vmem:[#allocation3 + $0x190] sm:$0xff] %vm307_vm0, %v6629_v15  ;;  %v815_v58 = vmul.f32 %v7034_v24, %v6972_v16 }
 0x140   : > { %433 = vst.msk [vmem:[#allocation3 + $0x1a0] sm:$0xff] %vm307_vm0, %v6629_v15  ;;  %v1072_v2 = vadd.f32 %v7068_v31, %v1036_v36  ;;  %v1041_v23 = vadd.f32 %v1009_v0, %v848_v44  ;;  %v1070_v0 = vadd.f32 %v7068_v31, %v1034_v32 }
 0x141   : > { %v882_v48 = vpop.permute.xlu1 %881  ;;  %v898_v19 = vpop.permute.xlu0 %897  ;;  %434 = vst.msk [vmem:[#allocation3 + $0x1a8] sm:$0xff] %vm307_vm0, %v6629_v15  ;;  %v847_v62 = vadd.f32 %v815_v58, %v7237_v38 }
 0x142   : > { %v1003_v40 = vmul.f32 %v7053_v29, %v882_v48  ;;  %435 = vst.msk [vmem:[#allocation3 + $0x1b0] sm:$0xff] %vm307_vm0, %v6629_v15  ;;  %v1007_v43 = vmul.f32 %v7053_v29, %v898_v19  ;;  %v1044_v19 = vadd.f32 %v1012_v51, %v851_v39  ;;  %v820_v48 = vmul.f32 %v7034_v24, %v7009_v21  ;;  %v930_v22 = vpop.permute.xlu2 %929 }
 0x143   : > { %437 = vst.msk [vmem:[#allocation3 + $0x1c0] sm:$0xff] %vm307_vm0, %v6629_v15  ;;  %v1136_v33 = vmul.f32 0.2, %v1072_v2  ;;  %v1077_v6 = vadd.f32 %v7068_v31, %v1041_v23  ;;  %v1015_v11 = vmul.f32 %v7053_v29, %v930_v22  ;;  %vm1104_vm2 = vcmp.gt.f32.partialorder %v1072_v2, 0.0 }
 0x144   : > { %v1035_v17 = vadd.f32 %v1003_v40, %v842_v7  ;;  %438 = vst.msk [vmem:[#allocation3 + $0x1c8] sm:$0xff] %vm307_vm0, %v6629_v15  ;;  %v1039_v8 = vadd.f32 %v1007_v43, %v846_v45  ;;  %v1138_v21 = vmul.f32 0.2, %v1074_v5  ;;  %v1134_v9 = vmul.f32 0.2, %v1070_v0 }
 0x145   : > { %439 = vst.msk [vmem:[#allocation3 + $0x1d0] sm:$0xff] %vm307_vm0, %v6629_v15  ;;  %v1080_v12 = vadd.f32 %v7068_v31, %v1044_v19  ;;  %v1047_v37 = vadd.f32 %v1015_v11, %v854_v4  ;;  %v857_v40 = vadd.f32 %v825_v28, %v7233_v3  ;;  %vm1102_vm4 = vcmp.gt.f32.partialorder %v1070_v0, 0.0 }
 0x146   : > { %441 = vst.msk [vmem:[#allocation3 + $0x1e0] sm:$0xff] %vm307_vm0, %v6629_v15  ;;  %v1071_v36 = vadd.f32 %v7068_v31, %v1035_v17  ;;  %v852_v32 = vadd.f32 %v820_v48, %v7248_v42  ;;  %v1168_v51 = vsel %vm1104_vm2, %v1072_v2, %v1136_v33  ;;  %v1141_v7 = vmul.f32 0.2, %v1077_v6 }
 0x147   : > { %442 = vst.msk [vmem:[#allocation3 + $0x1e8] sm:$0xff] %vm307_vm0, %v6629_v15  ;;  %v1075_v39 = vadd.f32 %v7068_v31, %v1039_v8  ;;  %v1170_v38 = vsel %vm1106_vm3, %v1074_v5, %v1138_v21  ;;  %vm1109_vm5 = vcmp.gt.f32.partialorder %v1077_v6, 0.0  ;;  %v1166_v42 = vsel %vm1102_vm4, %v1070_v0, %v1134_v9 }
 0x148   : > { %443 = vst.msk [vmem:[#allocation3 + $0x1f0] sm:$0xff] %vm307_vm0, %v6629_v15  ;;  %v1135_v3 = vmul.f32 0.2, %v1071_v36  ;;  %vm1103_vm6 = vcmp.gt.f32.partialorder %v1071_v36, 0.0  ;;  %v1144_v14 = vmul.f32 0.2, %v1080_v12  ;;  %v1083_v23 = vadd.f32 %v7068_v31, %v1047_v37 }
 0x149   : > { %v890_v34 = vpop.permute.xlu1 %889  ;;  %v910_v35 = vpop.permute.xlu0 %909  ;;  %445 = vst.msk [vmem:[#allocation3 + $0x200] sm:$0xff] %vm307_vm0, %v6629_v15  ;;  %vm1112_vm7 = vcmp.gt.f32.partialorder %v1080_v12, 0.0  ;;  %v1173_v58 = vsel %vm1109_vm5, %v1077_v6, %v1141_v7  ;;  %vm1107_vm8 = vcmp.gt.f32.partialorder %v1075_v39, 0.0  ;;  %v1139_v28 = vmul.f32 0.2, %v1075_v39 }
 0x14a   : > { %v1005_v16 = vmul.f32 %v7053_v29, %v890_v34  ;;  %v1010_v10 = vmul.f32 %v7053_v29, %v910_v35  ;;  %446 = vst.msk [vmem:[#allocation3 + $0x208] sm:$0xff] %vm307_vm0, %v6629_v15  ;;  %v942_v5 = vpop.permute.xlu2 %941  ;;  %v1167_v19 = vsel %vm1103_vm6, %v1071_v36, %v1135_v3  ;;  %v1176_v48 = vsel %vm1112_vm7, %v1080_v12, %v1144_v14 }
 0x14b   : > { %447 = vst.msk [vmem:[#allocation3 + $0x210] sm:$0xff] %vm307_vm0, %v6629_v15  ;;  %v1018_v0 = vmul.f32 %v7053_v29, %v942_v5  ;;  %vm1115_vm10 = vcmp.gt.f32.partialorder %v1083_v23, 0.0  ;;  %v1171_v8 = vsel %vm1107_vm8, %v1075_v39, %v1139_v28  ;;  %v673_v28 = vmul.f32 %v7048_v27, %v6886_v52 }
 0x14c   : > { %v1037_v1 = vadd.f32 %v1005_v16, %v844_v30  ;;  %v1042_v44 = vadd.f32 %v1010_v10, %v849_v41  ;;  %449 = vst.msk [vmem:[#allocation3 + $0x220] sm:$0xff] %vm307_vm0, %v6629_v15  ;;  %v1147_v16 = vmul.f32 0.2, %v1083_v23 }
 0x14d   : > { %450 = vst.msk [vmem:[#allocation3 + $0x228] sm:$0xff] %vm307_vm0, %v6629_v15  ;;  %v1050_v22 = vadd.f32 %v1018_v0, %v857_v40 }
 0x14e   : > { %v1073_v30 = vadd.f32 %v7068_v31, %v1037_v1  ;;  %v1078_v4 = vadd.f32 %v7068_v31, %v1042_v44  ;;  %451 = vst.msk [vmem:[#allocation3 + $0x230] sm:$0xff] %vm307_vm0, %v6629_v15  ;;  %v1179_v1 = vsel %vm1115_vm10, %v1083_v23, %v1147_v16  ;;  %v665_v16 = vmul.f32 %v7048_v27, %v6899_v57 }
 0x14f   : > { %1201 = vst.msk [vmem:[#allocation2 + $0x50] sm:$0xff] %vm307_vm0, %v1168_v51  ;;  %v1086_v11 = vadd.f32 %v7068_v31, %v1050_v22  ;;  %v7438_v22 = vmul.f32 %v7048_v27, %v6906_v60  ;;  %v824_v57 = vmul.f32 %v7034_v24, %v7079_v59  ;;  %v9952_v59 = vld [vmem:[#allocation9_spill] sm:$0xff] }
 0x150   : > { %v1137_v34 = vmul.f32 0.2, %v1073_v30  ;;  %1203 = vst.msk [vmem:[#allocation2 + $0x70] sm:$0xff] %vm307_vm0, %v1170_v38  ;;  %vm1105_vm9 = vcmp.gt.f32.partialorder %v1073_v30, 0.0  ;;  %v1142_v10 = vmul.f32 0.2, %v1078_v4 }
 0x151   : > { %v902_v2 = vpop.permute.xlu1 %901  ;;  %v922_v43 = vpop.permute.xlu0 %921  ;;  %1206 = vst.msk [vmem:[#allocation2 + $0xa8] sm:$0xff] %vm307_vm0, %v1173_v58  ;;  %vm1110_vm11 = vcmp.gt.f32.partialorder %v1078_v4, 0.0  ;;  %vm1118_vm13 = vcmp.gt.f32.partialorder %v1086_v11, 0.0  ;;  %v1150_v9 = vmul.f32 0.2, %v1086_v11  ;;  %v660_v58 = vmul.f32 %v7048_v27, %v6879_v50 }
 0x152   : > { %v1008_v45 = vmul.f32 %v7053_v29, %v902_v2  ;;  %v1013_v17 = vmul.f32 %v7053_v29, %v922_v43  ;;  %1199 = vst.msk [vmem:[#allocation2 + $0x30] sm:$0xff] %vm307_vm0, %v1166_v42  ;;  %v1169_v21 = vsel %vm1105_vm9, %v1073_v30, %v1137_v34  ;;  %v1174_v37 = vsel %vm1110_vm11, %v1078_v4, %v1142_v10  ;;  %v7380_v42 = vpop.permute.xlu2 %953  ;;  %v1283_v4 = vld [vmem:[#allocation2 + $0x9] sm:$0xff] }
 0x153   : > { %1200 = vst.msk [vmem:[#allocation2 + $0x48] sm:$0xff] %vm307_vm0, %v1167_v19  ;;  %v1182_v40 = vsel %vm1118_vm13, %v1086_v11, %v1150_v9  ;;  %v667_v2 = vmul.f32 %v7048_v27, %v6868_v46  ;;  %v657_v43 = vmul.f32 %v7048_v27, %v6870_v47  ;;  %v663_v19 = vmul.f32 %v7048_v27, %v6888_v53 }
 0x154   : > { %v1040_v35 = vadd.f32 %v1008_v45, %v847_v62  ;;  %v1045_v41 = vadd.f32 %v1013_v17, %v852_v32  ;;  %1209 = vst.msk [vmem:[#allocation2 + $0xd0] sm:$0xff] %vm307_vm0, %v1176_v48  ;;  %v1277_v32 = vld [vmem:[#allocation2 + $0x28] sm:$0xff]  ;;  %v670_v17 = vmul.f32 %v7048_v27, %v6877_v49  ;;  %v662_v34 = vmul.f32 %v7048_v27, %v6890_v54 }
 0x155   : > { %1204 = vst.msk [vmem:[#allocation2 + $0x88] sm:$0xff] %vm307_vm0, %v1171_v8  ;;  %v7410_v49 = vmul.f32 %v7048_v27, %v6895_v55  ;;  %v821_v55 = vmul.f32 %v7034_v24, %v7040_v25  ;;  %v831_v48 = vmul.f32 %v7034_v24, %v6980_v18  ;;  %v668_v25 = vmul.f32 %v7048_v27, %v6908_v61  ;;  %v9950_v61 = vld [vmem:[#allocation4_spill] sm:$0xff] }
 0x156   : > { %v1076_v33 = vadd.f32 %v7068_v31, %v1040_v35  ;;  %v1081_v6 = vadd.f32 %v7068_v31, %v1045_v41  ;;  %1202 = vst.msk [vmem:[#allocation2 + $0x68] sm:$0xff] %vm307_vm0, %v1169_v21  ;;  %v1280_v38 = vld [vmem:[#allocation2 + $0x50] sm:$0xff]  ;;  %v818_v35 = vmul.f32 %v7034_v24, %v7007_v20  ;;  %v828_v41 = vmul.f32 %v7034_v24, %v6963_v13 }
 0x157   : > { %1212 = vst.msk [vmem:[#allocation2 + $0x108] sm:$0xff] %vm307_vm0, %v1179_v1  ;;  %v1282_v5 = vld [vmem:[#allocation2 + $0x70] sm:$0xff]  ;;  %v666_v20 = vmul.f32 %v7048_v27, %v6897_v56  ;;  %v823_v56 = vmul.f32 %v7034_v24, %v7042_v26  ;;  %v834_v11 = vmul.f32 %v7034_v24, %v9952_v59  ;;  %v853_v9 = vadd.f32 %v821_v55, %v660_v58  ;;  %v9960_v59 = vld [vmem:[#allocation16_spill] sm:$0xff] }
 0x158   : > { %vm1108_vm12 = vcmp.gt.f32.partialorder %v1076_v33, 0.0  ;;  %v1140_v36 = vmul.f32 0.2, %v1076_v33  ;;  %v1145_v12 = vmul.f32 0.2, %v1081_v6  ;;  %vm1113_vm14 = vcmp.gt.f32.partialorder %v1081_v6, 0.0 }
 0x159   : > { %1207 = vst.msk [vmem:[#allocation2 + $0xb0] sm:$0xff] %vm307_vm0, %v1174_v37  ;;  %v1278_v51 = vld [vmem:[#allocation2 + $0x30] sm:$0xff]  ;;  %v7376_v30 = vpop.permute.xlu1 %913  ;;  %v7386_v23 = vpop.permute.xlu0 %933  ;;  %v860_v1 = vadd.f32 %v828_v41, %v667_v2  ;;  %v9953_v37 = vld [vmem:[#allocation11_spill] sm:$0xff] }
 0x15a   : > { %v1172_v62 = vsel %vm1108_vm12, %v1076_v33, %v1140_v36  ;;  %v1177_v44 = vsel %vm1113_vm14, %v1081_v6, %v1145_v12  ;;  %v5606_v7 = vpack.i.bf16 %v1278_v51, %v1277_v32  ;;  %1215 = vst.msk [vmem:[#allocation2 + $0x130] sm:$0xff] %vm307_vm0, %v1182_v40  ;;  %v1279_v39 = vld [vmem:[#allocation2 + $0x48] sm:$0xff]  ;;  %v966_v10 = vpop.permute.xlu2 %965  ;;  %v7457_v33 = vmul.f32 %v7048_v27, %v6915_v63  ;;  %v9951_v26 = vld [vmem:[#allocation6_spill] sm:$0xff] }
 0x15b   : > { %1205 = vst.msk [vmem:[#allocation2 + $0x90] sm:$0xff] %vm307_vm0, %v1172_v62  ;;  %v7366_v3 = vpack.i.bf16 %v1280_v38, %v1279_v39  ;;  %v7382_v14 = vld [vmem:[#allocation2 + $0x49] sm:$0xff]  ;;  %v671_v6 = vmul.f32 %v7048_v27, %v9950_v61  ;;  %v7463_v8 = vmul.f32 %v7048_v27, %v9951_v26  ;;  %v850_v36 = vadd.f32 %v818_v35, %v657_v43  ;;  %v9954_v38 = vld [vmem:[#allocation12_spill] sm:$0xff] }
 0x15c   : > { %1210 = vst.msk [vmem:[#allocation2 + $0xe8] sm:$0xff] %vm307_vm0, %v1177_v44  ;;  %5607 = vrot.lane.b32.xlu0 %v5606_v7, %s6630_s19  ;;  %v1285_v47 = vld [vmem:[#allocation2 + $0x29] sm:$0xff]  ;;  %v7469_v12 = vadd.f32 %v831_v48, %v670_v17  ;;  %v826_v62 = vmul.f32 %v7034_v24, %v9953_v37  ;;  %v1011_v40 = vmul.f32 %v7053_v29, %v7376_v30 }
 0x15d   : > { %320 = vst.msk [vmem:[#allocation2 + $0x58] sm:$0x1] %vm311_vm15, %v6629_v15  ;;  %5612 = vrot.lane.b32.xlu1 %v7366_v3, %s6630_s19  ;;  %v1281_v45 = vld [vmem:[#allocation2 + $0x68] sm:$0xff]  ;;  %v855_v7 = vadd.f32 %v823_v56, %v662_v34  ;;  %v7488_v39 = vadd.f32 %v824_v57, %v663_v19  ;;  %v827_v2 = vmul.f32 %v7034_v24, %v9954_v38  ;;  %v9957_v58 = vld [vmem:[#allocation14_spill] sm:$0xff] }
 0x15e   : > { %312 = vst.msk [vmem:[#allocation2 + $0x18] sm:$0x1] %vm311_vm15, %v6629_v15  ;;  %v7402_v46 = vpack.i.bf16 %v1282_v5, %v1281_v45  ;;  %v7453_v60 = vld [vmem:[#allocation2 + $0x69] sm:$0xff]  ;;  %v1021_v30 = vmul.f32 %v7053_v29, %v7380_v42  ;;  %v7496_v43 = vadd.f32 %v834_v11, %v673_v28  ;;  %v9958_v42 = vld [vmem:[#allocation15_spill] sm:$0xff]  ;;  %v858_v34 = vadd.f32 %v826_v62, %v665_v16 }
 0x15f   : > { %316 = vst.msk [vmem:[#allocation2 + $0x38] sm:$0x1] %vm311_vm15, %v6629_v15  ;;  %v7473_v63 = vld [vmem:[#allocation2 + $0x47] sm:$0xff]  ;;  %v7486_v51 = vld [vmem:[#allocation2 + $0x2f] sm:$0xff]  ;;  %v832_v28 = vmul.f32 %v7034_v24, %v9958_v42  ;;  %v7522_v41 = vadd.f32 %v827_v2, %v666_v20  ;;  %v1024_v20 = vmul.f32 %v7053_v29, %v966_v10  ;;  %v7543_v11 = vmul.f32 %v7034_v24, %v9960_v59 }
 0x160   : > { %324 = vst.msk [vmem:[#allocation2 + $0x78] sm:$0x1] %vm311_vm15, %v6629_v15  ;;  %5617 = vrot.lane.b32.xlu2 %v7402_v46, %s6630_s19  ;;  %v5636_v44 = vpack.i.bf16 %v7473_v63, %v7453_v60  ;;  %v9956_v45 = vld [vmem:[#allocation13_spill] sm:$0xff] }
 0x161   : > { %328 = vst.msk [vmem:[#allocation2 + $0x98] sm:$0x1] %vm311_vm15, %v6629_v15  ;;  %v926_v18 = vpop.permute.xlu1 %925  ;;  %v946_v21 = vpop.permute.xlu0 %945  ;;  %v829_v5 = vmul.f32 %v7034_v24, %v9956_v45  ;;  %v7506_v17 = vld [vmem:[#allocation2 + $0x27] sm:$0xff]  ;;  %v864_v26 = vadd.f32 %v832_v28, %v671_v6 }
 0x162   : > { %332 = vst.msk [vmem:[#allocation2 + $0xb8] sm:$0x1] %vm311_vm15, %v6629_v15  ;;  %v5641_v19 = vpack.i.bf16 %v7486_v51, %v7506_v17  ;;  %v978_v55 = vpop.permute.xlu2 %977  ;;  %v7536_v56 = vld [vmem:[#allocation2 + $0x67] sm:$0xff] }
 0x163   : > { %336 = vst.msk [vmem:[#allocation2 + $0xd8] sm:$0x1] %vm311_vm15, %v6629_v15  ;;  %v861_v16 = vadd.f32 %v829_v5, %v668_v25  ;;  %v1027_v6 = vmul.f32 %v7053_v29, %v978_v55  ;;  %v7609_v55 = vld [vmem:[#allocation2 + $0x87] sm:$0xff] }
 0x164   : > { %v1333_v0 = vld [vmem:[#allocation2 + $0x51] sm:$0xff]  ;;  %340 = vst.msk [vmem:[#allocation2 + $0xf8] sm:$0x1] %vm311_vm15, %v6629_v15  ;;  %v7621_v59 = vld [vmem:[#allocation2 + $0x89] sm:$0xff] }
 0x165   : > { %v1584_v50 = vpack.c.bf16 %v1333_v0, %v7382_v14  ;;  %344 = vst.msk [vmem:[#allocation2 + $0x118] sm:$0x1] %vm311_vm15, %v6629_v15  ;;  %v1284_v52 = vld [vmem:[#allocation2 + $0x11] sm:$0xff]  ;;  %v7484_v32 = vpack.i.bf16 %v1333_v0, %v7382_v14  ;;  %v830_v0 = vmul.f32 %v7034_v24, %v9957_v58 }
 0x166   : > { %348 = vst.msk [vmem:[#allocation2 + $0x138] sm:$0x1] %vm311_vm15, %v6629_v15  ;;  %v5621_v53 = vpack.i.bf16 %v1284_v52, %v1283_v4  ;;  %v1286_v54 = vld [vmem:[#allocation2 + $0x31] sm:$0xff]  ;;  %v1014_v52 = vmul.f32 %v7053_v29, %v926_v18  ;;  %v1019_v18 = vmul.f32 %v7053_v29, %v946_v21 }
 0x167   : > { %5425 = vmatmul.msk.bf16.vlgmr.msra.gmra.mxu2 %vm307_vm0, %v1584_v50  ;;  %352 = vst.msk [vmem:[#allocation2 + $0x158] sm:$0x1] %vm311_vm15, %v6629_v15  ;;  %v7430_v13 = vpack.i.bf16 %v1286_v54, %v1285_v47  ;;  %v9955_v4 = vld [vmem:[#allocation10_spill] sm:$0xff]  ;;  %v1016_v47 = vmul.f32 %v7053_v29, %v7386_v23  ;;  %v1043_v50 = vadd.f32 %v1011_v40, %v850_v36 }
 0x168   : > { %356 = vst.msk [vmem:[#allocation2 + $0x178] sm:$0x1] %vm311_vm15, %v6629_v15  ;;  %5622 = vrot.lane.b32.xlu0 %v5621_v53, %s6631_s20  ;;  %v837_v14 = vmul.f32 %v7034_v24, %v9955_v4  ;;  %5632 = vrot.lane.b32.xlu2 %v7484_v32, %s6631_s20  ;;  %v9959_v53 = vld [vmem:[#allocation17_spill] sm:$0xff]  ;;  %v1053_v23 = vadd.f32 %v1021_v30, %v860_v1  ;;  %v7550_v21 = vld [vmem:[#allocation2 + $0x71] sm:$0xff] }
 0x169   : > { %360 = vst.msk [vmem:[#allocation2 + $0x198] sm:$0x1] %vm311_vm15, %v6629_v15  ;;  %5627 = vrot.lane.b32.xlu1 %v7430_v13, %s6631_s20  ;;  %v938_v35 = vpop.permute.xlu1 %937  ;;  %v835_v54 = vmul.f32 %v7034_v24, %v9959_v53  ;;  %v958_v57 = vpop.permute.xlu0 %957  ;;  %v7539_v61 = vadd.f32 %v830_v0, %v7438_v22  ;;  %v1079_v25 = vadd.f32 %v7068_v31, %v1043_v50  ;;  %v1317_v36 = vld [vmem:[#allocation2 + $0x4f] sm:$0xff] }
 0x16a   : > { %364 = vst.msk [vmem:[#allocation2 + $0x1b8] sm:$0x1] %vm311_vm15, %v6629_v15  ;;  %v7530_v48 = vadd.f32 %v837_v14, %v7410_v49  ;;  %v1048_v49 = vadd.f32 %v1016_v47, %v855_v7  ;;  %v1046_v10 = vadd.f32 %v1014_v52, %v853_v9  ;;  %v1017_v22 = vmul.f32 %v7053_v29, %v938_v35  ;;  %v990_v58 = vpop.permute.xlu2 %989 }
 0x16b   : > { %368 = vst.msk [vmem:[#allocation2 + $0x1d8] sm:$0x1] %vm311_vm15, %v6629_v15  ;;  %v7555_v1 = vadd.f32 %v835_v54, %v7463_v8  ;;  %v1089_v37 = vadd.f32 %v7068_v31, %v1053_v23  ;;  %v1587_v62 = vpack.c.bf16 %v7550_v21, %v7453_v60  ;;  %v5651_v9 = vpack.i.bf16 %v7536_v56, %v1317_v36  ;;  %v9961_v8 = vld [vmem:[#allocation19_spill] sm:$0xff] }
 0x16c   : > { %372 = vst.msk [vmem:[#allocation2 + $0x1f8] sm:$0x1] %vm311_vm15, %v6629_v15  ;;  %v1056_v40 = vadd.f32 %v1024_v20, %v7469_v12  ;;  %v1022_v7 = vmul.f32 %v7053_v29, %v958_v57  ;;  %v7571_v38 = vmul.f32 %v7034_v24, %v9961_v8  ;;  %v1084_v2 = vadd.f32 %v7068_v31, %v1048_v49  ;;  %v7623_v49 = vld [vmem:[#allocation2 + $0x91] sm:$0xff] }
 0x16d   : > { %376 = vst.msk [vmem:[#allocation2 + $0x218] sm:$0x1] %vm311_vm15, %v6629_v15  ;;  %v5661_v30 = vpack.i.bf16 %v1317_v36, %v7473_v63  ;;  %v1143_v12 = vmul.f32 0.2, %v1079_v25  ;;  %v1082_v4 = vadd.f32 %v7068_v31, %v1046_v10  ;;  %v1059_v14 = vadd.f32 %v1027_v6, %v7496_v43 }
 0x16e   : > { %380 = vst.msk [vmem:[#allocation2 + $0x238] sm:$0x1] %vm311_vm15, %v6629_v15  ;;  %vm1111_vm1 = vcmp.gt.f32.partialorder %v1079_v25, 0.0  ;;  %vm1121_vm2 = vcmp.gt.f32.partialorder %v1089_v37, 0.0  ;;  %v1153_v5 = vmul.f32 0.2, %v1089_v37  ;;  %v1054_v0 = vadd.f32 %v1022_v7, %v861_v16 }
 0x16f   : > { %384 = vst.msk [vmem:[#allocation3 + $0x18] sm:$0x1] %vm311_vm15, %v6629_v15  ;;  %v1030_v42 = vmul.f32 %v7053_v29, %v990_v58  ;;  %vm1116_vm3 = vcmp.gt.f32.partialorder %v1084_v2, 0.0  ;;  %v1148_v47 = vmul.f32 0.2, %v1084_v2  ;;  %v1095_v35 = vadd.f32 %v7068_v31, %v1059_v14 }
 0x170   : > { %388 = vst.msk [vmem:[#allocation3 + $0x38] sm:$0x1] %vm311_vm15, %v6629_v15  ;;  %5637 = vrot.lane.b32.xlu0 %v5636_v44, %s6631_s20  ;;  %v1051_v44 = vadd.f32 %v1019_v18, %v858_v34  ;;  %5647 = vrot.lane.b32.xlu2 %v7430_v13, %s6630_s19  ;;  %v1049_v13 = vadd.f32 %v1017_v22, %v7488_v39  ;;  %v7598_v34 = vld [vmem:[#allocation2 + $0x6f] sm:$0xff]  ;;  %v1146_v50 = vmul.f32 0.2, %v1082_v4  ;;  %vm1114_vm4 = vcmp.gt.f32.partialorder %v1082_v4, 0.0 }
 0x171   : > { %392 = vst.msk [vmem:[#allocation3 + $0x58] sm:$0x1] %vm311_vm15, %v6629_v15  ;;  %5642 = vrot.lane.b32.xlu1 %v5641_v19, %s6632_s21  ;;  %v950_v45 = vpop.permute.xlu1 %949  ;;  %v1092_v39 = vadd.f32 %v7068_v31, %v1056_v40  ;;  %v970_v28 = vpop.permute.xlu0 %969  ;;  %v1062_v53 = vadd.f32 %v1030_v42, %v7530_v48  ;;  %v1175_v54 = vsel %vm1111_vm1, %v1079_v25, %v1143_v12  ;;  %v1159_v36 = vmul.f32 0.2, %v1095_v35  ;;  %v7666_v42 = vld [vmem:[#allocation2 + $0xd1] sm:$0xff] }
 0x172   : > { %396 = vst.msk [vmem:[#allocation3 + $0x78] sm:$0x1] %vm311_vm15, %v6629_v15  ;;  %v1020_v63 = vmul.f32 %v7053_v29, %v950_v45  ;;  %v1087_v43 = vadd.f32 %v7068_v31, %v1051_v44  ;;  %v1025_v19 = vmul.f32 %v7053_v29, %v970_v28  ;;  %v1085_v52 = vadd.f32 %v7068_v31, %v1049_v13 }
 0x173   : > { %400 = vst.msk [vmem:[#allocation3 + $0x98] sm:$0x1] %vm311_vm15, %v6629_v15  ;;  %v1156_v16 = vmul.f32 0.2, %v1092_v39  ;;  %v1090_v18 = vadd.f32 %v7068_v31, %v1054_v0  ;;  %v5671_v48 = vpack.i.bf16 %v7609_v55, %v7598_v34  ;;  %v1180_v57 = vsel %vm1116_vm3, %v1084_v2, %v1148_v47 }
 0x174   : > { %404 = vst.msk [vmem:[#allocation3 + $0xb8] sm:$0x1] %vm311_vm15, %v6629_v15  ;;  %v1057_v23 = vadd.f32 %v1025_v19, %v864_v26  ;;  %v1151_v20 = vmul.f32 0.2, %v1087_v43  ;;  %vm1124_vm5 = vcmp.gt.f32.partialorder %v1092_v39, 0.0  ;;  %vm1119_vm6 = vcmp.gt.f32.partialorder %v1087_v43, 0.0 }
 0x175   : > { %408 = vst.msk [vmem:[#allocation3 + $0xd8] sm:$0x1] %vm311_vm15, %v6629_v15  ;;  %v1178_v25 = vsel %vm1114_vm4, %v1082_v4, %v1146_v50  ;;  %v1149_v10 = vmul.f32 0.2, %v1085_v52  ;;  %v1098_v22 = vadd.f32 %v7068_v31, %v1062_v53  ;;  %vm1117_vm7 = vcmp.gt.f32.partialorder %v1085_v52, 0.0 }
 0x176   : > { %412 = vst.msk [vmem:[#allocation3 + $0xf8] sm:$0x1] %vm311_vm15, %v6629_v15  ;;  %vm1127_vm8 = vcmp.gt.f32.partialorder %v1095_v35, 0.0  ;;  %v1590_v40 = vpack.c.bf16 %v7623_v49, %v7621_v59  ;;  %vm1122_vm9 = vcmp.gt.f32.partialorder %v1090_v18, 0.0  ;;  %vm1540_vm4 = vcmask 523264  }
 0x177   : > { %416 = vst.msk [vmem:[#allocation3 + $0x118] sm:$0x1] %vm311_vm15, %v6629_v15  ;;  %5426 = vmatmul.msk.bf16.gmra.mxu2 %vm307_vm0, %v1587_v62  ;;  %v1188_v62 = vsel %vm1124_vm5, %v1092_v39, %v1156_v16  ;;  %v1191_v12 = vsel %vm1127_vm8, %v1095_v35, %v1159_v36  ;;  %v1162_v4 = vmul.f32 0.2, %v1098_v22  ;;  %vm1130_vm11 = vcmp.gt.f32.partialorder %v1098_v22, 0.0  ;;  %v1329_v35 = vld [vmem:[#allocation2 + $0x90] sm:$0xff] }
 0x178   : > { %420 = vst.msk [vmem:[#allocation3 + $0x138] sm:$0x1] %vm311_vm15, %v6629_v15  ;;  %5652 = vrot.lane.b32.xlu0 %v5651_v9, %s6631_s20  ;;  %5662 = vrot.lane.b32.xlu2 %v5661_v30, %s6632_s21  ;;  %v1183_v9 = vsel %vm1119_vm6, %v1087_v43, %v1151_v20  ;;  %v1181_v30 = vsel %vm1117_vm7, %v1085_v52, %v1149_v10  ;;  %v9962_v43 = vld [vmem:[#allocation8_spill] sm:$0xff]  ;;  %v9964_v10 = vld [vmem:[#allocation5_spill] sm:$0xff]  ;;  %vm1549_vm5 = vcmask 785408  }
 0x179   : > { %424 = vst.msk [vmem:[#allocation3 + $0x158] sm:$0x1] %vm311_vm15, %v6629_v15  ;;  %5657 = vrot.lane.b32.xlu1 %v7366_v3, %s6632_s21  ;;  %v1052_v3 = vadd.f32 %v1020_v63, %v7522_v41  ;;  %v1185_v41 = vsel %vm1121_vm2, %v1089_v37, %v1153_v5  ;;  %v962_v6 = vpop.permute.xlu1 %961  ;;  %v1093_v37 = vadd.f32 %v7068_v31, %v1057_v23  ;;  %v982_v44 = vpop.permute.xlu0 %981 }
 0x17a   : > { %428 = vst.msk [vmem:[#allocation3 + $0x178] sm:$0x1] %vm311_vm15, %v6629_v15  ;;  %v1028_v2 = vmul.f32 %v7053_v29, %v982_v44  ;;  %v5681_v5 = vpack.i.bf16 %v7598_v34, %v7536_v56  ;;  %v5686_v63 = vpack.i.bf16 %v7550_v21, %v7453_v60  ;;  %v677_v0 = vmul.f32 %v7048_v27, %v9962_v43  ;;  %v1338_v44 = vld [vmem:[#allocation2 + $0xa9] sm:$0xff] }
 0x17b   : > { %432 = vst.msk [vmem:[#allocation3 + $0x198] sm:$0x1] %vm311_vm15, %v6629_v15  ;;  %v1088_v26 = vadd.f32 %v7068_v31, %v1052_v3  ;;  %v1157_v13 = vmul.f32 0.2, %v1093_v37  ;;  %vm1125_vm12 = vcmp.gt.f32.partialorder %v1093_v37, 0.0  ;;  %v865_v56 = vadd.f32 %v7543_v11, %v7457_v33  ;;  %v7672_v33 = vld [vmem:[#allocation2 + $0x8f] sm:$0xff] }
 0x17c   : > { %436 = vst.msk [vmem:[#allocation3 + $0x1b8] sm:$0x1] %vm311_vm15, %v6629_v15  ;;  %v1060_v45 = vadd.f32 %v1028_v2, %v7555_v1  ;;  %v870_v50 = vadd.f32 %v7571_v38, %v677_v0  ;;  %v5691_v16 = vpack.i.bf16 %v7550_v21, %v7672_v33  ;;  %v1328_v38 = vld [vmem:[#allocation2 + $0x88] sm:$0xff]  ;;  %v675_v36 = vmul.f32 %v7048_v27, %v9964_v10 }
 0x17d   : > { %440 = vst.msk [vmem:[#allocation3 + $0x1d8] sm:$0x1] %vm311_vm15, %v6629_v15  ;;  %v1152_v7 = vmul.f32 0.2, %v1088_v26  ;;  %vm1120_vm10 = vcmp.gt.f32.partialorder %v1088_v26, 0.0  ;;  %v1189_v28 = vsel %vm1125_vm12, %v1093_v37, %v1157_v13  ;;  %v5696_v21 = vpack.i.bf16 %v1329_v35, %v1328_v38  ;;  %v1323_v2 = vld [vmem:[#allocation2 + $0xaf] sm:$0xff] }
 0x17e   : > { %444 = vst.msk [vmem:[#allocation3 + $0x1f8] sm:$0x1] %vm311_vm15, %v6629_v15  ;;  %v1096_v39 = vadd.f32 %v7068_v31, %v1060_v45  ;;  %v5701_v37 = vpack.i.bf16 %v7672_v33, %v7609_v55  ;;  %v5706_v55 = vpack.i.bf16 %v7623_v49, %v7621_v59  ;;  %v1322_v45 = vld [vmem:[#allocation2 + $0xa7] sm:$0xff] }
 0x17f   : > { %448 = vst.msk [vmem:[#allocation3 + $0x218] sm:$0x1] %vm311_vm15, %v6629_v15  ;;  %v1184_v58 = vsel %vm1120_vm10, %v1088_v26, %v1152_v7  ;;  %v1339_v7 = vld [vmem:[#allocation2 + $0xb1] sm:$0xff] }
 0x180   : > { %452 = vst.msk [vmem:[#allocation3 + $0x238] sm:$0x1] %vm311_vm15, %v6629_v15  ;;  %5667 = vrot.lane.b32.xlu0 %v7484_v32, %s6630_s19  ;;  %v1023_v15 = vmul.f32 %v7053_v29, %v962_v6  ;;  %v1154_v32 = vmul.f32 0.2, %v1090_v18  ;;  %5677 = vrot.lane.b32.xlu2 %v7402_v46, %s6632_s21  ;;  %v1194_v46 = vsel %vm1130_vm11, %v1098_v22, %v1162_v4  ;;  %vm1128_vm14 = vcmp.gt.f32.partialorder %v1096_v39, 0.0  ;;  %v9965_v4 = vld [vmem:[#allocation20_spill] sm:$0xff] }
 0x181   : > { %1208 = vst.msk [vmem:[#allocation2 + $0xc8] sm:$0xff] %vm307_vm0, %v1175_v54  ;;  %5672 = vrot.lane.b32.xlu1 %v5671_v48, %s6631_s20  ;;  %v974_v60 = vpop.permute.xlu1 %973  ;;  %v994_v19 = vpop.permute.xlu0 %993  ;;  %v6564_v48 = vld [vmem:[%s9909_s2] ss:$0 sm:$0xff]  ;;  %v839_v13 = vmul.f32 %v7034_v24, %v9965_v4  ;;  %v5736_v38 = vpack.i.bf16 %v1339_v7, %v1338_v44  ;;  %v1898_v4 = vld [vmem:[#allocation2 + $0xe8] sm:$0xff] }
 0x182   : > { %1218 = vst.msk [vmem:[#allocation2 + $0x168] sm:$0xff] %vm307_vm0, %v1185_v41  ;;  %v1055_v8 = vadd.f32 %v1023_v15, %v7539_v61  ;;  %v1186_v61 = vsel %vm1122_vm9, %v1090_v18, %v1154_v32  ;;  %v1026_v47 = vmul.f32 %v7053_v29, %v974_v60  ;;  %v1031_v54 = vmul.f32 %v7053_v29, %v994_v19  ;;  %v9963_v41 = vld [vmem:[#allocation18_spill] sm:$0xff] }
 0x183   : > { %1213 = vst.msk [vmem:[#allocation2 + $0x110] sm:$0xff] %vm307_vm0, %v1180_v57  ;;  %v836_v23 = vmul.f32 %v7034_v24, %v9963_v41 }
 0x184   : > { %1211 = vst.msk [vmem:[#allocation2 + $0xf0] sm:$0xff] %vm307_vm0, %v1178_v25  ;;  %v1091_v14 = vadd.f32 %v7068_v31, %v1055_v8  ;;  %v1160_v31 = vmul.f32 0.2, %v1096_v39  ;;  %v1058_v53 = vadd.f32 %v1026_v47, %v865_v56  ;;  %v1063_v26 = vadd.f32 %v1031_v54, %v870_v50  ;;  %v1268_v25 = vld [vmem:[#allocation2 + $0xf] sm:$0xff] }
 0x185   : > { %1221 = vst.msk [vmem:[#allocation2 + $0x190] sm:$0xff] %vm307_vm0, %v1188_v62  ;;  %v868_v15 = vadd.f32 %v836_v23, %v675_v36 }
 0x186   : > { %1216 = vst.msk [vmem:[#allocation2 + $0x148] sm:$0xff] %vm307_vm0, %v1183_v9  ;;  %vm1123_vm13 = vcmp.gt.f32.partialorder %v1091_v14, 0.0  ;;  %v1155_v1 = vmul.f32 0.2, %v1091_v14  ;;  %v1192_v52 = vsel %vm1128_vm14, %v1096_v39, %v1160_v31  ;;  %v1094_v57 = vadd.f32 %v6564_v48, %v1058_v53  ;;  %v1267_v31 = vld [vmem:[#allocation2 + $0x7] sm:$0xff] }
 0x187   : > { %1214 = vst.msk [vmem:[#allocation2 + $0x128] sm:$0xff] %vm307_vm0, %v1181_v30  ;;  %5427 = vmatmul.msk.bf16.gmra.mxu2 %vm307_vm0, %v1590_v40  ;;  %v1099_v6 = vadd.f32 %v6564_v48, %v1063_v26  ;;  %v7758_v26 = vld [vmem:[#allocation2 + $0xd0] sm:$0xff] }
 0x188   : > { %1224 = vst.msk [vmem:[#allocation2 + $0x1c8] sm:$0xff] %vm307_vm0, %v1191_v12  ;;  %5682 = vrot.lane.b32.xlu0 %v5681_v5, %s6632_s21  ;;  %v7674_v11 = vld [vmem:[#allocation2 + $0xc9] sm:$0xff]  ;;  %v1187_v3 = vsel %vm1123_vm13, %v1091_v14, %v1155_v1  ;;  %5692 = vrot.lane.b32.xlu2 %v5691_v16, %s6631_s20  ;;  %vm1126_vm15 = vcmp.gt.f32.partialorder %v1094_v57, 0.0  ;;  %v1158_v22 = vmul.f32 0.2, %v1094_v57  ;;  %v1593_v14 = vpack.c.bf16 %v1339_v7, %v1338_v44 }
 0x189   : > { %1219 = vst.msk [vmem:[#allocation2 + $0x170] sm:$0xff] %vm307_vm0, %v1186_v61  ;;  %5687 = vrot.lane.b32.xlu1 %v5686_v63, %s6630_s19  ;;  %v986_v62 = vpop.permute.xlu1 %985  ;;  %vm1131_vm1 = vcmp.gt.f32.partialorder %v1099_v6, 0.0  ;;  %v1163_v32 = vmul.f32 0.2, %v1099_v6  ;;  %v7711_v12 = vld [vmem:[#allocation2 + $0xb0] sm:$0xff]  ;;  %v5711_v5 = vpack.i.bf16 %v1323_v2, %v1322_v45  ;;  %v7716_v63 = vld [vmem:[#allocation2 + $0xa8] sm:$0xff]  ;;  %v5766_v2 = vpack.i.bf16 %v7666_v42, %v7674_v11 }
 0x18a   : > { %1217 = vst.msk [vmem:[#allocation2 + $0x150] sm:$0xff] %vm307_vm0, %v1184_v58  ;;  %v1190_v9 = vsel %vm1126_vm15, %v1094_v57, %v1158_v22  ;;  %v1029_v40 = vmul.f32 %v7053_v29, %v986_v62  ;;  %v9966_v58 = vld [vmem:[#allocation7_spill] sm:$0xff]  ;;  %v5716_v49 = vpack.i.bf16 %v7711_v12, %v7716_v63  ;;  %v1888_v41 = vld [vmem:[#allocation2 + $0xc7] sm:$0xff]  ;;  %v1889_v23 = vld [vmem:[#allocation2 + $0xcf] sm:$0xff] }
 0x18b   : > { %1227 = vst.msk [vmem:[#allocation2 + $0x1f0] sm:$0xff] %vm307_vm0, %v1194_v46  ;;  %v7688_v20 = vld [vmem:[#allocation2 + $0xe9] sm:$0xff]  ;;  %v7690_v18 = vld [vmem:[#allocation2 + $0xf1] sm:$0xff]  ;;  %v1195_v8 = vsel %vm1131_vm1, %v1099_v6, %v1163_v32  ;;  %v678_v1 = vmul.f32 %v7048_v27, %v9966_v58  ;;  %v5741_v57 = vpack.i.bf16 %v1889_v23, %v1888_v41 }
 0x18c   : > { %1222 = vst.msk [vmem:[#allocation2 + $0x1a8] sm:$0xff] %vm307_vm0, %v1189_v28  ;;  %v1061_v30 = vadd.f32 %v1029_v40, %v868_v15  ;;  %v7728_v46 = vld [vmem:[#allocation2 + $0x131] sm:$0xff]  ;;  %v2305_v6 = vld [vmem:[#allocation2 + $0x108] sm:$0xff] }
 0x18d   : > { %1220 = vst.msk [vmem:[#allocation2 + $0x188] sm:$0xff] %vm307_vm0, %v1187_v3  ;;  %v871_v39 = vadd.f32 %v839_v13, %v678_v1  ;;  %v7751_v54 = vld [vmem:[#allocation2 + $0x191] sm:$0xff]  ;;  %v7791_v13 = vpop.permute.xlu2 %5602  ;;  %v7799_v45 = vld [vmem:[%s9910_s3 + $0x28] sm:$0xff] }
 0x18e   : > { %1225 = vst.msk [vmem:[#allocation2 + $0x1d0] sm:$0xff] %vm307_vm0, %v1192_v52  ;;  %v1097_v61 = vadd.f32 %v6564_v48, %v1061_v30  ;;  %v7726_v56 = vld [vmem:[#allocation2 + $0x129] sm:$0xff]  ;;  %v2314_v22 = vld [vmem:[#allocation2 + $0x111] sm:$0xff]  ;;  %v5604_v16 = vunpack.i.l.bf16 %v7791_v13 }
 0x18f   : > { %1223 = vst.msk [vmem:[#allocation2 + $0x1b0] sm:$0xff] %vm307_vm0, %v1190_v9  ;;  %v2306_v36 = vld [vmem:[#allocation2 + $0x110] sm:$0xff]  ;;  %v7777_v40 = vld [vmem:[%s9910_s3 + $0x38] sm:$0xff]  ;;  %v1890_v30 = vld [vmem:[#allocation2 + $0xe7] sm:$0xff] }
 0x190   : > { %5697 = vrot.lane.b32.xlu0 %v5696_v21, %s6632_s21  ;;  %1228 = vst.msk [vmem:[#allocation2 + $0x208] sm:$0xff] %vm307_vm0, %v1195_v8  ;;  %5707 = vrot.lane.b32.xlu2 %v5706_v55, %s6630_s19  ;;  %vm1129_vm2 = vcmp.gt.f32.partialorder %v1097_v61, 0.0  ;;  %v1161_v59 = vmul.f32 0.2, %v1097_v61  ;;  %v7735_v28 = vld [vmem:[#allocation2 + $0x169] sm:$0xff]  ;;  %v7739_v3 = vld [vmem:[#allocation2 + $0x171] sm:$0xff]  ;;  %v7764_v62 = vpack.i.bf16 %v2306_v36, %v2305_v6 }
 0x191   : > { %5702 = vrot.lane.b32.xlu1 %v5701_v37, %s6632_s21  ;;  %v998_v24 = vpop.permute.xlu1 %997  ;;  %9967 = vst [vmem:[#allocation4_spill] sm:$0xff] %v7726_v56  ;;  %v7731_v27 = vld [vmem:[#allocation2 + $0x149] sm:$0xff]  ;;  %v7733_v60 = vld [vmem:[#allocation2 + $0x151] sm:$0xff]  ;;  %1717 = vmatpush.bf16.msra.mxu0 %v7777_v40 }
 0x192   : > { %v1193_v43 = vsel %vm1129_vm2, %v1097_v61, %v1161_v59  ;;  %v1032_v0 = vmul.f32 %v7053_v29, %v998_v24  ;;  %9968 = vst [vmem:[#allocation6_spill] sm:$0xff] %v7728_v46  ;;  %v2322_v37 = vld [vmem:[#allocation2 + $0x127] sm:$0xff]  ;;  %v2323_v15 = vld [vmem:[#allocation2 + $0x12f] sm:$0xff]  ;;  %2176 = vmatpush.bf16.msra.mxu3 %v7777_v40  ;;  %v7804_v61 = vld [vmem:[%s9910_s3 + $0x78] sm:$0xff] }
 0x193   : > { %1226 = vst.msk [vmem:[#allocation2 + $0x1e8] sm:$0xff] %vm307_vm0, %v1193_v43  ;;  %v7770_v32 = vpack.i.bf16 %v2323_v15, %v2322_v37  ;;  %v7785_v44 = vld [vmem:[%s9910_s3 + $0x30] sm:$0xff]  ;;  %1746 = vmatpush.bf16.msra.mxu1 %v7804_v61  ;;  %v7812_v59 = vld [vmem:[%s9910_s3 + $0x20] sm:$0xff]  ;;  %2205 = vmatpush.bf16.msrb.mxu2 %v7804_v61  ;;  %v7839_v41 = vld [vmem:[%s9910_s3 + $0x68] sm:$0xff] }
 0x194   : > { %9969 = vst [vmem:[#allocation9_spill] sm:$0xff] %v7731_v27  ;;  %v1064_v47 = vadd.f32 %v1032_v0, %v871_v39  ;;  %v7747_v35 = vld [vmem:[#allocation2 + $0x189] sm:$0xff]  ;;  %v2316_v43 = vld [vmem:[#allocation2 + $0x131] sm:$0xff] }
 0x195   : > { %9970 = vst [vmem:[#allocation11_spill] sm:$0xff] %v7733_v60  ;;  %v1891_v7 = vld [vmem:[#allocation2 + $0xef] sm:$0xff]  ;;  %1718 = vmatpush.bf16.msra.mxu0 %v7785_v44  ;;  %v7861_v36 = vld [vmem:[#allocation2 + $0x107] sm:$0xff]  ;;  %v7880_v37 = vld [vmem:[%s9910_s3 + $0x58] sm:$0xff] }
 0x196   : > { %9971 = vst [vmem:[#allocation12_spill] sm:$0xff] %v7735_v28  ;;  %v1100_v50 = vadd.f32 %v6564_v48, %v1064_v47  ;;  %v7755_v48 = vld [vmem:[#allocation2 + $0xc8] sm:$0xff]  ;;  %v1899_v8 = vld [vmem:[#allocation2 + $0xf0] sm:$0xff]  ;;  %2177 = vmatpush.bf16.msra.mxu3 %v7785_v44 }
 0x197   : > { %5428 = vmatmul.msk.bf16.gmra.mxu2 %vm307_vm0, %v1593_v14  ;;  %9972 = vst [vmem:[#allocation10_spill] sm:$0xff] %v7739_v3  ;;  %v5746_v10 = vpack.i.bf16 %v7758_v26, %v7755_v48  ;;  %v5776_v14 = vpack.i.bf16 %v1899_v8, %v1898_v4  ;;  %v2308_v58 = vld [vmem:[#allocation2 + $0x130] sm:$0xff]  ;;  %v2324_v47 = vld [vmem:[#allocation2 + $0x147] sm:$0xff] }
 0x198   : > { %5712 = vrot.lane.b32.xlu0 %v5711_v5, %s6631_s20  ;;  %5722 = vrot.lane.b32.xlu2 %v5696_v21, %s6630_s19  ;;  %vm1132_vm3 = vcmp.gt.f32.partialorder %v1100_v50, 0.0  ;;  %v1164_v52 = vmul.f32 0.2, %v1100_v50  ;;  %9973 = vst [vmem:[#allocation13_spill] sm:$0xff] %v7747_v35  ;;  %v2313_v21 = vld [vmem:[#allocation2 + $0x109] sm:$0xff] }
 0x199   : > { %5717 = vrot.lane.b32.xlu1 %v5716_v49, %s6632_s21  ;;  %9974 = vst [vmem:[#allocation14_spill] sm:$0xff] %v7751_v54  ;;  %v7766_v9 = vpack.i.bf16 %v2314_v22, %v2313_v21  ;;  %1719 = vmatpush.bf16.msra.mxu0 %v7799_v45  ;;  %v2315_v1 = vld [vmem:[#allocation2 + $0x129] sm:$0xff] }
 0x19a   : > { %v1196_v53 = vsel %vm1132_vm3, %v1100_v50, %v1164_v52  ;;  %v7817_v49 = vld [vmem:[%s9910_s3 + $0x70] sm:$0xff]  ;;  %2178 = vmatpush.bf16.msra.mxu3 %v7799_v45  ;;  %v5786_v0 = vpack.i.bf16 %v2316_v43, %v2315_v1  ;;  %v7875_v6 = vld [vmem:[%s9910_s3 + $0x8] sm:$0xff] }
 0x19b   : > { %1229 = vst.msk [vmem:[#allocation2 + $0x210] sm:$0xff] %vm307_vm0, %v1196_v53  ;;  %v2325_v39 = vld [vmem:[#allocation2 + $0x14f] sm:$0xff]  ;;  %1747 = vmatpush.bf16.msra.mxu1 %v7817_v49  ;;  %v7834_v53 = vld [vmem:[%s9910_s3 + $0x18] sm:$0xff]  ;;  %2206 = vmatpush.bf16.msrb.mxu2 %v7817_v49 }
 0x19c   : > { %v5791_v50 = vpack.i.bf16 %v2325_v39, %v2324_v47  ;;  %v7844_v23 = vld [vmem:[#allocation2 + $0x10f] sm:$0xff] }
 0x19d   : > { %1720 = vmatpush.bf16.msra.mxu0 %v7812_v59  ;;  %v5801_v21 = vpack.i.bf16 %v7844_v23, %v7861_v36  ;;  %v2310_v15 = vld [vmem:[#allocation2 + $0x150] sm:$0xff]  ;;  %v2309_v8 = vld [vmem:[#allocation2 + $0x148] sm:$0xff] }
 0x19e   : > { %2179 = vmatpush.bf16.msra.mxu3 %v7812_v59  ;;  %v7898_v4 = vld [vmem:[#allocation2 + $0x16f] sm:$0xff] }
 0x19f   : > { %1748 = vmatpush.bf16.msra.mxu1 %v7839_v41  ;;  %2207 = vmatpush.bf16.msrb.mxu2 %v7839_v41  ;;  %v7917_v43 = vld [vmem:[%s9910_s3 + $0x48] sm:$0xff]  ;;  %v2765_v28 = vld [vmem:[#allocation2 + $0x190] sm:$0xff] }
 0x1a0   : > { %5727 = vrot.lane.b32.xlu0 %v5706_v55, %s6631_s20  ;;  %5737 = vrot.lane.b32.xlu2 %v5736_v38, %s6630_s19  ;;  %v5771_v55 = vpack.i.bf16 %v1891_v7, %v1890_v30  ;;  %v7850_v38 = vld [vmem:[%s9910_s3 + $0x10] sm:$0xff]  ;;  %v7890_v30 = vld [vmem:[%s9910_s3] sm:$0xff] }
 0x1a1   : > { %5732 = vrot.lane.b32.xlu1 %v5711_v5, %s6632_s21  ;;  %v2307_v5 = vld [vmem:[#allocation2 + $0x128] sm:$0xff]  ;;  %1721 = vmatpush.bf16.msra.mxu0 %v7834_v53  ;;  %v8011_v56 = vld [vmem:[#allocation2 + $0x1d0] sm:$0xff] }
 0x1a2   : > { %v7821_v24 = vpack.i.bf16 %v2308_v58, %v2307_v5  ;;  %2180 = vmatpush.bf16.msra.mxu3 %v7834_v53  ;;  %v2317_v7 = vld [vmem:[#allocation2 + $0x149] sm:$0xff] }
 0x1a3   : > { %v7902_v5 = vld [vmem:[#allocation2 + $0x167] sm:$0xff]  ;;  %v7981_v60 = vld [vmem:[#allocation2 + $0x1af] sm:$0xff] }
 0x1a4   : > { %v5821_v58 = vpack.i.bf16 %v7898_v4, %v7902_v5  ;;  %v7926_v47 = vld [vmem:[%s9910_s3 + $0x88] sm:$0xff]  ;;  %9975 = vst [vmem:[#allocation15_spill] sm:$0xff] %v7981_v60 }
 0x1a5   : > { %1722 = vmatpush.bf16.msra.mxu0 %v7850_v38  ;;  %v2772_v35 = vld [vmem:[#allocation2 + $0x189] sm:$0xff] }
 0x1a6   : > { %2181 = vmatpush.bf16.msra.mxu3 %v7850_v38 }
 0x1a8   : > { %5742 = vrot.lane.b32.xlu0 %v5741_v57, %s6631_s20  ;;  %5752 = vrot.lane.b32.xlu2 %v7764_v62, %s6630_s19  ;;  %v7855_v57 = vld [vmem:[%s9910_s3 + $0x60] sm:$0xff] }
 0x1a9   : > { %5747 = vrot.lane.b32.xlu1 %v5746_v10, %s6632_s21  ;;  %v5796_v10 = vpack.i.bf16 %v7690_v18, %v7688_v20  ;;  %1749 = vmatpush.bf16.msra.mxu1 %v7855_v57 }
 0x1aa   : > { %2208 = vmatpush.bf16.msrb.mxu2 %v7855_v57  ;;  %1723 = vmatpush.bf16.msra.mxu0 %v7875_v6 }
 0x1ab   : > { %2182 = vmatpush.bf16.msra.mxu3 %v7875_v6 }
 0x1ad   : > { %1750 = vmatpush.bf16.msra.mxu1 %v7880_v37 }
 0x1ae   : > { %2209 = vmatpush.bf16.msrb.mxu2 %v7880_v37  ;;  %1724 = vmatpush.bf16.msra.mxu0 %v7890_v30 }
 0x1af   : > { %2183 = vmatpush.bf16.msra.mxu3 %v7890_v30 }
 0x1b0   : > { %5757 = vrot.lane.b32.xlu0 %v7766_v9, %s6631_s20  ;;  %5767 = vrot.lane.b32.xlu2 %v5766_v2, %s6630_s19  ;;  %v2318_v2 = vld [vmem:[#allocation2 + $0x151] sm:$0xff] }
 0x1b1   : > { %5762 = vrot.lane.b32.xlu1 %v7770_v32, %s6632_s21 }
 0x1b2   : > { %2240 = vmatpush.bf16.msrb.mxu0 %v7926_v47 }
 0x1b3   : > { %2664 = vmatpush.bf16.msrb.mxu3 %v7804_v61 }
 0x1b7   : > { %2665 = vmatpush.bf16.msrb.mxu3 %v7817_v49 }
 0x1b8   : > { %5772 = vrot.lane.b32.xlu0 %v5771_v55, %s6631_s20  ;;  %5782 = vrot.lane.b32.xlu2 %v7821_v24, %s6630_s19  ;;  %v7895_v55 = vld [vmem:[%s9910_s3 + $0x50] sm:$0xff] }
 0x1b9   : > { %5777 = vrot.lane.b32.xlu1 %v5776_v14, %s6632_s21  ;;  %v5816_v14 = vpack.i.bf16 %v2318_v2, %v2317_v7  ;;  %1751 = vmatpush.bf16.msra.mxu1 %v7895_v55 }
 0x1ba   : > { %v7829_v52 = vpop.permute.xlu2 %5617  ;;  %2210 = vmatpush.bf16.msrb.mxu2 %v7895_v55 }
 0x1bb   : > { %2666 = vmatpush.bf16.msrb.mxu3 %v7839_v41 }
 0x1bd   : > { %1752 = vmatpush.bf16.msra.mxu1 %v7917_v43 }
 0x1be   : > { %2211 = vmatpush.bf16.msrb.mxu2 %v7917_v43 }
 0x1bf   : > { %2667 = vmatpush.bf16.msrb.mxu3 %v7855_v57 }
 0x1c0   : > { %5787 = vrot.lane.b32.xlu0 %v5786_v0, %s6631_s20  ;;  %5797 = vrot.lane.b32.xlu2 %v5796_v10, %s6630_s19  ;;  %v7940_v10 = vld [vmem:[%s9910_s3 + $0x80] sm:$0xff] }
 0x1c1   : > { %5792 = vrot.lane.b32.xlu1 %v5791_v50, %s6632_s21  ;;  %v7934_v50 = vld [vmem:[%s9910_s3 + $0x40] sm:$0xff]  ;;  %2241 = vmatpush.bf16.msrb.mxu0 %v7940_v10 }
 0x1c2   : > { %v7870_v22 = vpop.permute.xlu2 %5632  ;;  %1753 = vmatpush.bf16.msra.mxu1 %v7934_v50  ;;  %2212 = vmatpush.bf16.msrb.mxu2 %v7934_v50 }
 0x1c3   : > { %2668 = vmatpush.bf16.msrb.mxu3 %v7880_v37 }
 0x1c6   : > { %2635 = vmatpush.bf16.msrb.mxu1 %v7777_v40  ;;  %2699 = vmatpush.bf16.msra.mxu2 %v7926_v47 }
 0x1c7   : > { %2669 = vmatpush.bf16.msrb.mxu3 %v7895_v55 }
 0x1c8   : > { %5802 = vrot.lane.b32.xlu0 %v5801_v21, %s6631_s20 }
 0x1c9   : > { %5807 = vrot.lane.b32.xlu1 %v7764_v62, %s6632_s21  ;;  %v5811_v62 = vpack.i.bf16 %v2310_v15, %v2309_v8  ;;  %v2312_v15 = vld [vmem:[#allocation2 + $0x170] sm:$0xff] }
 0x1ca   : > { %v7912_v39 = vpop.permute.xlu2 %5647  ;;  %v2320_v8 = vld [vmem:[#allocation2 + $0x171] sm:$0xff]  ;;  %2636 = vmatpush.bf16.msrb.mxu1 %v7785_v44  ;;  %2700 = vmatpush.bf16.msra.mxu2 %v7940_v10 }
 0x1cb   : > { %5812 = vrot.lane.b32.xlu2 %v5811_v62, %s6630_s19  ;;  %v7959_v62 = vld [vmem:[#allocation2 + $0x187] sm:$0xff]  ;;  %2670 = vmatpush.bf16.msrb.mxu3 %v7917_v43 }
 0x1ce   : > { %v7910_v1 = vpop.permute.xlu0 %5607  ;;  %2637 = vmatpush.bf16.msrb.mxu1 %v7799_v45 }
 0x1cf   : > { %v7921_v0 = vpop.permute.xlu1 %5612  ;;  %2671 = vmatpush.bf16.msrb.mxu3 %v7934_v50 }
 0x1d0   : > { %5817 = vrot.lane.b32.xlu0 %v5816_v14, %s6631_s20  ;;  %v7961_v14 = vld [vmem:[#allocation2 + $0x18f] sm:$0xff] }
 0x1d1   : > { %5822 = vrot.lane.b32.xlu1 %v5821_v58, %s6632_s21  ;;  %v5851_v29 = vpack.i.bf16 %v7961_v14, %v7959_v62 }
 0x1d2   : > { %v7949_v21 = vpop.permute.xlu2 %5662  ;;  %2638 = vmatpush.bf16.msrb.mxu1 %v7812_v59 }
 0x1d3   : > { %5827 = vrot.lane.b32.xlu2 %v7766_v9, %s6630_s19  ;;  %v2319_v9 = vld [vmem:[#allocation2 + $0x169] sm:$0xff] }
 0x1d4   : > { %v5846_v19 = vpack.i.bf16 %v2320_v8, %v2319_v9  ;;  %v2764_v9 = vld [vmem:[#allocation2 + $0x188] sm:$0xff] }
 0x1d5   : > { %v5856_v27 = vpack.i.bf16 %v2765_v28, %v2764_v9 }
 0x1d6   : > { %2639 = vmatpush.bf16.msrb.mxu1 %v7834_v53 }
 0x1d8   : > { %5832 = vrot.lane.b32.xlu0 %v7770_v32, %s6631_s20  ;;  %v2311_v32 = vld [vmem:[#allocation2 + $0x168] sm:$0xff] }
 0x1d9   : > { %5837 = vrot.lane.b32.xlu1 %v7821_v24, %s6632_s21  ;;  %v5841_v58 = vpack.i.bf16 %v2312_v15, %v2311_v32  ;;  %v5605_v24 = vunpack.i.h.bf16 %v7791_v13 }
 0x1da   : > { %v5623_v7 = vpop.permute.xlu0 %5622  ;;  %v7972_v15 = vpop.permute.xlu2 %5677  ;;  %2640 = vmatpush.bf16.msrb.mxu1 %v7850_v38 }
 0x1db   : > { %v7957_v2 = vpop.permute.xlu1 %5627  ;;  %5842 = vrot.lane.b32.xlu2 %v5841_v58, %s6630_s19  ;;  %v5625_v32 = vunpack.i.h.bf16 %v5623_v7  ;;  %v5624_v13 = vunpack.i.l.bf16 %v5623_v7  ;;  %v1532_v58 = vsel %vm307_vm0, %v1267_v31, %v5604_v16  ;;  %v1533_v34 = vsel %vm307_vm0, %v1268_v25, %v5605_v24  ;;  %v7987_v16 = vld [vmem:[#allocation2 + $0x1a7] sm:$0xff] }
 0x1dc   : > { %9976 = vst [vmem:[#allocation17_spill] sm:$0xff] %v7987_v16  ;;  %v5866_v28 = vpack.i.bf16 %v7981_v60, %v7987_v16  ;;  %v5629_v60 = vunpack.i.l.bf16 %v7957_v2  ;;  %v8018_v16 = vld [vmem:[#allocation2 + $0x1c7] sm:$0xff] }
 0x1dd   : > { %v1541_v7 = vsel %vm1540_vm4, %v1532_v58, %v5624_v13  ;;  %v1542_v31 = vsel %vm1540_vm4, %v1533_v34, %v5625_v32  ;;  %v5650_v13 = vunpack.i.h.bf16 %v7912_v39  ;;  %v5649_v34 = vunpack.i.l.bf16 %v7912_v39  ;;  %v2798_v32 = vld [vmem:[#allocation2 + $0x1b1] sm:$0xff] }
 0x1de   : > { %v5609_v39 = vunpack.i.l.bf16 %v7910_v1  ;;  %2641 = vmatpush.bf16.msrb.mxu1 %v7875_v6 }
 0x1e0   : > { %5847 = vrot.lane.b32.xlu0 %v5846_v19, %s6631_s20 }
 0x1e1   : > { %5852 = vrot.lane.b32.xlu1 %v5851_v29, %s6632_s21  ;;  %v2773_v29 = vld [vmem:[#allocation2 + $0x191] sm:$0xff] }
 0x1e2   : > { %v7976_v8 = vpop.permute.xlu0 %5637  ;;  %v5861_v25 = vpack.i.bf16 %v2773_v29, %v2772_v35  ;;  %v7997_v35 = vpop.permute.xlu2 %5692  ;;  %2642 = vmatpush.bf16.msrb.mxu1 %v7890_v30 }
 0x1e3   : > { %v5643_v54 = vpop.permute.xlu1 %5642  ;;  %5857 = vrot.lane.b32.xlu2 %v5856_v27, %s6630_s19  ;;  %v2797_v27 = vld [vmem:[#allocation2 + $0x1a9] sm:$0xff] }
 0x1e4   : > { %v5645_v19 = vunpack.i.h.bf16 %v5643_v54  ;;  %v5644_v3 = vunpack.i.l.bf16 %v5643_v54 }
 0x1e6   : > { %v1550_v24 = vsel %vm1549_vm5, %v1541_v7, %v5644_v3  ;;  %v1551_v54 = vsel %vm1549_vm5, %v1542_v31, %v5645_v19  ;;  %v5640_v3 = vunpack.i.h.bf16 %v7976_v8  ;;  %v5610_v19 = vunpack.i.h.bf16 %v7910_v1  ;;  %v8008_v7 = vld [vmem:[#allocation2 + $0x1cf] sm:$0xff] }
 0x1e7   : > { %v1582_v9 = vpack.c.bf16 %v1551_v54, %v1550_v24  ;;  %v1299_v24 = vld [vmem:[#allocation2 + $0x28] sm:$0xff]  ;;  %v1300_v54 = vld [vmem:[#allocation2 + $0x30] sm:$0xff]  ;;  %v5630_v1 = vunpack.i.h.bf16 %v7957_v2 }
 0x1e8   : > { %5862 = vrot.lane.b32.xlu0 %v5861_v25, %s6631_s20  ;;  %v5871_v25 = vpack.i.bf16 %v2798_v32, %v2797_v27  ;;  %v1559_v46 = vsel %vm307_vm0, %v1300_v54, %v5650_v13 }
 0x1e9   : > { %5867 = vrot.lane.b32.xlu1 %v5866_v28, %s6632_s21  ;;  %1725 = vmatmul.bf16.vlgmr.msra.gmra.mxu0 %v1582_v9 }
 0x1ea   : > { %v8002_v58 = vpop.permute.xlu0 %5652  ;;  %3094 = vmatpush.bf16.msra.mxu0 %v7777_v40  ;;  %v1558_v40 = vsel %vm307_vm0, %v1299_v24, %v5649_v34  ;;  %v8025_v34 = vld [vmem:[#allocation2 + $0x1c8] sm:$0xff]  ;;  %v8038_v54 = vpop.permute.xlu2 %5707 }
 0x1eb   : > { %v5654_v29 = vunpack.i.l.bf16 %v8002_v58  ;;  %v5658_v31 = vpop.permute.xlu1 %5657  ;;  %v1566_v27 = vsel %vm1540_vm4, %v1558_v40, %v5640_v3  ;;  %5872 = vrot.lane.b32.xlu2 %v5871_v25, %s6630_s19  ;;  %v8032_v2 = vpack.i.bf16 %v8011_v56, %v8025_v34 }
 0x1ec   : > { %v5660_v28 = vunpack.i.h.bf16 %v5658_v31  ;;  %v5659_v9 = vunpack.i.l.bf16 %v5658_v31  ;;  %v5876_v31 = vpack.i.bf16 %v8008_v7, %v8018_v16 }
 0x1ed   : > { %v1567_v32 = vsel %vm1540_vm4, %v1559_v46, %v5654_v29  ;;  %v5665_v46 = vunpack.i.h.bf16 %v7949_v21  ;;  %v5664_v29 = vunpack.i.l.bf16 %v7949_v21 }
 0x1ee   : > { %v1574_v13 = vsel %vm1549_vm5, %v1566_v27, %v5659_v9  ;;  %v1575_v24 = vsel %vm1549_vm5, %v1567_v32, %v5660_v28  ;;  %3095 = vmatpush.bf16.msra.mxu0 %v7785_v44  ;;  %v8040_v9 = vld [vmem:[#allocation2 + $0x1b0] sm:$0xff]  ;;  %v1534_v44 = vsel %vm307_vm0, %v7506_v17, %v5609_v39  ;;  %v1535_v28 = vsel %vm307_vm0, %v7486_v51, %v5610_v19  ;;  %v8051_v32 = vld [vmem:[#allocation2 + $0x1a8] sm:$0xff] }
 0x1ef   : > { %v1583_v3 = vpack.c.bf16 %v1575_v24, %v1574_v13  ;;  %v1543_v21 = vsel %vm1540_vm4, %v1534_v44, %v5629_v60  ;;  %v1544_v40 = vsel %vm1540_vm4, %v1535_v28, %v5630_v1  ;;  %v5886_v51 = vpack.i.bf16 %v8040_v9, %v8051_v32  ;;  %v1301_v1 = vld [vmem:[#allocation2 + $0x48] sm:$0xff]  ;;  %v2800_v28 = vld [vmem:[#allocation2 + $0x1d1] sm:$0xff] }
 0x1f0   : > { %5877 = vrot.lane.b32.xlu0 %v5876_v31, %s6631_s20  ;;  %v1552_v39 = vsel %vm1549_vm5, %v1543_v21, %v5664_v29  ;;  %v1553_v24 = vsel %vm1549_vm5, %v1544_v40, %v5665_v46  ;;  %v2799_v29 = vld [vmem:[#allocation2 + $0x1c9] sm:$0xff]  ;;  %v5655_v40 = vunpack.i.h.bf16 %v8002_v58 }
 0x1f1   : > { %5882 = vrot.lane.b32.xlu1 %v8032_v2, %s6632_s21  ;;  %1754 = vmatmul.bf16.vlgmr.msra.gmra.mxu1 %v1583_v3  ;;  %v1302_v3 = vld [vmem:[#allocation2 + $0x50] sm:$0xff] }
 0x1f2   : > { %v5668_v27 = vpop.permute.xlu0 %5667  ;;  %3096 = vmatpush.bf16.msra.mxu0 %v7799_v45  ;;  %3123 = vmatpush.bf16.msra.mxu1 %v7804_v61  ;;  %v1585_v45 = vpack.c.bf16 %v1553_v24, %v1552_v39  ;;  %v8066_v44 = vpop.permute.xlu2 %5722  ;;  %v5614_v39 = vunpack.i.l.bf16 %v7921_v0  ;;  %v5679_v24 = vunpack.i.l.bf16 %v7972_v15 }
 0x1f3   : > { %v8054_v13 = vpop.permute.xlu1 %5672  ;;  %v5670_v17 = vunpack.i.h.bf16 %v5668_v27  ;;  %v5669_v19 = vunpack.i.l.bf16 %v5668_v27  ;;  %5887 = vrot.lane.b32.xlu2 %v5886_v51, %s6630_s19  ;;  %v8078_v51 = vld [vmem:[#allocation2 + $0x1ef] sm:$0xff] }
 0x1f4   : > { %v5674_v60 = vunpack.i.l.bf16 %v8054_v13 }
 0x1f5   : > { %v1560_v46 = vsel %vm307_vm0, %v1301_v1, %v5669_v19  ;;  %v1561_v21 = vsel %vm307_vm0, %v1302_v3, %v5670_v17  ;;  %v5901_v17 = vpack.i.bf16 %v2800_v28, %v2799_v29  ;;  %v1271_v3 = vld [vmem:[#allocation2 + $0x47] sm:$0xff]  ;;  %v1272_v29 = vld [vmem:[#allocation2 + $0x4f] sm:$0xff] }
 0x1f6   : > { %3097 = vmatpush.bf16.msra.mxu0 %v7812_v59  ;;  %v1569_v61 = vsel %vm1540_vm4, %v1561_v21, %v5674_v60  ;;  %v5680_v59 = vunpack.i.h.bf16 %v7972_v15  ;;  %3124 = vmatpush.bf16.msra.mxu1 %v7817_v49  ;;  %v1568_v58 = vsel %vm1540_vm4, %v1560_v46, %v5655_v40  ;;  %v8084_v60 = vld [vmem:[#allocation2 + $0x1e8] sm:$0xff]  ;;  %v1536_v40 = vsel %vm307_vm0, %v1271_v3, %v5614_v39  ;;  %v1304_v3 = vld [vmem:[#allocation2 + $0x70] sm:$0xff] }
 0x1f7   : > { %v1576_v1 = vsel %vm1549_vm5, %v1568_v58, %v5679_v24 }
 0x1f8   : > { %5892 = vrot.lane.b32.xlu0 %v5871_v25, %s6631_s20  ;;  %v8076_v25 = vld [vmem:[#allocation2 + $0x1e7] sm:$0xff]  ;;  %v1577_v49 = vsel %vm1549_vm5, %v1569_v61, %v5680_v59  ;;  %v5634_v59 = vunpack.i.l.bf16 %v7870_v22 }
 0x1f9   : > { %5897 = vrot.lane.b32.xlu1 %v5876_v31, %s6632_s21  ;;  %1730 = vmatmul.bf16.gmra.mxu0 %v1585_v45  ;;  %v5615_v31 = vunpack.i.h.bf16 %v7921_v0  ;;  %v8090_v45 = vld [vmem:[#allocation2 + $0x1f0] sm:$0xff]  ;;  %v1586_v15 = vpack.c.bf16 %v1577_v49, %v1576_v1  ;;  %v1303_v1 = vld [vmem:[#allocation2 + $0x68] sm:$0xff] }
 0x1fa   : > { %v5683_v27 = vpop.permute.xlu0 %5682  ;;  %3098 = vmatpush.bf16.msra.mxu0 %v7834_v53  ;;  %v5906_v53 = vpack.i.bf16 %v8078_v51, %v8076_v25  ;;  %3125 = vmatpush.bf16.msra.mxu1 %v7839_v41  ;;  %v8096_v0 = vpack.i.bf16 %v8090_v45, %v8084_v60  ;;  %v8100_v21 = vpop.permute.xlu2 %5737  ;;  %v5635_v41 = vunpack.i.h.bf16 %v7870_v22  ;;  %v1545_v49 = vsel %vm1540_vm4, %v1536_v40, %v5634_v59 }
 0x1fb   : > { %v5688_v19 = vpop.permute.xlu1 %5687  ;;  %5902 = vrot.lane.b32.xlu2 %v5901_v17, %s6630_s19  ;;  %v5685_v28 = vunpack.i.h.bf16 %v5683_v27  ;;  %v5684_v46 = vunpack.i.l.bf16 %v5683_v27  ;;  %v1537_v61 = vsel %vm307_vm0, %v1272_v29, %v5615_v31  ;;  %v5675_v29 = vunpack.i.h.bf16 %v8054_v13  ;;  %v2811_v13 = vld [vmem:[#allocation2 + $0x20f] sm:$0xff] }
 0x1fc   : > { %v5690_v58 = vunpack.i.h.bf16 %v5688_v19  ;;  %v1546_v39 = vsel %vm1540_vm4, %v1537_v61, %v5635_v41 }
 0x1fd   : > { %v1554_v31 = vsel %vm1549_vm5, %v1545_v49, %v5684_v46  ;;  %v1555_v22 = vsel %vm1549_vm5, %v1546_v39, %v5685_v28  ;;  %v5620_v49 = vunpack.i.h.bf16 %v7829_v52  ;;  %v5619_v39 = vunpack.i.l.bf16 %v7829_v52 }
 0x1fe   : > { %3099 = vmatpush.bf16.msra.mxu0 %v7850_v38  ;;  %v5689_v38 = vunpack.i.l.bf16 %v5688_v19  ;;  %3126 = vmatpush.bf16.msra.mxu1 %v7855_v57  ;;  %v1563_v57 = vsel %vm307_vm0, %v1304_v3, %v5690_v58  ;;  %v8135_v58 = vld [vmem:[#allocation2 + $0x210] sm:$0xff]  ;;  %v5725_v3 = vunpack.i.h.bf16 %v8066_v44 }
 0x200   : > { %5907 = vrot.lane.b32.xlu0 %v5906_v53, %s6631_s20  ;;  %v1562_v19 = vsel %vm307_vm0, %v1303_v1, %v5689_v38  ;;  %v8144_v1 = vld [vmem:[#allocation2 + $0x208] sm:$0xff] }
 0x201   : > { %5912 = vrot.lane.b32.xlu1 %v8096_v0, %s6632_s21  ;;  %1759 = vmatmul.bf16.gmra.mxu1 %v1586_v15  ;;  %v5694_v15 = vunpack.i.l.bf16 %v7997_v35  ;;  %v1570_v46 = vsel %vm1540_vm4, %v1562_v19, %v5675_v29  ;;  %v5724_v19 = vunpack.i.l.bf16 %v8066_v44  ;;  %v1273_v29 = vld [vmem:[#allocation2 + $0x67] sm:$0xff] }
 0x202   : > { %v5698_v24 = vpop.permute.xlu0 %5697  ;;  %3100 = vmatpush.bf16.msra.mxu0 %v7875_v6  ;;  %3127 = vmatpush.bf16.msra.mxu1 %v7880_v37  ;;  %v1588_v6 = vpack.c.bf16 %v1555_v22, %v1554_v31  ;;  %v8125_v28 = vpop.permute.xlu2 %5752  ;;  %v5639_v31 = vunpack.i.l.bf16 %v7976_v8 }
 0x203   : > { %v8109_v27 = vpop.permute.xlu1 %5702  ;;  %5917 = vrot.lane.b32.xlu2 %v8032_v2, %s6630_s19  ;;  %v2801_v2 = vld [vmem:[#allocation2 + $0x1e9] sm:$0xff]  ;;  %v1571_v40 = vsel %vm1540_vm4, %v1563_v57, %v5694_v15  ;;  %v5700_v37 = vunpack.i.h.bf16 %v5698_v24  ;;  %v5699_v61 = vunpack.i.l.bf16 %v5698_v24  ;;  %v5941_v57 = vpack.i.bf16 %v8135_v58, %v8144_v1 }
 0x204   : > { %v2810_v24 = vld [vmem:[#allocation2 + $0x207] sm:$0xff]  ;;  %v5705_v15 = vunpack.i.h.bf16 %v8109_v27  ;;  %v5704_v8 = vunpack.i.l.bf16 %v8109_v27 }
 0x205   : > { %v1579_v38 = vsel %vm1549_vm5, %v1571_v40, %v5700_v37  ;;  %v5936_v22 = vpack.i.bf16 %v2811_v13, %v2810_v24  ;;  %v1838_v37 = vld [vmem:[#allocation2 + $0x87] sm:$0xff] }
 0x206   : > { %3101 = vmatpush.bf16.msra.mxu0 %v7890_v30  ;;  %3128 = vmatpush.bf16.msra.mxu1 %v7895_v55  ;;  %v5695_v55 = vunpack.i.h.bf16 %v7997_v35 }
 0x208   : > { %5922 = vrot.lane.b32.xlu0 %v5901_v17, %s6631_s20  ;;  %v2802_v17 = vld [vmem:[#allocation2 + $0x1f1] sm:$0xff] }
 0x209   : > { %5927 = vrot.lane.b32.xlu1 %v5906_v53, %s6632_s21  ;;  %1735 = vmatmul.bf16.gmra.mxu0 %v1588_v6  ;;  %v5931_v59 = vpack.i.bf16 %v2802_v17, %v2801_v2  ;;  %v1578_v53 = vsel %vm1549_vm5, %v1570_v46, %v5699_v61  ;;  %v1274_v6 = vld [vmem:[#allocation2 + $0x6f] sm:$0xff]  ;;  %v2104_v17 = vsel %vm307_vm0, %v1838_v37, %v5724_v19  ;;  %v5739_v19 = vunpack.i.l.bf16 %v8100_v21 }
 0x20a   : > { %v8130_v41 = vpop.permute.xlu0 %5712  ;;  %3129 = vmatpush.bf16.msra.mxu1 %v7917_v43  ;;  %v1589_v52 = vpack.c.bf16 %v1579_v38, %v1578_v53  ;;  %v8154_v35 = vpop.permute.xlu2 %5767  ;;  %v1538_v43 = vsel %vm307_vm0, %v1273_v29, %v5619_v39  ;;  %v1539_v44 = vsel %vm307_vm0, %v1274_v6, %v5620_v49  ;;  %v2105_v53 = vsel %vm307_vm0, %v7672_v33, %v5725_v3  ;;  %v2812_v6 = vld [vmem:[#allocation2 + $0x227] sm:$0xff] }
 0x20b   : > { %v8133_v30 = vpop.permute.xlu1 %5717  ;;  %5932 = vrot.lane.b32.xlu2 %v5931_v59, %s6630_s19  ;;  %v1547_v46 = vsel %vm1540_vm4, %v1538_v43, %v5639_v31  ;;  %v1548_v40 = vsel %vm1540_vm4, %v1539_v44, %v5695_v55  ;;  %v5710_v31 = vunpack.i.h.bf16 %v8038_v54  ;;  %v5709_v55 = vunpack.i.l.bf16 %v8038_v54  ;;  %v2813_v43 = vld [vmem:[#allocation2 + $0x22f] sm:$0xff] }
 0x20c   : > { %v1556_v49 = vsel %vm1549_vm5, %v1547_v46, %v5704_v8  ;;  %v1557_v24 = vsel %vm1549_vm5, %v1548_v40, %v5705_v15  ;;  %v2803_v15 = vld [vmem:[#allocation2 + $0x209] sm:$0xff]  ;;  %v2804_v8 = vld [vmem:[#allocation2 + $0x211] sm:$0xff]  ;;  %v5715_v29 = vunpack.i.h.bf16 %v8130_v41  ;;  %v5714_v54 = vunpack.i.l.bf16 %v8130_v41 }
 0x20d   : > { %v1591_v44 = vpack.c.bf16 %v1557_v24, %v1556_v49  ;;  %v5720_v46 = vunpack.i.h.bf16 %v8133_v30  ;;  %v5961_v37 = vpack.i.bf16 %v2804_v8, %v2803_v15 }
 0x20e   : > { %3130 = vmatpush.bf16.msra.mxu1 %v7934_v50 }
 0x210   : > { %5937 = vrot.lane.b32.xlu0 %v5936_v22, %s6631_s20 }
 0x211   : > { %5942 = vrot.lane.b32.xlu1 %v5941_v57, %s6632_s21  ;;  %1764 = vmatmul.bf16.gmra.mxu1 %v1589_v52  ;;  %v5740_v52 = vunpack.i.h.bf16 %v8100_v21  ;;  %v5719_v21 = vunpack.i.l.bf16 %v8133_v30  ;;  %v5966_v30 = vpack.i.bf16 %v2813_v43, %v2812_v6  ;;  %v5755_v6 = vunpack.i.h.bf16 %v8125_v28 }
 0x212   : > { %v5728_v2 = vpop.permute.xlu0 %5727  ;;  %v8183_v40 = vpop.permute.xlu2 %5782  ;;  %v5754_v43 = vunpack.i.l.bf16 %v8125_v28 }
 0x213   : > { %v5730_v27 = vunpack.i.h.bf16 %v5728_v2  ;;  %v5729_v61 = vunpack.i.l.bf16 %v5728_v2  ;;  %v5733_v13 = vpop.permute.xlu1 %5732  ;;  %5947 = vrot.lane.b32.xlu2 %v8096_v0, %s6630_s19  ;;  %v1305_v0 = vld [vmem:[#allocation2 + $0x88] sm:$0xff] }
 0x214   : > { %v5735_v38 = vunpack.i.h.bf16 %v5733_v13  ;;  %v5734_v39 = vunpack.i.l.bf16 %v5733_v13  ;;  %v1564_v41 = vsel %vm307_vm0, %v1305_v0, %v5709_v55  ;;  %v2129_v13 = vsel %vm307_vm0, %v7711_v12, %v5740_v52 }
 0x215   : > { %v2112_v50 = vsel %vm1540_vm4, %v2104_v17, %v5729_v61  ;;  %v2113_v57 = vsel %vm1540_vm4, %v2105_v53, %v5730_v27  ;;  %v1306_v27 = vld [vmem:[#allocation2 + $0x90] sm:$0xff]  ;;  %v2128_v61 = vsel %vm307_vm0, %v7716_v63, %v5739_v19  ;;  %v1572_v24 = vsel %vm1540_vm4, %v1564_v41, %v5714_v54 }
 0x216   : > { %v2120_v33 = vsel %vm1549_vm5, %v2112_v50, %v5734_v39  ;;  %v2121_v3 = vsel %vm1549_vm5, %v2113_v57, %v5735_v38  ;;  %v2821_v53 = vld [vmem:[#allocation2 + $0x230] sm:$0xff]  ;;  %v1580_v12 = vsel %vm1549_vm5, %v1572_v24, %v5719_v21  ;;  %v2564_v41 = vsel %vm307_vm0, %v7844_v23, %v5755_v6  ;;  %v2299_v6 = vld [vmem:[#allocation2 + $0x127] sm:$0xff] }
 0x217   : > { %v2152_v2 = vpack.c.bf16 %v2121_v3, %v2120_v33 }
 0x218   : > { %5952 = vrot.lane.b32.xlu0 %v5931_v59, %s6631_s20  ;;  %v2820_v59 = vld [vmem:[#allocation2 + $0x228] sm:$0xff] }
 0x219   : > { %5957 = vrot.lane.b32.xlu1 %v5936_v22, %s6632_s21  ;;  %1740 = vmatmul.bf16.gmra.mxu0 %v1591_v44  ;;  %v1565_v22 = vsel %vm307_vm0, %v1306_v27, %v5710_v31  ;;  %v5971_v52 = vpack.i.bf16 %v2821_v53, %v2820_v59  ;;  %v5770_v44 = vunpack.i.h.bf16 %v8154_v35  ;;  %v2563_v27 = vsel %vm307_vm0, %v7861_v36, %v5754_v43  ;;  %v2300_v43 = vld [vmem:[#allocation2 + $0x12f] sm:$0xff] }
 0x21a   : > { %v5743_v17 = vpop.permute.xlu0 %5742  ;;  %2184 = vmatmul.bf16.vlgmr.msra.gmra.mxu3 %v2152_v2  ;;  %v1573_v55 = vsel %vm1540_vm4, %v1565_v22, %v5715_v29  ;;  %v5798_v54 = vpop.permute.xlu2 %5797  ;;  %v5769_v2 = vunpack.i.l.bf16 %v8154_v35 }
 0x21b   : > { %v5745_v38 = vunpack.i.h.bf16 %v5743_v17  ;;  %v5744_v39 = vunpack.i.l.bf16 %v5743_v17  ;;  %v5748_v49 = vpop.permute.xlu1 %5747  ;;  %3158 = vmatpush.bf16.msra.mxu3 %v7926_v47  ;;  %v1581_v57 = vsel %vm1549_vm5, %v1573_v55, %v5720_v46  ;;  %5962 = vrot.lane.b32.xlu2 %v5961_v37, %s6630_s19  ;;  %v9977_v37 = vpack.c.bf16 %v7666_v42, %v7674_v11 }
 0x21c   : > { %v5750_v63 = vunpack.i.h.bf16 %v5748_v49  ;;  %v5749_v50 = vunpack.i.l.bf16 %v5748_v49  ;;  %v1592_v15 = vpack.c.bf16 %v1581_v57, %v1580_v12  ;;  %v2131_v35 = vsel %vm307_vm0, %v7758_v26, %v5770_v44 }
 0x21d   : > { %v2136_v19 = vsel %vm1540_vm4, %v2128_v61, %v5744_v39  ;;  %v2137_v31 = vsel %vm1540_vm4, %v2129_v13, %v5745_v38  ;;  %v2130_v61 = vsel %vm307_vm0, %v7755_v48, %v5769_v2  ;;  %v5784_v12 = vunpack.i.l.bf16 %v8183_v40 }
 0x21e   : > { %v2144_v33 = vsel %vm1549_vm5, %v2136_v19, %v5749_v50  ;;  %v2145_v3 = vsel %vm1549_vm5, %v2137_v31, %v5750_v63  ;;  %v5785_v50 = vunpack.i.h.bf16 %v8183_v40  ;;  %v5800_v57 = vunpack.i.h.bf16 %v5798_v54 }
 0x21f   : > { %v2153_v8 = vpack.c.bf16 %v2145_v3, %v2144_v33  ;;  %3159 = vmatpush.bf16.msra.mxu3 %v7940_v10  ;;  %v2565_v2 = vsel %vm307_vm0, %v2299_v6, %v5784_v12 }
 0x220   : > { %5967 = vrot.lane.b32.xlu0 %v5966_v30, %s6631_s20 }
 0x221   : > { %5972 = vrot.lane.b32.xlu1 %v5971_v52, %s6632_s21  ;;  %1769 = vmatmul.bf16.gmra.mxu1 %v1592_v15  ;;  %v5799_v52 = vunpack.i.l.bf16 %v5798_v54 }
 0x222   : > { %v5758_v47 = vpop.permute.xlu0 %5757  ;;  %2213 = vmatmul.bf16.vlgmr.msrb.gmra.mxu2 %v2153_v8  ;;  %v8232_v8 = vld [vmem:[#allocation2 + $0xe8] sm:$0xff] }
 0x223   : > { %v5763_v29 = vpop.permute.xlu1 %5762  ;;  %v5760_v46 = vunpack.i.h.bf16 %v5758_v47  ;;  %v5759_v21 = vunpack.i.l.bf16 %v5758_v47  ;;  %v9978_v47 = vpack.c.bf16 %v7690_v18, %v7688_v20  ;;  %v2132_v40 = vsel %vm307_vm0, %v8232_v8, %v5799_v52  ;;  %v8257_v52 = vld [vmem:[#allocation2 + $0x147] sm:$0xff] }
 0x224   : > { %v5765_v10 = vunpack.i.h.bf16 %v5763_v29  ;;  %v5764_v0 = vunpack.i.l.bf16 %v5763_v29  ;;  %v8238_v29 = vld [vmem:[#allocation2 + $0xf0] sm:$0xff] }
 0x225   : > { %v2571_v42 = vsel %vm1540_vm4, %v2563_v27, %v5759_v21  ;;  %v2572_v11 = vsel %vm1540_vm4, %v2564_v41, %v5760_v46  ;;  %v8224_v22 = vpop.permute.xlu2 %5812  ;;  %v2133_v54 = vsel %vm307_vm0, %v8238_v29, %v5800_v57  ;;  %v2566_v46 = vsel %vm307_vm0, %v2300_v43, %v5785_v50  ;;  %v1878_v57 = vld [vmem:[#allocation2 + $0x110] sm:$0xff] }
 0x226   : > { %v2579_v36 = vsel %vm1549_vm5, %v2571_v42, %v5764_v0  ;;  %v2580_v23 = vsel %vm1549_vm5, %v2572_v11, %v5765_v10 }
 0x227   : > { %v2611_v24 = vpack.c.bf16 %v2580_v23, %v2579_v36  ;;  %v1908_v36 = vld [vmem:[#allocation2 + $0x109] sm:$0xff]  ;;  %v1909_v23 = vld [vmem:[#allocation2 + $0x111] sm:$0xff] }
 0x229   : > { %5429 = vmatmul.msk.bf16.vlgmr.msrb.gmra.mxu0 %vm307_vm0, %v9977_v37 }
 0x22a   : > { %v5773_v28 = vpop.permute.xlu0 %5772 }
 0x22b   : > { %v5775_v13 = vunpack.i.h.bf16 %v5773_v28  ;;  %v5774_v17 = vunpack.i.l.bf16 %v5773_v28  ;;  %v5778_v30 = vpop.permute.xlu1 %5777 }
 0x22c   : > { %v5780_v59 = vunpack.i.h.bf16 %v5778_v30  ;;  %v5779_v53 = vunpack.i.l.bf16 %v5778_v30 }
 0x22d   : > { %v2138_v48 = vsel %vm1540_vm4, %v2130_v61, %v5774_v17  ;;  %v2139_v38 = vsel %vm1540_vm4, %v2131_v35, %v5775_v13  ;;  %v5828_v33 = vpop.permute.xlu2 %5827 }
 0x22e   : > { %v2146_v26 = vsel %vm1549_vm5, %v2138_v48, %v5779_v53  ;;  %v2147_v39 = vsel %vm1549_vm5, %v2139_v38, %v5780_v59  ;;  %v5815_v48 = vunpack.i.h.bf16 %v8224_v22  ;;  %v5814_v38 = vunpack.i.l.bf16 %v8224_v22 }
 0x22f   : > { %v2156_v49 = vpack.c.bf16 %v2147_v39, %v2146_v26  ;;  %v5830_v26 = vunpack.i.h.bf16 %v5828_v33  ;;  %v5829_v39 = vunpack.i.l.bf16 %v5828_v33 }
 0x230   : > { %v2567_v33 = vsel %vm307_vm0, %v8257_v52, %v5814_v38 }
 0x231   : > { %2643 = vmatmul.bf16.vlgmr.msrb.gmra.mxu1 %v2611_v24 }
 0x232   : > { %v5788_v55 = vpop.permute.xlu0 %5787  ;;  %2218 = vmatmul.bf16.gmra.mxu2 %v2156_v49 }
 0x233   : > { %v5793_v63 = vpop.permute.xlu1 %5792  ;;  %v5790_v19 = vunpack.i.h.bf16 %v5788_v55  ;;  %v5789_v31 = vunpack.i.l.bf16 %v5788_v55  ;;  %v2160_v55 = vpack.c.bf16 %v1909_v23, %v1908_v36  ;;  %v6568_v36 = vld [vmem:[#allocation2 + $0x131] sm:$0xff] }
 0x234   : > { %v5795_v3 = vunpack.i.h.bf16 %v5793_v63  ;;  %v5794_v15 = vunpack.i.l.bf16 %v5793_v63  ;;  %v1877_v63 = vld [vmem:[#allocation2 + $0x108] sm:$0xff] }
 0x235   : > { %v2573_v18 = vsel %vm1540_vm4, %v2565_v2, %v5789_v31  ;;  %v2574_v0 = vsel %vm1540_vm4, %v2566_v46, %v5790_v19  ;;  %v5843_v11 = vpop.permute.xlu2 %5842  ;;  %v8259_v19 = vld [vmem:[#allocation2 + $0x14f] sm:$0xff]  ;;  %v2135_v31 = vsel %vm307_vm0, %v1878_v57, %v5830_v26 }
 0x236   : > { %v2581_v41 = vsel %vm1549_vm5, %v2573_v18, %v5794_v15  ;;  %v2582_v28 = vsel %vm1549_vm5, %v2574_v0, %v5795_v3  ;;  %v2134_v3 = vsel %vm307_vm0, %v1877_v63, %v5829_v39  ;;  %v2568_v15 = vsel %vm307_vm0, %v8259_v19, %v5815_v48 }
 0x237   : > { %v2614_v42 = vpack.c.bf16 %v2582_v28, %v2581_v41 }
 0x239   : > { %5430 = vmatmul.msk.bf16.gmra.mxu0 %vm307_vm0, %v9978_v47 }
 0x23a   : > { %v5803_v44 = vpop.permute.xlu0 %5802 }
 0x23b   : > { %v5805_v21 = vunpack.i.h.bf16 %v5803_v44  ;;  %v5804_v10 = vunpack.i.l.bf16 %v5803_v44  ;;  %v5808_v20 = vpop.permute.xlu1 %5807 }
 0x23c   : > { %v5810_v37 = vunpack.i.h.bf16 %v5808_v20  ;;  %v5809_v27 = vunpack.i.l.bf16 %v5808_v20 }
 0x23d   : > { %v2140_v61 = vsel %vm1540_vm4, %v2132_v40, %v5804_v10  ;;  %v2141_v35 = vsel %vm1540_vm4, %v2133_v54, %v5805_v21  ;;  %v5858_v47 = vpop.permute.xlu2 %5857 }
 0x23e   : > { %v2148_v13 = vsel %vm1549_vm5, %v2140_v61, %v5809_v27  ;;  %v2149_v17 = vsel %vm1549_vm5, %v2141_v35, %v5810_v37  ;;  %v5859_v57 = vunpack.i.l.bf16 %v5858_v47 }
 0x23f   : > { %v2159_v30 = vpack.c.bf16 %v2149_v17, %v2148_v13  ;;  %v5845_v13 = vunpack.i.h.bf16 %v5843_v11  ;;  %v5844_v17 = vunpack.i.l.bf16 %v5843_v11 }
 0x241   : > { %2648 = vmatmul.bf16.gmra.mxu1 %v2614_v42  ;;  %v2569_v26 = vsel %vm307_vm0, %v7902_v5, %v5844_v17  ;;  %v2570_v39 = vsel %vm307_vm0, %v7898_v4, %v5845_v13  ;;  %v6569_v4 = vld [vmem:[#allocation2 + $0x149] sm:$0xff] }
 0x242   : > { %v5818_v59 = vpop.permute.xlu0 %5817  ;;  %2223 = vmatmul.bf16.gmra.mxu2 %v2159_v30  ;;  %v8275_v30 = vpop.f32.mrf.mxu2 }
 0x243   : > { %v5823_v53 = vpop.permute.xlu1 %5822  ;;  %v5820_v49 = vunpack.i.h.bf16 %v5818_v59  ;;  %v5819_v24 = vunpack.i.l.bf16 %v5818_v59 }
 0x244   : > { %v5825_v50 = vunpack.i.h.bf16 %v5823_v53  ;;  %v5824_v12 = vunpack.i.l.bf16 %v5823_v53  ;;  %v6567_v53 = vld [vmem:[#allocation2 + $0x129] sm:$0xff] }
 0x245   : > { %v2575_v40 = vsel %vm1540_vm4, %v2567_v33, %v5819_v24  ;;  %v2576_v54 = vsel %vm1540_vm4, %v2568_v15, %v5820_v49  ;;  %v5873_v35 = vpop.permute.xlu2 %5872  ;;  %v2163_v23 = vpack.c.bf16 %v6568_v36, %v6567_v53 }
 0x246   : > { %v2583_v21 = vsel %vm1549_vm5, %v2575_v40, %v5824_v12  ;;  %v2584_v10 = vsel %vm1549_vm5, %v2576_v54, %v5825_v50  ;;  %v5860_v12 = vunpack.i.h.bf16 %v5858_v47  ;;  %v3022_v54 = vsel %vm307_vm0, %v7959_v62, %v5859_v57 }
 0x247   : > { %v2617_v41 = vpack.c.bf16 %v2584_v10, %v2583_v21 }
 0x248   : > { %v3023_v40 = vsel %vm307_vm0, %v7961_v14, %v5860_v12  ;;  %v3268_v12 = vld [vmem:[#allocation3 + $0x11] sm:$0xff] }
 0x249   : > { %5431 = vmatmul.msk.bf16.gmra.mxu0 %vm307_vm0, %v2160_v55 }
 0x24a   : > { %v5833_v22 = vpop.permute.xlu0 %5832 }
 0x24b   : > { %v5835_v6 = vunpack.i.h.bf16 %v5833_v22  ;;  %v5834_v43 = vunpack.i.l.bf16 %v5833_v22  ;;  %v5838_v44 = vpop.permute.xlu1 %5837 }
 0x24c   : > { %v5840_v2 = vunpack.i.h.bf16 %v5838_v44  ;;  %v5839_v46 = vunpack.i.l.bf16 %v5838_v44  ;;  %v8288_v44 = vpop.f32.mrf.mxu2 }
 0x24d   : > { %v2142_v20 = vsel %vm1540_vm4, %v2134_v3, %v5834_v43  ;;  %v2143_v18 = vsel %vm1540_vm4, %v2135_v31, %v5835_v6  ;;  %v8286_v31 = vpop.permute.xlu2 %5887  ;;  %v6570_v6 = vld [vmem:[#allocation2 + $0x151] sm:$0xff] }
 0x24e   : > { %v2150_v0 = vsel %vm1549_vm5, %v2142_v20, %v5839_v46  ;;  %v2151_v37 = vsel %vm1549_vm5, %v2143_v18, %v5840_v2  ;;  %v2613_v43 = vpack.c.bf16 %v6570_v6, %v6569_v4  ;;  %v5875_v18 = vunpack.i.h.bf16 %v5873_v35  ;;  %v6571_v4 = vld [vmem:[#allocation2 + $0x169] sm:$0xff]  ;;  %v6572_v6 = vld [vmem:[#allocation2 + $0x171] sm:$0xff] }
 0x24f   : > { %v2162_v27 = vpack.c.bf16 %v2151_v37, %v2150_v0  ;;  %v5874_v0 = vunpack.i.l.bf16 %v5873_v35  ;;  %v8306_v35 = vld [vmem:[%s9911_s4] ss:$0 sm:$0xff] }
 0x251   : > { %2653 = vmatmul.bf16.gmra.mxu1 %v2617_v41  ;;  %v3259_v41 = vld [vmem:[#allocation3 + $0x8] sm:$0xff] }
 0x252   : > { %v5848_v28 = vpop.permute.xlu0 %5847  ;;  %2228 = vmatmul.bf16.gmra.mxu2 %v2162_v27 }
 0x253   : > { %v5853_v61 = vpop.permute.xlu1 %5852  ;;  %v5850_v42 = vunpack.i.h.bf16 %v5848_v28  ;;  %v5849_v59 = vunpack.i.l.bf16 %v5848_v28  ;;  %v3260_v28 = vld [vmem:[#allocation3 + $0x10] sm:$0xff] }
 0x254   : > { %v5855_v48 = vunpack.i.h.bf16 %v5853_v61  ;;  %v5854_v38 = vunpack.i.l.bf16 %v5853_v61  ;;  %v5976_v17 = vpack.i.bf16 %v3260_v28, %v3259_v41 }
 0x255   : > { %v2577_v11 = vsel %vm1540_vm4, %v2569_v26, %v5849_v59  ;;  %v2578_v55 = vsel %vm1540_vm4, %v2570_v39, %v5850_v42  ;;  %v3047_v42 = vsel %vm307_vm0, %v8040_v9, %v5875_v18  ;;  %v3046_v59 = vsel %vm307_vm0, %v8051_v32, %v5874_v0  ;;  %v5903_v53 = vpop.permute.xlu2 %5902 }
 0x256   : > { %v2585_v63 = vsel %vm1549_vm5, %v2577_v11, %v5854_v38  ;;  %v2586_v50 = vsel %vm1549_vm5, %v2578_v55, %v5855_v48  ;;  %5977 = vrot.lane.b32.xlu2 %v5976_v17, %s6630_s19  ;;  %v8311_v38 = vpop.f32.mrf.mxu2  ;;  %v5905_v28 = vunpack.i.h.bf16 %v5903_v53 }
 0x257   : > { %v2620_v5 = vpack.c.bf16 %v2586_v50, %v2585_v63  ;;  %v3267_v50 = vld [vmem:[#allocation3 + $0x9] sm:$0xff] }
 0x259   : > { %5432 = vmatmul.msk.bf16.gmra.mxu0 %vm307_vm0, %v2163_v23 }
 0x25a   : > { %v5863_v49 = vpop.permute.xlu0 %5862 }
 0x25b   : > { %v5868_v24 = vpop.permute.xlu1 %5867  ;;  %v5865_v3 = vunpack.i.h.bf16 %v5863_v49  ;;  %v5864_v22 = vunpack.i.l.bf16 %v5863_v49  ;;  %v5890_v49 = vunpack.i.h.bf16 %v8286_v31 }
 0x25c   : > { %v5870_v33 = vunpack.i.h.bf16 %v5868_v24  ;;  %v5869_v15 = vunpack.i.l.bf16 %v5868_v24  ;;  %v5889_v24 = vunpack.i.l.bf16 %v8286_v31  ;;  %v9979_v31 = vld [vmem:[#allocation17_spill] sm:$0xff] }
 0x25d   : > { %v3031_v2 = vsel %vm1540_vm4, %v3023_v40, %v5865_v3  ;;  %v3030_v46 = vsel %vm1540_vm4, %v3022_v54, %v5864_v22 }
 0x25e   : > { %v3038_v10 = vsel %vm1549_vm5, %v3030_v46, %v5869_v15  ;;  %v3039_v20 = vsel %vm1549_vm5, %v3031_v2, %v5870_v33  ;;  %v3024_v54 = vsel %vm307_vm0, %v9979_v31, %v5889_v24  ;;  %v6574_v31 = vld [vmem:[#allocation2 + $0x191] sm:$0xff] }
 0x25f   : > { %v3070_v62 = vpack.c.bf16 %v3039_v20, %v3038_v10 }
 0x261   : > { %2658 = vmatmul.bf16.gmra.mxu1 %v2620_v5  ;;  %v5981_v5 = vpack.i.bf16 %v3268_v12, %v3267_v50 }
 0x262   : > { %v5878_v47 = vpop.permute.xlu0 %5877  ;;  %5433 = vmatmul.msk.bf16.vlgmr.msra.gmra.mxu2 %vm307_vm0, %v2613_v43  ;;  %v2616_v43 = vpack.c.bf16 %v6572_v6, %v6571_v4 }
 0x263   : > { %v5883_v21 = vpop.permute.xlu1 %5882  ;;  %v5880_v37 = vunpack.i.h.bf16 %v5878_v47  ;;  %v5879_v27 = vunpack.i.l.bf16 %v5878_v47  ;;  %5982 = vrot.lane.b32.xlu0 %v5981_v5, %s6631_s20  ;;  %v9980_v47 = vld [vmem:[#allocation15_spill] sm:$0xff] }
 0x264   : > { %v5885_v61 = vunpack.i.h.bf16 %v5883_v21  ;;  %v5884_v13 = vunpack.i.l.bf16 %v5883_v21  ;;  %v3025_v2 = vsel %vm307_vm0, %v9980_v47, %v5890_v49  ;;  %v5918_v21 = vpop.permute.xlu2 %5917 }
 0x265   : > { %v3055_v36 = vsel %vm1540_vm4, %v3047_v42, %v5880_v37  ;;  %v3054_v23 = vsel %vm1540_vm4, %v3046_v59, %v5879_v27  ;;  %v8329_v27 = vpop.f32.mrf.mxu2 }
 0x266   : > { %v1726_v14 = vpop.f32.mrf.mxu0  ;;  %v3062_v9 = vsel %vm1549_vm5, %v3054_v23, %v5884_v13  ;;  %v3063_v32 = vsel %vm1549_vm5, %v3055_v36, %v5885_v61 }
 0x267   : > { %v1727_v39 = vadd.f32 %v8306_v35, %v1726_v14  ;;  %v3071_v11 = vpack.c.bf16 %v3063_v32, %v3062_v9 }
 0x269   : > { %3102 = vmatmul.bf16.vlgmr.msra.gmra.mxu0 %v3070_v62  ;;  %v5904_v62 = vunpack.i.l.bf16 %v5903_v53 }
 0x26a   : > { %v5893_v48 = vpop.permute.xlu0 %5892 }
 0x26b   : > { %v5898_v26 = vpop.permute.xlu1 %5897  ;;  %v5895_v57 = vunpack.i.h.bf16 %v5893_v48  ;;  %v5894_v3 = vunpack.i.l.bf16 %v5893_v48  ;;  %v3048_v32 = vsel %vm307_vm0, %v8025_v34, %v5904_v62  ;;  %v5920_v34 = vunpack.i.h.bf16 %v5918_v21 }
 0x26c   : > { %v5900_v33 = vunpack.i.h.bf16 %v5898_v26  ;;  %v5899_v15 = vunpack.i.l.bf16 %v5898_v26  ;;  %v3049_v26 = vsel %vm307_vm0, %v8011_v56, %v5905_v28 }
 0x26d   : > { %v3032_v18 = vsel %vm1540_vm4, %v3024_v54, %v5894_v3 }
 0x26e   : > { %v1728_v55 = vpop.f32.mrf.mxu0  ;;  %v1755_v63 = vpop.f32.mrf.mxu1  ;;  %v3040_v0 = vsel %vm1549_vm5, %v3032_v18, %v5899_v15 }
 0x26f   : > { %v1756_v22 = vadd.f32 %v1755_v63, %v1727_v39  ;;  %v1729_v14 = vadd.f32 %v8306_v35, %v1728_v55 }
 0x271   : > { %v1785_v40 = vadd.f32 %v8275_v30, %v1756_v22  ;;  %3131 = vmatmul.bf16.vlgmr.msra.gmra.mxu1 %v3071_v11  ;;  %v3033_v30 = vsel %vm1540_vm4, %v3025_v2, %v5895_v57  ;;  %v5919_v57 = vunpack.i.l.bf16 %v5918_v21  ;;  %v8344_v22 = vpop.f32.mrf.mxu2 }
 0x272   : > { %v5908_v46 = vpop.permute.xlu0 %5907  ;;  %5434 = vmatmul.msk.bf16.gmra.mxu2 %vm307_vm0, %v2616_v43  ;;  %v3041_v37 = vsel %vm1549_vm5, %v3033_v30, %v5900_v33 }
 0x273   : > { %vm1804_vm6 = vcmp.gt.f32.partialorder %v1785_v40, 0.0  ;;  %v1812_v10 = vmul.f32 0.2, %v1785_v40  ;;  %v5913_v20 = vpop.permute.xlu1 %5912  ;;  %v5910_v17 = vunpack.i.h.bf16 %v5908_v46  ;;  %v5909_v42 = vunpack.i.l.bf16 %v5908_v46 }
 0x274   : > { %v3073_v36 = vpack.c.bf16 %v3041_v37, %v3040_v0  ;;  %v5915_v23 = vunpack.i.h.bf16 %v5913_v20  ;;  %v5914_v48 = vunpack.i.l.bf16 %v5913_v20  ;;  %v3026_v2 = vsel %vm307_vm0, %v8018_v16, %v5919_v57 }
 0x275   : > { %v1820_v41 = vsel %vm1804_vm6, %v1785_v40, %v1812_v10  ;;  %v3056_v24 = vsel %vm1540_vm4, %v3048_v32, %v5909_v42  ;;  %v3057_v11 = vsel %vm1540_vm4, %v3049_v26, %v5910_v17  ;;  %v6573_v40 = vld [vmem:[#allocation2 + $0x189] sm:$0xff]  ;;  %v3027_v46 = vsel %vm307_vm0, %v8008_v7, %v5920_v34 }
 0x276   : > { %1829 = vst.msk [vmem:[#allocation3 + $0x28] sm:$0xff] %vm307_vm0, %v1820_v41  ;;  %v1731_v61 = vpop.f32.mrf.mxu0  ;;  %v1757_v13 = vpop.f32.mrf.mxu1  ;;  %v3064_v55 = vsel %vm1549_vm5, %v3056_v24, %v5914_v48  ;;  %v3065_v63 = vsel %vm1549_vm5, %v3057_v11, %v5915_v23  ;;  %v2619_v54 = vpack.c.bf16 %v6574_v31, %v6573_v40 }
 0x277   : > { %v1758_v59 = vadd.f32 %v1757_v13, %v1729_v14  ;;  %v1732_v50 = vadd.f32 %v8306_v35, %v1731_v61  ;;  %v3074_v4 = vpack.c.bf16 %v3065_v63, %v3064_v55 }
 0x279   : > { %v1787_v9 = vadd.f32 %v8288_v44, %v1758_v59  ;;  %3107 = vmatmul.bf16.gmra.mxu0 %v3073_v36  ;;  %v5933_v44 = vpop.permute.xlu2 %5932 }
 0x27a   : > { %v5923_v53 = vpop.permute.xlu0 %5922  ;;  %v5935_v62 = vunpack.i.h.bf16 %v5933_v44  ;;  %v5934_v61 = vunpack.i.l.bf16 %v5933_v44 }
 0x27b   : > { %vm1805_vm7 = vcmp.gt.f32.partialorder %v1787_v9, 0.0  ;;  %v1813_v39 = vmul.f32 0.2, %v1787_v9  ;;  %v5928_v49 = vpop.permute.xlu1 %5927  ;;  %v5925_v5 = vunpack.i.h.bf16 %v5923_v53  ;;  %v5924_v33 = vunpack.i.l.bf16 %v5923_v53 }
 0x27c   : > { %v5930_v6 = vunpack.i.h.bf16 %v5928_v49  ;;  %v5929_v43 = vunpack.i.l.bf16 %v5928_v49  ;;  %v3051_v24 = vsel %vm307_vm0, %v8090_v45, %v5935_v62  ;;  %v3050_v11 = vsel %vm307_vm0, %v8084_v60, %v5934_v61 }
 0x27d   : > { %v1821_v12 = vsel %vm1805_vm7, %v1787_v9, %v1813_v39  ;;  %v3034_v18 = vsel %vm1540_vm4, %v3026_v2, %v5924_v33  ;;  %v3035_v30 = vsel %vm1540_vm4, %v3027_v46, %v5925_v5  ;;  %v8354_v0 = vld [vmem:[#allocation3 + $0x27] sm:$0xff]  ;;  %v8369_v39 = vpop.f32.mrf.mxu2 }
 0x27e   : > { %1830 = vst.msk [vmem:[#allocation3 + $0x30] sm:$0xff] %vm307_vm0, %v1821_v12  ;;  %v1733_v56 = vpop.f32.mrf.mxu0  ;;  %v1760_v3 = vpop.f32.mrf.mxu1  ;;  %v3043_v37 = vsel %vm1549_vm5, %v3035_v30, %v5930_v6  ;;  %v8383_v60 = vld [vmem:[#allocation3 + $0x28] sm:$0xff] }
 0x27f   : > { %v1761_v15 = vadd.f32 %v1760_v3, %v1732_v50  ;;  %v1734_v16 = vadd.f32 %v8306_v35, %v1733_v56  ;;  %v2369_v33 = vld [vmem:[#allocation2 + $0x1a9] sm:$0xff] }
 0x281   : > { %v1790_v47 = vadd.f32 %v8311_v38, %v1761_v15  ;;  %3136 = vmatmul.bf16.gmra.mxu1 %v3074_v4  ;;  %v3042_v38 = vsel %vm1549_vm5, %v3034_v18, %v5929_v43  ;;  %v5948_v32 = vpop.permute.xlu2 %5947  ;;  %v2370_v15 = vld [vmem:[#allocation2 + $0x1b1] sm:$0xff] }
 0x282   : > { %v5938_v21 = vpop.permute.xlu0 %5937  ;;  %5435 = vmatmul.msk.bf16.gmra.mxu2 %vm307_vm0, %v2619_v54  ;;  %v3076_v9 = vpack.c.bf16 %v3043_v37, %v3042_v38  ;;  %v5950_v56 = vunpack.i.h.bf16 %v5948_v32  ;;  %v5949_v3 = vunpack.i.l.bf16 %v5948_v32  ;;  %v8391_v54 = vld [vmem:[%s9912_s5 + $0x88] sm:$0xff] }
 0x283   : > { %vm1806_vm8 = vcmp.gt.f32.partialorder %v1790_v47, 0.0  ;;  %v1814_v10 = vmul.f32 0.2, %v1790_v47  ;;  %v5943_v20 = vpop.permute.xlu1 %5942  ;;  %v5940_v36 = vunpack.i.h.bf16 %v5938_v21  ;;  %v5939_v23 = vunpack.i.l.bf16 %v5938_v21  ;;  %3763 = vmatpush.bf16.msrb.mxu1 %v8391_v54 }
 0x284   : > { %v5945_v26 = vunpack.i.h.bf16 %v5943_v20  ;;  %v5944_v53 = vunpack.i.l.bf16 %v5943_v20  ;;  %v3029_v20 = vsel %vm307_vm0, %v8078_v51, %v5950_v56  ;;  %v3028_v18 = vsel %vm307_vm0, %v8076_v25, %v5949_v3 }
 0x285   : > { %v1822_v14 = vsel %vm1806_vm8, %v1790_v47, %v1814_v10  ;;  %v3291_v7 = vld [vmem:[#allocation3 + $0x29] sm:$0xff]  ;;  %v3292_v41 = vld [vmem:[#allocation3 + $0x31] sm:$0xff]  ;;  %v3058_v12 = vsel %vm1540_vm4, %v3050_v11, %v5939_v23  ;;  %v3059_v34 = vsel %vm1540_vm4, %v3051_v24, %v5940_v36  ;;  %v2622_v10 = vpack.c.bf16 %v2370_v15, %v2369_v33 }
 0x286   : > { %v8359_v28 = vld [vmem:[#allocation3 + $0x2f] sm:$0xff]  ;;  %1831 = vst.msk [vmem:[#allocation3 + $0x48] sm:$0xff] %vm307_vm0, %v1822_v14  ;;  %v1736_v13 = vpop.f32.mrf.mxu0  ;;  %v1762_v17 = vpop.f32.mrf.mxu1  ;;  %v8362_v42 = vpack.i.bf16 %v3292_v41, %v3291_v7  ;;  %v3066_v57 = vsel %vm1549_vm5, %v3058_v12, %v5944_v53 }
 0x287   : > { %v5986_v59 = vpack.i.bf16 %v8359_v28, %v8354_v0  ;;  %v1763_v48 = vadd.f32 %v1762_v17, %v1734_v16  ;;  %v8376_v50 = vld [vmem:[#allocation3 + $0x30] sm:$0xff]  ;;  %v1737_v45 = vadd.f32 %v8306_v35, %v1736_v13  ;;  %v1799_v14 = vpop.f32.mrf.mxu2 }
 0x288   : > { %5992 = vrot.lane.b32.xlu2 %v8362_v42, %s6630_s19  ;;  %v6006_v31 = vpack.i.bf16 %v8376_v50, %v8383_v60 }
 0x289   : > { %5987 = vrot.lane.b32.xlu1 %v5986_v59, %s6632_s21  ;;  %v1792_v49 = vadd.f32 %v8329_v27, %v1763_v48  ;;  %3112 = vmatmul.bf16.gmra.mxu0 %v3076_v9  ;;  %v3067_v27 = vsel %vm1549_vm5, %v3059_v34, %v5945_v26  ;;  %v5963_v38 = vpop.permute.xlu2 %5962 }
 0x28a   : > { %v5953_v55 = vpop.permute.xlu0 %5952  ;;  %v3077_v21 = vpack.c.bf16 %v3067_v27, %v3066_v57  ;;  %v5964_v9 = vunpack.i.l.bf16 %v5963_v38 }
 0x28b   : > { %vm1807_vm9 = vcmp.gt.f32.partialorder %v1792_v49, 0.0  ;;  %v1815_v63 = vmul.f32 0.2, %v1792_v49  ;;  %v5958_v44 = vpop.permute.xlu1 %5957  ;;  %v5955_v4 = vunpack.i.h.bf16 %v5953_v55  ;;  %v5954_v6 = vunpack.i.l.bf16 %v5953_v55  ;;  %v8428_v55 = vld [vmem:[%s9912_s5 + $0x80] sm:$0xff] }
 0x28c   : > { %v5960_v47 = vunpack.i.h.bf16 %v5958_v44  ;;  %v5959_v2 = vunpack.i.l.bf16 %v5958_v44  ;;  %3764 = vmatpush.bf16.msrb.mxu1 %v8428_v55 }
 0x28d   : > { %v1823_v5 = vsel %vm1807_vm9, %v1792_v49, %v1815_v63  ;;  %v3036_v37 = vsel %vm1540_vm4, %v3028_v18, %v5954_v6  ;;  %v3037_v16 = vsel %vm1540_vm4, %v3029_v20, %v5955_v4  ;;  %v8405_v61 = vld [vmem:[#allocation3 + $0x48] sm:$0xff]  ;;  %v1849_v4 = vld [vmem:[#allocation2 + $0xb0] sm:$0xff] }
 0x28e   : > { %1832 = vst.msk [vmem:[#allocation3 + $0x50] sm:$0xff] %vm307_vm0, %v1823_v5  ;;  %v1738_v43 = vpop.f32.mrf.mxu0  ;;  %v1765_v40 = vpop.f32.mrf.mxu1  ;;  %v3044_v41 = vsel %vm1549_vm5, %v3036_v37, %v5959_v2  ;;  %v3045_v51 = vsel %vm1549_vm5, %v3037_v16, %v5960_v47  ;;  %v8407_v25 = vld [vmem:[#allocation3 + $0x47] sm:$0xff] }
 0x28f   : > { %v1766_v46 = vadd.f32 %v1765_v40, %v1737_v45  ;;  %v1739_v13 = vadd.f32 %v8306_v35, %v1738_v43  ;;  %v3079_v11 = vpack.c.bf16 %v3045_v51, %v3044_v41  ;;  %v3052_v45 = vsel %vm307_vm0, %v8144_v1, %v5964_v9  ;;  %v1801_v43 = vpop.f32.mrf.mxu2  ;;  %v1848_v47 = vld [vmem:[#allocation2 + $0xa8] sm:$0xff] }
 0x290   : > { %6007 = vrot.lane.b32.xlu2 %v6006_v31, %s6630_s19 }
 0x291   : > { %v1795_v30 = vadd.f32 %v8344_v22, %v1766_v46  ;;  %3141 = vmatmul.bf16.gmra.mxu1 %v3077_v21  ;;  %v5965_v22 = vunpack.i.h.bf16 %v5963_v38  ;;  %v6036_v21 = vpack.i.bf16 %v1849_v4, %v1848_v47  ;;  %v1850_v47 = vld [vmem:[#allocation2 + $0xc8] sm:$0xff] }
 0x292   : > { %5436 = vmatmul.msk.bf16.gmra.mxu2 %vm307_vm0, %v2622_v10  ;;  %v5968_v62 = vpop.permute.xlu0 %5967 }
 0x293   : > { %vm1808_vm10 = vcmp.gt.f32.partialorder %v1795_v30, 0.0  ;;  %v1816_v7 = vmul.f32 0.2, %v1795_v30  ;;  %v5973_v59 = vpop.permute.xlu1 %5972  ;;  %v5970_v63 = vunpack.i.h.bf16 %v5968_v62  ;;  %v5969_v44 = vunpack.i.l.bf16 %v5968_v62 }
 0x294   : > { %v5975_v57 = vunpack.i.h.bf16 %v5973_v59  ;;  %v5974_v27 = vunpack.i.l.bf16 %v5973_v59  ;;  %v3053_v3 = vsel %vm307_vm0, %v8135_v58, %v5965_v22 }
 0x295   : > { %v1824_v17 = vsel %vm1808_vm10, %v1795_v30, %v1816_v7  ;;  %v8410_v36 = vld [vmem:[#allocation3 + $0x50] sm:$0xff]  ;;  %v3060_v33 = vsel %vm1540_vm4, %v3052_v45, %v5969_v44  ;;  %v3061_v15 = vsel %vm1540_vm4, %v3053_v3, %v5970_v63 }
 0x296   : > { %v8412_v23 = vld [vmem:[#allocation3 + $0x4f] sm:$0xff]  ;;  %1833 = vst.msk [vmem:[#allocation3 + $0x68] sm:$0xff] %vm307_vm0, %v1824_v17  ;;  %v1741_v32 = vpop.f32.mrf.mxu0  ;;  %v1767_v26 = vpop.f32.mrf.mxu1  ;;  %v8419_v53 = vpack.i.bf16 %v8410_v36, %v8405_v61  ;;  %v3069_v6 = vsel %vm1549_vm5, %v3061_v15, %v5975_v57 }
 0x297   : > { %v8414_v48 = vld [vmem:[#allocation3 + $0x49] sm:$0xff]  ;;  %v5996_v49 = vpack.i.bf16 %v8412_v23, %v8407_v25  ;;  %v8423_v24 = vld [vmem:[#allocation3 + $0x51] sm:$0xff]  ;;  %v1768_v12 = vadd.f32 %v1767_v26, %v1739_v13  ;;  %v1742_v40 = vadd.f32 %v8306_v35, %v1741_v32 }
 0x298   : > { %v8432_v34 = vpack.i.bf16 %v8423_v24, %v8414_v48  ;;  %6002 = vrot.lane.b32.xlu1 %v8419_v53, %s6632_s21  ;;  %v1857_v44 = vld [vmem:[#allocation2 + $0xb1] sm:$0xff] }
 0x299   : > { %5997 = vrot.lane.b32.xlu0 %v5996_v49, %s6631_s20  ;;  %v1797_v56 = vadd.f32 %v8369_v39, %v1768_v12  ;;  %3117 = vmatmul.bf16.gmra.mxu0 %v3079_v11  ;;  %v3068_v39 = vsel %vm1549_vm5, %v3060_v33, %v5974_v27  ;;  %v1856_v11 = vld [vmem:[#allocation2 + $0xa9] sm:$0xff] }
 0x29a   : > { %6022 = vrot.lane.b32.xlu2 %v8432_v34, %s6630_s19  ;;  %v3080_v10 = vpack.c.bf16 %v3069_v6, %v3068_v39  ;;  %v8474_v12 = vld [vmem:[#allocation2 + $0xc7] sm:$0xff]  ;;  %v8476_v57 = vld [vmem:[#allocation2 + $0xcf] sm:$0xff]  ;;  %v6041_v39 = vpack.i.bf16 %v1857_v44, %v1856_v11 }
 0x29b   : > { %vm1809_vm11 = vcmp.gt.f32.partialorder %v1797_v56, 0.0  ;;  %v1817_v5 = vmul.f32 0.2, %v1797_v56  ;;  %v6046_v6 = vpack.i.bf16 %v8476_v57, %v8474_v12 }
 0x29d   : > { %v1825_v58 = vsel %vm1809_vm11, %v1797_v56, %v1817_v5  ;;  %v2185_v2 = vpop.f32.mrf.mxu3  ;;  %v8456_v38 = vld [vmem:[#allocation3 + $0x67] sm:$0xff] }
 0x29e   : > { %1834 = vst.msk [vmem:[#allocation3 + $0x70] sm:$0xff] %vm307_vm0, %v1825_v58  ;;  %v1743_v1 = vpop.f32.mrf.mxu0  ;;  %v1770_v31 = vpop.f32.mrf.mxu1  ;;  %v2186_v30 = vadd.f32 %v8306_v35, %v2185_v2  ;;  %v8461_v51 = vld [vmem:[#allocation3 + $0x68] sm:$0xff] }
 0x29f   : > { %v1771_v46 = vadd.f32 %v1770_v31, %v1742_v40  ;;  %v1744_v37 = vadd.f32 %v8306_v35, %v1743_v1  ;;  %v3566_v40 = vpack.c.bf16 %v8423_v24, %v8414_v48  ;;  %v1851_v48 = vld [vmem:[#allocation2 + $0xd0] sm:$0xff] }
 0x2a0   : > { %6017 = vrot.lane.b32.xlu1 %v5996_v49, %s6632_s21  ;;  %v6081_v24 = vpack.i.bf16 %v1851_v48, %v1850_v47  ;;  %v5573_v47 = vld [vmem:[%s9912_s5 + $0x70] sm:$0xff] }
 0x2a1   : > { %6012 = vrot.lane.b32.xlu0 %v8362_v42, %s6631_s20  ;;  %v1800_v20 = vadd.f32 %v1799_v14, %v1771_v46  ;;  %3146 = vmatmul.bf16.gmra.mxu1 %v3080_v10  ;;  %v9991_v48 = vld [vmem:[#allocation6_spill] sm:$0xff] }
 0x2a2   : > { %6037 = vrot.lane.b32.xlu2 %v6036_v21, %s6630_s19 }
 0x2a3   : > { %vm1810_vm12 = vcmp.gt.f32.partialorder %v1800_v20, 0.0  ;;  %v1818_v18 = vmul.f32 0.2, %v1800_v20 }
 0x2a5   : > { %v1826_v16 = vsel %vm1810_vm12, %v1800_v20, %v1818_v18  ;;  %v2214_v7 = vpop.f32.mrf.mxu2  ;;  %v8459_v41 = vld [vmem:[#allocation3 + $0x6f] sm:$0xff]  ;;  %v2187_v32 = vpop.f32.mrf.mxu3 }
 0x2a6   : > { %v8463_v42 = vld [vmem:[#allocation3 + $0x70] sm:$0xff]  ;;  %1835 = vst.msk [vmem:[#allocation3 + $0x88] sm:$0xff] %vm307_vm0, %v1826_v16  ;;  %v2215_v14 = vadd.f32 %v2214_v7, %v2186_v30  ;;  %v1772_v62 = vpop.f32.mrf.mxu1  ;;  %v2243_v22 = vpop.f32.mrf.mxu0  ;;  %v6026_v13 = vpack.i.bf16 %v8459_v41, %v8456_v38  ;;  %v2188_v27 = vadd.f32 %v8306_v35, %v2187_v32 }
 0x2a7   : > { %v6031_v17 = vpack.i.bf16 %v8463_v42, %v8461_v51  ;;  %v1773_v59 = vadd.f32 %v1772_v62, %v1744_v37  ;;  %v3295_v3 = vld [vmem:[#allocation3 + $0x69] sm:$0xff]  ;;  %v3296_v45 = vld [vmem:[#allocation3 + $0x71] sm:$0xff] }
 0x2a8   : > { %v2244_v9 = vadd.f32 %v2243_v22, %v2215_v14  ;;  %v3569_v14 = vpack.c.bf16 %v3296_v45, %v3295_v3  ;;  %v8522_v62 = vld [vmem:[#allocation2 + $0xef] sm:$0xff] }
 0x2a9   : > { %6027 = vrot.lane.b32.xlu0 %v6026_v13, %s6631_s20  ;;  %6032 = vrot.lane.b32.xlu1 %v6031_v17, %s6632_s21  ;;  %v1802_v26 = vadd.f32 %v1801_v43, %v1773_v59  ;;  %v6066_v43 = vpack.i.bf16 %v3296_v45, %v3295_v3  ;;  %v1858_v22 = vld [vmem:[#allocation2 + $0xc9] sm:$0xff]  ;;  %v1859_v32 = vld [vmem:[#allocation2 + $0xd1] sm:$0xff] }
 0x2aa   : > { %6052 = vrot.lane.b32.xlu2 %v8419_v53, %s6630_s19  ;;  %vm2263_vm13 = vcmp.gt.f32.partialorder %v2244_v9, 0.0  ;;  %v2271_v49 = vmul.f32 0.2, %v2244_v9 }
 0x2ab   : > { %vm1811_vm14 = vcmp.gt.f32.partialorder %v1802_v26, 0.0  ;;  %v1819_v63 = vmul.f32 0.2, %v1802_v26 }
 0x2ac   : > { %v2279_v56 = vsel %vm2263_vm13, %v2244_v9, %v2271_v49  ;;  %v8525_v9 = vld [vmem:[#allocation2 + $0xe7] sm:$0xff] }
 0x2ad   : > { %v1827_v5 = vsel %vm1811_vm14, %v1802_v26, %v1819_v63  ;;  %2288 = vst.msk [vmem:[#allocation3 + $0xa8] sm:$0xff] %vm307_vm0, %v2279_v56  ;;  %v2216_v33 = vpop.f32.mrf.mxu2  ;;  %v8502_v20 = vld [vmem:[#allocation3 + $0x88] sm:$0xff]  ;;  %v6091_v11 = vpack.i.bf16 %v8522_v62, %v8525_v9  ;;  %v6086_v63 = vpack.i.bf16 %v1859_v32, %v1858_v22  ;;  %v8554_v56 = vld [vmem:[%s9912_s5 + $0x20] sm:$0xff]  ;;  %v1861_v22 = vld [vmem:[#allocation2 + $0xf1] sm:$0xff] }
 0x2ae   : > { %1836 = vst.msk [vmem:[#allocation3 + $0x90] sm:$0xff] %vm307_vm0, %v1827_v5  ;;  %v2217_v53 = vadd.f32 %v2216_v33, %v2188_v27  ;;  %v2245_v15 = vpop.f32.mrf.mxu0  ;;  %v8481_v4 = vpop.f32.mrf.mxu1  ;;  %v3304_v18 = vld [vmem:[#allocation3 + $0x87] sm:$0xff]  ;;  %v6126_v5 = vpack.i.bf16 %v8238_v29, %v8232_v8  ;;  %v5574_v8 = vld [vmem:[%s9912_s5 + $0x78] sm:$0xff] }
 0x2af   : > { %9981 = vst [vmem:[#allocation16_spill] sm:$0xff] %v8481_v4  ;;  %v8548_v27 = vld [vmem:[%s9912_s5 + $0x28] sm:$0xff]  ;;  %3728 = vmatpush.bf16.msrb.mxu0 %v5574_v8 }
 0x2b0   : > { %v2246_v58 = vadd.f32 %v2245_v15, %v2217_v53  ;;  %v8570_v53 = vld [vmem:[%s9912_s5 + $0x18] sm:$0xff]  ;;  %v1869_v32 = vld [vmem:[#allocation2 + $0x107] sm:$0xff] }
 0x2b1   : > { %6042 = vrot.lane.b32.xlu0 %v6041_v39, %s6631_s20  ;;  %6047 = vrot.lane.b32.xlu1 %v6046_v6, %s6632_s21 }
 0x2b2   : > { %6067 = vrot.lane.b32.xlu2 %v6066_v43, %s6630_s19  ;;  %5513 = vmatmul.msk.bf16.vlgmr.msrb.gmra.mxu1 %vm307_vm0, %v3566_v40  ;;  %vm2264_vm15 = vcmp.gt.f32.partialorder %v2246_v58, 0.0  ;;  %v2272_v1 = vmul.f32 0.2, %v2246_v58 }
 0x2b3   : > { %3729 = vmatpush.bf16.msrb.mxu0 %v5573_v47 }
 0x2b4   : > { %v2280_v31 = vsel %vm2264_vm15, %v2246_v58, %v2272_v1  ;;  %v3314_v39 = vld [vmem:[#allocation3 + $0xa8] sm:$0xff] }
 0x2b5   : > { %2289 = vst.msk [vmem:[#allocation3 + $0xb0] sm:$0xff] %vm307_vm0, %v2280_v31  ;;  %v8500_v21 = vld [vmem:[#allocation3 + $0x90] sm:$0xff]  ;;  %v3306_v6 = vld [vmem:[#allocation3 + $0xa7] sm:$0xff] }
 0x2b6   : > { %v8492_v2 = vpop.f32.mrf.mxu0  ;;  %v8494_v46 = vpop.f32.mrf.mxu1  ;;  %v3305_v10 = vld [vmem:[#allocation3 + $0x8f] sm:$0xff]  ;;  %v8510_v16 = vpack.i.bf16 %v8500_v21, %v8502_v20 }
 0x2b7   : > { %9982 = vst [vmem:[#allocation19_spill] sm:$0xff] %v8494_v46  ;;  %v6071_v7 = vpack.i.bf16 %v3305_v10, %v3304_v18  ;;  %v3298_v59 = vld [vmem:[#allocation3 + $0x91] sm:$0xff]  ;;  %v8604_v18 = vld [vmem:[%s9912_s5 + $0x8] sm:$0xff] }
 0x2b8   : > { %v8587_v31 = vld [vmem:[%s9912_s5 + $0x10] sm:$0xff] }
 0x2b9   : > { %6062 = vrot.lane.b32.xlu1 %v6026_v13, %s6632_s21  ;;  %6057 = vrot.lane.b32.xlu0 %v8432_v34, %s6631_s20  ;;  %v8520_v34 = vld [vmem:[%s9912_s5 + $0x38] sm:$0xff]  ;;  %v3297_v13 = vld [vmem:[#allocation3 + $0x89] sm:$0xff] }
 0x2ba   : > { %6082 = vrot.lane.b32.xlu2 %v6081_v24, %s6630_s19  ;;  %3699 = vmatpush.bf16.msrb.mxu2 %v8520_v34  ;;  %v8538_v44 = vpack.i.bf16 %v3298_v59, %v3297_v13  ;;  %v3572_v33 = vpack.c.bf16 %v3298_v59, %v3297_v13  ;;  %v9992_v24 = vld [vmem:[#allocation4_spill] sm:$0xff]  ;;  %v8685_v46 = vld [vmem:[#allocation2 + $0x190] sm:$0xff] }
 0x2bb   : > { %v9993_v10 = vpack.i.bf16 %v9991_v48, %v9992_v24  ;;  %v9997_v48 = vld [vmem:[#allocation9_spill] sm:$0xff] }
 0x2bc   : > { %v3315_v29 = vld [vmem:[#allocation3 + $0xb0] sm:$0xff] }
 0x2bd   : > { %v3307_v15 = vld [vmem:[#allocation3 + $0xaf] sm:$0xff]  ;;  %v8580_v58 = vpack.i.bf16 %v3315_v29, %v3314_v39 }
 0x2be   : > { %v8504_v30 = vpop.f32.mrf.mxu0  ;;  %v8506_v37 = vpop.f32.mrf.mxu1  ;;  %v8582_v1 = vpack.i.bf16 %v3307_v15, %v3306_v6  ;;  %v8606_v13 = vld [vmem:[#allocation3 + $0xa9] sm:$0xff]  ;;  %v8608_v59 = vld [vmem:[#allocation3 + $0xb1] sm:$0xff]  ;;  %v8621_v15 = vld [vmem:[%s9912_s5] sm:$0xff] }
 0x2bf   : > { %9983 = vst [vmem:[#allocation8_spill] sm:$0xff] %v8504_v30  ;;  %v5572_v29 = vld [vmem:[%s9912_s5 + $0x68] sm:$0xff]  ;;  %v3575_v39 = vpack.c.bf16 %v8608_v59, %v8606_v13  ;;  %v9996_v6 = vld [vmem:[#allocation11_spill] sm:$0xff]  ;;  %v6216_v30 = vpack.i.bf16 %v8608_v59, %v8606_v13 }
 0x2c0   : > { %9984 = vst [vmem:[#allocation18_spill] sm:$0xff] %v8506_v37  ;;  %v9998_v24 = vpack.i.bf16 %v9996_v6, %v9997_v48  ;;  %3730 = vmatpush.bf16.msrb.mxu0 %v5572_v29  ;;  %v10000_v6 = vld [vmem:[#allocation10_spill] sm:$0xff]  ;;  %v10001_v48 = vld [vmem:[#allocation12_spill] sm:$0xff] }
 0x2c1   : > { %6077 = vrot.lane.b32.xlu1 %v8510_v16, %s6632_s21  ;;  %6072 = vrot.lane.b32.xlu0 %v6071_v7, %s6631_s20 }
 0x2c2   : > { %6097 = vrot.lane.b32.xlu2 %v6031_v17, %s6630_s19  ;;  %5514 = vmatmul.msk.bf16.gmra.mxu1 %vm307_vm0, %v3569_v14  ;;  %v8530_v17 = vld [vmem:[%s9912_s5 + $0x30] sm:$0xff] }
 0x2c3   : > { %3700 = vmatpush.bf16.msrb.mxu2 %v8530_v17  ;;  %v1860_v14 = vld [vmem:[#allocation2 + $0xe9] sm:$0xff] }
 0x2c6   : > { %v8532_v26 = vpop.f32.mrf.mxu0  ;;  %v8534_v49 = vpop.f32.mrf.mxu1 }
 0x2c7   : > { %9985 = vst [vmem:[#allocation5_spill] sm:$0xff] %v8532_v26  ;;  %3701 = vmatpush.bf16.msrb.mxu2 %v8548_v27 }
 0x2c8   : > { %9986 = vst [vmem:[#allocation20_spill] sm:$0xff] %v8534_v49 }
 0x2c9   : > { %6092 = vrot.lane.b32.xlu1 %v6091_v11, %s6632_s21  ;;  %6087 = vrot.lane.b32.xlu0 %v6086_v63, %s6631_s20 }
 0x2ca   : > { %6112 = vrot.lane.b32.xlu2 %v8538_v44, %s6630_s19 }
 0x2cb   : > { %3702 = vmatpush.bf16.msrb.mxu2 %v8554_v56 }
 0x2ce   : > { %v8556_v3 = vpop.f32.mrf.mxu0  ;;  %v8558_v45 = vpop.f32.mrf.mxu1 }
 0x2cf   : > { %9987 = vst [vmem:[#allocation7_spill] sm:$0xff] %v8556_v3  ;;  %3703 = vmatpush.bf16.msrb.mxu2 %v8570_v53 }
 0x2d0   : > { %9988 = vst [vmem:[#allocation17_spill] sm:$0xff] %v8558_v45 }
 0x2d1   : > { %6107 = vrot.lane.b32.xlu1 %v6071_v7, %s6632_s21  ;;  %6102 = vrot.lane.b32.xlu0 %v6066_v43, %s6631_s20  ;;  %v1870_v7 = vld [vmem:[#allocation2 + $0x10f] sm:$0xff] }
 0x2d2   : > { %6127 = vrot.lane.b32.xlu2 %v6126_v5, %s6630_s19  ;;  %5515 = vmatmul.msk.bf16.gmra.mxu1 %vm307_vm0, %v3572_v33  ;;  %v6136_v5 = vpack.i.bf16 %v1870_v7, %v1869_v32  ;;  %v6131_v33 = vpack.i.bf16 %v1861_v22, %v1860_v14  ;;  %v8636_v7 = vld [vmem:[#allocation2 + $0x150] sm:$0xff]  ;;  %v8638_v14 = vld [vmem:[#allocation2 + $0x148] sm:$0xff] }
 0x2d3   : > { %3704 = vmatpush.bf16.msrb.mxu2 %v8587_v31 }
 0x2d6   : > { %v8576_v43 = vpop.f32.mrf.mxu0  ;;  %v8578_v40 = vpop.f32.mrf.mxu1 }
 0x2d7   : > { %9989 = vst [vmem:[#allocation15_spill] sm:$0xff] %v8576_v43  ;;  %3705 = vmatpush.bf16.msrb.mxu2 %v8604_v18 }
 0x2d8   : > { %9990 = vst [vmem:[#allocation21_spill] sm:$0xff] %v8578_v40 }
 0x2d9   : > { %6122 = vrot.lane.b32.xlu1 %v8580_v58, %s6632_s21  ;;  %6117 = vrot.lane.b32.xlu0 %v8582_v1, %s6631_s20 }
 0x2da   : > { %6142 = vrot.lane.b32.xlu2 %v9993_v10, %s6630_s19  ;;  %v5571_v10 = vld [vmem:[%s9912_s5 + $0x60] sm:$0xff] }
 0x2db   : > { %3706 = vmatpush.bf16.msrb.mxu2 %v8621_v15  ;;  %3731 = vmatpush.bf16.msrb.mxu0 %v5571_v10 }
 0x2de   : > { %v8611_v11 = vpop.f32.mrf.mxu0  ;;  %v8613_v63 = vpop.f32.mrf.mxu1 }
 0x2df   : > { %9994 = vst [vmem:[#allocation6_spill] sm:$0xff] %v8611_v11  ;;  %4210 = vmatpush.bf16.msra.mxu2 %v5574_v8  ;;  %v5978_v8 = vpop.permute.xlu2 %5977 }
 0x2e0   : > { %9995 = vst [vmem:[#allocation4_spill] sm:$0xff] %v8613_v63  ;;  %v5979_v49 = vunpack.i.l.bf16 %v5978_v8 }
 0x2e1   : > { %6137 = vrot.lane.b32.xlu1 %v6136_v5, %s6632_s21  ;;  %6132 = vrot.lane.b32.xlu0 %v6131_v33, %s6631_s20  ;;  %v6151_v5 = vpack.i.bf16 %v8636_v7, %v8638_v14  ;;  %v6146_v33 = vpack.i.bf16 %v8259_v19, %v8257_v52  ;;  %v5569_v52 = vld [vmem:[%s9912_s5 + $0x50] sm:$0xff] }
 0x2e2   : > { %6157 = vrot.lane.b32.xlu2 %v9998_v24, %s6630_s19  ;;  %5516 = vmatmul.msk.bf16.gmra.mxu1 %vm307_vm0, %v3575_v39  ;;  %v5570_v39 = vld [vmem:[%s9912_s5 + $0x58] sm:$0xff]  ;;  %v10002_v24 = vpack.i.bf16 %v10000_v6, %v10001_v48  ;;  %v8658_v19 = vld [vmem:[#allocation2 + $0x170] sm:$0xff] }
 0x2e3   : > { %4211 = vmatpush.bf16.msra.mxu2 %v5573_v47  ;;  %3732 = vmatpush.bf16.msrb.mxu0 %v5570_v39 }
 0x2e6   : > { %v8640_v22 = vpop.f32.mrf.mxu1  ;;  %v3103_v32 = vpop.f32.mrf.mxu0 }
 0x2e7   : > { %9999 = vst [vmem:[#allocation11_spill] sm:$0xff] %v8640_v22  ;;  %v2350_v22 = vld [vmem:[#allocation2 + $0x16f] sm:$0xff]  ;;  %4212 = vmatpush.bf16.msra.mxu2 %v5572_v29  ;;  %v3104_v47 = vadd.f32 %v8306_v35, %v3103_v32  ;;  %3733 = vmatpush.bf16.msrb.mxu0 %v5569_v52  ;;  %v8681_v37 = vpop.permute.xlu2 %5992 }
 0x2e8   : > { %v10005_v29 = vld [vmem:[#allocation14_spill] sm:$0xff]  ;;  %v10006_v32 = vld [vmem:[#allocation13_spill] sm:$0xff]  ;;  %v5994_v13 = vunpack.i.l.bf16 %v8681_v37 }
 0x2e9   : > { %6152 = vrot.lane.b32.xlu1 %v6151_v5, %s6632_s21  ;;  %6147 = vrot.lane.b32.xlu0 %v6146_v33, %s6631_s20  ;;  %v8661_v5 = vld [vmem:[#allocation2 + $0x168] sm:$0xff] }
 0x2ea   : > { %6172 = vrot.lane.b32.xlu2 %v10002_v24, %s6630_s19  ;;  %v2349_v33 = vld [vmem:[#allocation2 + $0x167] sm:$0xff]  ;;  %v6166_v6 = vpack.i.bf16 %v8658_v19, %v8661_v5 }
 0x2eb   : > { %v6161_v48 = vpack.i.bf16 %v2350_v22, %v2349_v33  ;;  %v5568_v24 = vld [vmem:[%s9912_s5 + $0x48] sm:$0xff]  ;;  %4213 = vmatpush.bf16.msra.mxu2 %v5571_v10  ;;  %v5567_v22 = vld [vmem:[%s9912_s5 + $0x40] sm:$0xff]  ;;  %v5980_v33 = vunpack.i.h.bf16 %v5978_v8 }
 0x2ec   : > { %3734 = vmatpush.bf16.msrb.mxu0 %v5568_v24  ;;  %v2351_v10 = vld [vmem:[#allocation2 + $0x187] sm:$0xff] }
 0x2ee   : > { %v8663_v63 = vpop.f32.mrf.mxu0  ;;  %v3132_v40 = vpop.f32.mrf.mxu1 }
 0x2ef   : > { %10003 = vst [vmem:[#allocation9_spill] sm:$0xff] %v8663_v63  ;;  %v8670_v45 = vadd.f32 %v3132_v40, %v3104_v47  ;;  %v10007_v63 = vpack.i.bf16 %v10005_v29, %v10006_v32  ;;  %v8683_v40 = vld [vmem:[#allocation2 + $0x188] sm:$0xff]  ;;  %4214 = vmatpush.bf16.msra.mxu2 %v5570_v39 }
 0x2f0   : > { %v2352_v47 = vld [vmem:[#allocation2 + $0x18f] sm:$0xff]  ;;  %v6181_v32 = vpack.i.bf16 %v8685_v46, %v8683_v40  ;;  %3735 = vmatpush.bf16.msrb.mxu0 %v5567_v22 }
 0x2f1   : > { %10004 = vst [vmem:[#allocation10_spill] sm:$0xff] %v8670_v45  ;;  %6167 = vrot.lane.b32.xlu1 %v6166_v6, %s6632_s21  ;;  %6162 = vrot.lane.b32.xlu0 %v6161_v48, %s6631_s20  ;;  %v5983_v6 = vpop.permute.xlu0 %5982  ;;  %v3251_v48 = vld [vmem:[#allocation3 + $0x7] sm:$0xff]  ;;  %v3252_v45 = vld [vmem:[#allocation3 + $0xf] sm:$0xff]  ;;  %v6176_v4 = vpack.i.bf16 %v2352_v47, %v2351_v10 }
 0x2f2   : > { %6187 = vrot.lane.b32.xlu2 %v10007_v63, %s6630_s19  ;;  %v5985_v8 = vunpack.i.h.bf16 %v5983_v6  ;;  %v5984_v11 = vunpack.i.l.bf16 %v5983_v6  ;;  %v3517_v43 = vsel %vm307_vm0, %v3252_v45, %v5980_v33  ;;  %v3516_v3 = vsel %vm307_vm0, %v3251_v48, %v5979_v49  ;;  %v2362_v45 = vld [vmem:[#allocation2 + $0x1b0] sm:$0xff] }
 0x2f3   : > { %4215 = vmatpush.bf16.msra.mxu2 %v5569_v52  ;;  %v2354_v49 = vld [vmem:[#allocation2 + $0x1af] sm:$0xff]  ;;  %v6008_v52 = vpop.permute.xlu2 %6007 }
 0x2f4   : > { %4245 = vmatpush.bf16.msra.mxu0 %v8391_v54  ;;  %v3525_v39 = vsel %vm1540_vm4, %v3517_v43, %v5985_v8  ;;  %v3524_v10 = vsel %vm1540_vm4, %v3516_v3, %v5984_v11  ;;  %v2353_v8 = vld [vmem:[#allocation2 + $0x1a7] sm:$0xff] }
 0x2f6   : > { %v3108_v63 = vpop.f32.mrf.mxu0  ;;  %v8687_v29 = vpop.f32.mrf.mxu1 }
 0x2f7   : > { %10008 = vst [vmem:[#allocation12_spill] sm:$0xff] %v8687_v29  ;;  %4216 = vmatpush.bf16.msra.mxu2 %v5568_v24  ;;  %v3109_v33 = vadd.f32 %v8306_v35, %v3108_v63  ;;  %v6191_v24 = vpack.i.bf16 %v2354_v49, %v2353_v8 }
 0x2f8   : > { %4246 = vmatpush.bf16.msra.mxu0 %v8428_v55 }
 0x2f9   : > { %6182 = vrot.lane.b32.xlu1 %v6181_v32, %s6632_s21  ;;  %6177 = vrot.lane.b32.xlu0 %v6176_v4, %s6631_s20 }
 0x2fa   : > { %6202 = vrot.lane.b32.xlu2 %v8510_v16, %s6630_s19  ;;  %v2361_v16 = vld [vmem:[#allocation2 + $0x1a8] sm:$0xff] }
 0x2fb   : > { %v5988_v47 = vpop.permute.xlu1 %5987  ;;  %v6196_v11 = vpack.i.bf16 %v2362_v45, %v2361_v16  ;;  %4217 = vmatpush.bf16.msra.mxu2 %v5567_v22 }
 0x2fc   : > { %v5990_v6 = vunpack.i.h.bf16 %v5988_v47  ;;  %v5989_v29 = vunpack.i.l.bf16 %v5988_v47  ;;  %v8706_v47 = vpop.f32.mrf.mxu2 }
 0x2fe   : > { %v3533_v4 = vsel %vm1549_vm5, %v3525_v39, %v5990_v6  ;;  %v3532_v48 = vsel %vm1549_vm5, %v3524_v10, %v5989_v29  ;;  %v8704_v43 = vpop.f32.mrf.mxu0  ;;  %v3137_v3 = vpop.f32.mrf.mxu1  ;;  %v5995_v10 = vunpack.i.h.bf16 %v8681_v37 }
 0x2ff   : > { %v3564_v32 = vpack.c.bf16 %v3533_v4, %v3532_v48  ;;  %v8708_v26 = vadd.f32 %v3137_v3, %v3109_v33  ;;  %v6023_v39 = vpop.permute.xlu2 %6022 }
 0x300   : > { %v3541_v37 = vsel %vm307_vm0, %v8376_v50, %v5995_v10  ;;  %v6010_v50 = vunpack.i.h.bf16 %v6008_v52 }
 0x301   : > { %3707 = vmatmul.bf16.vlgmr.msrb.gmra.mxu2 %v3564_v32  ;;  %6197 = vrot.lane.b32.xlu1 %v6196_v11, %s6632_s21  ;;  %v6009_v11 = vunpack.i.l.bf16 %v6008_v52 }
 0x302   : > { %6192 = vrot.lane.b32.xlu0 %v6191_v24, %s6631_s20  ;;  %6217 = vrot.lane.b32.xlu2 %v6216_v30, %s6630_s19 }
 0x303   : > { %4727 = vmatpush.bf16.msrb.mxu2 %v8391_v54 }
 0x304   : > { %v8723_v59 = vpop.f32.mrf.mxu2 }
 0x306   : > { %v3113_v63 = vpop.f32.mrf.mxu0  ;;  %v8716_v29 = vpop.f32.mrf.mxu1 }
 0x307   : > { %4728 = vmatpush.bf16.msrb.mxu2 %v8428_v55  ;;  %v3114_v49 = vadd.f32 %v8306_v35, %v3113_v63  ;;  %v6038_v8 = vpop.permute.xlu2 %6037 }
 0x309   : > { %6212 = vrot.lane.b32.xlu1 %v8582_v1, %s6632_s21  ;;  %v3540_v1 = vsel %vm307_vm0, %v8383_v60, %v5994_v13 }
 0x30a   : > { %6207 = vrot.lane.b32.xlu0 %v8538_v44, %s6631_s20  ;;  %6232 = vrot.lane.b32.xlu2 %v8580_v58, %s6630_s19  ;;  %v6003_v54 = vpop.permute.xlu1 %6002 }
 0x30b   : > { %v5998_v30 = vpop.permute.xlu0 %5997  ;;  %v6005_v22 = vunpack.i.h.bf16 %v6003_v54  ;;  %v6004_v55 = vunpack.i.l.bf16 %v6003_v54 }
 0x30c   : > { %v6000_v6 = vunpack.i.h.bf16 %v5998_v30  ;;  %v5999_v45 = vunpack.i.l.bf16 %v5998_v30  ;;  %v8743_v24 = vpop.f32.mrf.mxu2  ;;  %v3518_v30 = vsel %vm307_vm0, %v8354_v0, %v6009_v11 }
 0x30e   : > { %v3549_v33 = vsel %vm1540_vm4, %v3541_v37, %v6000_v6  ;;  %v3548_v44 = vsel %vm1540_vm4, %v3540_v1, %v5999_v45  ;;  %v3142_v48 = vpop.f32.mrf.mxu1  ;;  %v8738_v32 = vpop.f32.mrf.mxu0  ;;  %v6025_v1 = vunpack.i.h.bf16 %v6023_v39 }
 0x30f   : > { %v3557_v58 = vsel %vm1549_vm5, %v3549_v33, %v6005_v22  ;;  %v3556_v4 = vsel %vm1549_vm5, %v3548_v44, %v6004_v55  ;;  %v8740_v3 = vadd.f32 %v3142_v48, %v3114_v49  ;;  %v3519_v22 = vsel %vm307_vm0, %v8359_v28, %v6010_v50  ;;  %v6053_v28 = vpop.permute.xlu2 %6052 }
 0x310   : > { %v3565_v16 = vpack.c.bf16 %v3557_v58, %v3556_v4  ;;  %v6024_v49 = vunpack.i.l.bf16 %v6023_v39  ;;  %v3543_v50 = vsel %vm307_vm0, %v8410_v36, %v6025_v1  ;;  %v8766_v39 = vld [vmem:[%s9911_s4] ss:$0 sm:$0xff] }
 0x312   : > { %3736 = vmatmul.bf16.vlgmr.msrb.gmra.mxu0 %v3565_v16  ;;  %v6018_v35 = vpop.permute.xlu1 %6017 }
 0x313   : > { %v6013_v60 = vpop.permute.xlu0 %6012  ;;  %5145 = vmatpush.bf16.msrb.mxu0 %v8520_v34  ;;  %v6020_v13 = vunpack.i.h.bf16 %v6018_v35  ;;  %v6019_v54 = vunpack.i.l.bf16 %v6018_v35 }
 0x314   : > { %v6015_v63 = vunpack.i.h.bf16 %v6013_v60  ;;  %v6014_v10 = vunpack.i.l.bf16 %v6013_v60  ;;  %v8761_v11 = vpop.f32.mrf.mxu2 }
 0x316   : > { %v3527_v52 = vsel %vm1540_vm4, %v3519_v22, %v6015_v63  ;;  %v3526_v55 = vsel %vm1540_vm4, %v3518_v30, %v6014_v10  ;;  %v8751_v6 = vpop.f32.mrf.mxu1  ;;  %v3118_v33 = vpop.f32.mrf.mxu0  ;;  %v6039_v30 = vunpack.i.l.bf16 %v6038_v8 }
 0x317   : > { %v3534_v34 = vsel %vm1549_vm5, %v3526_v55, %v6019_v54  ;;  %v3535_v45 = vsel %vm1549_vm5, %v3527_v52, %v6020_v13  ;;  %5146 = vmatpush.bf16.msrb.mxu0 %v8530_v17  ;;  %v3542_v17 = vsel %vm307_vm0, %v8405_v61, %v6024_v49  ;;  %v6040_v54 = vunpack.i.h.bf16 %v6038_v8  ;;  %v1840_v55 = vld [vmem:[#allocation2 + $0xa7] sm:$0xff] }
 0x318   : > { %v3567_v37 = vpack.c.bf16 %v3535_v45, %v3534_v34  ;;  %v1841_v34 = vld [vmem:[#allocation2 + $0xaf] sm:$0xff] }
 0x31a   : > { %3712 = vmatmul.bf16.gmra.mxu2 %v3567_v37 }
 0x31b   : > { %v6028_v0 = vpop.permute.xlu0 %6027  ;;  %v6033_v44 = vpop.permute.xlu1 %6032  ;;  %5147 = vmatpush.bf16.msrb.mxu0 %v8548_v27  ;;  %v3119_v27 = vadd.f32 %v8766_v39, %v3118_v33  ;;  %v2107_v33 = vsel %vm307_vm0, %v1841_v34, %v6040_v54 }
 0x31c   : > { %v6030_v58 = vunpack.i.h.bf16 %v6028_v0  ;;  %v6029_v4 = vunpack.i.l.bf16 %v6028_v0  ;;  %v6035_v48 = vunpack.i.h.bf16 %v6033_v44  ;;  %v6034_v16 = vunpack.i.l.bf16 %v6033_v44  ;;  %v6068_v0 = vpop.permute.xlu2 %6067 }
 0x31e   : > { %v3550_v60 = vsel %vm1540_vm4, %v3542_v17, %v6029_v4  ;;  %v3551_v35 = vsel %vm1540_vm4, %v3543_v50, %v6030_v58  ;;  %v3147_v63 = vpop.f32.mrf.mxu1  ;;  %v6054_v50 = vunpack.i.l.bf16 %v6053_v28 }
 0x31f   : > { %v3558_v10 = vsel %vm1549_vm5, %v3550_v60, %v6034_v16  ;;  %v3559_v36 = vsel %vm1549_vm5, %v3551_v35, %v6035_v48  ;;  %5148 = vmatpush.bf16.msrb.mxu0 %v8554_v56  ;;  %v8774_v61 = vadd.f32 %v3147_v63, %v3119_v27  ;;  %v2106_v56 = vsel %vm307_vm0, %v1840_v55, %v6039_v30 }
 0x320   : > { %v3568_v13 = vpack.c.bf16 %v3559_v36, %v3558_v10  ;;  %v6055_v16 = vunpack.i.h.bf16 %v6053_v28  ;;  %v3520_v36 = vsel %vm307_vm0, %v8407_v25, %v6054_v50  ;;  %v6069_v55 = vunpack.i.l.bf16 %v6068_v0 }
 0x322   : > { %3741 = vmatmul.bf16.gmra.mxu0 %v3568_v13 }
 0x323   : > { %v6043_v22 = vpop.permute.xlu0 %6042  ;;  %v6048_v52 = vpop.permute.xlu1 %6047  ;;  %5149 = vmatpush.bf16.msrb.mxu0 %v8570_v53 }
 0x324   : > { %v6045_v45 = vunpack.i.h.bf16 %v6043_v22  ;;  %v6044_v37 = vunpack.i.l.bf16 %v6043_v22  ;;  %v6050_v1 = vunpack.i.h.bf16 %v6048_v52  ;;  %v6049_v49 = vunpack.i.l.bf16 %v6048_v52  ;;  %v8784_v53 = vpop.f32.mrf.mxu2 }
 0x325   : > { %v6070_v52 = vunpack.i.h.bf16 %v6068_v0 }
 0x326   : > { %v2114_v44 = vsel %vm1540_vm4, %v2106_v56, %v6044_v37  ;;  %v2115_v8 = vsel %vm1540_vm4, %v2107_v33, %v6045_v45  ;;  %v3544_v56 = vsel %vm307_vm0, %v8461_v51, %v6069_v55 }
 0x327   : > { %v2122_v58 = vsel %vm1549_vm5, %v2114_v44, %v6049_v49  ;;  %v2123_v4 = vsel %vm1549_vm5, %v2115_v8, %v6050_v1  ;;  %5150 = vmatpush.bf16.msrb.mxu0 %v8587_v31  ;;  %v3521_v31 = vsel %vm307_vm0, %v8412_v23, %v6055_v16  ;;  %v3545_v33 = vsel %vm307_vm0, %v8463_v42, %v6070_v52 }
 0x328   : > { %v2155_v48 = vpack.c.bf16 %v2123_v4, %v2122_v58 }
 0x32a   : > { %2189 = vmatmul.bf16.gmra.mxu3 %v2155_v48 }
 0x32b   : > { %v6063_v17 = vpop.permute.xlu1 %6062  ;;  %v6058_v27 = vpop.permute.xlu0 %6057  ;;  %5151 = vmatpush.bf16.msrb.mxu0 %v8604_v18 }
 0x32c   : > { %v6065_v60 = vunpack.i.h.bf16 %v6063_v17  ;;  %v6064_v35 = vunpack.i.l.bf16 %v6063_v17  ;;  %v6060_v63 = vunpack.i.h.bf16 %v6058_v27  ;;  %v6059_v10 = vunpack.i.l.bf16 %v6058_v27  ;;  %v6083_v18 = vpop.permute.xlu2 %6082  ;;  %v8796_v34 = vpop.f32.mrf.mxu2 }
 0x32d   : > { %v6085_v4 = vunpack.i.h.bf16 %v6083_v18  ;;  %v6084_v48 = vunpack.i.l.bf16 %v6083_v18 }
 0x32e   : > { %v3528_v13 = vsel %vm1540_vm4, %v3520_v36, %v6059_v10  ;;  %v3529_v54 = vsel %vm1540_vm4, %v3521_v31, %v6060_v63 }
 0x32f   : > { %v3536_v28 = vsel %vm1549_vm5, %v3528_v13, %v6064_v35  ;;  %v3537_v30 = vsel %vm1549_vm5, %v3529_v54, %v6065_v60  ;;  %5152 = vmatpush.bf16.msrb.mxu0 %v8621_v15  ;;  %v2109_v63 = vsel %vm307_vm0, %v8476_v57, %v6085_v4  ;;  %v2108_v10 = vsel %vm307_vm0, %v8474_v12, %v6084_v48 }
 0x330   : > { %v3570_v22 = vpack.c.bf16 %v3537_v30, %v3536_v28 }
 0x332   : > { %3717 = vmatmul.bf16.gmra.mxu2 %v3570_v22 }
 0x333   : > { %v6078_v25 = vpop.permute.xlu1 %6077  ;;  %v6073_v45 = vpop.permute.xlu0 %6072 }
 0x334   : > { %v6080_v23 = vunpack.i.h.bf16 %v6078_v25  ;;  %v6079_v37 = vunpack.i.l.bf16 %v6078_v25  ;;  %v6075_v1 = vunpack.i.h.bf16 %v6073_v45  ;;  %v6074_v49 = vunpack.i.l.bf16 %v6073_v45  ;;  %v6098_v16 = vpop.permute.xlu2 %6097  ;;  %v8806_v51 = vpop.f32.mrf.mxu2 }
 0x335   : > { %v6100_v30 = vunpack.i.h.bf16 %v6098_v16  ;;  %v6099_v18 = vunpack.i.l.bf16 %v6098_v16 }
 0x336   : > { %v3552_v15 = vsel %vm1540_vm4, %v3544_v56, %v6074_v49  ;;  %v3553_v44 = vsel %vm1540_vm4, %v3545_v33, %v6075_v1 }
 0x337   : > { %v3560_v0 = vsel %vm1549_vm5, %v3552_v15, %v6079_v37  ;;  %v3561_v8 = vsel %vm1549_vm5, %v3553_v44, %v6080_v23  ;;  %v3523_v12 = vsel %vm307_vm0, %v8459_v41, %v6100_v30  ;;  %v3522_v37 = vsel %vm307_vm0, %v8456_v38, %v6099_v18 }
 0x338   : > { %v3571_v58 = vpack.c.bf16 %v3561_v8, %v3560_v0 }
 0x33a   : > { %3746 = vmatmul.bf16.gmra.mxu0 %v3571_v58 }
 0x33b   : > { %v6093_v50 = vpop.permute.xlu1 %6092  ;;  %v6088_v17 = vpop.permute.xlu0 %6087 }
 0x33c   : > { %v6095_v27 = vunpack.i.h.bf16 %v6093_v50  ;;  %v6094_v42 = vunpack.i.l.bf16 %v6093_v50  ;;  %v6090_v60 = vunpack.i.h.bf16 %v6088_v17  ;;  %v6089_v35 = vunpack.i.l.bf16 %v6088_v17  ;;  %v6113_v55 = vpop.permute.xlu2 %6112  ;;  %v8822_v33 = vpop.f32.mrf.mxu2 }
 0x33d   : > { %v6115_v0 = vunpack.i.h.bf16 %v6113_v55  ;;  %v6114_v8 = vunpack.i.l.bf16 %v6113_v55 }
 0x33e   : > { %v2116_v36 = vsel %vm1540_vm4, %v2108_v10, %v6089_v35  ;;  %v2117_v31 = vsel %vm1540_vm4, %v2109_v63, %v6090_v60 }
 0x33f   : > { %v2124_v13 = vsel %vm1549_vm5, %v2116_v36, %v6094_v42  ;;  %v2125_v54 = vsel %vm1549_vm5, %v2117_v31, %v6095_v27  ;;  %v3547_v50 = vsel %vm307_vm0, %v8500_v21, %v6115_v0  ;;  %v3546_v17 = vsel %vm307_vm0, %v8502_v20, %v6114_v8  ;;  %v2331_v0 = vld [vmem:[#allocation2 + $0x130] sm:$0xff] }
 0x340   : > { %v2158_v28 = vpack.c.bf16 %v2125_v54, %v2124_v13 }
 0x342   : > { %2194 = vmatmul.bf16.gmra.mxu3 %v2158_v28 }
 0x343   : > { %v6108_v22 = vpop.permute.xlu1 %6107  ;;  %v6103_v52 = vpop.permute.xlu0 %6102 }
 0x344   : > { %v6110_v25 = vunpack.i.h.bf16 %v6108_v22  ;;  %v6109_v57 = vunpack.i.l.bf16 %v6108_v22  ;;  %v6105_v45 = vunpack.i.h.bf16 %v6103_v52  ;;  %v6104_v23 = vunpack.i.l.bf16 %v6103_v52  ;;  %v6128_v27 = vpop.permute.xlu2 %6127  ;;  %v8834_v36 = vpop.f32.mrf.mxu2 }
 0x345   : > { %v6130_v31 = vunpack.i.h.bf16 %v6128_v27  ;;  %v6129_v13 = vunpack.i.l.bf16 %v6128_v27 }
 0x346   : > { %v3530_v1 = vsel %vm1540_vm4, %v3522_v37, %v6104_v23  ;;  %v3531_v49 = vsel %vm1540_vm4, %v3523_v12, %v6105_v45 }
 0x347   : > { %v3538_v56 = vsel %vm1549_vm5, %v3530_v1, %v6109_v57  ;;  %v3539_v15 = vsel %vm1549_vm5, %v3531_v49, %v6110_v25  ;;  %v2111_v22 = vsel %vm307_vm0, %v8522_v62, %v6130_v31  ;;  %v2110_v52 = vsel %vm307_vm0, %v8525_v9, %v6129_v13  ;;  %v2330_v9 = vld [vmem:[#allocation2 + $0x128] sm:$0xff] }
 0x348   : > { %v3573_v44 = vpack.c.bf16 %v3539_v15, %v3538_v56 }
 0x34a   : > { %3722 = vmatmul.bf16.gmra.mxu2 %v3573_v44 }
 0x34b   : > { %v6123_v58 = vpop.permute.xlu1 %6122  ;;  %v6118_v4 = vpop.permute.xlu0 %6117 }
 0x34c   : > { %v6125_v41 = vunpack.i.h.bf16 %v6123_v58  ;;  %v6124_v48 = vunpack.i.l.bf16 %v6123_v58  ;;  %v6120_v16 = vunpack.i.h.bf16 %v6118_v4  ;;  %v6119_v38 = vunpack.i.l.bf16 %v6118_v4  ;;  %v6143_v12 = vpop.permute.xlu2 %6142  ;;  %v8844_v37 = vpop.f32.mrf.mxu2 }
 0x34d   : > { %v6145_v49 = vunpack.i.h.bf16 %v6143_v12  ;;  %v6144_v56 = vunpack.i.l.bf16 %v6143_v12 }
 0x34e   : > { %v3554_v42 = vsel %vm1540_vm4, %v3546_v17, %v6119_v38  ;;  %v3555_v60 = vsel %vm1540_vm4, %v3547_v50, %v6120_v16 }
 0x34f   : > { %v3562_v35 = vsel %vm1549_vm5, %v3554_v42, %v6124_v48  ;;  %v3563_v63 = vsel %vm1549_vm5, %v3555_v60, %v6125_v41  ;;  %v2588_v8 = vsel %vm307_vm0, %v2331_v0, %v6145_v49  ;;  %v2587_v58 = vsel %vm307_vm0, %v2330_v9, %v6144_v56 }
 0x350   : > { %v3574_v10 = vpack.c.bf16 %v3563_v63, %v3562_v35 }
 0x352   : > { %3751 = vmatmul.bf16.gmra.mxu0 %v3574_v10 }
 0x353   : > { %v6138_v54 = vpop.permute.xlu1 %6137  ;;  %v6133_v21 = vpop.permute.xlu0 %6132 }
 0x354   : > { %v6140_v28 = vunpack.i.h.bf16 %v6138_v54  ;;  %v6139_v30 = vunpack.i.l.bf16 %v6138_v54  ;;  %v6135_v20 = vunpack.i.h.bf16 %v6133_v21  ;;  %v6134_v18 = vunpack.i.l.bf16 %v6133_v21  ;;  %v8850_v38 = vpop.f32.mrf.mxu2  ;;  %v6158_v42 = vpop.permute.xlu2 %6157 }
 0x355   : > { %v6160_v35 = vunpack.i.h.bf16 %v6158_v42  ;;  %v6159_v63 = vunpack.i.l.bf16 %v6158_v42 }
 0x356   : > { %v2118_v55 = vsel %vm1540_vm4, %v2110_v52, %v6134_v18  ;;  %v2119_v25 = vsel %vm1540_vm4, %v2111_v22, %v6135_v20 }
 0x357   : > { %v2126_v57 = vsel %vm1549_vm5, %v2118_v55, %v6139_v30  ;;  %v2127_v45 = vsel %vm1549_vm5, %v2119_v25, %v6140_v28  ;;  %v2590_v21 = vsel %vm307_vm0, %v8636_v7, %v6160_v35  ;;  %v2589_v28 = vsel %vm307_vm0, %v8638_v14, %v6159_v63 }
 0x358   : > { %v2161_v23 = vpack.c.bf16 %v2127_v45, %v2126_v57 }
 0x35a   : > { %2199 = vmatmul.bf16.gmra.mxu3 %v2161_v23 }
 0x35b   : > { %v6148_v1 = vpop.permute.xlu0 %6147  ;;  %v6153_v62 = vpop.permute.xlu1 %6152 }
 0x35c   : > { %v6150_v15 = vunpack.i.h.bf16 %v6148_v1  ;;  %v6149_v44 = vunpack.i.l.bf16 %v6148_v1  ;;  %v6155_v4 = vunpack.i.h.bf16 %v6153_v62  ;;  %v6154_v41 = vunpack.i.l.bf16 %v6153_v62  ;;  %v8854_v54 = vpop.f32.mrf.mxu2  ;;  %v6173_v45 = vpop.permute.xlu2 %6172 }
 0x35d   : > { %v6175_v7 = vunpack.i.h.bf16 %v6173_v45  ;;  %v6174_v12 = vunpack.i.l.bf16 %v6173_v45 }
 0x35e   : > { %v2595_v48 = vsel %vm1540_vm4, %v2587_v58, %v6149_v44  ;;  %v2596_v16 = vsel %vm1540_vm4, %v2588_v8, %v6150_v15 }
 0x35f   : > { %v2603_v50 = vsel %vm1549_vm5, %v2595_v48, %v6154_v41  ;;  %v2604_v17 = vsel %vm1549_vm5, %v2596_v16, %v6155_v4  ;;  %v2592_v56 = vsel %vm307_vm0, %v8658_v19, %v6175_v7  ;;  %v2591_v62 = vsel %vm307_vm0, %v8661_v5, %v6174_v12  ;;  %v8876_v41 = vpop.f32.mrf.mxu0  ;;  %v8878_v48 = vpop.f32.mrf.mxu1  ;;  %v8883_v5 = vld [vmem:[%s9913_s6] ss:$0 sm:$0xff] }
 0x360   : > { %v2612_v27 = vpack.c.bf16 %v2604_v17, %v2603_v50 }
 0x363   : > { %v6163_v60 = vpop.permute.xlu0 %6162  ;;  %v6168_v10 = vpop.permute.xlu1 %6167 }
 0x364   : > { %v6165_v31 = vunpack.i.h.bf16 %v6163_v60  ;;  %v6164_v13 = vunpack.i.l.bf16 %v6163_v60  ;;  %v6170_v30 = vunpack.i.h.bf16 %v6168_v10  ;;  %v6169_v20 = vunpack.i.l.bf16 %v6168_v10  ;;  %v8864_v57 = vpop.f32.mrf.mxu2  ;;  %v6188_v16 = vpop.permute.xlu2 %6187 }
 0x365   : > { %v6189_v42 = vunpack.i.l.bf16 %v6188_v16 }
 0x366   : > { %v2597_v18 = vsel %vm1540_vm4, %v2589_v28, %v6164_v13  ;;  %v2598_v22 = vsel %vm1540_vm4, %v2590_v21, %v6165_v31 }
 0x367   : > { %v2605_v52 = vsel %vm1549_vm5, %v2597_v18, %v6169_v20  ;;  %v2606_v55 = vsel %vm1549_vm5, %v2598_v22, %v6170_v30  ;;  %v3766_v21 = vpop.f32.mrf.mxu1  ;;  %v2593_v30 = vsel %vm307_vm0, %v8683_v40, %v6189_v42  ;;  %v2822_v40 = vld [vmem:[#allocation2 + $0x1c9] sm:$0xff] }
 0x368   : > { %v2615_v25 = vpack.c.bf16 %v2606_v55, %v2605_v52 }
 0x36a   : > { %2672 = vmatmul.bf16.vlgmr.msrb.gmra.mxu3 %v2612_v27  ;;  %v6190_v27 = vunpack.i.h.bf16 %v6188_v16 }
 0x36b   : > { %v6178_v23 = vpop.permute.xlu0 %6177  ;;  %v6183_v1 = vpop.permute.xlu1 %6182 }
 0x36c   : > { %v6180_v14 = vunpack.i.h.bf16 %v6178_v23  ;;  %v6179_v49 = vunpack.i.l.bf16 %v6178_v23  ;;  %v6185_v15 = vunpack.i.h.bf16 %v6183_v1  ;;  %v6184_v44 = vunpack.i.l.bf16 %v6183_v1  ;;  %v8872_v8 = vpop.f32.mrf.mxu2  ;;  %v2823_v1 = vld [vmem:[#allocation2 + $0x1d1] sm:$0xff] }
 0x36d   : > { %v2594_v28 = vsel %vm307_vm0, %v8685_v46, %v6190_v27 }
 0x36e   : > { %v2599_v9 = vsel %vm1540_vm4, %v2591_v62, %v6179_v49  ;;  %v2600_v0 = vsel %vm1540_vm4, %v2592_v56, %v6180_v14  ;;  %v3072_v49 = vpack.c.bf16 %v2823_v1, %v2822_v40 }
 0x36f   : > { %v2607_v58 = vsel %vm1549_vm5, %v2599_v9, %v6184_v44  ;;  %v2608_v4 = vsel %vm1549_vm5, %v2600_v0, %v6185_v15  ;;  %v8896_v7 = vpop.f32.mrf.mxu1 }
 0x370   : > { %v2618_v19 = vpack.c.bf16 %v2608_v4, %v2607_v58 }
 0x373   : > { %v6198_v60 = vpop.permute.xlu1 %6197 }
 0x374   : > { %v6193_v50 = vpop.permute.xlu0 %6192  ;;  %v6200_v20 = vunpack.i.h.bf16 %v6198_v60  ;;  %v6199_v18 = vunpack.i.l.bf16 %v6198_v60  ;;  %v2825_v60 = vld [vmem:[#allocation2 + $0x1f1] sm:$0xff] }
 0x375   : > { %v6195_v35 = vunpack.i.h.bf16 %v6193_v50  ;;  %v6194_v63 = vunpack.i.l.bf16 %v6193_v50 }
 0x377   : > { %v2601_v52 = vsel %vm1540_vm4, %v2593_v30, %v6194_v63  ;;  %v2602_v55 = vsel %vm1540_vm4, %v2594_v28, %v6195_v35  ;;  %v8902_v14 = vpop.f32.mrf.mxu1 }
 0x378   : > { %v2610_v45 = vsel %vm1549_vm5, %v2602_v55, %v6200_v20  ;;  %v2826_v20 = vld [vmem:[#allocation2 + $0x209] sm:$0xff] }
 0x37a   : > { %2677 = vmatmul.bf16.gmra.mxu3 %v2615_v25  ;;  %v2609_v25 = vsel %vm1549_vm5, %v2601_v52, %v6199_v18 }
 0x37b   : > { %v2621_v23 = vpack.c.bf16 %v2610_v45, %v2609_v25  ;;  %v2827_v25 = vld [vmem:[#allocation2 + $0x211] sm:$0xff] }
 0x37f   : > { %v8910_v9 = vpop.f32.mrf.mxu1 }
 0x384   : > { %v3708_v17 = vpop.f32.mrf.mxu2 }
 0x385   : > { %v3709_v10 = vadd.f32 %v8883_v5, %v3708_v17  ;;  %v2824_v17 = vld [vmem:[#allocation2 + $0x1e9] sm:$0xff] }
 0x386   : > { %v3075_v63 = vpack.c.bf16 %v2825_v60, %v2824_v17  ;;  %v3078_v17 = vpack.c.bf16 %v2827_v25, %v2826_v20 }
 0x38a   : > { %2682 = vmatmul.bf16.gmra.mxu3 %v2618_v19 }
 0x38c   : > { %v8898_v46 = vpop.f32.mrf.mxu2 }
 0x38f   : > { %v3737_v31 = vpop.f32.mrf.mxu0 }
 0x390   : > { %v3738_v13 = vadd.f32 %v3737_v31, %v3709_v10 }
 0x392   : > { %v8890_v22 = vadd.f32 %v3766_v21, %v3738_v13 }
 0x394   : > { %vm3786_vm15 = vcmp.gt.f32.partialorder %v8890_v22, 0.0 }
 0x397   : > { %v8900_v12 = vpop.f32.mrf.mxu0 }
 0x39a   : > { %2687 = vmatmul.bf16.gmra.mxu3 %v2621_v23 }
 0x39d   : > { %v8904_v56 = vpop.f32.mrf.mxu2 }
 0x39f   : > { %v8907_v62 = vpop.f32.mrf.mxu0 }
 0x3a5   : > { %v8914_v4 = vpop.f32.mrf.mxu2 }
 0x3a7   : > { %v8916_v16 = vpop.f32.mrf.mxu0 }
 0x3aa   : > { %5437 = vmatmul.msk.bf16.vlgmr.msra.gmra.mxu3 %vm307_vm0, %v3072_v49 }
 0x3ad   : > { %v2190_v15 = vpop.f32.mrf.mxu3 }
 0x3ae   : > { %v2191_v44 = vadd.f32 %v8766_v39, %v2190_v15 }
 0x3b0   : > { %v2220_v0 = vadd.f32 %v8706_v47, %v2191_v44  ;;  %v8921_v47 = vpop.f32.mrf.mxu1 }
 0x3b2   : > { %v2249_v58 = vadd.f32 %v8492_v2, %v2220_v0  ;;  %v10009_v2 = vld [vmem:[#allocation8_spill] sm:$0xff] }
 0x3b4   : > { %vm2265_vm1 = vcmp.gt.f32.partialorder %v2249_v58, 0.0  ;;  %v2273_v19 = vmul.f32 0.2, %v2249_v58 }
 0x3b5   : > { %v2192_v50 = vpop.f32.mrf.mxu3  ;;  %v3718_v31 = vpop.f32.mrf.mxu2 }
 0x3b6   : > { %v2281_v27 = vsel %vm2265_vm1, %v2249_v58, %v2273_v19  ;;  %v2193_v42 = vadd.f32 %v8766_v39, %v2192_v50 }
 0x3b7   : > { %2290 = vst.msk [vmem:[#allocation3 + $0xc8] sm:$0xff] %vm307_vm0, %v2281_v27  ;;  %v8925_v21 = vpop.f32.mrf.mxu0  ;;  %v10010_v27 = vld [vmem:[#allocation5_spill] sm:$0xff] }
 0x3b8   : > { %v2222_v35 = vadd.f32 %v8723_v59, %v2193_v42  ;;  %v8928_v30 = vpop.f32.mrf.mxu1 }
 0x3ba   : > { %v2251_v10 = vadd.f32 %v10009_v2, %v2222_v35  ;;  %5438 = vmatmul.msk.bf16.gmra.mxu3 %vm307_vm0, %v3075_v63  ;;  %v3863_v35 = vld [vmem:[#allocation3 + $0xb1] sm:$0xff] }
 0x3bc   : > { %vm2266_vm2 = vcmp.gt.f32.partialorder %v2251_v10, 0.0  ;;  %v2274_v13 = vmul.f32 0.2, %v2251_v10 }
 0x3bd   : > { %v3720_v18 = vpop.f32.mrf.mxu2 }
 0x3be   : > { %v2282_v28 = vsel %vm2266_vm2, %v2251_v10, %v2274_v13  ;;  %v8930_v52 = vld [vmem:[#allocation3 + $0xc8] sm:$0xff] }
 0x3bf   : > { %2291 = vst.msk [vmem:[#allocation3 + $0xd0] sm:$0xff] %vm307_vm0, %v2282_v28  ;;  %v8932_v55 = vld [vmem:[#allocation3 + $0xc7] sm:$0xff]  ;;  %v3749_v49 = vpop.f32.mrf.mxu0 }
 0x3c0   : > { %v3781_v28 = vpop.f32.mrf.mxu1 }
 0x3c5   : > { %v2195_v59 = vpop.f32.mrf.mxu3 }
 0x3c6   : > { %v2196_v45 = vadd.f32 %v8766_v39, %v2195_v59  ;;  %v8935_v23 = vld [vmem:[#allocation3 + $0xd0] sm:$0xff] }
 0x3c7   : > { %v8937_v40 = vld [vmem:[#allocation3 + $0xcf] sm:$0xff]  ;;  %v6226_v15 = vpack.i.bf16 %v8935_v23, %v8930_v52 }
 0x3c8   : > { %v3886_v1 = vld [vmem:[#allocation3 + $0xc9] sm:$0xff]  ;;  %v6221_v44 = vpack.i.bf16 %v8937_v40, %v8932_v55  ;;  %v3887_v0 = vld [vmem:[#allocation3 + $0xd1] sm:$0xff]  ;;  %v2225_v58 = vadd.f32 %v8743_v24, %v2196_v45 }
 0x3c9   : > { %v8944_v19 = vpack.i.bf16 %v3887_v0, %v3886_v1  ;;  %v4159_v50 = vpack.c.bf16 %v3887_v0, %v3886_v1  ;;  %6227 = vrot.lane.b32.xlu1 %v6226_v15, %s6632_s21  ;;  %v3862_v24 = vld [vmem:[#allocation3 + $0xa9] sm:$0xff]  ;;  %v10011_v1 = vld [vmem:[#allocation7_spill] sm:$0xff] }
 0x3ca   : > { %6222 = vrot.lane.b32.xlu0 %v6221_v44, %s6631_s20  ;;  %v2254_v42 = vadd.f32 %v10010_v27, %v2225_v58  ;;  %5439 = vmatmul.msk.bf16.gmra.mxu3 %vm307_vm0, %v3078_v17  ;;  %v6236_v59 = vpack.i.bf16 %v3863_v35, %v3862_v24  ;;  %v3721_v58 = vadd.f32 %v8883_v5, %v3720_v18  ;;  %v2828_v17 = vld [vmem:[#allocation2 + $0x229] sm:$0xff]  ;;  %v2829_v27 = vld [vmem:[#allocation2 + $0x231] sm:$0xff] }
 0x3cb   : > { %6247 = vrot.lane.b32.xlu2 %v8944_v19, %s6630_s19  ;;  %5519 = vmatmul.msk.bf16.vlgmr.msra.gmra.mxu0 %vm307_vm0, %v4159_v50 }
 0x3cc   : > { %vm2267_vm3 = vcmp.gt.f32.partialorder %v2254_v42, 0.0  ;;  %v2275_v60 = vmul.f32 0.2, %v2254_v42 }
 0x3cd   : > { %v2197_v63 = vpop.f32.mrf.mxu3  ;;  %v3723_v2 = vpop.f32.mrf.mxu2 }
 0x3ce   : > { %v2283_v10 = vsel %vm2267_vm3, %v2254_v42, %v2275_v60  ;;  %v2198_v13 = vadd.f32 %v8766_v39, %v2197_v63  ;;  %v3724_v45 = vadd.f32 %v8883_v5, %v3723_v2  ;;  %v3719_v42 = vadd.f32 %v8883_v5, %v3718_v31 }
 0x3cf   : > { %2292 = vst.msk [vmem:[#allocation3 + $0xe8] sm:$0xff] %vm307_vm0, %v2283_v10  ;;  %v3752_v20 = vpop.f32.mrf.mxu0  ;;  %v3750_v63 = vadd.f32 %v3749_v49, %v3721_v58  ;;  %v3081_v2 = vpack.c.bf16 %v2829_v27, %v2828_v17  ;;  %v3783_v10 = vpop.f32.mrf.mxu1 }
 0x3d0   : > { %v2227_v25 = vadd.f32 %v8761_v11, %v2198_v13  ;;  %v3753_v60 = vadd.f32 %v3752_v20, %v3724_v45  ;;  %v3714_v13 = vadd.f32 %v8883_v5, %v8904_v56  ;;  %v3748_v31 = vadd.f32 %v8925_v21, %v3719_v42 }
 0x3d1   : > { %6242 = vrot.lane.b32.xlu1 %v6221_v44, %s6632_s21  ;;  %v3716_v44 = vadd.f32 %v8883_v5, %v8914_v4  ;;  %v3779_v45 = vadd.f32 %v8928_v30, %v3750_v63  ;;  %v3711_v4 = vadd.f32 %v8883_v5, %v8898_v46  ;;  %v10012_v63 = vld [vmem:[#allocation15_spill] sm:$0xff] }
 0x3d2   : > { %6237 = vrot.lane.b32.xlu0 %v6236_v59, %s6631_s20  ;;  %v2256_v0 = vadd.f32 %v10011_v1, %v2227_v25  ;;  %v3782_v20 = vadd.f32 %v3781_v28, %v3753_v60  ;;  %v3743_v1 = vadd.f32 %v8907_v62, %v3714_v13 }
 0x3d3   : > { %6262 = vrot.lane.b32.xlu2 %v6226_v15, %s6630_s19  ;;  %v3745_v25 = vadd.f32 %v8916_v16, %v3716_v44  ;;  %v3740_v16 = vadd.f32 %v8900_v12, %v3711_v4  ;;  %v3799_v12 = vmul.f32 0.2, %v3779_v45  ;;  %vm3791_vm9 = vcmp.gt.f32.partialorder %v3779_v45, 0.0 }
 0x3d4   : > { %vm2268_vm6 = vcmp.gt.f32.partialorder %v2256_v0, 0.0  ;;  %v2276_v50 = vmul.f32 0.2, %v2256_v0  ;;  %v3800_v28 = vmul.f32 0.2, %v3782_v20  ;;  %vm3792_vm8 = vcmp.gt.f32.partialorder %v3782_v20, 0.0 }
 0x3d5   : > { %v3725_v11 = vpop.f32.mrf.mxu2  ;;  %v3774_v62 = vadd.f32 %v8910_v9, %v3745_v25 }
 0x3d6   : > { %v2284_v24 = vsel %vm2268_vm6, %v2256_v0, %v2276_v50  ;;  %v3726_v35 = vadd.f32 %v8883_v5, %v3725_v11  ;;  %v3777_v0 = vadd.f32 %v8921_v47, %v3748_v31  ;;  %v8977_v58 = vld [vmem:[#allocation3 + $0xe8] sm:$0xff]  ;;  %v3808_v9 = vsel %vm3792_vm8, %v3782_v20, %v3800_v28  ;;  %v10014_v28 = vld [vmem:[#allocation16_spill] sm:$0xff] }
 0x3d7   : > { %2293 = vst.msk [vmem:[#allocation3 + $0xf0] sm:$0xff] %vm307_vm0, %v2284_v24  ;;  %v3754_v15 = vpop.f32.mrf.mxu0  ;;  %v8979_v21 = vld [vmem:[#allocation3 + $0xe7] sm:$0xff]  ;;  %vm3789_vm12 = vcmp.gt.f32.partialorder %v3774_v62, 0.0 }
 0x3d8   : > { %v3755_v18 = vadd.f32 %v3754_v15, %v3726_v35  ;;  %v3772_v35 = vadd.f32 %v8902_v14, %v3743_v1  ;;  %v3798_v44 = vmul.f32 0.2, %v3777_v0  ;;  %vm3790_vm10 = vcmp.gt.f32.partialorder %v3777_v0, 0.0  ;;  %v10013_v1 = vld [vmem:[#allocation6_spill] sm:$0xff] }
 0x3da   : > { %v3784_v59 = vadd.f32 %v3783_v10, %v3755_v18  ;;  %5440 = vmatmul.msk.bf16.gmra.mxu3 %vm307_vm0, %v3081_v2  ;;  %v3807_v2 = vsel %vm3791_vm9, %v3779_v45, %v3799_v12  ;;  %v3797_v18 = vmul.f32 0.2, %v3774_v62  ;;  %v3806_v13 = vsel %vm3790_vm10, %v3777_v0, %v3798_v44  ;;  %v10015_v12 = vld [vmem:[#allocation19_spill] sm:$0xff] }
 0x3db   : > { %v3796_v31 = vmul.f32 0.2, %v3772_v35  ;;  %vm3788_vm13 = vcmp.gt.f32.partialorder %v3772_v35, 0.0 }
 0x3dc   : > { %v3801_v49 = vmul.f32 0.2, %v3784_v59  ;;  %vm3793_vm7 = vcmp.gt.f32.partialorder %v3784_v59, 0.0  ;;  %v3805_v25 = vsel %vm3789_vm12, %v3774_v62, %v3797_v18  ;;  %v6578_v18 = vld [vmem:[%s9912_s5 + $0x28] sm:$0xff] }
 0x3dd   : > { %v2200_v56 = vpop.f32.mrf.mxu3  ;;  %v3804_v45 = vsel %vm3788_vm13, %v3772_v35, %v3796_v31 }
 0x3de   : > { %v2201_v30 = vadd.f32 %v8766_v39, %v2200_v56  ;;  %v3809_v50 = vsel %vm3793_vm7, %v3784_v59, %v3801_v49  ;;  %v8983_v17 = vld [vmem:[#allocation3 + $0xf0] sm:$0xff]  ;;  %v3794_v49 = vmul.f32 0.2, %v8890_v22 }
 0x3df   : > { %v8985_v5 = vld [vmem:[#allocation3 + $0xef] sm:$0xff]  ;;  %3826 = vmatpush.msrb.mxu3 %v3809_v50  ;;  %v6256_v47 = vpack.i.bf16 %v8983_v17, %v8977_v58  ;;  %v3810_v50 = vld [vmem:[%s9914_s7] sm:$0xff] }
 0x3e0   : > { %v3888_v46 = vld [vmem:[#allocation3 + $0xe9] sm:$0xff]  ;;  %v6251_v27 = vpack.i.bf16 %v8985_v5, %v8979_v21  ;;  %v3889_v42 = vld [vmem:[#allocation3 + $0xf1] sm:$0xff]  ;;  %v2230_v60 = vadd.f32 %v8784_v53, %v2201_v30  ;;  %v3769_v53 = vadd.f32 %v8896_v7, %v3740_v16  ;;  %v3802_v30 = vsel %vm3786_vm15, %v8890_v22, %v3794_v49  ;;  %v6203_v49 = vpop.permute.xlu2 %6202 }
 0x3e1   : > { %v8993_v11 = vpack.i.bf16 %v3889_v42, %v3888_v46  ;;  %v4162_v24 = vpack.c.bf16 %v3889_v42, %v3888_v46  ;;  %6257 = vrot.lane.b32.xlu1 %v6256_v47, %s6632_s21  ;;  %3827 = vmatpush.msrb.mxu3 %v3808_v9  ;;  %v6577_v42 = vld [vmem:[%s9912_s5 + $0x30] sm:$0xff] }
 0x3e2   : > { %6252 = vrot.lane.b32.xlu0 %v6251_v27, %s6631_s20  ;;  %v2259_v15 = vadd.f32 %v10012_v63, %v2230_v60  ;;  %v3795_v7 = vmul.f32 0.2, %v3769_v53  ;;  %vm3787_vm14 = vcmp.gt.f32.partialorder %v3769_v53, 0.0  ;;  %v2647_v60 = vadd.f32 %v8766_v39, %v10015_v12 }
 0x3e3   : > { %6277 = vrot.lane.b32.xlu2 %v8993_v11, %s6630_s19  ;;  %5520 = vmatmul.msk.bf16.gmra.mxu0 %vm307_vm0, %v4162_v24 }
 0x3e4   : > { %vm2269_vm11 = vcmp.gt.f32.partialorder %v2259_v15, 0.0  ;;  %v2277_v14 = vmul.f32 0.2, %v2259_v15  ;;  %3828 = vmatpush.msrb.mxu3 %v3807_v2  ;;  %v3803_v56 = vsel %vm3787_vm14, %v3769_v53, %v3795_v7  ;;  %v10016_v7 = vld [vmem:[#allocation18_spill] sm:$0xff] }
 0x3e5   : > { %v2202_v10 = vpop.f32.mrf.mxu3 }
 0x3e6   : > { %v2285_v20 = vsel %vm2269_vm11, %v2259_v15, %v2277_v14  ;;  %v2203_v59 = vadd.f32 %v8766_v39, %v2202_v10  ;;  %3829 = vmatpush.msrb.mxu3 %v3806_v13 }
 0x3e7   : > { %2294 = vst.msk [vmem:[#allocation3 + $0x108] sm:$0xff] %vm307_vm0, %v2285_v20 }
 0x3e8   : > { %v2232_v4 = vadd.f32 %v8796_v34, %v2203_v59  ;;  %3830 = vmatpush.msrb.mxu3 %v3805_v25  ;;  %v2645_v34 = vadd.f32 %v8766_v39, %v10014_v28  ;;  %v6580_v28 = vld [vmem:[%s9912_s5 + $0x18] sm:$0xff] }
 0x3e9   : > { %6272 = vrot.lane.b32.xlu1 %v6251_v27, %s6632_s21 }
 0x3ea   : > { %6267 = vrot.lane.b32.xlu0 %v8944_v19, %s6631_s20  ;;  %v2261_v0 = vadd.f32 %v10013_v1, %v2232_v4  ;;  %3831 = vmatpush.msrb.mxu3 %v3804_v45  ;;  %v2650_v4 = vadd.f32 %v8766_v39, %v10016_v7 }
 0x3eb   : > { %6292 = vrot.lane.b32.xlu2 %v6256_v47, %s6630_s19  ;;  %v6576_v47 = vld [vmem:[%s9912_s5 + $0x38] sm:$0xff] }
 0x3ec   : > { %vm2270_vm1 = vcmp.gt.f32.partialorder %v2261_v0, 0.0  ;;  %v2278_v16 = vmul.f32 0.2, %v2261_v0  ;;  %3832 = vmatpush.msrb.mxu3 %v3803_v56  ;;  %v6208_v56 = vpop.permute.xlu0 %6207 }
 0x3ed   : > { %v2673_v19 = vpop.f32.mrf.mxu3 }
 0x3ee   : > { %v2286_v46 = vsel %vm2270_vm1, %v2261_v0, %v2278_v16  ;;  %v2674_v62 = vadd.f32 %v2673_v19, %v2645_v34  ;;  %3833 = vmatpush.msrb.mxu3 %v3802_v30  ;;  %v9031_v9 = vld [vmem:[#allocation3 + $0x107] sm:$0xff]  ;;  %v6205_v34 = vunpack.i.h.bf16 %v6203_v49  ;;  %v6204_v19 = vunpack.i.l.bf16 %v6203_v49  ;;  %v6213_v30 = vpop.permute.xlu1 %6212 }
 0x3ef   : > { %2295 = vst.msk [vmem:[#allocation3 + $0x110] sm:$0xff] %vm307_vm0, %v2286_v46  ;;  %5517 = vmatmul.msk.f32.vlgmr.msrb.gmra.mxu3 %vm1540_vm4, %v3810_v50  ;;  %v9033_v44 = vld [vmem:[#allocation3 + $0x108] sm:$0xff]  ;;  %v6210_v50 = vunpack.i.h.bf16 %v6208_v56  ;;  %v6209_v46 = vunpack.i.l.bf16 %v6208_v56 }
 0x3f0   : > { %4181 = vmatpush.bf16.msra.mxu3 %v6576_v47  ;;  %v2703_v27 = vadd.f32 %v8806_v51, %v2674_v62  ;;  %v3811_v51 = vld [vmem:[%s9914_s7 + $0x8] sm:$0xff]  ;;  %v6581_v47 = vld [vmem:[%s9912_s5 + $0x10] sm:$0xff] }
 0x3f2   : > { %vm2722_vm2 = vcmp.gt.f32.partialorder %v2703_v27, 0.0  ;;  %v2730_v22 = vmul.f32 0.2, %v2703_v27 }
 0x3f4   : > { %4182 = vmatpush.bf16.msra.mxu3 %v6577_v42  ;;  %v2738_v24 = vsel %vm2722_vm2, %v2703_v27, %v2730_v22  ;;  %v10017_v27 = vld [vmem:[#allocation20_spill] sm:$0xff] }
 0x3f5   : > { %2747 = vst.msk [vmem:[#allocation3 + $0x128] sm:$0xff] %vm307_vm0, %v2738_v24  ;;  %v2675_v35 = vpop.f32.mrf.mxu3  ;;  %v2652_v22 = vadd.f32 %v8766_v39, %v10017_v27 }
 0x3f6   : > { %v2676_v63 = vadd.f32 %v2675_v35, %v2647_v60  ;;  %v9038_v15 = vld [vmem:[#allocation3 + $0x10f] sm:$0xff]  ;;  %v6583_v35 = vld [vmem:[#allocation3 + $0x87] sm:$0xff] }
 0x3f7   : > { %v9040_v53 = vld [vmem:[#allocation3 + $0x110] sm:$0xff]  ;;  %v6281_v14 = vpack.i.bf16 %v9038_v15, %v9031_v9  ;;  %5518 = vmatmul.msk.f32.gmra.mxu3 %vm1540_vm4, %v3811_v51  ;;  %v4109_v51 = vsel %vm307_vm0, %v6583_v35, %v6204_v19 }
 0x3f8   : > { %v3890_v2 = vld [vmem:[#allocation3 + $0x109] sm:$0xff]  ;;  %4183 = vmatpush.bf16.msra.mxu3 %v6578_v18  ;;  %v9049_v10 = vpack.i.bf16 %v9040_v53, %v9033_v44  ;;  %v3891_v13 = vld [vmem:[#allocation3 + $0x111] sm:$0xff]  ;;  %v2705_v31 = vadd.f32 %v8822_v33, %v2676_v63  ;;  %v6579_v33 = vld [vmem:[%s9912_s5 + $0x20] sm:$0xff]  ;;  %v6215_v63 = vunpack.i.h.bf16 %v6213_v30 }
 0x3f9   : > { %v9052_v20 = vpack.i.bf16 %v3891_v13, %v3890_v2  ;;  %v4165_v59 = vpack.c.bf16 %v3891_v13, %v3890_v2  ;;  %6282 = vrot.lane.b32.xlu0 %v6281_v14, %s6631_s20  ;;  %v6214_v2 = vunpack.i.l.bf16 %v6213_v30 }
 0x3fa   : > { %6287 = vrot.lane.b32.xlu1 %v9049_v10, %s6632_s21  ;;  %vm2723_vm3 = vcmp.gt.f32.partialorder %v2705_v31, 0.0  ;;  %v2731_v25 = vmul.f32 0.2, %v2705_v31 }
 0x3fb   : > { %6307 = vrot.lane.b32.xlu2 %v9052_v20, %s6630_s19  ;;  %5521 = vmatmul.msk.bf16.gmra.mxu0 %vm307_vm0, %v4165_v59 }
 0x3fc   : > { %4184 = vmatpush.bf16.msra.mxu3 %v6579_v33  ;;  %v2739_v45 = vsel %vm2723_vm3, %v2705_v31, %v2731_v25  ;;  %v4117_v31 = vsel %vm1540_vm4, %v4109_v51, %v6209_v46  ;;  %v9090_v33 = vld [vmem:[#allocation3 + $0x128] sm:$0xff]  ;;  %v6586_v46 = vld [vmem:[%s9912_s5 + $0x78] sm:$0xff] }
 0x3fd   : > { %2748 = vst.msk [vmem:[#allocation3 + $0x130] sm:$0xff] %vm307_vm0, %v2739_v45  ;;  %v2678_v1 = vpop.f32.mrf.mxu3  ;;  %v9092_v7 = vld [vmem:[#allocation3 + $0x127] sm:$0xff]  ;;  %v4125_v56 = vsel %vm1549_vm5, %v4117_v31, %v6214_v2 }
 0x3fe   : > { %v2679_v0 = vadd.f32 %v2678_v1, %v2650_v4  ;;  %v6584_v4 = vld [vmem:[%s9912_s5 + $0x8] sm:$0xff] }
 0x400   : > { %4185 = vmatpush.bf16.msra.mxu3 %v6580_v28  ;;  %v2708_v16 = vadd.f32 %v8834_v36, %v2679_v0  ;;  %v6582_v36 = vld [vmem:[#allocation3 + $0x8f] sm:$0xff] }
 0x401   : > { %6297 = vrot.lane.b32.xlu0 %v8993_v11, %s6631_s20  ;;  %v4110_v42 = vsel %vm307_vm0, %v6582_v36, %v6205_v34 }
 0x402   : > { %6302 = vrot.lane.b32.xlu1 %v6281_v14, %s6632_s21  ;;  %vm2724_vm6 = vcmp.gt.f32.partialorder %v2708_v16, 0.0  ;;  %v2732_v62 = vmul.f32 0.2, %v2708_v16  ;;  %v4118_v59 = vsel %vm1540_vm4, %v4110_v42, %v6210_v50 }
 0x403   : > { %v4126_v28 = vsel %vm1549_vm5, %v4118_v59, %v6215_v63  ;;  %v6588_v63 = vld [vmem:[%s9912_s5 + $0x68] sm:$0xff] }
 0x404   : > { %4186 = vmatpush.bf16.msra.mxu3 %v6581_v47  ;;  %v2740_v12 = vsel %vm2724_vm6, %v2708_v16, %v2732_v62  ;;  %v4366_v60 = vld [vmem:[#allocation3 + $0x129] sm:$0xff]  ;;  %v4367_v24 = vld [vmem:[#allocation3 + $0x131] sm:$0xff]  ;;  %v6585_v16 = vld [vmem:[%s9912_s5] sm:$0xff]  ;;  %v4157_v30 = vpack.c.bf16 %v4126_v28, %v4125_v56 }
 0x405   : > { %v9080_v11 = vld [vmem:[#allocation3 + $0x130] sm:$0xff]  ;;  %2749 = vst.msk [vmem:[#allocation3 + $0x148] sm:$0xff] %vm307_vm0, %v2740_v12  ;;  %v2680_v18 = vpop.f32.mrf.mxu3  ;;  %v9084_v14 = vpack.i.bf16 %v4367_v24, %v4366_v60  ;;  %v4168_v0 = vpack.c.bf16 %v4367_v24, %v4366_v60  ;;  %v10020_v60 = vld [vmem:[#allocation21_spill] sm:$0xff]  ;;  %v9167_v56 = vld [vmem:[%s9911_s4] ss:$0 sm:$0xff] }
 0x406   : > { %v9086_v13 = vld [vmem:[#allocation3 + $0x12f] sm:$0xff]  ;;  %v2681_v25 = vadd.f32 %v2680_v18, %v2652_v22  ;;  %v9101_v45 = vpack.i.bf16 %v9080_v11, %v9090_v33  ;;  %v2657_v24 = vadd.f32 %v8766_v39, %v10020_v60  ;;  %v10021_v28 = vld [vmem:[#allocation4_spill] sm:$0xff] }
 0x407   : > { %6322 = vrot.lane.b32.xlu2 %v9084_v14, %s6630_s19  ;;  %v6311_v49 = vpack.i.bf16 %v9086_v13, %v9092_v7  ;;  %v6587_v22 = vld [vmem:[%s9912_s5 + $0x70] sm:$0xff]  ;;  %v6593_v60 = vld [vmem:[%s9912_s5 + $0x48] sm:$0xff] }
 0x408   : > { %4187 = vmatpush.bf16.msra.mxu3 %v6584_v4  ;;  %v2710_v1 = vadd.f32 %v8844_v37, %v2681_v25  ;;  %v10018_v37 = vld [vmem:[#allocation17_spill] sm:$0xff] }
 0x409   : > { %6312 = vrot.lane.b32.xlu0 %v6311_v49, %s6631_s20  ;;  %v2655_v19 = vadd.f32 %v8766_v39, %v10018_v37 }
 0x40a   : > { %6317 = vrot.lane.b32.xlu1 %v9101_v45, %s6632_s21  ;;  %vm2725_vm7 = vcmp.gt.f32.partialorder %v2710_v1, 0.0  ;;  %v2733_v34 = vmul.f32 0.2, %v2710_v1 }
 0x40b   : > { %5522 = vmatmul.msk.bf16.gmra.mxu0 %vm307_vm0, %v4168_v0 }
 0x40c   : > { %4188 = vmatpush.bf16.msra.mxu3 %v6585_v16  ;;  %v2741_v50 = vsel %vm2725_vm7, %v2710_v1, %v2733_v34  ;;  %v9127_v42 = vld [vmem:[#allocation3 + $0x148] sm:$0xff]  ;;  %v6589_v1 = vld [vmem:[%s9912_s5 + $0x60] sm:$0xff]  ;;  %v2660_v34 = vadd.f32 %v9167_v56, %v10021_v28 }
 0x40d   : > { %2750 = vst.msk [vmem:[#allocation3 + $0x150] sm:$0xff] %vm307_vm0, %v2741_v50  ;;  %v2683_v62 = vpop.f32.mrf.mxu3  ;;  %v9129_v12 = vld [vmem:[#allocation3 + $0x147] sm:$0xff]  ;;  %v6592_v50 = vld [vmem:[%s9912_s5 + $0x50] sm:$0xff] }
 0x40e   : > { %v2684_v47 = vadd.f32 %v2683_v62, %v2655_v19  ;;  %10019 = vst [vmem:[#allocation14_spill] sm:$0xff] %v9129_v12  ;;  %v6595_v28 = vld [vmem:[%s9912_s5 + $0x88] sm:$0xff] }
 0x40f   : > { %4189 = vmatmul.bf16.vlgmr.msra.gmra.mxu3 %v4157_v30  ;;  %6337 = vrot.lane.b32.xlu2 %v9049_v10, %s6630_s19 }
 0x410   : > { %4692 = vmatpush.bf16.msrb.mxu3 %v6586_v46  ;;  %v2713_v27 = vadd.f32 %v8850_v38, %v2684_v47 }
 0x412   : > { %vm2726_vm8 = vcmp.gt.f32.partialorder %v2713_v27, 0.0  ;;  %v2734_v36 = vmul.f32 0.2, %v2713_v27 }
 0x414   : > { %4693 = vmatpush.bf16.msrb.mxu3 %v6587_v22  ;;  %v2742_v35 = vsel %vm2726_vm8, %v2713_v27, %v2734_v36  ;;  %v9133_v51 = vld [vmem:[#allocation3 + $0x150] sm:$0xff] }
 0x415   : > { %v9135_v10 = vld [vmem:[#allocation3 + $0x14f] sm:$0xff]  ;;  %2751 = vst.msk [vmem:[#allocation3 + $0x168] sm:$0xff] %vm307_vm0, %v2742_v35  ;;  %v2685_v2 = vpop.f32.mrf.mxu3  ;;  %v9145_v18 = vpack.i.bf16 %v9133_v51, %v9127_v42 }
 0x416   : > { %v9137_v38 = vld [vmem:[#allocation3 + $0x149] sm:$0xff]  ;;  %v6326_v39 = vpack.i.bf16 %v9135_v10, %v9129_v12  ;;  %v9149_v31 = vld [vmem:[#allocation3 + $0x151] sm:$0xff]  ;;  %v2686_v59 = vadd.f32 %v2685_v2, %v2657_v24 }
 0x417   : > { %v9153_v25 = vpack.i.bf16 %v9149_v31, %v9137_v38  ;;  %6332 = vrot.lane.b32.xlu1 %v9145_v18, %s6632_s21 }
 0x418   : > { %4694 = vmatpush.bf16.msrb.mxu3 %v6588_v63  ;;  %6327 = vrot.lane.b32.xlu0 %v6326_v39, %s6631_s20  ;;  %v2715_v4 = vadd.f32 %v8854_v54, %v2686_v59  ;;  %v6591_v54 = vld [vmem:[%s9912_s5 + $0x58] sm:$0xff] }
 0x419   : > { %6352 = vrot.lane.b32.xlu2 %v9153_v25, %s6630_s19 }
 0x41a   : > { %vm2727_vm9 = vcmp.gt.f32.partialorder %v2715_v4, 0.0  ;;  %v2735_v0 = vmul.f32 0.2, %v2715_v4 }
 0x41c   : > { %4695 = vmatpush.bf16.msrb.mxu3 %v6589_v1  ;;  %v2743_v16 = vsel %vm2727_vm9, %v2715_v4, %v2735_v0  ;;  %v9186_v47 = vld [vmem:[#allocation3 + $0x168] sm:$0xff]  ;;  %v6594_v0 = vld [vmem:[%s9912_s5 + $0x40] sm:$0xff] }
 0x41d   : > { %2752 = vst.msk [vmem:[#allocation3 + $0x170] sm:$0xff] %vm307_vm0, %v2743_v16  ;;  %v2688_v37 = vpop.f32.mrf.mxu3 }
 0x41e   : > { %v2689_v19 = vadd.f32 %v2688_v37, %v2660_v34  ;;  %v6218_v34 = vpop.permute.xlu2 %6217  ;;  %v6596_v37 = vld [vmem:[%s9912_s5 + $0x80] sm:$0xff] }
 0x41f   : > { %6347 = vrot.lane.b32.xlu1 %v6311_v49, %s6632_s21  ;;  %v9188_v49 = vld [vmem:[#allocation3 + $0x167] sm:$0xff] }
 0x420   : > { %4696 = vmatpush.bf16.msrb.mxu3 %v6591_v54  ;;  %6342 = vrot.lane.b32.xlu0 %v9052_v20, %s6631_s20  ;;  %v2718_v30 = vadd.f32 %v8864_v57, %v2689_v19  ;;  %10022 = vst [vmem:[#allocation13_spill] sm:$0xff] %v9188_v49  ;;  %v10023_v20 = vld [vmem:[#allocation11_spill] sm:$0xff]  ;;  %v10025_v19 = vld [vmem:[#allocation10_spill] sm:$0xff] }
 0x421   : > { %6367 = vrot.lane.b32.xlu2 %v9101_v45, %s6630_s19  ;;  %v2662_v57 = vadd.f32 %v9167_v56, %v10023_v20  ;;  %v10026_v20 = vld [vmem:[#allocation9_spill] sm:$0xff] }
 0x422   : > { %vm2728_vm10 = vcmp.gt.f32.partialorder %v2718_v30, 0.0  ;;  %v2736_v62 = vmul.f32 0.2, %v2718_v30 }
 0x424   : > { %4697 = vmatpush.bf16.msrb.mxu3 %v6592_v50  ;;  %v2744_v27 = vsel %vm2728_vm10, %v2718_v30, %v2736_v62  ;;  %v9192_v22 = vld [vmem:[#allocation3 + $0x170] sm:$0xff] }
 0x425   : > { %v9194_v45 = vld [vmem:[#allocation3 + $0x16f] sm:$0xff]  ;;  %2753 = vst.msk [vmem:[#allocation3 + $0x188] sm:$0xff] %vm307_vm0, %v2744_v27  ;;  %v2690_v24 = vpop.f32.mrf.mxu3  ;;  %v9204_v35 = vpack.i.bf16 %v9192_v22, %v9186_v47 }
 0x426   : > { %10024 = vst [vmem:[#allocation8_spill] sm:$0xff] %v9194_v45  ;;  %v9196_v36 = vld [vmem:[#allocation3 + $0x169] sm:$0xff]  ;;  %v9208_v63 = vpack.i.bf16 %v9194_v45, %v9188_v49  ;;  %v9210_v2 = vld [vmem:[#allocation3 + $0x171] sm:$0xff]  ;;  %v2691_v59 = vadd.f32 %v2690_v24, %v2662_v57  ;;  %v3106_v57 = vadd.f32 %v9167_v56, %v10026_v20  ;;  %v10029_v24 = vld [vmem:[#allocation12_spill] sm:$0xff]  ;;  %v6219_v20 = vunpack.i.l.bf16 %v6218_v34 }
 0x427   : > { %v9214_v4 = vpack.i.bf16 %v9210_v2, %v9196_v36  ;;  %6362 = vrot.lane.b32.xlu1 %v9204_v35, %s6632_s21  ;;  %v6598_v45 = vld [vmem:[#allocation3 + $0xa8] sm:$0xff] }
 0x428   : > { %4698 = vmatpush.bf16.msrb.mxu3 %v6593_v60  ;;  %6357 = vrot.lane.b32.xlu0 %v9208_v63, %s6631_s20  ;;  %v2720_v1 = vadd.f32 %v8872_v8, %v2691_v59  ;;  %v9249_v59 = vpop.permute.xlu2 %6232 }
 0x429   : > { %6382 = vrot.lane.b32.xlu2 %v9214_v4, %s6630_s19 }
 0x42a   : > { %vm2729_vm11 = vcmp.gt.f32.partialorder %v2720_v1, 0.0  ;;  %v2737_v16 = vmul.f32 0.2, %v2720_v1 }
 0x42c   : > { %4699 = vmatpush.bf16.msrb.mxu3 %v6594_v0  ;;  %v2745_v54 = vsel %vm2729_vm11, %v2720_v1, %v2737_v16  ;;  %v9244_v60 = vld [vmem:[#allocation3 + $0x188] sm:$0xff] }
 0x42d   : > { %2754 = vst.msk [vmem:[#allocation3 + $0x190] sm:$0xff] %vm307_vm0, %v2745_v54  ;;  %v3161_v8 = vpop.f32.mrf.mxu3 }
 0x42e   : > { %v3162_v30 = vadd.f32 %v3161_v8, %v10025_v19  ;;  %10027 = vst [vmem:[#allocation5_spill] sm:$0xff] %v9244_v60 }
 0x42f   : > { %6377 = vrot.lane.b32.xlu1 %v6326_v39, %s6632_s21  ;;  %v9246_v39 = vld [vmem:[#allocation3 + $0x187] sm:$0xff] }
 0x430   : > { %5209 = vmatpush.bf16.msra.mxu3 %v6595_v28  ;;  %6372 = vrot.lane.b32.xlu0 %v9084_v14, %s6631_s20  ;;  %vm3181_vm12 = vcmp.gt.f32.partialorder %v3162_v30, 0.0  ;;  %v3189_v50 = vmul.f32 0.2, %v3162_v30  ;;  %10028 = vst [vmem:[#allocation7_spill] sm:$0xff] %v9246_v39  ;;  %v3135_v14 = vadd.f32 %v10029_v24, %v3106_v57 }
 0x431   : > { %6397 = vrot.lane.b32.xlu2 %v9145_v18, %s6630_s19 }
 0x432   : > { %v3197_v27 = vsel %vm3181_vm12, %v3162_v30, %v3189_v50  ;;  %v6220_v50 = vunpack.i.h.bf16 %v6218_v34 }
 0x433   : > { %3206 = vst.msk [vmem:[#allocation3 + $0x1a8] sm:$0xff] %vm307_vm0, %v3197_v27 }
 0x434   : > { %5210 = vmatpush.bf16.msra.mxu3 %v6596_v37  ;;  %v9251_v1 = vld [vmem:[#allocation3 + $0x190] sm:$0xff] }
 0x435   : > { %10030 = vst [vmem:[#allocation15_spill] sm:$0xff] %v9251_v1  ;;  %v9253_v18 = vld [vmem:[#allocation3 + $0x18f] sm:$0xff]  ;;  %v3163_v28 = vpop.f32.mrf.mxu3  ;;  %v9259_v16 = vpack.i.bf16 %v9251_v1, %v9244_v60  ;;  %v4133_v60 = vsel %vm307_vm0, %v6598_v45, %v6219_v20 }
 0x436   : > { %10031 = vst [vmem:[#allocation6_spill] sm:$0xff] %v9253_v18  ;;  %v9255_v0 = vld [vmem:[#allocation3 + $0x189] sm:$0xff]  ;;  %v9263_v54 = vpack.i.bf16 %v9253_v18, %v9246_v39  ;;  %v9265_v8 = vld [vmem:[#allocation3 + $0x191] sm:$0xff]  ;;  %v3164_v37 = vadd.f32 %v3163_v28, %v3135_v14  ;;  %v9278_v14 = vpop.permute.xlu2 %6247 }
 0x437   : > { %v9269_v19 = vpack.i.bf16 %v9265_v8, %v9255_v0  ;;  %6392 = vrot.lane.b32.xlu1 %v9259_v16, %s6632_s21  ;;  %v6597_v18 = vld [vmem:[#allocation3 + $0xb0] sm:$0xff]  ;;  %v4647_v45 = vpack.c.bf16 %v9265_v8, %v9255_v0 }
 0x438   : > { %6387 = vrot.lane.b32.xlu0 %v9263_v54, %s6631_s20  ;;  %vm3182_vm13 = vcmp.gt.f32.partialorder %v3164_v37, 0.0  ;;  %v3190_v30 = vmul.f32 0.2, %v3164_v37  ;;  %v4134_v49 = vsel %vm307_vm0, %v6597_v18, %v6220_v50  ;;  %v6599_v20 = vld [vmem:[#allocation3 + $0xaf] sm:$0xff] }
 0x439   : > { %6412 = vrot.lane.b32.xlu2 %v9269_v19, %s6630_s19 }
 0x43a   : > { %v3198_v57 = vsel %vm3182_vm13, %v3164_v37, %v3190_v30 }
 0x43b   : > { %3207 = vst.msk [vmem:[#allocation3 + $0x1b0] sm:$0xff] %vm307_vm0, %v3198_v57  ;;  %v6228_v27 = vpop.permute.xlu1 %6227 }
 0x43c   : > { %v6223_v24 = vpop.permute.xlu0 %6222  ;;  %v6230_v28 = vunpack.i.h.bf16 %v6228_v27  ;;  %v6229_v62 = vunpack.i.l.bf16 %v6228_v27 }
 0x43d   : > { %v6225_v46 = vunpack.i.h.bf16 %v6223_v24  ;;  %v6224_v39 = vunpack.i.l.bf16 %v6223_v24  ;;  %v3166_v1 = vpop.f32.mrf.mxu3 }
 0x43e   : > { %v3167_v30 = vadd.f32 %v3166_v1, %v8708_v26  ;;  %v6235_v26 = vunpack.i.h.bf16 %v9249_v59 }
 0x43f   : > { %v4141_v34 = vsel %vm1540_vm4, %v4133_v60, %v6224_v39  ;;  %v4142_v37 = vsel %vm1540_vm4, %v4134_v49, %v6225_v46  ;;  %6407 = vrot.lane.b32.xlu1 %v9208_v63, %s6632_s21  ;;  %v3111_v46 = vadd.f32 %v9167_v56, %v8704_v43  ;;  %v6234_v49 = vunpack.i.l.bf16 %v9249_v59  ;;  %v9305_v59 = vld [vmem:[#allocation3 + $0x1a8] sm:$0xff] }
 0x440   : > { %v4149_v57 = vsel %vm1549_vm5, %v4141_v34, %v6229_v62  ;;  %v4150_v12 = vsel %vm1549_vm5, %v4142_v37, %v6230_v28  ;;  %vm3183_vm14 = vcmp.gt.f32.partialorder %v3167_v30, 0.0  ;;  %v3191_v18 = vmul.f32 0.2, %v3167_v30  ;;  %6402 = vrot.lane.b32.xlu0 %v9153_v25, %s6631_s20  ;;  %v6600_v28 = vld [vmem:[#allocation3 + $0xa7] sm:$0xff] }
 0x441   : > { %v4158_v27 = vpack.c.bf16 %v4150_v12, %v4149_v57  ;;  %6427 = vrot.lane.b32.xlu2 %v9204_v35, %s6630_s19  ;;  %v3140_v62 = vadd.f32 %v8716_v29, %v3111_v46  ;;  %v4112_v24 = vsel %vm307_vm0, %v6599_v20, %v6235_v26  ;;  %v4111_v34 = vsel %vm307_vm0, %v6600_v28, %v6234_v49  ;;  %v9313_v57 = vpop.permute.xlu2 %6262 }
 0x442   : > { %v3199_v63 = vsel %vm3183_vm14, %v3167_v30, %v3191_v18  ;;  %v9299_v12 = vld [vmem:[#allocation3 + $0x1b0] sm:$0xff]  ;;  %v9311_v30 = vld [vmem:[#allocation3 + $0x1a7] sm:$0xff]  ;;  %v6250_v28 = vunpack.i.h.bf16 %v9278_v14 }
 0x443   : > { %4218 = vmatmul.bf16.vlgmr.msra.gmra.mxu2 %v4158_v27  ;;  %3208 = vst.msk [vmem:[#allocation3 + $0x1c8] sm:$0xff] %vm307_vm0, %v3199_v63  ;;  %v6243_v25 = vpop.permute.xlu1 %6242  ;;  %v9303_v60 = vld [vmem:[#allocation3 + $0x1af] sm:$0xff]  ;;  %v6421_v29 = vpack.i.bf16 %v9299_v12, %v9305_v59 }
 0x444   : > { %v6238_v35 = vpop.permute.xlu0 %6237  ;;  %v6245_v43 = vunpack.i.h.bf16 %v6243_v25  ;;  %v6244_v39 = vunpack.i.l.bf16 %v6243_v25  ;;  %v6416_v63 = vpack.i.bf16 %v9303_v60, %v9311_v30 }
 0x445   : > { %v6240_v1 = vunpack.i.h.bf16 %v6238_v35  ;;  %v6239_v50 = vunpack.i.l.bf16 %v6238_v35  ;;  %v3168_v37 = vpop.f32.mrf.mxu3 }
 0x446   : > { %v3169_v46 = vadd.f32 %v3168_v37, %v3140_v62  ;;  %v9326_v62 = vld [vmem:[#allocation3 + $0x1a9] sm:$0xff] }
 0x447   : > { %v4119_v27 = vsel %vm1540_vm4, %v4111_v34, %v6239_v50  ;;  %v4120_v18 = vsel %vm1540_vm4, %v4112_v24, %v6240_v1  ;;  %6422 = vrot.lane.b32.xlu1 %v6421_v29, %s6632_s21  ;;  %v9328_v1 = vld [vmem:[#allocation3 + $0x1b1] sm:$0xff]  ;;  %v6249_v34 = vunpack.i.l.bf16 %v9278_v14 }
 0x448   : > { %v4127_v26 = vsel %vm1549_vm5, %v4119_v27, %v6244_v39  ;;  %v4128_v49 = vsel %vm1549_vm5, %v4120_v18, %v6245_v43  ;;  %vm3184_vm15 = vcmp.gt.f32.partialorder %v3169_v46, 0.0  ;;  %v3192_v25 = vmul.f32 0.2, %v3169_v46  ;;  %6417 = vrot.lane.b32.xlu0 %v6416_v63, %s6631_s20 }
 0x449   : > { %6442 = vrot.lane.b32.xlu2 %v9259_v16, %s6630_s19  ;;  %v4160_v35 = vpack.c.bf16 %v4128_v49, %v4127_v26  ;;  %v9330_v20 = vpop.permute.xlu2 %6277  ;;  %v9334_v43 = vpack.i.bf16 %v9328_v1, %v9326_v62  ;;  %v4135_v14 = vsel %vm307_vm0, %v8930_v52, %v6249_v34  ;;  %v6264_v52 = vunpack.i.l.bf16 %v9313_v57 }
 0x44a   : > { %v3200_v50 = vsel %vm3184_vm15, %v3169_v46, %v3192_v25 }
 0x44b   : > { %4194 = vmatmul.bf16.gmra.mxu3 %v4160_v35  ;;  %3209 = vst.msk [vmem:[#allocation3 + $0x1d0] sm:$0xff] %vm307_vm0, %v3200_v50  ;;  %v4136_v35 = vsel %vm307_vm0, %v8935_v23, %v6250_v28 }
 0x44d   : > { %v3171_v39 = vpop.f32.mrf.mxu3 }
 0x44e   : > { %v3172_v24 = vadd.f32 %v3171_v39, %v8740_v3  ;;  %v3116_v3 = vadd.f32 %v9167_v56, %v8738_v32 }
 0x44f   : > { %6437 = vrot.lane.b32.xlu1 %v9263_v54, %s6632_s21 }
 0x450   : > { %6432 = vrot.lane.b32.xlu0 %v9214_v4, %s6631_s20  ;;  %vm3185_vm1 = vcmp.gt.f32.partialorder %v3172_v24, 0.0  ;;  %v3193_v37 = vmul.f32 0.2, %v3172_v24  ;;  %v3145_v25 = vadd.f32 %v8751_v6, %v3116_v3 }
 0x451   : > { %6457 = vrot.lane.b32.xlu2 %v9334_v43, %s6630_s19 }
 0x452   : > { %v3201_v27 = vsel %vm3185_vm1, %v3172_v24, %v3193_v37  ;;  %v9367_v34 = vld [vmem:[#allocation3 + $0x1d0] sm:$0xff] }
 0x453   : > { %v6258_v54 = vpop.permute.xlu1 %6257  ;;  %3210 = vst.msk [vmem:[#allocation3 + $0x1e8] sm:$0xff] %vm307_vm0, %v3201_v27  ;;  %v6265_v27 = vunpack.i.h.bf16 %v9313_v57 }
 0x454   : > { %v6253_v18 = vpop.permute.xlu0 %6252  ;;  %v6260_v46 = vunpack.i.h.bf16 %v6258_v54  ;;  %v6259_v26 = vunpack.i.l.bf16 %v6258_v54  ;;  %v9360_v54 = vpop.permute.xlu2 %6292 }
 0x455   : > { %v6255_v4 = vunpack.i.h.bf16 %v6253_v18  ;;  %v6254_v49 = vunpack.i.l.bf16 %v6253_v18  ;;  %v3173_v39 = vpop.f32.mrf.mxu3 }
 0x456   : > { %v3174_v24 = vadd.f32 %v3173_v39, %v3145_v25  ;;  %v9376_v25 = vld [vmem:[#allocation3 + $0x1c8] sm:$0xff] }
 0x457   : > { %v4144_v50 = vsel %vm1540_vm4, %v4136_v35, %v6255_v4  ;;  %v4143_v32 = vsel %vm1540_vm4, %v4135_v14, %v6254_v49  ;;  %6452 = vrot.lane.b32.xlu1 %v6416_v63, %s6632_s21  ;;  %v9371_v4 = vld [vmem:[#allocation3 + $0x1c9] sm:$0xff]  ;;  %v4114_v35 = vsel %vm307_vm0, %v8937_v40, %v6265_v27  ;;  %v4113_v14 = vsel %vm307_vm0, %v8932_v55, %v6264_v52 }
 0x458   : > { %v4151_v37 = vsel %vm1549_vm5, %v4143_v32, %v6259_v26  ;;  %6447 = vrot.lane.b32.xlu0 %v9269_v19, %s6631_s20  ;;  %v4152_v6 = vsel %vm1549_vm5, %v4144_v50, %v6260_v46  ;;  %vm3186_vm2 = vcmp.gt.f32.partialorder %v3174_v24, 0.0  ;;  %v3194_v23 = vmul.f32 0.2, %v3174_v24  ;;  %v9369_v26 = vld [vmem:[#allocation3 + $0x1cf] sm:$0xff]  ;;  %v9384_v32 = vld [vmem:[#allocation3 + $0x1c7] sm:$0xff] }
 0x459   : > { %6472 = vrot.lane.b32.xlu2 %v6421_v29, %s6630_s19  ;;  %v4161_v28 = vpack.c.bf16 %v4152_v6, %v4151_v37  ;;  %v9373_v19 = vld [vmem:[#allocation3 + $0x1d1] sm:$0xff]  ;;  %v6466_v50 = vpack.i.bf16 %v9367_v34, %v9376_v25  ;;  %v6461_v6 = vpack.i.bf16 %v9369_v26, %v9384_v32 }
 0x45a   : > { %v3202_v63 = vsel %vm3186_vm2, %v3174_v24, %v3194_v23  ;;  %v9392_v23 = vpack.i.bf16 %v9373_v19, %v9371_v4 }
 0x45b   : > { %4223 = vmatmul.bf16.gmra.mxu2 %v4161_v28  ;;  %v6273_v18 = vpop.permute.xlu1 %6272  ;;  %3211 = vst.msk [vmem:[#allocation3 + $0x1f0] sm:$0xff] %vm307_vm0, %v3202_v63 }
 0x45c   : > { %v6268_v3 = vpop.permute.xlu0 %6267  ;;  %v6275_v57 = vunpack.i.h.bf16 %v6273_v18  ;;  %v6274_v49 = vunpack.i.l.bf16 %v6273_v18  ;;  %v9400_v28 = vpop.permute.xlu2 %6307 }
 0x45d   : > { %v6270_v29 = vunpack.i.h.bf16 %v6268_v3  ;;  %v6269_v46 = vunpack.i.l.bf16 %v6268_v3  ;;  %v3176_v37 = vpop.f32.mrf.mxu3 }
 0x45e   : > { %v3177_v40 = vadd.f32 %v3176_v37, %v8774_v61  ;;  %v3121_v61 = vadd.f32 %v9167_v56, %v8876_v41  ;;  %v6279_v41 = vunpack.i.l.bf16 %v9330_v20 }
 0x45f   : > { %v4122_v39 = vsel %vm1540_vm4, %v4114_v35, %v6270_v29  ;;  %v4121_v24 = vsel %vm1540_vm4, %v4113_v14, %v6269_v46  ;;  %6467 = vrot.lane.b32.xlu1 %v6466_v50, %s6632_s21 }
 0x460   : > { %v4129_v55 = vsel %vm1549_vm5, %v4121_v24, %v6274_v49  ;;  %v4130_v27 = vsel %vm1549_vm5, %v4122_v39, %v6275_v57  ;;  %6462 = vrot.lane.b32.xlu0 %v6461_v6, %s6631_s20  ;;  %vm3187_vm3 = vcmp.gt.f32.partialorder %v3177_v40, 0.0  ;;  %v3195_v3 = vmul.f32 0.2, %v3177_v40 }
 0x461   : > { %6487 = vrot.lane.b32.xlu2 %v9392_v23, %s6630_s19  ;;  %v4163_v63 = vpack.c.bf16 %v4130_v27, %v4129_v55  ;;  %v3150_v29 = vadd.f32 %v8878_v48, %v3121_v61  ;;  %v6280_v49 = vunpack.i.h.bf16 %v9330_v20  ;;  %v9428_v55 = vld [vmem:[#allocation3 + $0x1e8] sm:$0xff]  ;;  %v4137_v27 = vsel %vm307_vm0, %v8977_v58, %v6279_v41 }
 0x462   : > { %v3203_v18 = vsel %vm3187_vm3, %v3177_v40, %v3195_v3  ;;  %v9417_v14 = vld [vmem:[#allocation3 + $0x1f0] sm:$0xff] }
 0x463   : > { %4199 = vmatmul.bf16.gmra.mxu3 %v4163_v63  ;;  %3212 = vst.msk [vmem:[#allocation3 + $0x208] sm:$0xff] %vm307_vm0, %v3203_v18  ;;  %v9419_v37 = vld [vmem:[#allocation3 + $0x1ef] sm:$0xff]  ;;  %v6496_v61 = vpack.i.bf16 %v9417_v14, %v9428_v55  ;;  %v9434_v18 = vld [vmem:[#allocation3 + $0x1e7] sm:$0xff] }
 0x464   : > { %v9411_v35 = vpop.permute.xlu2 %6322  ;;  %v9423_v40 = vld [vmem:[#allocation3 + $0x1f1] sm:$0xff] }
 0x465   : > { %v3178_v46 = vpop.f32.mrf.mxu3 }
 0x466   : > { %v3179_v57 = vadd.f32 %v3178_v46, %v3150_v29  ;;  %v6491_v46 = vpack.i.bf16 %v9419_v37, %v9434_v18 }
 0x467   : > { %6482 = vrot.lane.b32.xlu1 %v6461_v6, %s6632_s21  ;;  %v9421_v6 = vld [vmem:[#allocation3 + $0x1e9] sm:$0xff] }
 0x468   : > { %6477 = vrot.lane.b32.xlu0 %v9334_v43, %s6631_s20  ;;  %vm3188_vm6 = vcmp.gt.f32.partialorder %v3179_v57, 0.0  ;;  %v3196_v56 = vmul.f32 0.2, %v3179_v57  ;;  %v4138_v43 = vsel %vm307_vm0, %v8983_v17, %v6280_v49 }
 0x469   : > { %6502 = vrot.lane.b32.xlu2 %v6466_v50, %s6630_s19 }
 0x46a   : > { %v3204_v48 = vsel %vm3188_vm6, %v3179_v57, %v3196_v56  ;;  %v9442_v57 = vpack.i.bf16 %v9423_v40, %v9421_v6 }
 0x46b   : > { %v6283_v39 = vpop.permute.xlu0 %6282  ;;  %3213 = vst.msk [vmem:[#allocation3 + $0x210] sm:$0xff] %vm307_vm0, %v3204_v48  ;;  %v6295_v48 = vunpack.i.h.bf16 %v9360_v54 }
 0x46c   : > { %v6288_v24 = vpop.permute.xlu1 %6287  ;;  %v6285_v20 = vunpack.i.h.bf16 %v6283_v39  ;;  %v6284_v50 = vunpack.i.l.bf16 %v6283_v39  ;;  %v6294_v39 = vunpack.i.l.bf16 %v9360_v54 }
 0x46d   : > { %v6290_v63 = vunpack.i.h.bf16 %v6288_v24  ;;  %v6289_v3 = vunpack.i.l.bf16 %v6288_v24  ;;  %v9455_v24 = vpop.permute.xlu2 %6337  ;;  %v4116_v54 = vsel %vm307_vm0, %v8985_v5, %v6295_v48  ;;  %v6310_v5 = vunpack.i.h.bf16 %v9400_v28 }
 0x46e   : > { %v4145_v29 = vsel %vm1540_vm4, %v4137_v27, %v6284_v50  ;;  %v4146_v17 = vsel %vm1540_vm4, %v4138_v43, %v6285_v20  ;;  %v6309_v48 = vunpack.i.l.bf16 %v9400_v28 }
 0x46f   : > { %6497 = vrot.lane.b32.xlu1 %v6496_v61, %s6632_s21  ;;  %v4153_v58 = vsel %vm1549_vm5, %v4145_v29, %v6289_v3  ;;  %v4154_v49 = vsel %vm1549_vm5, %v4146_v17, %v6290_v63  ;;  %v4115_v17 = vsel %vm307_vm0, %v8979_v21, %v6294_v39  ;;  %v4140_v28 = vsel %vm307_vm0, %v9040_v53, %v6310_v5 }
 0x470   : > { %6492 = vrot.lane.b32.xlu0 %v6491_v46, %s6631_s20  ;;  %v4164_v56 = vpack.c.bf16 %v4154_v49, %v4153_v58 }
 0x471   : > { %6517 = vrot.lane.b32.xlu2 %v9442_v57, %s6630_s19 }
 0x472   : > { %4228 = vmatmul.bf16.gmra.mxu2 %v4164_v56  ;;  %v3835_v29 = vpop.f32.mrf.mxu3  ;;  %v9478_v39 = vld [vmem:[#allocation3 + $0x210] sm:$0xff] }
 0x473   : > { %v6298_v20 = vpop.permute.xlu0 %6297  ;;  %3841 = vst.msk [vmem:[%s9460_s28] sm:$0xff] %vm307_vm0, %v3835_v29 }
 0x474   : > { %v6303_v43 = vpop.permute.xlu1 %6302  ;;  %v6300_v63 = vunpack.i.h.bf16 %v6298_v20  ;;  %v6299_v3 = vunpack.i.l.bf16 %v6298_v20 }
 0x475   : > { %v6305_v50 = vunpack.i.h.bf16 %v6303_v43  ;;  %v6304_v27 = vunpack.i.l.bf16 %v6303_v43 }
 0x476   : > { %v4123_v58 = vsel %vm1540_vm4, %v4115_v17, %v6299_v3  ;;  %v4124_v49 = vsel %vm1540_vm4, %v4116_v54, %v6300_v63  ;;  %v4862_v63 = vld [vmem:[#allocation3 + $0x20f] sm:$0xff] }
 0x477   : > { %6512 = vrot.lane.b32.xlu1 %v6491_v46, %s6632_s21  ;;  %v4131_v56 = vsel %vm1549_vm5, %v4123_v58, %v6304_v27  ;;  %v4132_v43 = vsel %vm1549_vm5, %v4124_v49, %v6305_v50  ;;  %v9480_v27 = vld [vmem:[#allocation3 + $0x209] sm:$0xff]  ;;  %v9482_v50 = vld [vmem:[#allocation3 + $0x211] sm:$0xff]  ;;  %v4139_v58 = vsel %vm307_vm0, %v9033_v44, %v6309_v48  ;;  %v9490_v49 = vpop.permute.xlu2 %6352 }
 0x478   : > { %6507 = vrot.lane.b32.xlu0 %v9392_v23, %s6631_s20  ;;  %v4166_v21 = vpack.c.bf16 %v4132_v43, %v4131_v56  ;;  %v9484_v17 = vld [vmem:[#allocation3 + $0x208] sm:$0xff]  ;;  %v6546_v41 = vpack.i.bf16 %v9482_v50, %v9480_v27 }
 0x479   : > { %6532 = vrot.lane.b32.xlu2 %v6496_v61, %s6630_s19  ;;  %v6526_v56 = vpack.i.bf16 %v9478_v39, %v9484_v17  ;;  %v4861_v43 = vld [vmem:[#allocation3 + $0x207] sm:$0xff] }
 0x47a   : > { %4204 = vmatmul.bf16.gmra.mxu3 %v4166_v21  ;;  %v3838_v54 = vpop.f32.mrf.mxu3 }
 0x47b   : > { %v6313_v46 = vpop.permute.xlu0 %6312  ;;  %3842 = vst.msk [vmem:[%s9460_s28 + $0x8] sm:$0xff] %vm307_vm0, %v3838_v54 }
 0x47c   : > { %v6318_v20 = vpop.permute.xlu1 %6317  ;;  %v6315_v29 = vunpack.i.h.bf16 %v6313_v46  ;;  %v6314_v61 = vunpack.i.l.bf16 %v6313_v46  ;;  %v6521_v46 = vpack.i.bf16 %v4862_v63, %v4861_v43  ;;  %v6325_v63 = vunpack.i.h.bf16 %v9411_v35 }
 0x47d   : > { %v6320_v3 = vunpack.i.h.bf16 %v6318_v20  ;;  %v6319_v23 = vunpack.i.l.bf16 %v6318_v20 }
 0x47e   : > { %v4147_v21 = vsel %vm1540_vm4, %v4139_v58, %v6314_v61  ;;  %v4148_v20 = vsel %vm1540_vm4, %v4140_v28, %v6315_v29  ;;  %v6324_v29 = vunpack.i.l.bf16 %v9411_v35  ;;  %v4863_v58 = vld [vmem:[#allocation3 + $0x227] sm:$0xff]  ;;  %v4616_v35 = vsel %vm307_vm0, %v9080_v11, %v6325_v63 }
 0x47f   : > { %6527 = vrot.lane.b32.xlu1 %v6526_v56, %s6632_s21  ;;  %v4155_v44 = vsel %vm1549_vm5, %v4147_v21, %v6319_v23  ;;  %v4156_v53 = vsel %vm1549_vm5, %v4148_v20, %v6320_v3  ;;  %v9509_v61 = vpop.permute.xlu2 %6367  ;;  %v4871_v3 = vld [vmem:[#allocation3 + $0x228] sm:$0xff]  ;;  %v4872_v23 = vld [vmem:[#allocation3 + $0x230] sm:$0xff]  ;;  %v6339_v11 = vunpack.i.l.bf16 %v9455_v24 }
 0x480   : > { %6522 = vrot.lane.b32.xlu0 %v6521_v46, %s6631_s20  ;;  %v4167_v48 = vpack.c.bf16 %v4156_v53, %v4155_v44  ;;  %v4864_v56 = vld [vmem:[#allocation3 + $0x22f] sm:$0xff]  ;;  %v4615_v44 = vsel %vm307_vm0, %v9090_v33, %v6324_v29 }
 0x481   : > { %6547 = vrot.lane.b32.xlu2 %v6546_v41, %s6630_s19 }
 0x482   : > { %4233 = vmatmul.bf16.gmra.mxu2 %v4167_v48  ;;  %v6551_v48 = vpack.i.bf16 %v4864_v56, %v4863_v58 }
 0x487   : > { %6542 = vrot.lane.b32.xlu1 %v6521_v46, %s6632_s21  ;;  %v6556_v46 = vpack.i.bf16 %v4872_v23, %v4871_v3  ;;  %v6383_v33 = vpop.permute.xlu2 %6382 }
 0x488   : > { %6537 = vrot.lane.b32.xlu0 %v9442_v57, %s6631_s20 }
 0x489   : > { %v6333_v54 = vpop.permute.xlu1 %6332 }
 0x48a   : > { %v6328_v28 = vpop.permute.xlu0 %6327  ;;  %v6335_v41 = vunpack.i.h.bf16 %v6333_v54  ;;  %v6334_v43 = vunpack.i.l.bf16 %v6333_v54  ;;  %v6340_v54 = vunpack.i.h.bf16 %v9455_v24  ;;  %v4591_v24 = vsel %vm307_vm0, %v9031_v9, %v6339_v11 }
 0x48b   : > { %v6330_v21 = vunpack.i.h.bf16 %v6328_v28  ;;  %v6329_v20 = vunpack.i.l.bf16 %v6328_v28  ;;  %v10032_v28 = vpack.c.bf16 %v9149_v31, %v9137_v38  ;;  %v6355_v31 = vunpack.i.h.bf16 %v9490_v49 }
 0x48c   : > { %v4592_v58 = vsel %vm307_vm0, %v9038_v15, %v6340_v54  ;;  %v6354_v15 = vunpack.i.l.bf16 %v9490_v49 }
 0x48d   : > { %v4623_v53 = vsel %vm1540_vm4, %v4615_v44, %v6329_v20  ;;  %v4624_v57 = vsel %vm1540_vm4, %v4616_v35, %v6330_v21 }
 0x48e   : > { %v4631_v5 = vsel %vm1549_vm5, %v4623_v53, %v6334_v43  ;;  %v4632_v52 = vsel %vm1549_vm5, %v4624_v57, %v6335_v41  ;;  %v4618_v57 = vsel %vm307_vm0, %v9133_v51, %v6355_v31  ;;  %v10033_v51 = vpack.c.bf16 %v9210_v2, %v9196_v36 }
 0x48f   : > { %v4640_v16 = vpack.c.bf16 %v4632_v52, %v4631_v5  ;;  %6557 = vrot.lane.b32.xlu1 %v6556_v46, %s6632_s21  ;;  %v6398_v44 = vpop.permute.xlu2 %6397  ;;  %v6385_v31 = vunpack.i.h.bf16 %v6383_v33 }
 0x490   : > { %6552 = vrot.lane.b32.xlu0 %v6551_v48, %s6631_s20  ;;  %v4617_v48 = vsel %vm307_vm0, %v9127_v42, %v6354_v15  ;;  %v6384_v15 = vunpack.i.l.bf16 %v6383_v33 }
 0x491   : > { %4700 = vmatmul.bf16.vlgmr.msrb.gmra.mxu3 %v4640_v16  ;;  %v6348_v63 = vpop.permute.xlu1 %6347 }
 0x492   : > { %v6350_v29 = vunpack.i.h.bf16 %v6348_v63  ;;  %v6349_v3 = vunpack.i.l.bf16 %v6348_v63  ;;  %v6343_v23 = vpop.permute.xlu0 %6342  ;;  %5525 = vmatmul.msk.bf16.vlgmr.msrb.gmra.mxu2 %vm307_vm0, %v10032_v28 }
 0x493   : > { %v6345_v52 = vunpack.i.h.bf16 %v6343_v23  ;;  %v6344_v5 = vunpack.i.l.bf16 %v6343_v23  ;;  %v6369_v23 = vunpack.i.l.bf16 %v9509_v61 }
 0x495   : > { %v4599_v16 = vsel %vm1540_vm4, %v4591_v24, %v6344_v5  ;;  %v4600_v56 = vsel %vm1540_vm4, %v4592_v58, %v6345_v52  ;;  %v4593_v24 = vsel %vm307_vm0, %v9092_v7, %v6369_v23 }
 0x496   : > { %v9537_v41 = vsel %vm1549_vm5, %v4599_v16, %v6349_v3  ;;  %v9540_v43 = vsel %vm1549_vm5, %v4600_v56, %v6350_v29  ;;  %v6370_v3 = vunpack.i.h.bf16 %v9509_v61 }
 0x497   : > { %v4639_v38 = vpack.c.bf16 %v9540_v43, %v9537_v41  ;;  %v6413_v16 = vpop.permute.xlu2 %6412  ;;  %v6614_v41 = vld [vmem:[%s9912_s5 + $0x58] sm:$0xff]  ;;  %v6615_v43 = vld [vmem:[%s9912_s5 + $0x50] sm:$0xff] }
 0x498   : > { %v4594_v58 = vsel %vm307_vm0, %v9086_v13, %v6370_v3  ;;  %v4619_v13 = vsel %vm307_vm0, %v9186_v47, %v6384_v15 }
 0x499   : > { %v6363_v21 = vpop.permute.xlu1 %6362 }
 0x49a   : > { %v6365_v20 = vunpack.i.h.bf16 %v6363_v21  ;;  %v6364_v9 = vunpack.i.l.bf16 %v6363_v21  ;;  %v6358_v35 = vpop.permute.xlu0 %6357 }
 0x49b   : > { %v6360_v46 = vunpack.i.h.bf16 %v6358_v35  ;;  %v6359_v53 = vunpack.i.l.bf16 %v6358_v35 }
 0x49d   : > { %v4625_v54 = vsel %vm1540_vm4, %v4617_v48, %v6359_v53  ;;  %v4626_v11 = vsel %vm1540_vm4, %v4618_v57, %v6360_v46  ;;  %v4620_v46 = vsel %vm307_vm0, %v9192_v22, %v6385_v31 }
 0x49e   : > { %v4633_v63 = vsel %vm1549_vm5, %v4625_v54, %v6364_v9  ;;  %v4634_v49 = vsel %vm1549_vm5, %v4626_v11, %v6365_v20 }
 0x49f   : > { %v4643_v29 = vpack.c.bf16 %v4634_v49, %v4633_v63  ;;  %v6428_v11 = vpop.permute.xlu2 %6427  ;;  %v6400_v49 = vunpack.i.h.bf16 %v6398_v44 }
 0x4a1   : > { %4705 = vmatmul.bf16.gmra.mxu3 %v4643_v29  ;;  %v6378_v28 = vpop.permute.xlu1 %6377  ;;  %v6399_v29 = vunpack.i.l.bf16 %v6398_v44  ;;  %v4596_v44 = vsel %vm307_vm0, %v9135_v10, %v6400_v49  ;;  %v10036_v10 = vld [vmem:[#allocation5_spill] sm:$0xff] }
 0x4a2   : > { %v6373_v52 = vpop.permute.xlu0 %6372  ;;  %5526 = vmatmul.msk.bf16.gmra.mxu2 %vm307_vm0, %v10033_v51  ;;  %v6380_v7 = vunpack.i.h.bf16 %v6378_v28  ;;  %v6379_v53 = vunpack.i.l.bf16 %v6378_v28 }
 0x4a3   : > { %v6375_v42 = vunpack.i.h.bf16 %v6373_v52  ;;  %v6374_v5 = vunpack.i.l.bf16 %v6373_v52 }
 0x4a5   : > { %v4601_v56 = vsel %vm1540_vm4, %v4593_v24, %v6374_v5  ;;  %v4602_v61 = vsel %vm1540_vm4, %v4594_v58, %v6375_v42  ;;  %v10034_v42 = vld [vmem:[#allocation14_spill] sm:$0xff] }
 0x4a6   : > { %v9575_v22 = vsel %vm1549_vm5, %v4601_v56, %v6379_v53  ;;  %v9578_v47 = vsel %vm1549_vm5, %v4602_v61, %v6380_v7  ;;  %v4595_v5 = vsel %vm307_vm0, %v10034_v42, %v6399_v29  ;;  %v6415_v56 = vunpack.i.h.bf16 %v6413_v16  ;;  %v9615_v42 = vld [vmem:[%s9913_s6] ss:$0 sm:$0xff] }
 0x4a7   : > { %v4642_v28 = vpack.c.bf16 %v9578_v47, %v9575_v22  ;;  %v6414_v61 = vunpack.i.l.bf16 %v6413_v16  ;;  %v6443_v0 = vpop.permute.xlu2 %6442  ;;  %v4879_v22 = vld [vmem:[#allocation3 + $0x229] sm:$0xff]  ;;  %v4880_v47 = vld [vmem:[#allocation3 + $0x231] sm:$0xff] }
 0x4a9   : > { %v6393_v21 = vpop.permute.xlu1 %6392 }
 0x4aa   : > { %v6395_v20 = vunpack.i.h.bf16 %v6393_v21  ;;  %v6394_v36 = vunpack.i.l.bf16 %v6393_v21  ;;  %v6388_v2 = vpop.permute.xlu0 %6387 }
 0x4ab   : > { %v6390_v9 = vunpack.i.h.bf16 %v6388_v2  ;;  %v6389_v35 = vunpack.i.l.bf16 %v6388_v2 }
 0x4ad   : > { %v4627_v57 = vsel %vm1540_vm4, %v4619_v13, %v6389_v35  ;;  %v4628_v48 = vsel %vm1540_vm4, %v4620_v46, %v6390_v9  ;;  %v4621_v9 = vsel %vm307_vm0, %v10036_v10, %v6414_v61 }
 0x4ae   : > { %v4635_v33 = vsel %vm1549_vm5, %v4627_v57, %v6394_v36  ;;  %v4636_v54 = vsel %vm1549_vm5, %v4628_v48, %v6395_v20  ;;  %v10035_v36 = vld [vmem:[#allocation15_spill] sm:$0xff]  ;;  %v6430_v48 = vunpack.i.h.bf16 %v6428_v11 }
 0x4af   : > { %v4646_v63 = vpack.c.bf16 %v4636_v54, %v4635_v33  ;;  %v4622_v2 = vsel %vm307_vm0, %v10035_v36, %v6415_v56  ;;  %v6429_v33 = vunpack.i.l.bf16 %v6428_v11  ;;  %v4190_v54 = vpop.f32.mrf.mxu3  ;;  %v10039_v56 = vld [vmem:[#allocation13_spill] sm:$0xff] }
 0x4b1   : > { %4710 = vmatmul.bf16.gmra.mxu3 %v4646_v63  ;;  %v6408_v3 = vpop.permute.xlu1 %6407 }
 0x4b2   : > { %v6403_v23 = vpop.permute.xlu0 %6402  ;;  %5527 = vmatmul.msk.bf16.gmra.mxu2 %vm307_vm0, %v4647_v45  ;;  %v6410_v35 = vunpack.i.h.bf16 %v6408_v3  ;;  %v6409_v46 = vunpack.i.l.bf16 %v6408_v3 }
 0x4b3   : > { %v6405_v52 = vunpack.i.h.bf16 %v6403_v23  ;;  %v6404_v51 = vunpack.i.l.bf16 %v6403_v23  ;;  %v10037_v23 = vpack.c.bf16 %v9328_v1, %v9326_v62  ;;  %v4597_v62 = vsel %vm307_vm0, %v10039_v56, %v6429_v33 }
 0x4b5   : > { %v4603_v58 = vsel %vm1540_vm4, %v4595_v5, %v6404_v51  ;;  %v4604_v24 = vsel %vm1540_vm4, %v4596_v44, %v6405_v52  ;;  %v6458_v51 = vpop.permute.xlu2 %6457  ;;  %v4191_v5 = vadd.f32 %v9615_v42, %v4190_v54 }
 0x4b6   : > { %v9601_v49 = vsel %vm1549_vm5, %v4603_v58, %v6409_v46  ;;  %v9604_v29 = vsel %vm1549_vm5, %v4604_v24, %v6410_v35  ;;  %v10038_v58 = vld [vmem:[#allocation8_spill] sm:$0xff] }
 0x4b7   : > { %v4645_v52 = vpack.c.bf16 %v9604_v29, %v9601_v49  ;;  %v4598_v24 = vsel %vm307_vm0, %v10038_v58, %v6430_v48  ;;  %v10042_v58 = vpack.c.bf16 %v9373_v19, %v9371_v4 }
 0x4b9   : > { %v6423_v8 = vpop.permute.xlu1 %6422 }
 0x4ba   : > { %v6425_v45 = vunpack.i.h.bf16 %v6423_v8  ;;  %v6424_v31 = vunpack.i.l.bf16 %v6423_v8  ;;  %v6418_v15 = vpop.permute.xlu0 %6417 }
 0x4bb   : > { %v6420_v21 = vunpack.i.h.bf16 %v6418_v15  ;;  %v6419_v20 = vunpack.i.l.bf16 %v6418_v15  ;;  %v6445_v15 = vunpack.i.h.bf16 %v6443_v0 }
 0x4bd   : > { %v4629_v13 = vsel %vm1540_vm4, %v4621_v9, %v6419_v20  ;;  %v4630_v7 = vsel %vm1540_vm4, %v4622_v2, %v6420_v21  ;;  %v6444_v21 = vunpack.i.l.bf16 %v6443_v0 }
 0x4be   : > { %v4637_v16 = vsel %vm1549_vm5, %v4629_v13, %v6424_v31  ;;  %v4638_v53 = vsel %vm1549_vm5, %v4630_v7, %v6425_v45  ;;  %v4248_v31 = vpop.f32.mrf.mxu0  ;;  %v10040_v13 = vld [vmem:[#allocation6_spill] sm:$0xff] }
 0x4bf   : > { %v4649_v57 = vpack.c.bf16 %v4638_v53, %v4637_v16  ;;  %v5074_v7 = vsel %vm307_vm0, %v10040_v13, %v6445_v15  ;;  %v10041_v16 = vld [vmem:[#allocation7_spill] sm:$0xff] }
 0x4c0   : > { %v5073_v53 = vsel %vm307_vm0, %v10041_v16, %v6444_v21 }
 0x4c1   : > { %4715 = vmatmul.bf16.gmra.mxu3 %v4649_v57  ;;  %v6438_v63 = vpop.permute.xlu1 %6437  ;;  %v6473_v57 = vpop.permute.xlu2 %6472 }
 0x4c2   : > { %v6433_v3 = vpop.permute.xlu0 %6432  ;;  %5528 = vmatmul.msk.bf16.gmra.mxu2 %vm307_vm0, %v10037_v23  ;;  %v6440_v48 = vunpack.i.h.bf16 %v6438_v63  ;;  %v6439_v33 = vunpack.i.l.bf16 %v6438_v63 }
 0x4c3   : > { %v6435_v11 = vunpack.i.h.bf16 %v6433_v3  ;;  %v6434_v44 = vunpack.i.l.bf16 %v6433_v3 }
 0x4c5   : > { %v4605_v1 = vsel %vm1540_vm4, %v4597_v62, %v6434_v44  ;;  %v4606_v61 = vsel %vm1540_vm4, %v4598_v24, %v6435_v11  ;;  %v6460_v44 = vunpack.i.h.bf16 %v6458_v51 }
 0x4c6   : > { %v4219_v8 = vpop.f32.mrf.mxu2  ;;  %v9639_v63 = vsel %vm1549_vm5, %v4605_v1, %v6439_v33  ;;  %v9642_v56 = vsel %vm1549_vm5, %v4606_v61, %v6440_v48 }
 0x4c7   : > { %v4220_v45 = vadd.f32 %v4219_v8, %v4191_v5  ;;  %v6459_v5 = vunpack.i.l.bf16 %v6458_v51  ;;  %v9646_v51 = vpop.f32.mrf.mxu3  ;;  %v5098_v4 = vsel %vm307_vm0, %v9299_v12, %v6460_v44  ;;  %v6475_v12 = vunpack.i.h.bf16 %v6473_v57 }
 0x4c9   : > { %v9624_v20 = vadd.f32 %v4248_v31, %v4220_v45  ;;  %v6453_v36 = vpop.permute.xlu1 %6452  ;;  %v4648_v31 = vpack.c.bf16 %v9642_v56, %v9639_v63  ;;  %v5097_v19 = vsel %vm307_vm0, %v9305_v59, %v6459_v5 }
 0x4ca   : > { %v6455_v2 = vunpack.i.h.bf16 %v6453_v36  ;;  %v6454_v10 = vunpack.i.l.bf16 %v6453_v36  ;;  %v6448_v9 = vpop.permute.xlu0 %6447 }
 0x4cb   : > { %v6450_v35 = vunpack.i.h.bf16 %v6448_v9  ;;  %v6449_v46 = vunpack.i.l.bf16 %v6448_v9  ;;  %v6488_v9 = vpop.permute.xlu2 %6487  ;;  %vm4268_vm14 = vcmp.gt.f32.partialorder %v9624_v20, 0.0 }
 0x4cd   : > { %v5081_v54 = vsel %vm1540_vm4, %v5073_v53, %v6449_v46  ;;  %v5082_v0 = vsel %vm1540_vm4, %v5074_v7, %v6450_v35  ;;  %v6474_v46 = vunpack.i.l.bf16 %v6473_v57 }
 0x4ce   : > { %v5089_v3 = vsel %vm1549_vm5, %v5081_v54, %v6454_v10  ;;  %v5090_v23 = vsel %vm1549_vm5, %v5082_v0, %v6455_v2  ;;  %v9660_v10 = vpop.f32.mrf.mxu0  ;;  %v9666_v48 = vpop.f32.mrf.mxu2  ;;  %v5076_v0 = vsel %vm307_vm0, %v9303_v60, %v6475_v12  ;;  %v10043_v60 = vpack.c.bf16 %v9423_v40, %v9421_v6 }
 0x4cf   : > { %v5121_v11 = vpack.c.bf16 %v5090_v23, %v5089_v3  ;;  %v9664_v53 = vpop.f32.mrf.mxu3  ;;  %v5075_v3 = vsel %vm307_vm0, %v9311_v30, %v6474_v46 }
 0x4d1   : > { %5153 = vmatmul.bf16.vlgmr.msrb.gmra.mxu0 %v5121_v11  ;;  %5531 = vmatmul.msk.bf16.vlgmr.msra.gmra.mxu3 %vm307_vm0, %v10042_v58  ;;  %v6468_v24 = vpop.permute.xlu1 %6467 }
 0x4d2   : > { %v6470_v62 = vunpack.i.h.bf16 %v6468_v24  ;;  %v6469_v8 = vunpack.i.l.bf16 %v6468_v24  ;;  %v6463_v45 = vpop.permute.xlu0 %6462  ;;  %v6490_v24 = vunpack.i.h.bf16 %v6488_v9 }
 0x4d3   : > { %v6465_v15 = vunpack.i.h.bf16 %v6463_v45  ;;  %v6464_v21 = vunpack.i.l.bf16 %v6463_v45 }
 0x4d5   : > { %v5105_v1 = vsel %vm1540_vm4, %v5097_v19, %v6464_v21  ;;  %v5106_v61 = vsel %vm1540_vm4, %v5098_v4, %v6465_v15  ;;  %v5100_v19 = vsel %vm307_vm0, %v9367_v34, %v6490_v24 }
 0x4d6   : > { %v9655_v36 = vsel %vm1549_vm5, %v5105_v1, %v6469_v8  ;;  %v9658_v2 = vsel %vm1549_vm5, %v5106_v61, %v6470_v62  ;;  %v9676_v5 = vpop.f32.mrf.mxu0  ;;  %v6489_v62 = vunpack.i.l.bf16 %v6488_v9  ;;  %v6503_v8 = vpop.permute.xlu2 %6502 }
 0x4d7   : > { %v5122_v35 = vpack.c.bf16 %v9658_v2, %v9655_v36  ;;  %v9688_v61 = vpop.f32.mrf.mxu3  ;;  %v6505_v40 = vunpack.i.h.bf16 %v6503_v8  ;;  %v6504_v12 = vunpack.i.l.bf16 %v6503_v8 }
 0x4d8   : > { %v5099_v1 = vsel %vm307_vm0, %v9376_v25, %v6489_v62 }
 0x4d9   : > { %v6483_v13 = vpop.permute.xlu1 %6482  ;;  %v5078_v25 = vsel %vm307_vm0, %v9369_v26, %v6505_v40 }
 0x4da   : > { %v6485_v59 = vunpack.i.h.bf16 %v6483_v13  ;;  %v6484_v7 = vunpack.i.l.bf16 %v6483_v13  ;;  %v6478_v16 = vpop.permute.xlu0 %6477 }
 0x4db   : > { %v6480_v33 = vunpack.i.h.bf16 %v6478_v16  ;;  %v6479_v54 = vunpack.i.l.bf16 %v6478_v16 }
 0x4dd   : > { %v5083_v23 = vsel %vm1540_vm4, %v5075_v3, %v6479_v54  ;;  %v5084_v57 = vsel %vm1540_vm4, %v5076_v0, %v6480_v33  ;;  %v5077_v0 = vsel %vm307_vm0, %v9384_v32, %v6504_v12  ;;  %v10044_v32 = vpack.c.bf16 %v9482_v50, %v9480_v27 }
 0x4de   : > { %v5091_v11 = vsel %vm1549_vm5, %v5083_v23, %v6484_v7  ;;  %v5092_v44 = vsel %vm1549_vm5, %v5084_v57, %v6485_v59  ;;  %v9682_v15 = vpop.f32.mrf.mxu2  ;;  %v9692_v46 = vpop.f32.mrf.mxu0 }
 0x4df   : > { %v5124_v58 = vpack.c.bf16 %v5092_v44, %v5091_v11  ;;  %v6518_v33 = vpop.permute.xlu2 %6517 }
 0x4e1   : > { %5158 = vmatmul.bf16.gmra.mxu0 %v5124_v58  ;;  %5532 = vmatmul.msk.bf16.gmra.mxu3 %vm307_vm0, %v10043_v60  ;;  %v6498_v30 = vpop.permute.xlu1 %6497  ;;  %v6520_v60 = vunpack.i.h.bf16 %v6518_v33 }
 0x4e2   : > { %v6493_v45 = vpop.permute.xlu0 %6492  ;;  %v6500_v3 = vunpack.i.h.bf16 %v6498_v30  ;;  %v6499_v23 = vunpack.i.l.bf16 %v6498_v30 }
 0x4e3   : > { %v6495_v21 = vunpack.i.h.bf16 %v6493_v45  ;;  %v6494_v4 = vunpack.i.l.bf16 %v6493_v45  ;;  %v6519_v45 = vunpack.i.l.bf16 %v6518_v33 }
 0x4e5   : > { %v5107_v9 = vsel %vm1540_vm4, %v5099_v1, %v6494_v4  ;;  %v5108_v6 = vsel %vm1540_vm4, %v5100_v19, %v6495_v21  ;;  %v5101_v27 = vsel %vm307_vm0, %v9428_v55, %v6519_v45 }
 0x4e6   : > { %v4200_v57 = vpop.f32.mrf.mxu3  ;;  %v9698_v11 = vpop.f32.mrf.mxu2  ;;  %v9709_v21 = vsel %vm1549_vm5, %v5107_v9, %v6499_v23  ;;  %v9712_v4 = vsel %vm1549_vm5, %v5108_v6, %v6500_v3 }
 0x4e7   : > { %v4258_v26 = vpop.f32.mrf.mxu0  ;;  %v5125_v1 = vpack.c.bf16 %v9712_v4, %v9709_v21  ;;  %v6533_v50 = vpop.permute.xlu2 %6532 }
 0x4e8   : > { %v6534_v33 = vunpack.i.l.bf16 %v6533_v50 }
 0x4e9   : > { %v6513_v13 = vpop.permute.xlu1 %6512 }
 0x4ea   : > { %v6515_v59 = vunpack.i.h.bf16 %v6513_v13  ;;  %v6514_v7 = vunpack.i.l.bf16 %v6513_v13  ;;  %v6508_v16 = vpop.permute.xlu0 %6507  ;;  %v5102_v13 = vsel %vm307_vm0, %v9417_v14, %v6520_v60  ;;  %v5079_v55 = vsel %vm307_vm0, %v9434_v18, %v6534_v33 }
 0x4eb   : > { %v6510_v54 = vunpack.i.h.bf16 %v6508_v16  ;;  %v6509_v34 = vunpack.i.l.bf16 %v6508_v16  ;;  %v6535_v16 = vunpack.i.h.bf16 %v6533_v50 }
 0x4ed   : > { %v5085_v44 = vsel %vm1540_vm4, %v5077_v0, %v6509_v34  ;;  %v5086_v58 = vsel %vm1540_vm4, %v5078_v25, %v6510_v54  ;;  %v5080_v14 = vsel %vm307_vm0, %v9419_v37, %v6535_v16 }
 0x4ee   : > { %v5093_v24 = vsel %vm1549_vm5, %v5085_v44, %v6514_v7  ;;  %v5094_v62 = vsel %vm1549_vm5, %v5086_v58, %v6515_v59  ;;  %v4202_v6 = vpop.f32.mrf.mxu3 }
 0x4ef   : > { %v5127_v8 = vpack.c.bf16 %v5094_v62, %v5093_v24  ;;  %v4260_v3 = vpop.f32.mrf.mxu0  ;;  %v4203_v16 = vadd.f32 %v9615_v42, %v4202_v6  ;;  %v6548_v49 = vpop.permute.xlu2 %6547 }
 0x4f0   : > { %v6549_v63 = vunpack.i.l.bf16 %v6548_v49 }
 0x4f1   : > { %5163 = vmatmul.bf16.gmra.mxu0 %v5127_v8  ;;  %5533 = vmatmul.msk.bf16.gmra.mxu3 %vm307_vm0, %v10044_v32  ;;  %v6528_v30 = vpop.permute.xlu1 %6527 }
 0x4f2   : > { %v6523_v19 = vpop.permute.xlu0 %6522  ;;  %v6530_v58 = vunpack.i.h.bf16 %v6528_v30  ;;  %v6529_v24 = vunpack.i.l.bf16 %v6528_v30  ;;  %v5103_v21 = vsel %vm307_vm0, %v9484_v17, %v6549_v63 }
 0x4f3   : > { %v6525_v40 = vunpack.i.h.bf16 %v6523_v19  ;;  %v6524_v12 = vunpack.i.l.bf16 %v6523_v19 }
 0x4f5   : > { %v5109_v59 = vsel %vm1540_vm4, %v5101_v27, %v6524_v12  ;;  %v5110_v9 = vsel %vm1540_vm4, %v5102_v13, %v6525_v40  ;;  %v4229_v7 = vpop.f32.mrf.mxu2 }
 0x4f6   : > { %v9731_v12 = vsel %vm1549_vm5, %v5109_v59, %v6529_v24  ;;  %v9734_v37 = vsel %vm1549_vm5, %v5110_v9, %v6530_v58  ;;  %v4198_v9 = vadd.f32 %v9615_v42, %v9688_v61 }
 0x4f7   : > { %v5128_v18 = vpack.c.bf16 %v9734_v37, %v9731_v12  ;;  %v4263_v30 = vpop.f32.mrf.mxu0 }
 0x4f8   : > { %v4227_v58 = vadd.f32 %v9698_v11, %v4198_v9  ;;  %v6608_v9 = vld [vmem:[%s9912_s5 + $0x8] sm:$0xff] }
 0x4f9   : > { %v6543_v54 = vpop.permute.xlu1 %6542 }
 0x4fa   : > { %v6545_v34 = vunpack.i.h.bf16 %v6543_v54  ;;  %v6544_v25 = vunpack.i.l.bf16 %v6543_v54  ;;  %v6538_v0 = vpop.permute.xlu0 %6537  ;;  %v4201_v54 = vadd.f32 %v9615_v42, %v4200_v57  ;;  %v4193_v57 = vadd.f32 %v9615_v42, %v9646_v51 }
 0x4fb   : > { %v6540_v23 = vunpack.i.h.bf16 %v6538_v0  ;;  %v6539_v44 = vunpack.i.l.bf16 %v6538_v0 }
 0x4fc   : > { %v4230_v0 = vadd.f32 %v4229_v7, %v4201_v54  ;;  %v4222_v7 = vadd.f32 %v9666_v48, %v4193_v57  ;;  %v6604_v54 = vld [vmem:[%s9912_s5 + $0x28] sm:$0xff] }
 0x4fd   : > { %v5087_v62 = vsel %vm1540_vm4, %v5079_v55, %v6539_v44  ;;  %v5088_v8 = vsel %vm1540_vm4, %v5080_v14, %v6540_v23  ;;  %v4231_v60 = vpop.f32.mrf.mxu2  ;;  %v4205_v19 = vpop.f32.mrf.mxu3  ;;  %v4196_v55 = vadd.f32 %v9615_v42, %v9664_v53 }
 0x4fe   : > { %v5095_v45 = vsel %vm1549_vm5, %v5087_v62, %v6544_v25  ;;  %v5096_v32 = vsel %vm1549_vm5, %v5088_v8, %v6545_v34  ;;  %v4206_v27 = vadd.f32 %v9615_v42, %v4205_v19  ;;  %v4232_v34 = vadd.f32 %v4231_v60, %v4203_v16  ;;  %v6602_v16 = vld [vmem:[%s9912_s5 + $0x38] sm:$0xff] }
 0x4ff   : > { %v5130_v40 = vpack.c.bf16 %v5096_v32, %v5095_v45  ;;  %v4265_v14 = vpop.f32.mrf.mxu0  ;;  %v4225_v62 = vadd.f32 %v9682_v15, %v4196_v55  ;;  %v4259_v8 = vadd.f32 %v4258_v26, %v4230_v0  ;;  %v4256_v45 = vadd.f32 %v9692_v46, %v4227_v58  ;;  %v6609_v0 = vld [vmem:[%s9912_s5] sm:$0xff] }
 0x500   : > { %v4261_v6 = vadd.f32 %v4260_v3, %v4232_v34  ;;  %v4251_v51 = vadd.f32 %v9660_v10, %v4222_v7  ;;  %v6605_v34 = vld [vmem:[%s9912_s5 + $0x20] sm:$0xff] }
 0x501   : > { %5168 = vmatmul.bf16.gmra.mxu0 %v5130_v40  ;;  %v4254_v11 = vadd.f32 %v9676_v5, %v4225_v62  ;;  %v4280_v19 = vmul.f32 0.2, %v4259_v8  ;;  %vm4272_vm10 = vcmp.gt.f32.partialorder %v4259_v8, 0.0  ;;  %v4279_v26 = vmul.f32 0.2, %v4256_v45  ;;  %v6613_v55 = vld [vmem:[%s9912_s5 + $0x60] sm:$0xff]  ;;  %v6558_v2 = vpop.permute.xlu1 %6557 }
 0x502   : > { %v4281_v53 = vmul.f32 0.2, %v4261_v6  ;;  %vm4273_vm9 = vcmp.gt.f32.partialorder %v4261_v6, 0.0  ;;  %vm4271_vm11 = vcmp.gt.f32.partialorder %v4256_v45, 0.0  ;;  %vm4269_vm13 = vcmp.gt.f32.partialorder %v4251_v51, 0.0  ;;  %v6617_v58 = vld [vmem:[%s9912_s5 + $0x40] sm:$0xff]  ;;  %v6553_v29 = vpop.permute.xlu0 %6552 }
 0x503   : > { %v4288_v40 = vsel %vm4272_vm10, %v4259_v8, %v4280_v19  ;;  %v4278_v48 = vmul.f32 0.2, %v4254_v11  ;;  %vm4270_vm12 = vcmp.gt.f32.partialorder %v4254_v11, 0.0  ;;  %v4287_v46 = vsel %vm4271_vm11, %v4256_v45, %v4279_v26 }
 0x504   : > { %v4289_v15 = vsel %vm4273_vm9, %v4261_v6, %v4281_v53  ;;  %v4276_v5 = vmul.f32 0.2, %v9624_v20  ;;  %v6554_v36 = vunpack.i.l.bf16 %v6553_v29  ;;  %v6560_v4 = vunpack.i.h.bf16 %v6558_v2 }
 0x505   : > { %v4234_v13 = vpop.f32.mrf.mxu2  ;;  %v4207_v50 = vpop.f32.mrf.mxu3 }
 0x506   : > { %v4235_v33 = vadd.f32 %v4234_v13, %v4206_v27  ;;  %v4208_v59 = vadd.f32 %v9615_v42, %v4207_v50  ;;  %v4286_v13 = vsel %vm4270_vm12, %v4254_v11, %v4278_v48  ;;  %v4284_v10 = vsel %vm4268_vm14, %v9624_v20, %v4276_v5  ;;  %v9760_v50 = vld [vmem:[%s9914_s7] sm:$0xff]  ;;  %v9773_v20 = vld [vmem:[%s9914_s7 + $0x8] sm:$0xff] }
 0x507   : > { %v5111_v37 = vsel %vm1540_vm4, %v5103_v21, %v6554_v36 }
 0x508   : > { %v4264_v23 = vadd.f32 %v4263_v30, %v4235_v33  ;;  %v4277_v30 = vmul.f32 0.2, %v4251_v51  ;;  %v6603_v33 = vld [vmem:[%s9912_s5 + $0x30] sm:$0xff] }
 0x50a   : > { %v4282_v61 = vmul.f32 0.2, %v4264_v23  ;;  %vm4274_vm8 = vcmp.gt.f32.partialorder %v4264_v23, 0.0  ;;  %v4285_v27 = vsel %vm4269_vm13, %v4251_v51, %v4277_v30 }
 0x50c   : > { %v4290_v3 = vsel %vm4274_vm8, %v4264_v23, %v4282_v61  ;;  %v6610_v23 = vld [vmem:[%s9912_s5 + $0x78] sm:$0xff] }
 0x50d   : > { %v4236_v25 = vpop.f32.mrf.mxu2 }
 0x50e   : > { %v4237_v44 = vadd.f32 %v4236_v25, %v4208_v59  ;;  %v6606_v59 = vld [vmem:[%s9912_s5 + $0x18] sm:$0xff]  ;;  %v6607_v25 = vld [vmem:[%s9912_s5 + $0x10] sm:$0xff] }
 0x510   : > { %v4266_v24 = vadd.f32 %v4265_v14, %v4237_v44  ;;  %v6611_v44 = vld [vmem:[%s9912_s5 + $0x70] sm:$0xff]  ;;  %v6612_v14 = vld [vmem:[%s9912_s5 + $0x68] sm:$0xff] }
 0x512   : > { %v4283_v60 = vmul.f32 0.2, %v4266_v24  ;;  %vm4275_vm7 = vcmp.gt.f32.partialorder %v4266_v24, 0.0 }
 0x514   : > { %v4291_v32 = vsel %vm4275_vm7, %v4266_v24, %v4283_v60  ;;  %v4701_v56 = vpop.f32.mrf.mxu3 }
 0x515   : > { %4308 = vmatpush.msra.mxu1 %v4291_v32 }
 0x517   : > { %4309 = vmatpush.msra.mxu1 %v4290_v3 }
 0x519   : > { %4310 = vmatpush.msra.mxu1 %v4289_v15 }
 0x51b   : > { %4311 = vmatpush.msra.mxu1 %v4288_v40 }
 0x51c   : > { %v4703_v62 = vpop.f32.mrf.mxu3 }
 0x51d   : > { %4312 = vmatpush.msra.mxu1 %v4287_v46 }
 0x51f   : > { %4313 = vmatpush.msra.mxu1 %v4286_v13 }
 0x521   : > { %4314 = vmatpush.msra.mxu1 %v4285_v27 }
 0x523   : > { %4315 = vmatpush.msra.mxu1 %v4284_v10 }
 0x524   : > { %5523 = vmatmul.msk.f32.vlgmr.msra.gmra.mxu1 %vm1540_vm4, %v9760_v50  ;;  %v4706_v60 = vpop.f32.mrf.mxu3 }
 0x525   : > { %4663 = vmatpush.bf16.msrb.mxu1 %v6602_v16 }
 0x529   : > { %4664 = vmatpush.bf16.msrb.mxu1 %v6603_v33 }
 0x52c   : > { %5524 = vmatmul.msk.f32.gmra.mxu1 %vm1540_vm4, %v9773_v20  ;;  %v4708_v32 = vpop.f32.mrf.mxu3 }
 0x52d   : > { %4665 = vmatpush.bf16.msrb.mxu1 %v6604_v54 }
 0x531   : > { %4666 = vmatpush.bf16.msrb.mxu1 %v6605_v34 }
 0x534   : > { %v4711_v19 = vpop.f32.mrf.mxu3 }
 0x535   : > { %4667 = vmatpush.bf16.msrb.mxu1 %v6606_v59 }
 0x539   : > { %4668 = vmatpush.bf16.msrb.mxu1 %v6607_v25 }
 0x53c   : > { %v4713_v26 = vpop.f32.mrf.mxu3 }
 0x53d   : > { %4669 = vmatpush.bf16.msrb.mxu1 %v6608_v9 }
 0x541   : > { %4670 = vmatpush.bf16.msrb.mxu1 %v6609_v0 }
 0x544   : > { %4671 = vmatmul.bf16.vlgmr.msrb.gmra.mxu1 %v4639_v38  ;;  %v6616_v38 = vld [vmem:[%s9912_s5 + $0x48] sm:$0xff]  ;;  %v4716_v30 = vpop.f32.mrf.mxu3 }
 0x545   : > { %5174 = vmatpush.bf16.msra.mxu1 %v6610_v23 }
 0x549   : > { %5175 = vmatpush.bf16.msra.mxu1 %v6611_v44 }
 0x54c   : > { %v4718_v27 = vpop.f32.mrf.mxu3 }
 0x54d   : > { %5176 = vmatpush.bf16.msra.mxu1 %v6612_v14 }
 0x54e   : > { %v5154_v10 = vpop.f32.mrf.mxu0 }
 0x551   : > { %5177 = vmatpush.bf16.msra.mxu1 %v6613_v55 }
 0x554   : > { %4676 = vmatmul.bf16.gmra.mxu1 %v4642_v28  ;;  %v5132_v28 = vpack.c.bf16 %v4880_v47, %v4879_v22  ;;  %v5212_v59 = vpop.f32.mrf.mxu3 }
 0x555   : > { %5178 = vmatpush.bf16.msra.mxu1 %v6614_v41 }
 0x556   : > { %5534 = vmatmul.msk.bf16.gmra.mxu3 %vm307_vm0, %v5132_v28  ;;  %v9861_v0 = vpop.f32.mrf.mxu0 }
 0x559   : > { %5179 = vmatpush.bf16.msra.mxu1 %v6615_v43 }
 0x55c   : > { %v9868_v36 = vpop.f32.mrf.mxu3 }
 0x55d   : > { %5180 = vmatpush.bf16.msra.mxu1 %v6616_v38 }
 0x561   : > { %5181 = vmatpush.bf16.msra.mxu1 %v6617_v58 }
 0x564   : > { %4681 = vmatmul.bf16.gmra.mxu1 %v4645_v52  ;;  %v6550_v52 = vunpack.i.h.bf16 %v6548_v49 }
 0x574   : > { %4686 = vmatmul.bf16.gmra.mxu1 %v4648_v31  ;;  %v6555_v31 = vunpack.i.h.bf16 %v6553_v29  ;;  %v5155_v29 = vadd.f32 %v9615_v42, %v5154_v10 }
 0x584   : > { %5182 = vmatmul.bf16.vlgmr.msra.gmra.mxu1 %v5122_v35  ;;  %v5104_v35 = vsel %vm307_vm0, %v9478_v39, %v6550_v52  ;;  %v4730_v39 = vpop.f32.mrf.mxu2 }
 0x58c   : > { %v9853_v61 = vpop.f32.mrf.mxu2 }
 0x594   : > { %5187 = vmatmul.bf16.gmra.mxu1 %v5125_v1  ;;  %v6559_v1 = vunpack.i.l.bf16 %v6558_v2  ;;  %v4735_v3 = vpop.f32.mrf.mxu2 }
 0x596   : > { %v5119_v24 = vsel %vm1549_vm5, %v5111_v37, %v6559_v1  ;;  %v5159_v37 = vpop.f32.mrf.mxu0 }
 0x59c   : > { %v4737_v15 = vpop.f32.mrf.mxu2 }
 0x5a1   : > { %v4317_v6 = vpop.f32.mrf.mxu1 }
 0x5a2   : > { %4323 = vst.msk [vmem:[%s9460_s28 + $0x10] sm:$0xff] %vm307_vm0, %v4317_v6 }
 0x5a4   : > { %5192 = vmatmul.bf16.gmra.mxu1 %v5128_v18  ;;  %v5112_v18 = vsel %vm1540_vm4, %v5104_v35, %v6555_v31  ;;  %v4740_v48 = vpop.f32.mrf.mxu2 }
 0x5a5   : > { %v5120_v57 = vsel %vm1549_vm5, %v5112_v18, %v6560_v4 }
 0x5a6   : > { %v5131_v8 = vpack.c.bf16 %v5120_v57, %v5119_v24 }
 0x5a9   : > { %v4320_v12 = vpop.f32.mrf.mxu1 }
 0x5aa   : > { %4324 = vst.msk [vmem:[%s9460_s28 + $0x18] sm:$0xff] %vm307_vm0, %v4320_v12 }
 0x5ac   : > { %v4742_v13 = vpop.f32.mrf.mxu2 }
 0x5b4   : > { %5197 = vmatmul.bf16.gmra.mxu1 %v5131_v8  ;;  %v4745_v33 = vpop.f32.mrf.mxu2 }
 0x5bc   : > { %v4747_v22 = vpop.f32.mrf.mxu2 }
 0x5c1   : > { %v4672_v17 = vpop.f32.mrf.mxu1 }
 0x5c2   : > { %v4673_v7 = vadd.f32 %v9615_v42, %v4672_v17 }
 0x5c4   : > { %v4702_v45 = vadd.f32 %v4701_v56, %v4673_v7 }
 0x5c6   : > { %v9856_v53 = vadd.f32 %v4730_v39, %v4702_v45 }
 0x5c8   : > { %vm4750_vm8 = vcmp.gt.f32.partialorder %v9856_v53, 0.0 }
 0x5c9   : > { %v4674_v11 = vpop.f32.mrf.mxu1 }
 0x5ca   : > { %v4675_v47 = vadd.f32 %v9615_v42, %v4674_v11 }
 0x5cc   : > { %v4704_v2 = vadd.f32 %v4703_v62, %v4675_v47 }
 0x5ce   : > { %v4733_v39 = vadd.f32 %v9853_v61, %v4704_v2 }
 0x5d0   : > { %v4759_v11 = vmul.f32 0.2, %v4733_v39  ;;  %vm4751_vm7 = vcmp.gt.f32.partialorder %v4733_v39, 0.0 }
 0x5d1   : > { %v4677_v51 = vpop.f32.mrf.mxu1 }
 0x5d2   : > { %v4678_v41 = vadd.f32 %v9615_v42, %v4677_v51  ;;  %v4758_v51 = vmul.f32 0.2, %v9856_v53  ;;  %v4767_v61 = vsel %vm4751_vm7, %v4733_v39, %v4759_v11 }
 0x5d4   : > { %v4707_v52 = vadd.f32 %v4706_v60, %v4678_v41 }
 0x5d6   : > { %v4736_v18 = vadd.f32 %v4735_v3, %v4707_v52  ;;  %v5217_v3 = vpop.f32.mrf.mxu3 }
 0x5d8   : > { %v4760_v7 = vmul.f32 0.2, %v4736_v18  ;;  %vm4752_vm6 = vcmp.gt.f32.partialorder %v4736_v18, 0.0 }
 0x5d9   : > { %v4679_v40 = vpop.f32.mrf.mxu1 }
 0x5da   : > { %v4680_v44 = vadd.f32 %v9615_v42, %v4679_v40 }
 0x5dc   : > { %v4709_v28 = vadd.f32 %v4708_v32, %v4680_v44 }
 0x5de   : > { %v4738_v21 = vadd.f32 %v4737_v15, %v4709_v28  ;;  %v5161_v15 = vpop.f32.mrf.mxu0 }
 0x5df   : > { %v5162_v41 = vadd.f32 %v9615_v42, %v5161_v15 }
 0x5e0   : > { %v4761_v62 = vmul.f32 0.2, %v4738_v21  ;;  %vm4753_vm3 = vcmp.gt.f32.partialorder %v4738_v21, 0.0 }
 0x5e1   : > { %v4682_v46 = vpop.f32.mrf.mxu1 }
 0x5e2   : > { %v4683_v25 = vadd.f32 %v9615_v42, %v4682_v46  ;;  %v4769_v32 = vsel %vm4753_vm3, %v4738_v21, %v4761_v62 }
 0x5e4   : > { %v4712_v43 = vadd.f32 %v4711_v19, %v4683_v25  ;;  %v4768_v19 = vsel %vm4752_vm6, %v4736_v18, %v4760_v7 }
 0x5e6   : > { %v4741_v63 = vadd.f32 %v4740_v48, %v4712_v43  ;;  %v5219_v48 = vpop.f32.mrf.mxu3  ;;  %v5164_v46 = vpop.f32.mrf.mxu0 }
 0x5e8   : > { %v4762_v8 = vmul.f32 0.2, %v4741_v63  ;;  %vm4754_vm2 = vcmp.gt.f32.partialorder %v4741_v63, 0.0 }
 0x5e9   : > { %v4684_v5 = vpop.f32.mrf.mxu1 }
 0x5ea   : > { %v4685_v34 = vadd.f32 %v9615_v42, %v4684_v5  ;;  %v4770_v17 = vsel %vm4754_vm2, %v4741_v63, %v4762_v8 }
 0x5ec   : > { %v4714_v14 = vadd.f32 %v4713_v26, %v4685_v34  ;;  %v4766_v26 = vsel %vm4750_vm8, %v9856_v53, %v4758_v51 }
 0x5ee   : > { %v4743_v6 = vadd.f32 %v4742_v13, %v4714_v14  ;;  %v5222_v13 = vpop.f32.mrf.mxu3  ;;  %v5166_v5 = vpop.f32.mrf.mxu0 }
 0x5ef   : > { %v5167_v25 = vadd.f32 %v9615_v42, %v5166_v5 }
 0x5f0   : > { %v4763_v12 = vmul.f32 0.2, %v4743_v6  ;;  %vm4755_vm1 = vcmp.gt.f32.partialorder %v4743_v6, 0.0 }
 0x5f1   : > { %v4687_v16 = vpop.f32.mrf.mxu1 }
 0x5f2   : > { %v4688_v54 = vadd.f32 %v9615_v42, %v4687_v16  ;;  %v4771_v60 = vsel %vm4755_vm1, %v4743_v6, %v4763_v12 }
 0x5f4   : > { %v4717_v9 = vadd.f32 %v4716_v30, %v4688_v54 }
 0x5f6   : > { %v4746_v38 = vadd.f32 %v4745_v33, %v4717_v9  ;;  %v5224_v10 = vpop.f32.mrf.mxu3  ;;  %v5169_v33 = vpop.f32.mrf.mxu0 }
 0x5f7   : > { %v5170_v53 = vadd.f32 %v9615_v42, %v5169_v33 }
 0x5f8   : > { %v4764_v31 = vmul.f32 0.2, %v4746_v38  ;;  %vm4756_vm15 = vcmp.gt.f32.partialorder %v4746_v38, 0.0 }
 0x5f9   : > { %v4689_v23 = vpop.f32.mrf.mxu1 }
 0x5fa   : > { %v4690_v55 = vadd.f32 %v9615_v42, %v4689_v23  ;;  %v4772_v57 = vsel %vm4756_vm15, %v4746_v38, %v4764_v31  ;;  %v5165_v23 = vadd.f32 %v9615_v42, %v5164_v46 }
 0x5fc   : > { %v4719_v58 = vadd.f32 %v4718_v27, %v4690_v55 }
 0x5fe   : > { %v4748_v49 = vadd.f32 %v4747_v22, %v4719_v58  ;;  %v5227_v34 = vpop.f32.mrf.mxu3  ;;  %v5160_v22 = vadd.f32 %v9615_v42, %v5159_v37 }
 0x600   : > { %vm4757_vm5 = vcmp.gt.f32.partialorder %v4748_v49, 0.0  ;;  %v4765_v56 = vmul.f32 0.2, %v4748_v49 }
 0x601   : > { %v5183_v35 = vpop.f32.mrf.mxu1 }
 0x602   : > { %v5184_v4 = vadd.f32 %v5183_v35, %v5155_v29  ;;  %v4773_v1 = vsel %vm4757_vm5, %v4748_v49, %v4765_v56  ;;  %v5157_v29 = vadd.f32 %v9615_v42, %v9861_v0 }
 0x603   : > { %4790 = vmatpush.msra.mxu2 %v4773_v1 }
 0x604   : > { %v9870_v24 = vadd.f32 %v5212_v59, %v5184_v4  ;;  %v5171_v59 = vpop.f32.mrf.mxu0 }
 0x605   : > { %4791 = vmatpush.msra.mxu2 %v4772_v57  ;;  %v5172_v44 = vadd.f32 %v9615_v42, %v5171_v59 }
 0x606   : > { %v5229_v47 = vpop.f32.mrf.mxu3  ;;  %vm5232_vm15 = vcmp.gt.f32.partialorder %v9870_v24, 0.0 }
 0x607   : > { %4792 = vmatpush.msra.mxu2 %v4771_v60 }
 0x609   : > { %4793 = vmatpush.msra.mxu2 %v4770_v17  ;;  %v5185_v45 = vpop.f32.mrf.mxu1  ;;  %v5240_v17 = vmul.f32 0.2, %v9870_v24 }
 0x60a   : > { %v5186_v2 = vadd.f32 %v5185_v45, %v5157_v29 }
 0x60b   : > { %4794 = vmatpush.msra.mxu2 %v4769_v32  ;;  %v5248_v7 = vsel %vm5232_vm15, %v9870_v24, %v5240_v17 }
 0x60c   : > { %v5215_v18 = vadd.f32 %v9868_v36, %v5186_v2 }
 0x60d   : > { %4795 = vmatpush.msra.mxu2 %v4768_v19 }
 0x60e   : > { %v5241_v60 = vmul.f32 0.2, %v5215_v18  ;;  %vm5233_vm5 = vcmp.gt.f32.partialorder %v5215_v18, 0.0 }
 0x60f   : > { %4796 = vmatpush.msra.mxu2 %v4767_v61 }
 0x610   : > { %v5249_v36 = vsel %vm5233_vm5, %v5215_v18, %v5241_v60 }
 0x611   : > { %4797 = vmatpush.msra.mxu2 %v4766_v26  ;;  %v5188_v40 = vpop.f32.mrf.mxu1 }
 0x612   : > { %5529 = vmatmul.msk.f32.vlgmr.msra.gmra.mxu2 %vm1540_vm4, %v9760_v50  ;;  %v5189_v52 = vadd.f32 %v5188_v40, %v5160_v22 }
 0x614   : > { %v5218_v1 = vadd.f32 %v5217_v3, %v5189_v52 }
 0x616   : > { %v5242_v8 = vmul.f32 0.2, %v5218_v1  ;;  %vm5234_vm14 = vcmp.gt.f32.partialorder %v5218_v1, 0.0 }
 0x618   : > { %v5250_v62 = vsel %vm5234_vm14, %v5218_v1, %v5242_v8 }
 0x619   : > { %v5190_v30 = vpop.f32.mrf.mxu1 }
 0x61a   : > { %5530 = vmatmul.msk.f32.gmra.mxu2 %vm1540_vm4, %v9773_v20  ;;  %v5191_v28 = vadd.f32 %v5190_v30, %v5162_v41 }
 0x61c   : > { %v5220_v35 = vadd.f32 %v5219_v48, %v5191_v28 }
 0x61e   : > { %v5243_v0 = vmul.f32 0.2, %v5220_v35  ;;  %vm5235_vm13 = vcmp.gt.f32.partialorder %v5220_v35, 0.0 }
 0x620   : > { %v5251_v39 = vsel %vm5235_vm13, %v5220_v35, %v5243_v0 }
 0x621   : > { %v5193_v27 = vpop.f32.mrf.mxu1 }
 0x622   : > { %v5194_v43 = vadd.f32 %v5193_v27, %v5165_v23 }
 0x624   : > { %v5223_v63 = vadd.f32 %v5222_v13, %v5194_v43 }
 0x626   : > { %v5244_v37 = vmul.f32 0.2, %v5223_v63  ;;  %vm5236_vm12 = vcmp.gt.f32.partialorder %v5223_v63, 0.0 }
 0x628   : > { %v5252_v57 = vsel %vm5236_vm12, %v5223_v63, %v5244_v37 }
 0x629   : > { %v5195_v16 = vpop.f32.mrf.mxu1 }
 0x62a   : > { %v5196_v14 = vadd.f32 %v5195_v16, %v5167_v25 }
 0x62c   : > { %v5225_v6 = vadd.f32 %v5224_v10, %v5196_v14 }
 0x62e   : > { %v5245_v4 = vmul.f32 0.2, %v5225_v6  ;;  %vm5237_vm11 = vcmp.gt.f32.partialorder %v5225_v6, 0.0 }
 0x630   : > { %v5253_v42 = vsel %vm5237_vm11, %v5225_v6, %v5245_v4 }
 0x631   : > { %v5198_v54 = vpop.f32.mrf.mxu1 }
 0x632   : > { %v5199_v9 = vadd.f32 %v5198_v54, %v5170_v53 }
 0x634   : > { %v5228_v38 = vadd.f32 %v5227_v34, %v5199_v9 }
 0x636   : > { %v5246_v56 = vmul.f32 0.2, %v5228_v38  ;;  %vm5238_vm10 = vcmp.gt.f32.partialorder %v5228_v38, 0.0 }
 0x638   : > { %v5254_v12 = vsel %vm5238_vm10, %v5228_v38, %v5246_v56 }
 0x639   : > { %v5200_v55 = vpop.f32.mrf.mxu1 }
 0x63a   : > { %v5201_v58 = vadd.f32 %v5200_v55, %v5172_v44 }
 0x63c   : > { %v5230_v49 = vadd.f32 %v5229_v47, %v5201_v58 }
 0x63e   : > { %vm5239_vm9 = vcmp.gt.f32.partialorder %v5230_v49, 0.0  ;;  %v5247_v31 = vmul.f32 0.2, %v5230_v49 }
 0x640   : > { %v5255_v21 = vsel %vm5239_vm9, %v5230_v49, %v5247_v31 }
 0x641   : > { %5272 = vmatpush.msrb.mxu2 %v5255_v21 }
 0x643   : > { %5273 = vmatpush.msrb.mxu2 %v5254_v12 }
 0x645   : > { %5274 = vmatpush.msrb.mxu2 %v5253_v42 }
 0x647   : > { %5275 = vmatpush.msrb.mxu2 %v5252_v57 }
 0x649   : > { %5276 = vmatpush.msrb.mxu2 %v5251_v39 }
 0x64b   : > { %5277 = vmatpush.msrb.mxu2 %v5250_v62 }
 0x64d   : > { %5278 = vmatpush.msrb.mxu2 %v5249_v36 }
 0x64f   : > { %5279 = vmatpush.msrb.mxu2 %v5248_v7 }
 0x650   : > { %5535 = vmatmul.msk.f32.vlgmr.msrb.gmra.mxu2 %vm1540_vm4, %v9760_v50 }
 0x658   : > { %5536 = vmatmul.msk.f32.gmra.mxu2 %vm1540_vm4, %v9773_v20 }
 0x695   : > { %v4799_v45 = vpop.f32.mrf.mxu2 }
 0x696   : > { %4805 = vst.msk [vmem:[%s9460_s28 + $0x20] sm:$0xff] %vm307_vm0, %v4799_v45 }
 0x69d   : > { %v4802_v32 = vpop.f32.mrf.mxu2 }
 0x69e   : > { %4806 = vst.msk [vmem:[%s9460_s28 + $0x28] sm:$0xff] %vm307_vm0, %v4802_v32 }
 0x6d3   : > { %v5281_v11 = vpop.f32.mrf.mxu2 }
 0x6d4   : > { %5287 = vst.msk [vmem:[%s9460_s28 + $0x30] sm:$0xff] %vm307_vm0, %v5281_v11 }
 0x6db   : > { %v5284_v3 = vpop.f32.mrf.mxu2 }
 0x6dc   : > { %5288 = vst.msk [vmem:[%s9460_s28 + $0x38] sm:$0xff] %vm307_vm0, %v5284_v3 }
 0x6dd PF: > { %s18_s27 = sadd.s32 1, %s6624_s27  }
 0x6de   : > { %p15_p4 = scmp.ge.s32.totalorder %s18_s27, 4  }
 0x6e0   :  { %17 = sbr.rel (!%p15_p4) target bundleno = 1 (0x1), region = 104 }

</bundles_post_ra>
